<compile_context>
chip_gen: v7x
topology: tpu7x:2x2x1
jax: 0.10.0
libtpu: 0.0.40
codegen_flags: <defaults>
</compile_context>

<pallas_src>
import functools

import jax
import jax.numpy as jnp
from jax.experimental import pallas as pl
from jax.experimental.pallas import tpu as pltpu


# ------------------------------ Pallas kernels ------------------------------

def _matmul_bias_relu_kernel(a_ref, b_ref, bias_ref, o_ref):
    """[tm,K]@[K,N] + bias, ReLU.  bf16 inputs, f32 accumulation, bf16 out."""
    acc = jnp.dot(a_ref[...], b_ref[...], preferred_element_type=jnp.float32)
    o_ref[...] = jnp.maximum(acc + bias_ref[...], 0.0).astype(o_ref.dtype)


def _matmul_bn_relu_kernel(a_ref, b_ref, gamma_ref, beta_ref, o_ref, *, eps):
    """Conv matmul + BatchNorm2d (training-mode batch stats) + ReLU.

    NOTE: mean/var are computed over axis 0 of the WHOLE M (= N*H*W rows).
    This is only correct because M is not tiled for the BN layers; any future
    M-tiling must switch to an accumulate-then-finalize (sum / sum-of-squares)
    scheme.  Conv bias is intentionally omitted: with training-mode batch
    statistics it is exactly cancelled by the mean subtraction (this would NOT
    hold in eval mode with running stats).
    """
    acc = jnp.dot(a_ref[...], b_ref[...], preferred_element_type=jnp.float32)
    mean = jnp.mean(acc, axis=0, keepdims=True)
    var = jnp.mean((acc - mean) ** 2, axis=0, keepdims=True)
    x = (acc - mean) * jax.lax.rsqrt(var + eps)
    x = x * gamma_ref[...] + beta_ref[...]
    o_ref[...] = jnp.maximum(x, 0.0).astype(o_ref.dtype)


def _conv4_mlp_kernel(a_ref, act_ref, cw4_ref, cb4_ref, w0f_ref, w0a_ref,
                      b0_ref, w1_ref, b1_ref, w2_ref, b2_ref, o_ref):
    """conv4 (im2col matmul + bias + ReLU) fused with the 3-layer MLP head.

    a_ref rows are position-major: row p*Nb + n  ==  feature(n, i, j, :) with
    p = i*Wo + j.  The first Linear is computed as
        h0[n] = sum_p feat[p,n] @ w0f[p]  +  action[n] @ w0a  +  b0
    (w0f already carries the NCHW-flatten column permutation), so no in-kernel
    flatten/concat is needed and all dots stay 2-D.
    """
    nb = o_ref.shape[0]
    npos = w0f_ref.shape[0]

    feat = jnp.dot(a_ref[...], cw4_ref[...], preferred_element_type=jnp.float32)
    feat = jnp.maximum(feat + cb4_ref[...], 0.0).astype(jnp.bfloat16)

    h0 = jnp.dot(act_ref[...], w0a_ref[...], preferred_element_type=jnp.float32)
    for p in range(npos):                              # static unroll (9 dots)
        h0 = h0 + jnp.dot(feat[p * nb:(p + 1) * nb, :], w0f_ref[p],
                          preferred_element_type=jnp.float32)
    h0 = jnp.maximum(h0 + b0_ref[...], 0.0).astype(jnp.bfloat16)

    h1 = jnp.dot(h0, w1_ref[...], preferred_element_type=jnp.float32)
    h1 = jnp.maximum(h1 + b1_ref[...], 0.0).astype(jnp.bfloat16)

    h2 = jnp.dot(h1, w2_ref[...], preferred_element_type=jnp.float32)
    o_ref[...] = (h2 + b2_ref[...]).astype(o_ref.dtype)


# ------------------------------ kernel wrappers ------------------------------

def matmul_bias_relu(a, b, bias, out_dtype=jnp.bfloat16):
    """a:[M,K](bf16) @ b:[K,N](bf16) + bias[N], ReLU.

    M is split into at most 2 blocks: one per TensorCore on v7x, and only one
    extra (cheap) pipeline step on single-TC v5e/v6e — per perf review.
    """
    M, K = a.shape
    K2, N = b.shape
    assert K == K2
    if M >= 256 and M % 16 == 0 and (M // 2) % 8 == 0:
        tm = M // 2
    else:
        tm = M
    cost = pl.CostEstimate(
        flops=2 * M * K * N, transcendentals=0,
        bytes_accessed=2 * (M * K + K * N + M * N) + 4 * N)
    return pl.pallas_call(
        _matmul_bias_relu_kernel,
        out_shape=jax.ShapeDtypeStruct((M, N), out_dtype),
        grid=(M // tm,),
        in_specs=[
            pl.BlockSpec((tm, K), lambda i: (i, 0)),
            pl.BlockSpec((K, N), lambda i: (0, 0)),
            pl.BlockSpec((1, N), lambda i: (0, 0)),
        ],
        out_specs=pl.BlockSpec((tm, N), lambda i: (i, 0)),
        compiler_params=pltpu.CompilerParams(
            dimension_semantics=("parallel",)),
        cost_estimate=cost,
    )(a, b, bias.reshape(1, N))


def matmul_bn_relu(a, b, gamma, beta, eps=1e-5, out_dtype=jnp.bfloat16):
    """Conv matmul + BatchNorm + ReLU.  Whole-M single block (stats need it)."""
    M, K = a.shape
    K2, N = b.shape
    assert K == K2
    cost = pl.CostEstimate(
        flops=2 * M * K * N + 8 * M * N, transcendentals=N,
        bytes_accessed=2 * (M * K + K * N + M * N) + 8 * N)
    return pl.pallas_call(
        functools.partial(_matmul_bn_relu_kernel, eps=eps),
        out_shape=jax.ShapeDtypeStruct((M, N), out_dtype),
        grid=(1,),
        in_specs=[
            pl.BlockSpec((M, K), lambda i: (0, 0)),
            pl.BlockSpec((K, N), lambda i: (0, 0)),
            pl.BlockSpec((1, N), lambda i: (0, 0)),
            pl.BlockSpec((1, N), lambda i: (0, 0)),
        ],
        out_specs=pl.BlockSpec((M, N), lambda i: (0, 0)),
        cost_estimate=cost,
    )(a, b, gamma.reshape(1, N), beta.reshape(1, N))


def conv4_mlp(a4, action, cw4, cb4, w0f, w0a, b0, w1, b1, w2, b2):
    """Fused conv4 + MLP head.  a4:[P*Nb, K4] bf16 (position-major rows)."""
    M, K = a4.shape
    nb, asz = action.shape
    N = cw4.shape[1]
    P, _, H = w0f.shape
    H1 = w1.shape[1]
    A = w2.shape[1]
    flops = 2 * (M * K * N + nb * (P * N * H + asz * H + H * H1 + H1 * A))
    bytes_acc = (2 * (M * K + K * N + P * N * H + asz * H + H * H1 + H1 * A
                      + nb * asz)
                 + 4 * (N + H + H1 + A + nb * A))
    cost = pl.CostEstimate(flops=flops, transcendentals=0,
                           bytes_accessed=bytes_acc)
    return pl.pallas_call(
        _conv4_mlp_kernel,
        out_shape=jax.ShapeDtypeStruct((nb, A), jnp.float32),
        grid=(1,),
        in_specs=[
            pl.BlockSpec((M, K), lambda i: (0, 0)),
            pl.BlockSpec((nb, asz), lambda i: (0, 0)),
            pl.BlockSpec((K, N), lambda i: (0, 0)),
            pl.BlockSpec((1, N), lambda i: (0, 0)),
            pl.BlockSpec((P, N, H), lambda i: (0, 0, 0)),
            pl.BlockSpec((asz, H), lambda i: (0, 0)),
            pl.BlockSpec((1, H), lambda i: (0, 0)),
            pl.BlockSpec((H, H1), lambda i: (0, 0)),
            pl.BlockSpec((1, H1), lambda i: (0, 0)),
            pl.BlockSpec((H1, A), lambda i: (0, 0)),
            pl.BlockSpec((1, A), lambda i: (0, 0)),
        ],
        out_specs=pl.BlockSpec((nb, A), lambda i: (0, 0)),
        cost_estimate=cost,
    )(a4, action, cw4, cb4.reshape(1, N), w0f, w0a, b0.reshape(1, H),
      w1, b1.reshape(1, H1), w2, b2.reshape(1, A))


# ------------------------------ conv glue (im2col, NHWC) ---------------------

def im2col_nhwc(x, k=4, stride=2, pad=1, pos_major=False):
    """x:[N,H,W,C] -> ([rows, k*k*C], Ho, Wo).  K order = (kh, kw, c).

    Default row order is (n, i, j) (NHWC flat).  pos_major=True orders rows
    (i, j, n) so a per-spatial-position slice of the conv output is contiguous
    (used by the fused conv4+MLP kernel).
    """
    n, h, w, c = x.shape
    xp = jnp.pad(x, ((0, 0), (pad, pad), (pad, pad), (0, 0)))
    ho = (h + 2 * pad - k) // stride + 1
    wo = (w + 2 * pad - k) // stride + 1
    cols = []
    for i in range(k):
        for j in range(k):
            cols.append(xp[:, i:i + stride * ho:stride,
                           j:j + stride * wo:stride, :])
    patches = jnp.concatenate(cols, axis=-1)        # [N, Ho, Wo, k*k*C]
    if pos_major:
        patches = patches.transpose(1, 2, 0, 3)     # [Ho, Wo, N, k*k*C]
        return patches.reshape(ho * wo * n, k * k * c), ho, wo
    return patches.reshape(n * ho * wo, k * k * c), ho, wo


# ------------------------------ Critic forward -------------------------------

def critic_forward(pp, state, action):
    """pp: prepared (kernel-layout, bf16) params.  state: NCHW f32."""
    n = state.shape[0]
    # one-time layout change to NHWC; everything downstream stays NHWC.
    x = state.transpose(0, 2, 3, 1).astype(jnp.bfloat16)

    a, ho, wo = im2col_nhwc(x)                                  # 9  -> 32
    x = matmul_bias_relu(a, pp["cw1"], pp["cb1"]).reshape(n, ho, wo, 32)

    a, ho, wo = im2col_nhwc(x)                                  # 32 -> 64 (+BN)
    x = matmul_bn_relu(a, pp["cw2"], pp["g2"], pp["be2"]).reshape(n, ho, wo, 64)

    a, ho, wo = im2col_nhwc(x)                                  # 64 -> 128 (+BN)
    x = matmul_bn_relu(a, pp["cw3"], pp["g3"], pp["be3"]).reshape(n, ho, wo, 128)

    a4, ho, wo = im2col_nhwc(x, pos_major=True)                 # 128 -> 256 + MLP
    return conv4_mlp(a4, action.astype(jnp.bfloat16),
                     pp["cw4"], pp["cb4"], pp["w0f"], pp["w0a"], pp["b0"],
                     pp["w1"], pp["b1"], pp["w2"], pp["b2"])


# ------------------------------ parameter init & prep ------------------------

def init_params(key, action_size, hidden=256, hidden1=256, w_init=0.003):
    """Parameters in PyTorch layout (conv [Co,Ci,kh,kw], linear [out,in])."""
    keys = jax.random.split(key, 16)

    def u(k, shape, bound):
        return jax.random.uniform(k, shape, jnp.float32, -bound, bound)

    p = {}
    ki = 0
    for idx, (co, ci) in enumerate([(32, 9), (64, 32), (128, 64), (256, 128)], 1):
        bound = 1.0 / (ci * 16) ** 0.5
        p[f"w{idx}"] = u(keys[ki], (co, ci, 4, 4), bound); ki += 1
        p[f"b{idx}"] = u(keys[ki], (co,), bound); ki += 1
    # BatchNorm2d defaults: weight=1, bias=0
    p["g2"] = jnp.ones((64,), jnp.float32); p["be2"] = jnp.zeros((64,), jnp.float32)
    p["g3"] = jnp.ones((128,), jnp.float32); p["be3"] = jnp.zeros((128,), jnp.float32)

    in0 = 256 * 3 * 3 + action_size
    b0 = 1.0 / in0 ** 0.5
    p["lw0"] = u(keys[ki], (hidden, in0), b0); ki += 1
    p["lb0"] = u(keys[ki], (hidden,), b0); ki += 1
    b1 = 1.0 / hidden ** 0.5
    p["lw1"] = u(keys[ki], (hidden1, hidden), b1); ki += 1
    p["lb1"] = u(keys[ki], (hidden1,), b1); ki += 1
    p["lw2"] = u(keys[ki], (action_size, hidden1), w_init); ki += 1
    p["lb2"] = u(keys[ki], (action_size,), w_init); ki += 1
    return p


def prepare_params(p):
    """One-time conversion to kernel layout:
      * NHWC im2col weight matrices (bf16), K order (kh, kw, ci).
      * lw0 split into per-spatial-position blocks w0f[p][c,h] = lw0[h, c*9+p]
        (NCHW-flatten semantics preserved exactly) and w0a = action columns.
      * Linear weights pre-transposed bf16.
      * Conv biases for the BN'd layers (b2,b3) dropped (cancelled by
        training-mode BN)."""
    pp = {}
    for idx in (1, 2, 3, 4):
        w = p[f"w{idx}"]                              # [Co, Ci, kh, kw]
        co = w.shape[0]
        pp[f"cw{idx}"] = (w.transpose(2, 3, 1, 0)     # (kh, kw, ci, co)
                          .reshape(-1, co).astype(jnp.bfloat16))
    pp["cb1"] = p["b1"]
    pp["cb4"] = p["b4"]
    pp["g2"], pp["be2"] = p["g2"], p["be2"]
    pp["g3"], pp["be3"] = p["g3"], p["be3"]

    C, Hs, Ws = 256, 3, 3
    nfeat = C * Hs * Ws                               # 2304
    hidden = p["lw0"].shape[0]
    lw0_feat = p["lw0"][:, :nfeat]                    # [hidden, c*9+p]
    # [hidden, C, 9] -> [p, c, hidden]
    pp["w0f"] = (lw0_feat.reshape(hidden, C, Hs * Ws)
                 .transpose(2, 1, 0).astype(jnp.bfloat16))
    pp["w0a"] = p["lw0"][:, nfeat:].T.astype(jnp.bfloat16)   # [action, hidden]
    pp["b0"] = p["lb0"]
    pp["w1"] = p["lw1"].T.astype(jnp.bfloat16)        # [hidden, hidden1]
    pp["b1"] = p["lb1"]
    pp["w2"] = p["lw2"].T.astype(jnp.bfloat16)        # [hidden1, action]
    pp["b2"] = p["lb2"]
    return pp


# ------------------------------ main ------------------------------

if __name__ == "__main__":
    key = jax.random.PRNGKey(0)
    k_param, k_state, k_action = jax.random.split(key, 3)

    batch, action_size = 2, 4
    # The CNN flattens to 256*3*3, which implies 48x48 spatial input (NCHW, 9 ch).
    state = jax.random.normal(k_state, (batch, 9, 48, 48), jnp.float32)
    action = jax.random.normal(k_action, (batch, action_size), jnp.float32)

    params = init_params(k_param, action_size)
    prepped = prepare_params(params)

    fwd = jax.jit(critic_forward)
    out = fwd(prepped, state, action)
    jax.block_until_ready(out)
    assert out.shape == (batch, action_size)
    assert out.dtype == jnp.float32
    print("KERNEL_OK")
</pallas_src>

<mosaic_0001>
module attributes {stable_mosaic.version = 11 : i64} {
  func.func @_matmul_bias_relu_kernel(%arg0: i32, %arg1: memref<576x144xbf16, #tpu.memory_space<vmem>>, %arg2: memref<144x32xbf16, #tpu.memory_space<vmem>>, %arg3: memref<1x32xf32, #tpu.memory_space<vmem>>, %arg4: memref<576x32xbf16, #tpu.memory_space<vmem>>) attributes {dimension_semantics = [#tpu.dimension_semantics<parallel>], iteration_bounds = array<i64: 2>, scalar_prefetch = 0 : i64, scratch_operands = 0 : i64, tpu.core_type = #tpu.core_type<tc>, window_params = [{transform_indices = @transform_0, window_bounds = array<i64: 576, 144>}, {pipeline_mode = #tpu.pipeline_mode<synchronous>, transform_indices = @transform_1, window_bounds = array<i64: 144, 32>}, {pipeline_mode = #tpu.pipeline_mode<synchronous>, transform_indices = @transform_2, window_bounds = array<i64: 1, 32>}, {transform_indices = @transform_3, window_bounds = array<i64: 576, 32>}]} {
    %c0 = arith.constant 0 : index
    %c0_0 = arith.constant 0 : index
    %0 = vector.load %arg1[%c0, %c0_0] : memref<576x144xbf16, #tpu.memory_space<vmem>>, vector<576x144xbf16>
    %c0_1 = arith.constant 0 : index
    %c0_2 = arith.constant 0 : index
    %1 = vector.load %arg2[%c0_1, %c0_2] : memref<144x32xbf16, #tpu.memory_space<vmem>>, vector<144x32xbf16>
    %cst = arith.constant dense<0.000000e+00> : vector<576x32xf32>
    %2 = tpu.matmul %0, %1, %cst {dimension_numbers = #tpu.dot_dimension_numbers<[1], [0], [0], [1], [0, 0, 1, 1], [], []>} : vector<576x144xbf16>, vector<144x32xbf16>, vector<576x32xf32> -> vector<576x32xf32>
    %c0_3 = arith.constant 0 : index
    %c0_4 = arith.constant 0 : index
    %3 = vector.load %arg3[%c0_3, %c0_4] : memref<1x32xf32, #tpu.memory_space<vmem>>, vector<1x32xf32>
    %4 = vector.broadcast %3 : vector<1x32xf32> to vector<576x32xf32>
    %5 = arith.addf %2, %4 : vector<576x32xf32>
    %cst_5 = arith.constant 0.000000e+00 : f32
    %6 = vector.broadcast %cst_5 : f32 to vector<576x32xf32>
    %7 = arith.maximumf %5, %6 : vector<576x32xf32>
    %8 = arith.truncf %7 : vector<576x32xf32> to vector<576x32xbf16>
    %c0_6 = arith.constant 0 : index
    %c0_7 = arith.constant 0 : index
    %9 = vector.load %arg4[%c0_6, %c0_7] : memref<576x32xbf16, #tpu.memory_space<vmem>>, vector<576x32xbf16>
    tpu.vector_store %arg4[%c0_6, %c0_7], %8 {strides = array<i32>} : memref<576x32xbf16, #tpu.memory_space<vmem>>, vector<576x32xbf16>,
    return
  }
  func.func @transform_0(%arg0: i32) -> (i32, i32) {
    %c0_i32 = arith.constant 0 : i32
    %c0_i32_0 = arith.constant 0 : i32
    return %arg0, %c0_i32 : i32, i32
  }
  func.func @transform_1(%arg0: i32) -> (i32, i32) {
    %c0_i32 = arith.constant 0 : i32
    %c0_i32_0 = arith.constant 0 : i32
    %c0_i32_1 = arith.constant 0 : i32
    return %c0_i32, %c0_i32_0 : i32, i32
  }
  func.func @transform_2(%arg0: i32) -> (i32, i32) {
    %c0_i32 = arith.constant 0 : i32
    %c0_i32_0 = arith.constant 0 : i32
    %c0_i32_1 = arith.constant 0 : i32
    return %c0_i32, %c0_i32_0 : i32, i32
  }
  func.func @transform_3(%arg0: i32) -> (i32, i32) {
    %c0_i32 = arith.constant 0 : i32
    %c0_i32_0 = arith.constant 0 : i32
    return %arg0, %c0_i32 : i32, i32
  }
}

module attributes {stable_mosaic.version = 11 : i64} {
  func.func @_matmul_bn_relu_kernel(%arg0: i32, %arg1: memref<288x512xbf16, #tpu.memory_space<vmem>>, %arg2: memref<512x64xbf16, #tpu.memory_space<vmem>>, %arg3: memref<1x64xf32, #tpu.memory_space<vmem>>, %arg4: memref<1x64xf32, #tpu.memory_space<vmem>>, %arg5: memref<288x64xbf16, #tpu.memory_space<vmem>>) attributes {dimension_semantics = [#tpu.dimension_semantics<arbitrary>], iteration_bounds = array<i64: 1>, scalar_prefetch = 0 : i64, scratch_operands = 0 : i64, tpu.core_type = #tpu.core_type<tc>, window_params = [{pipeline_mode = #tpu.pipeline_mode<synchronous>, transform_indices = @transform_0, window_bounds = array<i64: 288, 512>}, {pipeline_mode = #tpu.pipeline_mode<synchronous>, transform_indices = @transform_1, window_bounds = array<i64: 512, 64>}, {pipeline_mode = #tpu.pipeline_mode<synchronous>, transform_indices = @transform_2, window_bounds = array<i64: 1, 64>}, {pipeline_mode = #tpu.pipeline_mode<synchronous>, transform_indices = @transform_3, window_bounds = array<i64: 1, 64>}, {pipeline_mode = #tpu.pipeline_mode<synchronous>, transform_indices = @transform_4, window_bounds = array<i64: 288, 64>}]} {
    %c0 = arith.constant 0 : index
    %c0_0 = arith.constant 0 : index
    %0 = vector.load %arg1[%c0, %c0_0] : memref<288x512xbf16, #tpu.memory_space<vmem>>, vector<288x512xbf16>
    %c0_1 = arith.constant 0 : index
    %c0_2 = arith.constant 0 : index
    %1 = vector.load %arg2[%c0_1, %c0_2] : memref<512x64xbf16, #tpu.memory_space<vmem>>, vector<512x64xbf16>
    %cst = arith.constant dense<0.000000e+00> : vector<288x64xf32>
    %2 = tpu.matmul %0, %1, %cst {dimension_numbers = #tpu.dot_dimension_numbers<[1], [0], [0], [1], [0, 0, 1, 1], [], []>} : vector<288x512xbf16>, vector<512x64xbf16>, vector<288x64xf32> -> vector<288x64xf32>
    %cst_3 = arith.constant dense<0.000000e+00> : vector<64xf32>
    %3 = vector.multi_reduction <add>, %2, %cst_3 [0] : vector<288x64xf32> to vector<64xf32>
    %4 = vector.shape_cast %3 : vector<64xf32> to vector<1x64xf32>
    %cst_4 = arith.constant 2.880000e+02 : f32
    %5 = vector.broadcast %cst_4 : f32 to vector<1x64xf32>
    %6 = arith.divf %4, %5 : vector<1x64xf32>
    %7 = vector.broadcast %6 : vector<1x64xf32> to vector<288x64xf32>
    %8 = arith.subf %2, %7 : vector<288x64xf32>
    %9 = arith.mulf %8, %8 : vector<288x64xf32>
    %cst_5 = arith.constant dense<0.000000e+00> : vector<64xf32>
    %10 = vector.multi_reduction <add>, %9, %cst_5 [0] : vector<288x64xf32> to vector<64xf32>
    %11 = vector.shape_cast %10 : vector<64xf32> to vector<1x64xf32>
    %cst_6 = arith.constant 2.880000e+02 : f32
    %12 = vector.broadcast %cst_6 : f32 to vector<1x64xf32>
    %13 = arith.divf %11, %12 : vector<1x64xf32>
    %14 = vector.broadcast %6 : vector<1x64xf32> to vector<288x64xf32>
    %15 = arith.subf %2, %14 : vector<288x64xf32>
    %cst_7 = arith.constant 9.99999974E-6 : f32
    %16 = vector.broadcast %cst_7 : f32 to vector<1x64xf32>
    %17 = arith.addf %13, %16 : vector<1x64xf32>
    %18 = math.rsqrt %17 : vector<1x64xf32>
    %19 = vector.broadcast %18 : vector<1x64xf32> to vector<288x64xf32>
    %20 = arith.mulf %15, %19 : vector<288x64xf32>
    %c0_8 = arith.constant 0 : index
    %c0_9 = arith.constant 0 : index
    %21 = vector.load %arg3[%c0_8, %c0_9] : memref<1x64xf32, #tpu.memory_space<vmem>>, vector<1x64xf32>
    %22 = vector.broadcast %21 : vector<1x64xf32> to vector<288x64xf32>
    %23 = arith.mulf %20, %22 : vector<288x64xf32>
    %c0_10 = arith.constant 0 : index
    %c0_11 = arith.constant 0 : index
    %24 = vector.load %arg4[%c0_10, %c0_11] : memref<1x64xf32, #tpu.memory_space<vmem>>, vector<1x64xf32>
    %25 = vector.broadcast %24 : vector<1x64xf32> to vector<288x64xf32>
    %26 = arith.addf %23, %25 : vector<288x64xf32>
    %cst_12 = arith.constant 0.000000e+00 : f32
    %27 = vector.broadcast %cst_12 : f32 to vector<288x64xf32>
    %28 = arith.maximumf %26, %27 : vector<288x64xf32>
    %29 = arith.truncf %28 : vector<288x64xf32> to vector<288x64xbf16>
    %c0_13 = arith.constant 0 : index
    %c0_14 = arith.constant 0 : index
    %30 = vector.load %arg5[%c0_13, %c0_14] : memref<288x64xbf16, #tpu.memory_space<vmem>>, vector<288x64xbf16>
    tpu.vector_store %arg5[%c0_13, %c0_14], %29 {strides = array<i32>} : memref<288x64xbf16, #tpu.memory_space<vmem>>, vector<288x64xbf16>,
    return
  }
  func.func @transform_0(%arg0: i32) -> (i32, i32) {
    %c0_i32 = arith.constant 0 : i32
    %c0_i32_0 = arith.constant 0 : i32
    %c0_i32_1 = arith.constant 0 : i32
    return %c0_i32, %c0_i32_0 : i32, i32
  }
  func.func @transform_1(%arg0: i32) -> (i32, i32) {
    %c0_i32 = arith.constant 0 : i32
    %c0_i32_0 = arith.constant 0 : i32
    %c0_i32_1 = arith.constant 0 : i32
    return %c0_i32, %c0_i32_0 : i32, i32
  }
  func.func @transform_2(%arg0: i32) -> (i32, i32) {
    %c0_i32 = arith.constant 0 : i32
    %c0_i32_0 = arith.constant 0 : i32
    %c0_i32_1 = arith.constant 0 : i32
    return %c0_i32, %c0_i32_0 : i32, i32
  }
  func.func @transform_3(%arg0: i32) -> (i32, i32) {
    %c0_i32 = arith.constant 0 : i32
    %c0_i32_0 = arith.constant 0 : i32
    %c0_i32_1 = arith.constant 0 : i32
    return %c0_i32, %c0_i32_0 : i32, i32
  }
  func.func @transform_4(%arg0: i32) -> (i32, i32) {
    %c0_i32 = arith.constant 0 : i32
    %c0_i32_0 = arith.constant 0 : i32
    %c0_i32_1 = arith.constant 0 : i32
    return %c0_i32, %c0_i32_0 : i32, i32
  }
}

module attributes {stable_mosaic.version = 11 : i64} {
  func.func @_matmul_bn_relu_kernel(%arg0: i32, %arg1: memref<72x1024xbf16, #tpu.memory_space<vmem>>, %arg2: memref<1024x128xbf16, #tpu.memory_space<vmem>>, %arg3: memref<1x128xf32, #tpu.memory_space<vmem>>, %arg4: memref<1x128xf32, #tpu.memory_space<vmem>>, %arg5: memref<72x128xbf16, #tpu.memory_space<vmem>>) attributes {dimension_semantics = [#tpu.dimension_semantics<arbitrary>], iteration_bounds = array<i64: 1>, scalar_prefetch = 0 : i64, scratch_operands = 0 : i64, tpu.core_type = #tpu.core_type<tc>, window_params = [{pipeline_mode = #tpu.pipeline_mode<synchronous>, transform_indices = @transform_0, window_bounds = array<i64: 72, 1024>}, {pipeline_mode = #tpu.pipeline_mode<synchronous>, transform_indices = @transform_1, window_bounds = array<i64: 1024, 128>}, {pipeline_mode = #tpu.pipeline_mode<synchronous>, transform_indices = @transform_2, window_bounds = array<i64: 1, 128>}, {pipeline_mode = #tpu.pipeline_mode<synchronous>, transform_indices = @transform_3, window_bounds = array<i64: 1, 128>}, {pipeline_mode = #tpu.pipeline_mode<synchronous>, transform_indices = @transform_4, window_bounds = array<i64: 72, 128>}]} {
    %c0 = arith.constant 0 : index
    %c0_0 = arith.constant 0 : index
    %0 = vector.load %arg1[%c0, %c0_0] : memref<72x1024xbf16, #tpu.memory_space<vmem>>, vector<72x1024xbf16>
    %c0_1 = arith.constant 0 : index
    %c0_2 = arith.constant 0 : index
    %1 = vector.load %arg2[%c0_1, %c0_2] : memref<1024x128xbf16, #tpu.memory_space<vmem>>, vector<1024x128xbf16>
    %cst = arith.constant dense<0.000000e+00> : vector<72x128xf32>
    %2 = tpu.matmul %0, %1, %cst {dimension_numbers = #tpu.dot_dimension_numbers<[1], [0], [0], [1], [0, 0, 1, 1], [], []>} : vector<72x1024xbf16>, vector<1024x128xbf16>, vector<72x128xf32> -> vector<72x128xf32>
    %cst_3 = arith.constant dense<0.000000e+00> : vector<128xf32>
    %3 = vector.multi_reduction <add>, %2, %cst_3 [0] : vector<72x128xf32> to vector<128xf32>
    %4 = vector.shape_cast %3 : vector<128xf32> to vector<1x128xf32>
    %cst_4 = arith.constant 7.200000e+01 : f32
    %5 = vector.broadcast %cst_4 : f32 to vector<1x128xf32>
    %6 = arith.divf %4, %5 : vector<1x128xf32>
    %7 = vector.broadcast %6 : vector<1x128xf32> to vector<72x128xf32>
    %8 = arith.subf %2, %7 : vector<72x128xf32>
    %9 = arith.mulf %8, %8 : vector<72x128xf32>
    %cst_5 = arith.constant dense<0.000000e+00> : vector<128xf32>
    %10 = vector.multi_reduction <add>, %9, %cst_5 [0] : vector<72x128xf32> to vector<128xf32>
    %11 = vector.shape_cast %10 : vector<128xf32> to vector<1x128xf32>
    %cst_6 = arith.constant 7.200000e+01 : f32
    %12 = vector.broadcast %cst_6 : f32 to vector<1x128xf32>
    %13 = arith.divf %11, %12 : vector<1x128xf32>
    %14 = vector.broadcast %6 : vector<1x128xf32> to vector<72x128xf32>
    %15 = arith.subf %2, %14 : vector<72x128xf32>
    %cst_7 = arith.constant 9.99999974E-6 : f32
    %16 = vector.broadcast %cst_7 : f32 to vector<1x128xf32>
    %17 = arith.addf %13, %16 : vector<1x128xf32>
    %18 = math.rsqrt %17 : vector<1x128xf32>
    %19 = vector.broadcast %18 : vector<1x128xf32> to vector<72x128xf32>
    %20 = arith.mulf %15, %19 : vector<72x128xf32>
    %c0_8 = arith.constant 0 : index
    %c0_9 = arith.constant 0 : index
    %21 = vector.load %arg3[%c0_8, %c0_9] : memref<1x128xf32, #tpu.memory_space<vmem>>, vector<1x128xf32>
    %22 = vector.broadcast %21 : vector<1x128xf32> to vector<72x128xf32>
    %23 = arith.mulf %20, %22 : vector<72x128xf32>
    %c0_10 = arith.constant 0 : index
    %c0_11 = arith.constant 0 : index
    %24 = vector.load %arg4[%c0_10, %c0_11] : memref<1x128xf32, #tpu.memory_space<vmem>>, vector<1x128xf32>
    %25 = vector.broadcast %24 : vector<1x128xf32> to vector<72x128xf32>
    %26 = arith.addf %23, %25 : vector<72x128xf32>
    %cst_12 = arith.constant 0.000000e+00 : f32
    %27 = vector.broadcast %cst_12 : f32 to vector<72x128xf32>
    %28 = arith.maximumf %26, %27 : vector<72x128xf32>
    %29 = arith.truncf %28 : vector<72x128xf32> to vector<72x128xbf16>
    %c0_13 = arith.constant 0 : index
    %c0_14 = arith.constant 0 : index
    %30 = vector.load %arg5[%c0_13, %c0_14] : memref<72x128xbf16, #tpu.memory_space<vmem>>, vector<72x128xbf16>
    tpu.vector_store %arg5[%c0_13, %c0_14], %29 {strides = array<i32>} : memref<72x128xbf16, #tpu.memory_space<vmem>>, vector<72x128xbf16>,
    return
  }
  func.func @transform_0(%arg0: i32) -> (i32, i32) {
    %c0_i32 = arith.constant 0 : i32
    %c0_i32_0 = arith.constant 0 : i32
    %c0_i32_1 = arith.constant 0 : i32
    return %c0_i32, %c0_i32_0 : i32, i32
  }
  func.func @transform_1(%arg0: i32) -> (i32, i32) {
    %c0_i32 = arith.constant 0 : i32
    %c0_i32_0 = arith.constant 0 : i32
    %c0_i32_1 = arith.constant 0 : i32
    return %c0_i32, %c0_i32_0 : i32, i32
  }
  func.func @transform_2(%arg0: i32) -> (i32, i32) {
    %c0_i32 = arith.constant 0 : i32
    %c0_i32_0 = arith.constant 0 : i32
    %c0_i32_1 = arith.constant 0 : i32
    return %c0_i32, %c0_i32_0 : i32, i32
  }
  func.func @transform_3(%arg0: i32) -> (i32, i32) {
    %c0_i32 = arith.constant 0 : i32
    %c0_i32_0 = arith.constant 0 : i32
    %c0_i32_1 = arith.constant 0 : i32
    return %c0_i32, %c0_i32_0 : i32, i32
  }
  func.func @transform_4(%arg0: i32) -> (i32, i32) {
    %c0_i32 = arith.constant 0 : i32
    %c0_i32_0 = arith.constant 0 : i32
    %c0_i32_1 = arith.constant 0 : i32
    return %c0_i32, %c0_i32_0 : i32, i32
  }
}

module attributes {stable_mosaic.version = 11 : i64} {
  func.func @_conv4_mlp_kernel(%arg0: i32, %arg1: memref<18x2048xbf16, #tpu.memory_space<vmem>>, %arg2: memref<2x4xbf16, #tpu.memory_space<vmem>>, %arg3: memref<2048x256xbf16, #tpu.memory_space<vmem>>, %arg4: memref<1x256xf32, #tpu.memory_space<vmem>>, %arg5: memref<9x256x256xbf16, #tpu.memory_space<vmem>>, %arg6: memref<4x256xbf16, #tpu.memory_space<vmem>>, %arg7: memref<1x256xf32, #tpu.memory_space<vmem>>, %arg8: memref<256x256xbf16, #tpu.memory_space<vmem>>, %arg9: memref<1x256xf32, #tpu.memory_space<vmem>>, %arg10: memref<256x4xbf16, #tpu.memory_space<vmem>>, %arg11: memref<1x4xf32, #tpu.memory_space<vmem>>, %arg12: memref<2x4xf32, #tpu.memory_space<vmem>>) attributes {dimension_semantics = [#tpu.dimension_semantics<arbitrary>], iteration_bounds = array<i64: 1>, scalar_prefetch = 0 : i64, scratch_operands = 0 : i64, tpu.core_type = #tpu.core_type<tc>, window_params = [{pipeline_mode = #tpu.pipeline_mode<synchronous>, transform_indices = @transform_0, window_bounds = array<i64: 18, 2048>}, {pipeline_mode = #tpu.pipeline_mode<synchronous>, transform_indices = @transform_1, window_bounds = array<i64: 2, 4>}, {pipeline_mode = #tpu.pipeline_mode<synchronous>, transform_indices = @transform_2, window_bounds = array<i64: 2048, 256>}, {pipeline_mode = #tpu.pipeline_mode<synchronous>, transform_indices = @transform_3, window_bounds = array<i64: 1, 256>}, {pipeline_mode = #tpu.pipeline_mode<synchronous>, transform_indices = @transform_4, window_bounds = array<i64: 9, 256, 256>}, {pipeline_mode = #tpu.pipeline_mode<synchronous>, transform_indices = @transform_5, window_bounds = array<i64: 4, 256>}, {pipeline_mode = #tpu.pipeline_mode<synchronous>, transform_indices = @transform_6, window_bounds = array<i64: 1, 256>}, {pipeline_mode = #tpu.pipeline_mode<synchronous>, transform_indices = @transform_7, window_bounds = array<i64: 256, 256>}, {pipeline_mode = #tpu.pipeline_mode<synchronous>, transform_indices = @transform_8, window_bounds = array<i64: 1, 256>}, {pipeline_mode = #tpu.pipeline_mode<synchronous>, transform_indices = @transform_9, window_bounds = array<i64: 256, 4>}, {pipeline_mode = #tpu.pipeline_mode<synchronous>, transform_indices = @transform_10, window_bounds = array<i64: 1, 4>}, {pipeline_mode = #tpu.pipeline_mode<synchronous>, transform_indices = @transform_11, window_bounds = array<i64: 2, 4>}]} {
    %c0 = arith.constant 0 : index
    %c0_0 = arith.constant 0 : index
    %0 = vector.load %arg1[%c0, %c0_0] : memref<18x2048xbf16, #tpu.memory_space<vmem>>, vector<18x2048xbf16>
    %c0_1 = arith.constant 0 : index
    %c0_2 = arith.constant 0 : index
    %1 = vector.load %arg3[%c0_1, %c0_2] : memref<2048x256xbf16, #tpu.memory_space<vmem>>, vector<2048x256xbf16>
    %cst = arith.constant dense<0.000000e+00> : vector<18x256xf32>
    %2 = tpu.matmul %0, %1, %cst {dimension_numbers = #tpu.dot_dimension_numbers<[1], [0], [0], [1], [0, 0, 1, 1], [], []>} : vector<18x2048xbf16>, vector<2048x256xbf16>, vector<18x256xf32> -> vector<18x256xf32>
    %c0_3 = arith.constant 0 : index
    %c0_4 = arith.constant 0 : index
    %3 = vector.load %arg4[%c0_3, %c0_4] : memref<1x256xf32, #tpu.memory_space<vmem>>, vector<1x256xf32>
    %4 = vector.broadcast %3 : vector<1x256xf32> to vector<18x256xf32>
    %5 = arith.addf %2, %4 : vector<18x256xf32>
    %cst_5 = arith.constant 0.000000e+00 : f32
    %6 = vector.broadcast %cst_5 : f32 to vector<18x256xf32>
    %7 = arith.maximumf %5, %6 : vector<18x256xf32>
    %8 = arith.truncf %7 : vector<18x256xf32> to vector<18x256xbf16>
    %c0_6 = arith.constant 0 : index
    %c0_7 = arith.constant 0 : index
    %9 = vector.load %arg2[%c0_6, %c0_7] : memref<2x4xbf16, #tpu.memory_space<vmem>>, vector<2x4xbf16>
    %c0_8 = arith.constant 0 : index
    %c0_9 = arith.constant 0 : index
    %10 = vector.load %arg6[%c0_8, %c0_9] : memref<4x256xbf16, #tpu.memory_space<vmem>>, vector<4x256xbf16>
    %cst_10 = arith.constant dense<0.000000e+00> : vector<2x256xf32>
    %11 = tpu.matmul %9, %10, %cst_10 {dimension_numbers = #tpu.dot_dimension_numbers<[1], [0], [0], [1], [0, 0, 1, 1], [], []>} : vector<2x4xbf16>, vector<4x256xbf16>, vector<2x256xf32> -> vector<2x256xf32>
    %12 = vector.extract_strided_slice %8 {offsets = [0, 0], sizes = [2, 256], strides = [1, 1]} : vector<18x256xbf16> to vector<2x256xbf16>
    %c0_11 = arith.constant 0 : index
    %c0_12 = arith.constant 0 : index
    %c0_13 = arith.constant 0 : index
    %13 = vector.load %arg5[%c0_11, %c0_12, %c0_13] : memref<9x256x256xbf16, #tpu.memory_space<vmem>>, vector<1x256x256xbf16>
    %14 = vector.shape_cast %13 : vector<1x256x256xbf16> to vector<256x256xbf16>
    %cst_14 = arith.constant dense<0.000000e+00> : vector<2x256xf32>
    %15 = tpu.matmul %12, %14, %cst_14 {dimension_numbers = #tpu.dot_dimension_numbers<[1], [0], [0], [1], [0, 0, 1, 1], [], []>} : vector<2x256xbf16>, vector<256x256xbf16>, vector<2x256xf32> -> vector<2x256xf32>
    %16 = arith.addf %11, %15 : vector<2x256xf32>
    %17 = vector.extract_strided_slice %8 {offsets = [2, 0], sizes = [2, 256], strides = [1, 1]} : vector<18x256xbf16> to vector<2x256xbf16>
    %c1 = arith.constant 1 : index
    %c0_15 = arith.constant 0 : index
    %c0_16 = arith.constant 0 : index
    %18 = vector.load %arg5[%c1, %c0_15, %c0_16] : memref<9x256x256xbf16, #tpu.memory_space<vmem>>, vector<1x256x256xbf16>
    %19 = vector.shape_cast %18 : vector<1x256x256xbf16> to vector<256x256xbf16>
    %cst_17 = arith.constant dense<0.000000e+00> : vector<2x256xf32>
    %20 = tpu.matmul %17, %19, %cst_17 {dimension_numbers = #tpu.dot_dimension_numbers<[1], [0], [0], [1], [0, 0, 1, 1], [], []>} : vector<2x256xbf16>, vector<256x256xbf16>, vector<2x256xf32> -> vector<2x256xf32>
    %21 = arith.addf %16, %20 : vector<2x256xf32>
    %22 = vector.extract_strided_slice %8 {offsets = [4, 0], sizes = [2, 256], strides = [1, 1]} : vector<18x256xbf16> to vector<2x256xbf16>
    %c2 = arith.constant 2 : index
    %c0_18 = arith.constant 0 : index
    %c0_19 = arith.constant 0 : index
    %23 = vector.load %arg5[%c2, %c0_18, %c0_19] : memref<9x256x256xbf16, #tpu.memory_space<vmem>>, vector<1x256x256xbf16>
    %24 = vector.shape_cast %23 : vector<1x256x256xbf16> to vector<256x256xbf16>
    %cst_20 = arith.constant dense<0.000000e+00> : vector<2x256xf32>
    %25 = tpu.matmul %22, %24, %cst_20 {dimension_numbers = #tpu.dot_dimension_numbers<[1], [0], [0], [1], [0, 0, 1, 1], [], []>} : vector<2x256xbf16>, vector<256x256xbf16>, vector<2x256xf32> -> vector<2x256xf32>
    %26 = arith.addf %21, %25 : vector<2x256xf32>
    %27 = vector.extract_strided_slice %8 {offsets = [6, 0], sizes = [2, 256], strides = [1, 1]} : vector<18x256xbf16> to vector<2x256xbf16>
    %c3 = arith.constant 3 : index
    %c0_21 = arith.constant 0 : index
    %c0_22 = arith.constant 0 : index
    %28 = vector.load %arg5[%c3, %c0_21, %c0_22] : memref<9x256x256xbf16, #tpu.memory_space<vmem>>, vector<1x256x256xbf16>
    %29 = vector.shape_cast %28 : vector<1x256x256xbf16> to vector<256x256xbf16>
    %cst_23 = arith.constant dense<0.000000e+00> : vector<2x256xf32>
    %30 = tpu.matmul %27, %29, %cst_23 {dimension_numbers = #tpu.dot_dimension_numbers<[1], [0], [0], [1], [0, 0, 1, 1], [], []>} : vector<2x256xbf16>, vector<256x256xbf16>, vector<2x256xf32> -> vector<2x256xf32>
    %31 = arith.addf %26, %30 : vector<2x256xf32>
    %32 = vector.extract_strided_slice %8 {offsets = [8, 0], sizes = [2, 256], strides = [1, 1]} : vector<18x256xbf16> to vector<2x256xbf16>
    %c4 = arith.constant 4 : index
    %c0_24 = arith.constant 0 : index
    %c0_25 = arith.constant 0 : index
    %33 = vector.load %arg5[%c4, %c0_24, %c0_25] : memref<9x256x256xbf16, #tpu.memory_space<vmem>>, vector<1x256x256xbf16>
    %34 = vector.shape_cast %33 : vector<1x256x256xbf16> to vector<256x256xbf16>
    %cst_26 = arith.constant dense<0.000000e+00> : vector<2x256xf32>
    %35 = tpu.matmul %32, %34, %cst_26 {dimension_numbers = #tpu.dot_dimension_numbers<[1], [0], [0], [1], [0, 0, 1, 1], [], []>} : vector<2x256xbf16>, vector<256x256xbf16>, vector<2x256xf32> -> vector<2x256xf32>
    %36 = arith.addf %31, %35 : vector<2x256xf32>
    %37 = vector.extract_strided_slice %8 {offsets = [10, 0], sizes = [2, 256], strides = [1, 1]} : vector<18x256xbf16> to vector<2x256xbf16>
    %c5 = arith.constant 5 : index
    %c0_27 = arith.constant 0 : index
    %c0_28 = arith.constant 0 : index
    %38 = vector.load %arg5[%c5, %c0_27, %c0_28] : memref<9x256x256xbf16, #tpu.memory_space<vmem>>, vector<1x256x256xbf16>
    %39 = vector.shape_cast %38 : vector<1x256x256xbf16> to vector<256x256xbf16>
    %cst_29 = arith.constant dense<0.000000e+00> : vector<2x256xf32>
    %40 = tpu.matmul %37, %39, %cst_29 {dimension_numbers = #tpu.dot_dimension_numbers<[1], [0], [0], [1], [0, 0, 1, 1], [], []>} : vector<2x256xbf16>, vector<256x256xbf16>, vector<2x256xf32> -> vector<2x256xf32>
    %41 = arith.addf %36, %40 : vector<2x256xf32>
    %42 = vector.extract_strided_slice %8 {offsets = [12, 0], sizes = [2, 256], strides = [1, 1]} : vector<18x256xbf16> to vector<2x256xbf16>
    %c6 = arith.constant 6 : index
    %c0_30 = arith.constant 0 : index
    %c0_31 = arith.constant 0 : index
    %43 = vector.load %arg5[%c6, %c0_30, %c0_31] : memref<9x256x256xbf16, #tpu.memory_space<vmem>>, vector<1x256x256xbf16>
    %44 = vector.shape_cast %43 : vector<1x256x256xbf16> to vector<256x256xbf16>
    %cst_32 = arith.constant dense<0.000000e+00> : vector<2x256xf32>
    %45 = tpu.matmul %42, %44, %cst_32 {dimension_numbers = #tpu.dot_dimension_numbers<[1], [0], [0], [1], [0, 0, 1, 1], [], []>} : vector<2x256xbf16>, vector<256x256xbf16>, vector<2x256xf32> -> vector<2x256xf32>
    %46 = arith.addf %41, %45 : vector<2x256xf32>
    %47 = vector.extract_strided_slice %8 {offsets = [14, 0], sizes = [2, 256], strides = [1, 1]} : vector<18x256xbf16> to vector<2x256xbf16>
    %c7 = arith.constant 7 : index
    %c0_33 = arith.constant 0 : index
    %c0_34 = arith.constant 0 : index
    %48 = vector.load %arg5[%c7, %c0_33, %c0_34] : memref<9x256x256xbf16, #tpu.memory_space<vmem>>, vector<1x256x256xbf16>
    %49 = vector.shape_cast %48 : vector<1x256x256xbf16> to vector<256x256xbf16>
    %cst_35 = arith.constant dense<0.000000e+00> : vector<2x256xf32>
    %50 = tpu.matmul %47, %49, %cst_35 {dimension_numbers = #tpu.dot_dimension_numbers<[1], [0], [0], [1], [0, 0, 1, 1], [], []>} : vector<2x256xbf16>, vector<256x256xbf16>, vector<2x256xf32> -> vector<2x256xf32>
    %51 = arith.addf %46, %50 : vector<2x256xf32>
    %52 = vector.extract_strided_slice %8 {offsets = [16, 0], sizes = [2, 256], strides = [1, 1]} : vector<18x256xbf16> to vector<2x256xbf16>
    %c8 = arith.constant 8 : index
    %c0_36 = arith.constant 0 : index
    %c0_37 = arith.constant 0 : index
    %53 = vector.load %arg5[%c8, %c0_36, %c0_37] : memref<9x256x256xbf16, #tpu.memory_space<vmem>>, vector<1x256x256xbf16>
    %54 = vector.shape_cast %53 : vector<1x256x256xbf16> to vector<256x256xbf16>
    %cst_38 = arith.constant dense<0.000000e+00> : vector<2x256xf32>
    %55 = tpu.matmul %52, %54, %cst_38 {dimension_numbers = #tpu.dot_dimension_numbers<[1], [0], [0], [1], [0, 0, 1, 1], [], []>} : vector<2x256xbf16>, vector<256x256xbf16>, vector<2x256xf32> -> vector<2x256xf32>
    %56 = arith.addf %51, %55 : vector<2x256xf32>
    %c0_39 = arith.constant 0 : index
    %c0_40 = arith.constant 0 : index
    %57 = vector.load %arg7[%c0_39, %c0_40] : memref<1x256xf32, #tpu.memory_space<vmem>>, vector<1x256xf32>
    %58 = vector.broadcast %57 : vector<1x256xf32> to vector<2x256xf32>
    %59 = arith.addf %56, %58 : vector<2x256xf32>
    %cst_41 = arith.constant 0.000000e+00 : f32
    %60 = vector.broadcast %cst_41 : f32 to vector<2x256xf32>
    %61 = arith.maximumf %59, %60 : vector<2x256xf32>
    %62 = arith.truncf %61 : vector<2x256xf32> to vector<2x256xbf16>
    %c0_42 = arith.constant 0 : index
    %c0_43 = arith.constant 0 : index
    %63 = vector.load %arg8[%c0_42, %c0_43] : memref<256x256xbf16, #tpu.memory_space<vmem>>, vector<256x256xbf16>
    %cst_44 = arith.constant dense<0.000000e+00> : vector<2x256xf32>
    %64 = tpu.matmul %62, %63, %cst_44 {dimension_numbers = #tpu.dot_dimension_numbers<[1], [0], [0], [1], [0, 0, 1, 1], [], []>} : vector<2x256xbf16>, vector<256x256xbf16>, vector<2x256xf32> -> vector<2x256xf32>
    %c0_45 = arith.constant 0 : index
    %c0_46 = arith.constant 0 : index
    %65 = vector.load %arg9[%c0_45, %c0_46] : memref<1x256xf32, #tpu.memory_space<vmem>>, vector<1x256xf32>
    %66 = vector.broadcast %65 : vector<1x256xf32> to vector<2x256xf32>
    %67 = arith.addf %64, %66 : vector<2x256xf32>
    %cst_47 = arith.constant 0.000000e+00 : f32
    %68 = vector.broadcast %cst_47 : f32 to vector<2x256xf32>
    %69 = arith.maximumf %67, %68 : vector<2x256xf32>
    %70 = arith.truncf %69 : vector<2x256xf32> to vector<2x256xbf16>
    %c0_48 = arith.constant 0 : index
    %c0_49 = arith.constant 0 : index
    %71 = vector.load %arg10[%c0_48, %c0_49] : memref<256x4xbf16, #tpu.memory_space<vmem>>, vector<256x4xbf16>
    %cst_50 = arith.constant dense<0.000000e+00> : vector<2x4xf32>
    %72 = tpu.matmul %70, %71, %cst_50 {dimension_numbers = #tpu.dot_dimension_numbers<[1], [0], [0], [1], [0, 0, 1, 1], [], []>} : vector<2x256xbf16>, vector<256x4xbf16>, vector<2x4xf32> -> vector<2x4xf32>
    %c0_51 = arith.constant 0 : index
    %c0_52 = arith.constant 0 : index
    %73 = vector.load %arg11[%c0_51, %c0_52] : memref<1x4xf32, #tpu.memory_space<vmem>>, vector<1x4xf32>
    %74 = vector.broadcast %73 : vector<1x4xf32> to vector<2x4xf32>
    %75 = arith.addf %72, %74 : vector<2x4xf32>
    %c0_53 = arith.constant 0 : index
    %c0_54 = arith.constant 0 : index
    %76 = vector.load %arg12[%c0_53, %c0_54] : memref<2x4xf32, #tpu.memory_space<vmem>>, vector<2x4xf32>
    tpu.vector_store %arg12[%c0_53, %c0_54], %75 {strides = array<i32>} : memref<2x4xf32, #tpu.memory_space<vmem>>, vector<2x4xf32>,
    return
  }
  func.func @transform_0(%arg0: i32) -> (i32, i32) {
    %c0_i32 = arith.constant 0 : i32
    %c0_i32_0 = arith.constant 0 : i32
    %c0_i32_1 = arith.constant 0 : i32
    return %c0_i32, %c0_i32_0 : i32, i32
  }
  func.func @transform_1(%arg0: i32) -> (i32, i32) {
    %c0_i32 = arith.constant 0 : i32
    %c0_i32_0 = arith.constant 0 : i32
    %c0_i32_1 = arith.constant 0 : i32
    return %c0_i32, %c0_i32_0 : i32, i32
  }
  func.func @transform_2(%arg0: i32) -> (i32, i32) {
    %c0_i32 = arith.constant 0 : i32
    %c0_i32_0 = arith.constant 0 : i32
    %c0_i32_1 = arith.constant 0 : i32
    return %c0_i32, %c0_i32_0 : i32, i32
  }
  func.func @transform_3(%arg0: i32) -> (i32, i32) {
    %c0_i32 = arith.constant 0 : i32
    %c0_i32_0 = arith.constant 0 : i32
    %c0_i32_1 = arith.constant 0 : i32
    return %c0_i32, %c0_i32_0 : i32, i32
  }
  func.func @transform_4(%arg0: i32) -> (i32, i32, i32) {
    %c0_i32 = arith.constant 0 : i32
    %c0_i32_0 = arith.constant 0 : i32
    %c0_i32_1 = arith.constant 0 : i32
    %c0_i32_2 = arith.constant 0 : i32
    return %c0_i32, %c0_i32_0, %c0_i32_1 : i32, i32, i32
  }
  func.func @transform_5(%arg0: i32) -> (i32, i32) {
    %c0_i32 = arith.constant 0 : i32
    %c0_i32_0 = arith.constant 0 : i32
    %c0_i32_1 = arith.constant 0 : i32
    return %c0_i32, %c0_i32_0 : i32, i32
  }
  func.func @transform_6(%arg0: i32) -> (i32, i32) {
    %c0_i32 = arith.constant 0 : i32
    %c0_i32_0 = arith.constant 0 : i32
    %c0_i32_1 = arith.constant 0 : i32
    return %c0_i32, %c0_i32_0 : i32, i32
  }
  func.func @transform_7(%arg0: i32) -> (i32, i32) {
    %c0_i32 = arith.constant 0 : i32
    %c0_i32_0 = arith.constant 0 : i32
    %c0_i32_1 = arith.constant 0 : i32
    return %c0_i32, %c0_i32_0 : i32, i32
  }
  func.func @transform_8(%arg0: i32) -> (i32, i32) {
    %c0_i32 = arith.constant 0 : i32
    %c0_i32_0 = arith.constant 0 : i32
    %c0_i32_1 = arith.constant 0 : i32
    return %c0_i32, %c0_i32_0 : i32, i32
  }
  func.func @transform_9(%arg0: i32) -> (i32, i32) {
    %c0_i32 = arith.constant 0 : i32
    %c0_i32_0 = arith.constant 0 : i32
    %c0_i32_1 = arith.constant 0 : i32
    return %c0_i32, %c0_i32_0 : i32, i32
  }
  func.func @transform_10(%arg0: i32) -> (i32, i32) {
    %c0_i32 = arith.constant 0 : i32
    %c0_i32_0 = arith.constant 0 : i32
    %c0_i32_1 = arith.constant 0 : i32
    return %c0_i32, %c0_i32_0 : i32, i32
  }
  func.func @transform_11(%arg0: i32) -> (i32, i32) {
    %c0_i32 = arith.constant 0 : i32
    %c0_i32_0 = arith.constant 0 : i32
    %c0_i32_1 = arith.constant 0 : i32
    return %c0_i32, %c0_i32_0 : i32, i32
  }
}

</mosaic_0001>

<bundles_post_ra>
// kernel: critic_forward.4
= control target key start
LH: loop header
LB: loop body
LE: loop exit
PB: predicated region body
PF: predicated region fallthrough
CT: control target
= control target key end

     0   :  { %s2018_s12 = smov 0   ;;  %s2399_s0 = inlined_call_operand.vmem [shape: bf16[1152,144], index: 0, kind: input, shape index: {}]   ;;  %s2400_s1 = inlined_call_operand.vmem [shape: bf16[144,32], index: 1, kind: input, shape index: {}]   ;;  %s2401_s2 = inlined_call_operand.vmem [shape: f32[1,32], index: 2, kind: input, shape index: {}]   ;;  %s2402_s3 = inlined_call_operand.vmem [shape: bf16[1152,32], index: 3, kind: output, shape index: {}]  }
   0x1 LB: > { %s1572_s13 = sadd.s32 4294967295, %s1995_s12   ;;  %p1576_p0 = scmp.ge.s32.totalorder %s1995_s12, 1  ;;  %s1995_s12 = sphi %s2018_s12, %s13_s12  }
   0x2   : > { %p139_p1 = scmp.lt.s32.totalorder %s1995_s12, 3 }
   0x4   : > { %p140_p2 = pnand %p1576_p0, %p139_p1 }
   0x5   : > { %v1872_v0 = vld [vmem:[%s2400_s1] sm:$0xff] (!%p140_p2)   ;;  %v1997_v1 = vmov (!%p140_p2), 0   ;;  %s164_s16 = smul.u32 (!%p140_p2), 72, %s1572_s13  ;;  %v1873_v2 = vld [vmem:[%s2400_s1 + $0x8] sm:$0xff] (!%p140_p2)   ;;  %v1874_v3 = vld [vmem:[%s2400_s1 + $0x10] sm:$0xff] (!%p140_p2)   ;;  %vm653_vm0 = vcmask (!%p140_p2), 130048  }
   0x6   : > { %143 = sbr.rel (%p140_p2) target bundleno = 399 (0x18f), region = 32  ;;  %762 = vmatprep.subr.bf16.mxu0 (!%p140_p2), %v1997_v1  ;;  %1845 = vmatprep.subr.bf16.mxu1 (!%p140_p2), %v1997_v1  ;;  %v1875_v4 = vld [vmem:[%s2400_s1 + $0x18] sm:$0xff] (!%p140_p2)   ;;  %v1876_v7 = vld [vmem:[%s2400_s1 + $0x20] sm:$0xff] (!%p140_p2)   ;;  %v1877_v8 = vld [vmem:[%s2400_s1 + $0x28] sm:$0xff] (!%p140_p2)   ;;  %vm1443_vm1 = vcmask (!%p140_p2), 257024  }
   0x7   : > { %763 = vmatpush1.bf16.msra.mxu0 (!%p140_p2), %v1872_v0  ;;  %1854 = vmatpush1.bf16.msra.mxu1 (!%p140_p2), %v1872_v0  ;;  %p165_p3 = scmp.lt.s32.totalorder (!%p140_p2), %s164_s16, 143  ;;  %v1878_v9 = vld [vmem:[%s2400_s1 + $0x30] sm:$0xff] (!%p140_p2)   ;;  %v1879_v10 = vld [vmem:[%s2400_s1 + $0x38] sm:$0xff] (!%p140_p2)   ;;  %v1880_v11 = vld [vmem:[%s2400_s1 + $0x40] sm:$0xff] (!%p140_p2)  }
   0x8   : > { %764 = vmatprep.subr.bf16.mxu0 (!%p140_p2), %v1997_v1  ;;  %1846 = vmatprep.subr.bf16.mxu1 (!%p140_p2), %v1997_v1 }
   0xb   : > { %765 = vmatpush1.bf16.msra.mxu0 (!%p140_p2), %v1873_v2  ;;  %1855 = vmatpush1.bf16.msra.mxu1 (!%p140_p2), %v1873_v2 }
   0xc   : > { %766 = vmatprep.subr.bf16.mxu0 (!%p140_p2), %v1997_v1  ;;  %1847 = vmatprep.subr.bf16.mxu1 (!%p140_p2), %v1997_v1 }
   0xd   : > { %s2404_s16 = smov (!%p165_p3, %s164_s16), 143 }
   0xe   : > { %s1772_s21 = sshll.u32 %s2404_s16, 3  ;;  %s1579_s13 = sshll.u32 %s2404_s16, 2 }
   0xf   : > { %s2041_s24 = scalar_lea.vmem %s2399_s0, %s1772_s21  ;;  %767 = vmatpush1.bf16.msra.mxu0 %v1874_v3  ;;  %1856 = vmatpush1.bf16.msra.mxu1 %v1874_v3  ;;  %s2182_s16 = scalar_lea.vmem %s2402_s3, %s1579_s13 }
  0x10   : > { %v1883_v5 = vld [vmem:[%s2041_s24 + $0x4] ss:$8 sps:$4 sm:$0xff]   ;;  %768 = vmatprep.subr.bf16.mxu0 %v1997_v1  ;;  %1848 = vmatprep.subr.bf16.mxu1 %v1997_v1  ;;  %v1881_v12 = vld [vmem:[%s2041_s24] ss:$8 sps:$4 sm:$0xff]   ;;  %v1887_v14 = vld [vmem:[%s2041_s24 + $0x14] ss:$8 sps:$4 sm:$0xff]  }
  0x11   : > { %v1886_v6 = vld [vmem:[%s2041_s24 + $0x124] ss:$8 sps:$4 sm:$0xff]   ;;  %1662 = vmatprep.mubr.msk.bf16.mxu0 %vm653_vm0, %v1883_v5  ;;  %v1884_v13 = vld [vmem:[%s2041_s24 + $0x120] ss:$8 sps:$4 sm:$0xff]   ;;  %v1889_v15 = vld [vmem:[%s2041_s24 + $0x134] ss:$8 sps:$4 sm:$0xff]  }
  0x12   : > { %1680 = vmatprep.mubr.msk.bf16.mxu1 %vm653_vm0, %v1886_v6  ;;  %v1891_v16 = vld [vmem:[%s2041_s24 + $0x10] ss:$8 sps:$4 sm:$0xff]   ;;  %v1893_v18 = vld [vmem:[%s2041_s24 + $0x24] ss:$8 sps:$4 sm:$0xff]   ;;  %v1897_v20 = vld [vmem:[%s2041_s24 + $0x20] ss:$8 sps:$4 sm:$0xff]  }
  0x13   : > { %769 = vmatpush1.bf16.msra.mxu0 %v1875_v4  ;;  %1857 = vmatpush1.bf16.msra.mxu1 %v1875_v4  ;;  %v1892_v17 = vld [vmem:[%s2041_s24 + $0x130] ss:$8 sps:$4 sm:$0xff]   ;;  %v1895_v19 = vld [vmem:[%s2041_s24 + $0x144] ss:$8 sps:$4 sm:$0xff]   ;;  %v1898_v21 = vld [vmem:[%s2041_s24 + $0x140] ss:$8 sps:$4 sm:$0xff]  }
  0x14   : > { %770 = vmatprep.subr.bf16.mxu0 %v1997_v1  ;;  %1849 = vmatprep.subr.bf16.mxu1 %v1997_v1  ;;  %v1899_v22 = vld [vmem:[%s2041_s24 + $0x34] ss:$8 sps:$4 sm:$0xff]   ;;  %v1903_v24 = vld [vmem:[%s2041_s24 + $0x30] ss:$8 sps:$4 sm:$0xff]   ;;  %v1905_v26 = vld [vmem:[%s2041_s24 + $0x44] ss:$8 sps:$4 sm:$0xff]  }
  0x15   : > { %v1901_v23 = vld [vmem:[%s2041_s24 + $0x154] ss:$8 sps:$4 sm:$0xff]   ;;  %v1904_v25 = vld [vmem:[%s2041_s24 + $0x150] ss:$8 sps:$4 sm:$0xff]   ;;  %v1907_v27 = vld [vmem:[%s2041_s24 + $0x164] ss:$8 sps:$4 sm:$0xff]  }
  0x16   : > { %v1909_v28 = vld [vmem:[%s2041_s24 + $0x40] ss:$8 sps:$4 sm:$0xff]   ;;  %v1911_v30 = vld [vmem:[%s2041_s24 + $0x54] ss:$8 sps:$4 sm:$0xff]   ;;  %v1915_v32 = vld [vmem:[%s2041_s24 + $0x50] ss:$8 sps:$4 sm:$0xff]  }
  0x17   : > { %771 = vmatpush1.bf16.msra.mxu0 %v1876_v7  ;;  %1858 = vmatpush1.bf16.msra.mxu1 %v1876_v7  ;;  %v1910_v29 = vld [vmem:[%s2041_s24 + $0x160] ss:$8 sps:$4 sm:$0xff]   ;;  %v1913_v31 = vld [vmem:[%s2041_s24 + $0x174] ss:$8 sps:$4 sm:$0xff]   ;;  %v1916_v33 = vld [vmem:[%s2041_s24 + $0x170] ss:$8 sps:$4 sm:$0xff]  }
  0x18   : > { %772 = vmatprep.subr.bf16.mxu0 %v1997_v1  ;;  %1850 = vmatprep.subr.bf16.mxu1 %v1997_v1  ;;  %v1917_v34 = vld [vmem:[%s2041_s24 + $0x64] ss:$8 sps:$4 sm:$0xff]   ;;  %v1921_v36 = vld [vmem:[%s2041_s24 + $0x60] ss:$8 sps:$4 sm:$0xff]   ;;  %v1923_v38 = vld [vmem:[%s2041_s24 + $0x74] ss:$8 sps:$4 sm:$0xff]  }
  0x19   : > { %v1919_v35 = vld [vmem:[%s2041_s24 + $0x184] ss:$8 sps:$4 sm:$0xff]   ;;  %v1922_v37 = vld [vmem:[%s2041_s24 + $0x180] ss:$8 sps:$4 sm:$0xff]   ;;  %v1925_v39 = vld [vmem:[%s2041_s24 + $0x194] ss:$8 sps:$4 sm:$0xff]  }
  0x1a   : > { %v1927_v40 = vld [vmem:[%s2041_s24 + $0x70] ss:$8 sps:$4 sm:$0xff]   ;;  %v1929_v42 = vld [vmem:[%s2041_s24 + $0x84] ss:$8 sps:$4 sm:$0xff]   ;;  %v1933_v44 = vld [vmem:[%s2041_s24 + $0x80] ss:$8 sps:$4 sm:$0xff]  }
  0x1b   : > { %773 = vmatpush1.bf16.msra.mxu0 %v1877_v8  ;;  %1859 = vmatpush1.bf16.msra.mxu1 %v1877_v8  ;;  %v1928_v41 = vld [vmem:[%s2041_s24 + $0x190] ss:$8 sps:$4 sm:$0xff]   ;;  %v1931_v43 = vld [vmem:[%s2041_s24 + $0x1a4] ss:$8 sps:$4 sm:$0xff]   ;;  %v1934_v45 = vld [vmem:[%s2041_s24 + $0x1a0] ss:$8 sps:$4 sm:$0xff]  }
  0x1c   : > { %774 = vmatprep.subr.bf16.mxu0 %v1997_v1  ;;  %1851 = vmatprep.subr.bf16.mxu1 %v1997_v1  ;;  %v1935_v46 = vld [vmem:[%s2041_s24 + $0x94] ss:$8 sps:$4 sm:$0xff]   ;;  %v1939_v48 = vld [vmem:[%s2041_s24 + $0x90] ss:$8 sps:$4 sm:$0xff]   ;;  %v1941_v50 = vld [vmem:[%s2041_s24 + $0xa4] ss:$8 sps:$4 sm:$0xff]  }
  0x1d   : > { %v1937_v47 = vld [vmem:[%s2041_s24 + $0x1b4] ss:$8 sps:$4 sm:$0xff]   ;;  %v1940_v49 = vld [vmem:[%s2041_s24 + $0x1b0] ss:$8 sps:$4 sm:$0xff]   ;;  %v1943_v51 = vld [vmem:[%s2041_s24 + $0x1c4] ss:$8 sps:$4 sm:$0xff]  }
  0x1e   : > { %v1945_v52 = vld [vmem:[%s2041_s24 + $0xa0] ss:$8 sps:$4 sm:$0xff]   ;;  %v1947_v54 = vld [vmem:[%s2041_s24 + $0xb4] ss:$8 sps:$4 sm:$0xff]   ;;  %v1951_v56 = vld [vmem:[%s2041_s24 + $0xb0] ss:$8 sps:$4 sm:$0xff]  }
  0x1f   : > { %775 = vmatpush1.bf16.msra.mxu0 %v1878_v9  ;;  %1860 = vmatpush1.bf16.msra.mxu1 %v1878_v9  ;;  %v1946_v53 = vld [vmem:[%s2041_s24 + $0x1c0] ss:$8 sps:$4 sm:$0xff]   ;;  %v1949_v55 = vld [vmem:[%s2041_s24 + $0x1d4] ss:$8 sps:$4 sm:$0xff]   ;;  %v1952_v57 = vld [vmem:[%s2041_s24 + $0x1d0] ss:$8 sps:$4 sm:$0xff]  }
  0x20   : > { %776 = vmatprep.subr.bf16.mxu0 %v1997_v1  ;;  %1852 = vmatprep.subr.bf16.mxu1 %v1997_v1  ;;  %v1953_v58 = vld [vmem:[%s2041_s24 + $0xc4] ss:$8 sps:$4 sm:$0xff]   ;;  %v1957_v60 = vld [vmem:[%s2041_s24 + $0xc0] ss:$8 sps:$4 sm:$0xff]   ;;  %v1959_v62 = vld [vmem:[%s2041_s24 + $0xd4] ss:$8 sps:$4 sm:$0xff]  }
  0x21   : > { %v1955_v59 = vld [vmem:[%s2041_s24 + $0x1e4] ss:$8 sps:$4 sm:$0xff]   ;;  %v1958_v61 = vld [vmem:[%s2041_s24 + $0x1e0] ss:$8 sps:$4 sm:$0xff]   ;;  %v1961_v63 = vld [vmem:[%s2041_s24 + $0x1f4] ss:$8 sps:$4 sm:$0xff]  }
  0x22   : > { %v1963_v0 = vld [vmem:[%s2041_s24 + $0xd0] ss:$8 sps:$4 sm:$0xff]   ;;  %v1965_v2 = vld [vmem:[%s2041_s24 + $0xe4] ss:$8 sps:$4 sm:$0xff]   ;;  %v1969_v4 = vld [vmem:[%s2041_s24 + $0xe0] ss:$8 sps:$4 sm:$0xff]  }
  0x23   : > { %777 = vmatpush1.bf16.msra.mxu0 %v1879_v10  ;;  %1861 = vmatpush1.bf16.msra.mxu1 %v1879_v10  ;;  %v1967_v3 = vld [vmem:[%s2041_s24 + $0x204] ss:$8 sps:$4 sm:$0xff]   ;;  %v1970_v5 = vld [vmem:[%s2041_s24 + $0x200] ss:$8 sps:$4 sm:$0xff]   ;;  %v1971_v6 = vld [vmem:[%s2041_s24 + $0xf4] ss:$8 sps:$4 sm:$0xff]  }
  0x24   : > { %778 = vmatprep.subr.bf16.mxu0 %v1997_v1  ;;  %1853 = vmatprep.subr.bf16.mxu1 %v1997_v1  ;;  %v1964_v1 = vld [vmem:[%s2041_s24 + $0x1f0] ss:$8 sps:$4 sm:$0xff]   ;;  %v1973_v7 = vld [vmem:[%s2041_s24 + $0x214] ss:$8 sps:$4 sm:$0xff]   ;;  %v1977_v10 = vld [vmem:[%s2041_s24 + $0x104] ss:$8 sps:$4 sm:$0xff]  }
  0x25   : > { %v1975_v8 = vld [vmem:[%s2041_s24 + $0xf0] ss:$8 sps:$4 sm:$0xff]  }
  0x26   : > { %v1976_v9 = vld [vmem:[%s2041_s24 + $0x210] ss:$8 sps:$4 sm:$0xff]  }
  0x27   : > { %779 = vmatpush1.bf16.msra.mxu0 %v1880_v11  ;;  %1862 = vmatpush1.bf16.msra.mxu1 %v1880_v11  ;;  %v1979_v11 = vld [vmem:[%s2041_s24 + $0x224] ss:$8 sps:$4 sm:$0xff]  }
  0x2a   : > { %795 = vmatmul.mubr.bf16.vlgmr.msra.gmra.mrb[0].mxu0 %v1881_v12  ;;  %939 = vmatmul.mubr.bf16.vlgmr.msra.gmra.mrb[0].mxu1 %v1884_v13  ;;  %v1981_v12 = vld [vmem:[%s2041_s24 + $0x100] ss:$8 sps:$4 sm:$0xff]  }
  0x2b   : > { %1663 = vmatprep.mubr.msk.bf16.mxu0 %vm653_vm0, %v1887_v14  ;;  %1681 = vmatprep.mubr.msk.bf16.mxu1 %vm653_vm0, %v1889_v15  ;;  %v1982_v13 = vld [vmem:[%s2041_s24 + $0x220] ss:$8 sps:$4 sm:$0xff]   ;;  %v1983_v14 = vld [vmem:[%s2041_s24 + $0x114] ss:$8 sps:$4 sm:$0xff]  }
  0x2c   : > { %v1985_v15 = vld [vmem:[%s2041_s24 + $0x234] ss:$8 sps:$4 sm:$0xff]  }
  0x32   : > { %803 = vmatmul.mubr.bf16.gmra.mrb[4].mxu0 %v1891_v16  ;;  %947 = vmatmul.mubr.bf16.gmra.mrb[4].mxu1 %v1892_v17  ;;  %v1987_v16 = vld [vmem:[%s2041_s24 + $0x110] ss:$8 sps:$4 sm:$0xff]  }
  0x33   : > { %1664 = vmatprep.mubr.msk.bf16.mxu0 %vm653_vm0, %v1893_v18  ;;  %1682 = vmatprep.mubr.msk.bf16.mxu1 %vm653_vm0, %v1895_v19  ;;  %v1988_v17 = vld [vmem:[%s2041_s24 + $0x230] ss:$8 sps:$4 sm:$0xff]   ;;  %v2172_v18 = vld [vmem:[%s2401_s2] ss:$0 sm:$0xff] }
  0x3a   : > { %811 = vmatmul.mubr.bf16.gmra.mrb[8].mxu0 %v1897_v20  ;;  %955 = vmatmul.mubr.bf16.gmra.mrb[8].mxu1 %v1898_v21 }
  0x3b   : > { %1665 = vmatprep.mubr.msk.bf16.mxu0 %vm653_vm0, %v1899_v22  ;;  %1683 = vmatprep.mubr.msk.bf16.mxu1 %vm653_vm0, %v1901_v23 }
  0x42   : > { %819 = vmatmul.mubr.bf16.gmra.mrb[12].mxu0 %v1903_v24  ;;  %963 = vmatmul.mubr.bf16.gmra.mrb[12].mxu1 %v1904_v25 }
  0x43   : > { %1666 = vmatprep.mubr.msk.bf16.mxu0 %vm653_vm0, %v1905_v26  ;;  %1684 = vmatprep.mubr.msk.bf16.mxu1 %vm653_vm0, %v1907_v27 }
  0x4a   : > { %827 = vmatmul.mubr.bf16.gmra.mrb[16].mxu0 %v1909_v28  ;;  %971 = vmatmul.mubr.bf16.gmra.mrb[16].mxu1 %v1910_v29 }
  0x4b   : > { %1667 = vmatprep.mubr.msk.bf16.mxu0 %vm653_vm0, %v1911_v30  ;;  %1685 = vmatprep.mubr.msk.bf16.mxu1 %vm653_vm0, %v1913_v31 }
  0x52   : > { %835 = vmatmul.mubr.bf16.gmra.mrb[20].mxu0 %v1915_v32  ;;  %979 = vmatmul.mubr.bf16.gmra.mrb[20].mxu1 %v1916_v33 }
  0x53   : > { %1668 = vmatprep.mubr.msk.bf16.mxu0 %vm653_vm0, %v1917_v34  ;;  %1686 = vmatprep.mubr.msk.bf16.mxu1 %vm653_vm0, %v1919_v35 }
  0x5a   : > { %843 = vmatmul.mubr.bf16.gmra.mrb[24].mxu0 %v1921_v36  ;;  %987 = vmatmul.mubr.bf16.gmra.mrb[24].mxu1 %v1922_v37 }
  0x5b   : > { %1669 = vmatprep.mubr.msk.bf16.mxu0 %vm653_vm0, %v1923_v38  ;;  %1687 = vmatprep.mubr.msk.bf16.mxu1 %vm653_vm0, %v1925_v39 }
  0x62   : > { %851 = vmatmul.mubr.bf16.gmra.mrb[28].mxu0 %v1927_v40  ;;  %995 = vmatmul.mubr.bf16.gmra.mrb[28].mxu1 %v1928_v41 }
  0x63   : > { %1670 = vmatprep.mubr.msk.bf16.mxu0 %vm653_vm0, %v1929_v42  ;;  %1688 = vmatprep.mubr.msk.bf16.mxu1 %vm653_vm0, %v1931_v43 }
  0x6a   : > { %859 = vmatmul.mubr.bf16.gmra.mrb[32].mxu0 %v1933_v44  ;;  %1003 = vmatmul.mubr.bf16.gmra.mrb[32].mxu1 %v1934_v45 }
  0x6b   : > { %1671 = vmatprep.mubr.msk.bf16.mxu0 %vm653_vm0, %v1935_v46  ;;  %1689 = vmatprep.mubr.msk.bf16.mxu1 %vm653_vm0, %v1937_v47 }
  0x72   : > { %867 = vmatmul.mubr.bf16.gmra.mrb[36].mxu0 %v1939_v48  ;;  %1011 = vmatmul.mubr.bf16.gmra.mrb[36].mxu1 %v1940_v49 }
  0x73   : > { %1672 = vmatprep.mubr.msk.bf16.mxu0 %vm653_vm0, %v1941_v50  ;;  %1690 = vmatprep.mubr.msk.bf16.mxu1 %vm653_vm0, %v1943_v51 }
  0x7a   : > { %875 = vmatmul.mubr.bf16.gmra.mrb[40].mxu0 %v1945_v52  ;;  %1019 = vmatmul.mubr.bf16.gmra.mrb[40].mxu1 %v1946_v53 }
  0x7b   : > { %1673 = vmatprep.mubr.msk.bf16.mxu0 %vm653_vm0, %v1947_v54  ;;  %1691 = vmatprep.mubr.msk.bf16.mxu1 %vm653_vm0, %v1949_v55 }
  0x82   : > { %883 = vmatmul.mubr.bf16.gmra.mrb[44].mxu0 %v1951_v56  ;;  %1027 = vmatmul.mubr.bf16.gmra.mrb[44].mxu1 %v1952_v57 }
  0x83   : > { %1674 = vmatprep.mubr.msk.bf16.mxu0 %vm653_vm0, %v1953_v58  ;;  %1692 = vmatprep.mubr.msk.bf16.mxu1 %vm653_vm0, %v1955_v59 }
  0x8a   : > { %891 = vmatmul.mubr.bf16.gmra.mrb[48].mxu0 %v1957_v60  ;;  %1035 = vmatmul.mubr.bf16.gmra.mrb[48].mxu1 %v1958_v61 }
  0x8b   : > { %1675 = vmatprep.mubr.msk.bf16.mxu0 %vm653_vm0, %v1959_v62  ;;  %1693 = vmatprep.mubr.msk.bf16.mxu1 %vm653_vm0, %v1961_v63 }
  0x92   : > { %899 = vmatmul.mubr.bf16.gmra.mrb[52].mxu0 %v1963_v0  ;;  %1043 = vmatmul.mubr.bf16.gmra.mrb[52].mxu1 %v1964_v1 }
  0x93   : > { %1676 = vmatprep.mubr.msk.bf16.mxu0 %vm653_vm0, %v1965_v2  ;;  %1694 = vmatprep.mubr.msk.bf16.mxu1 %vm653_vm0, %v1967_v3 }
  0x9a   : > { %907 = vmatmul.mubr.bf16.gmra.mrb[56].mxu0 %v1969_v4  ;;  %1051 = vmatmul.mubr.bf16.gmra.mrb[56].mxu1 %v1970_v5 }
  0x9b   : > { %1677 = vmatprep.mubr.msk.bf16.mxu0 %vm653_vm0, %v1971_v6  ;;  %1695 = vmatprep.mubr.msk.bf16.mxu1 %vm653_vm0, %v1973_v7 }
  0xa2   : > { %915 = vmatmul.mubr.bf16.gmra.mrb[60].mxu0 %v1975_v8  ;;  %1059 = vmatmul.mubr.bf16.gmra.mrb[60].mxu1 %v1976_v9 }
  0xa3   : > { %1678 = vmatprep.mubr.msk.bf16.mxu0 %vm653_vm0, %v1977_v10  ;;  %1696 = vmatprep.mubr.msk.bf16.mxu1 %vm653_vm0, %v1979_v11 }
  0xaa   : > { %923 = vmatmul.mubr.bf16.gmra.mrb[64].mxu0 %v1981_v12  ;;  %1067 = vmatmul.mubr.bf16.gmra.mrb[64].mxu1 %v1982_v13 }
  0xab   : > { %1679 = vmatprep.mubr.msk.bf16.mxu0 %vm653_vm0, %v1983_v14  ;;  %1697 = vmatprep.mubr.msk.bf16.mxu1 %vm653_vm0, %v1985_v15 }
  0xb2   : > { %931 = vmatmul.mubr.bf16.gmra.mrb[68].mxu0 %v1987_v16  ;;  %1075 = vmatmul.mubr.bf16.gmra.mrb[68].mxu1 %v1988_v17 }
  0xfd   : > { %v796_v19 = vpop.f32.mrb[0].mxu0  ;;  %v940_v20 = vpop.f32.mrb[0].mxu1 }
  0xfe   : > { %v797_v21 = vadd.f32 %v2172_v18, %v796_v19  ;;  %v941_v22 = vadd.f32 %v2172_v18, %v940_v20  ;;  %v798_v23 = vpop.f32.mrb[1].mxu0  ;;  %v942_v24 = vpop.f32.mrb[1].mxu1 }
  0xff   : > { %v799_v25 = vpop.f32.mrb[2].mxu0  ;;  %v943_v26 = vpop.f32.mrb[2].mxu1 }
 0x100   : > { %v1083_v27 = vmax.f32 %v797_v21, 0.0  ;;  %v1119_v28 = vmax.f32 %v941_v22, 0.0  ;;  %v800_v29 = vadd.f32 %v2172_v18, %v799_v25  ;;  %v944_v30 = vadd.f32 %v2172_v18, %v943_v26  ;;  %v801_v31 = vpop.f32.mrb[3].mxu0  ;;  %v945_v32 = vpop.f32.mrb[3].mxu1 }
 0x102   : > { %v1773_v33 = vpack.c.bf16 %v1083_v27, %v1083_v27  ;;  %v1809_v34 = vpack.c.bf16 %v1119_v28, %v1119_v28  ;;  %v1084_v35 = vmax.f32 %v800_v29, 0.0  ;;  %v1120_v36 = vmax.f32 %v944_v30, 0.0 }
 0x104   : > { %1444 = vst.msk [vmem:[%s2182_s16] sm:$0xf] %vm1443_vm1, %v1773_v33  ;;  %1480 = vst.msk [vmem:[%s2182_s16 + $0x90] sm:$0xf] %vm1443_vm1, %v1809_v34  ;;  %v1774_v37 = vpack.c.bf16 %v1084_v35, %v1084_v35  ;;  %v1810_v38 = vpack.c.bf16 %v1120_v36, %v1120_v36 }
 0x105   : > { %v804_v39 = vpop.f32.mrb[4].mxu0  ;;  %v948_v40 = vpop.f32.mrb[4].mxu1 }
 0x106   : > { %1445 = vst.msk [vmem:[%s2182_s16 + $0x4] sm:$0xf] %vm1443_vm1, %v1774_v37  ;;  %1481 = vst.msk [vmem:[%s2182_s16 + $0x94] sm:$0xf] %vm1443_vm1, %v1810_v38  ;;  %v805_v41 = vadd.f32 %v2172_v18, %v804_v39  ;;  %v949_v42 = vadd.f32 %v2172_v18, %v948_v40  ;;  %v806_v43 = vpop.f32.mrb[5].mxu0  ;;  %v950_v44 = vpop.f32.mrb[5].mxu1 }
 0x107   : > { %v807_v45 = vpop.f32.mrb[6].mxu0  ;;  %v951_v46 = vpop.f32.mrb[6].mxu1 }
 0x108   : > { %v1085_v47 = vmax.f32 %v805_v41, 0.0  ;;  %v1121_v48 = vmax.f32 %v949_v42, 0.0  ;;  %v808_v49 = vadd.f32 %v2172_v18, %v807_v45  ;;  %v952_v50 = vadd.f32 %v2172_v18, %v951_v46  ;;  %v809_v51 = vpop.f32.mrb[7].mxu0  ;;  %v953_v52 = vpop.f32.mrb[7].mxu1 }
 0x10a   : > { %v1775_v53 = vpack.c.bf16 %v1085_v47, %v1085_v47  ;;  %v1811_v54 = vpack.c.bf16 %v1121_v48, %v1121_v48  ;;  %v1086_v55 = vmax.f32 %v808_v49, 0.0  ;;  %v1122_v56 = vmax.f32 %v952_v50, 0.0 }
 0x10c   : > { %1446 = vst.msk [vmem:[%s2182_s16 + $0x8] sm:$0xf] %vm1443_vm1, %v1775_v53  ;;  %1482 = vst.msk [vmem:[%s2182_s16 + $0x98] sm:$0xf] %vm1443_vm1, %v1811_v54  ;;  %v1776_v57 = vpack.c.bf16 %v1086_v55, %v1086_v55  ;;  %v1812_v58 = vpack.c.bf16 %v1122_v56, %v1122_v56 }
 0x10d   : > { %v812_v59 = vpop.f32.mrb[8].mxu0  ;;  %v956_v60 = vpop.f32.mrb[8].mxu1 }
 0x10e   : > { %1447 = vst.msk [vmem:[%s2182_s16 + $0xc] sm:$0xf] %vm1443_vm1, %v1776_v57  ;;  %1483 = vst.msk [vmem:[%s2182_s16 + $0x9c] sm:$0xf] %vm1443_vm1, %v1812_v58  ;;  %v813_v61 = vadd.f32 %v2172_v18, %v812_v59  ;;  %v957_v62 = vadd.f32 %v2172_v18, %v956_v60  ;;  %v814_v63 = vpop.f32.mrb[9].mxu0  ;;  %v958_v0 = vpop.f32.mrb[9].mxu1 }
 0x10f   : > { %v815_v1 = vpop.f32.mrb[10].mxu0  ;;  %v959_v2 = vpop.f32.mrb[10].mxu1 }
 0x110   : > { %v1087_v3 = vmax.f32 %v813_v61, 0.0  ;;  %v1123_v4 = vmax.f32 %v957_v62, 0.0  ;;  %v816_v5 = vadd.f32 %v2172_v18, %v815_v1  ;;  %v960_v6 = vadd.f32 %v2172_v18, %v959_v2  ;;  %v817_v7 = vpop.f32.mrb[11].mxu0  ;;  %v961_v8 = vpop.f32.mrb[11].mxu1 }
 0x112   : > { %v1777_v9 = vpack.c.bf16 %v1087_v3, %v1087_v3  ;;  %v1813_v10 = vpack.c.bf16 %v1123_v4, %v1123_v4  ;;  %v1088_v11 = vmax.f32 %v816_v5, 0.0  ;;  %v1124_v12 = vmax.f32 %v960_v6, 0.0 }
 0x114   : > { %1448 = vst.msk [vmem:[%s2182_s16 + $0x10] sm:$0xf] %vm1443_vm1, %v1777_v9  ;;  %1484 = vst.msk [vmem:[%s2182_s16 + $0xa0] sm:$0xf] %vm1443_vm1, %v1813_v10  ;;  %v1778_v13 = vpack.c.bf16 %v1088_v11, %v1088_v11  ;;  %v1814_v14 = vpack.c.bf16 %v1124_v12, %v1124_v12 }
 0x115   : > { %v820_v15 = vpop.f32.mrb[12].mxu0  ;;  %v964_v16 = vpop.f32.mrb[12].mxu1 }
 0x116   : > { %1449 = vst.msk [vmem:[%s2182_s16 + $0x14] sm:$0xf] %vm1443_vm1, %v1778_v13  ;;  %1485 = vst.msk [vmem:[%s2182_s16 + $0xa4] sm:$0xf] %vm1443_vm1, %v1814_v14  ;;  %v821_v17 = vadd.f32 %v2172_v18, %v820_v15  ;;  %v965_v19 = vadd.f32 %v2172_v18, %v964_v16  ;;  %v822_v20 = vpop.f32.mrb[13].mxu0  ;;  %v966_v21 = vpop.f32.mrb[13].mxu1 }
 0x117   : > { %v823_v22 = vpop.f32.mrb[14].mxu0  ;;  %v967_v23 = vpop.f32.mrb[14].mxu1 }
 0x118   : > { %v1089_v24 = vmax.f32 %v821_v17, 0.0  ;;  %v1125_v25 = vmax.f32 %v965_v19, 0.0  ;;  %v824_v26 = vadd.f32 %v2172_v18, %v823_v22  ;;  %v968_v27 = vadd.f32 %v2172_v18, %v967_v23  ;;  %v825_v28 = vpop.f32.mrb[15].mxu0  ;;  %v969_v29 = vpop.f32.mrb[15].mxu1 }
 0x11a   : > { %v1779_v30 = vpack.c.bf16 %v1089_v24, %v1089_v24  ;;  %v1815_v31 = vpack.c.bf16 %v1125_v25, %v1125_v25  ;;  %v1090_v32 = vmax.f32 %v824_v26, 0.0  ;;  %v1126_v33 = vmax.f32 %v968_v27, 0.0 }
 0x11c   : > { %1450 = vst.msk [vmem:[%s2182_s16 + $0x18] sm:$0xf] %vm1443_vm1, %v1779_v30  ;;  %1486 = vst.msk [vmem:[%s2182_s16 + $0xa8] sm:$0xf] %vm1443_vm1, %v1815_v31  ;;  %v1780_v34 = vpack.c.bf16 %v1090_v32, %v1090_v32  ;;  %v1816_v35 = vpack.c.bf16 %v1126_v33, %v1126_v33 }
 0x11d   : > { %v828_v36 = vpop.f32.mrb[16].mxu0  ;;  %v972_v37 = vpop.f32.mrb[16].mxu1 }
 0x11e   : > { %1451 = vst.msk [vmem:[%s2182_s16 + $0x1c] sm:$0xf] %vm1443_vm1, %v1780_v34  ;;  %1487 = vst.msk [vmem:[%s2182_s16 + $0xac] sm:$0xf] %vm1443_vm1, %v1816_v35  ;;  %v829_v38 = vadd.f32 %v2172_v18, %v828_v36  ;;  %v973_v39 = vadd.f32 %v2172_v18, %v972_v37  ;;  %v830_v40 = vpop.f32.mrb[17].mxu0  ;;  %v974_v41 = vpop.f32.mrb[17].mxu1 }
 0x11f   : > { %v831_v42 = vpop.f32.mrb[18].mxu0  ;;  %v975_v43 = vpop.f32.mrb[18].mxu1 }
 0x120   : > { %v1091_v44 = vmax.f32 %v829_v38, 0.0  ;;  %v1127_v45 = vmax.f32 %v973_v39, 0.0  ;;  %v832_v46 = vadd.f32 %v2172_v18, %v831_v42  ;;  %v976_v47 = vadd.f32 %v2172_v18, %v975_v43  ;;  %v833_v48 = vpop.f32.mrb[19].mxu0  ;;  %v977_v49 = vpop.f32.mrb[19].mxu1 }
 0x122   : > { %v1781_v50 = vpack.c.bf16 %v1091_v44, %v1091_v44  ;;  %v1817_v51 = vpack.c.bf16 %v1127_v45, %v1127_v45  ;;  %v1092_v52 = vmax.f32 %v832_v46, 0.0  ;;  %v1128_v53 = vmax.f32 %v976_v47, 0.0 }
 0x124   : > { %1452 = vst.msk [vmem:[%s2182_s16 + $0x20] sm:$0xf] %vm1443_vm1, %v1781_v50  ;;  %1488 = vst.msk [vmem:[%s2182_s16 + $0xb0] sm:$0xf] %vm1443_vm1, %v1817_v51  ;;  %v1782_v54 = vpack.c.bf16 %v1092_v52, %v1092_v52  ;;  %v1818_v55 = vpack.c.bf16 %v1128_v53, %v1128_v53 }
 0x125   : > { %v836_v56 = vpop.f32.mrb[20].mxu0  ;;  %v980_v57 = vpop.f32.mrb[20].mxu1 }
 0x126   : > { %1453 = vst.msk [vmem:[%s2182_s16 + $0x24] sm:$0xf] %vm1443_vm1, %v1782_v54  ;;  %1489 = vst.msk [vmem:[%s2182_s16 + $0xb4] sm:$0xf] %vm1443_vm1, %v1818_v55  ;;  %v837_v58 = vadd.f32 %v2172_v18, %v836_v56  ;;  %v981_v59 = vadd.f32 %v2172_v18, %v980_v57  ;;  %v838_v60 = vpop.f32.mrb[21].mxu0  ;;  %v982_v61 = vpop.f32.mrb[21].mxu1 }
 0x127   : > { %v839_v62 = vpop.f32.mrb[22].mxu0  ;;  %v983_v63 = vpop.f32.mrb[22].mxu1 }
 0x128   : > { %v1093_v0 = vmax.f32 %v837_v58, 0.0  ;;  %v1129_v1 = vmax.f32 %v981_v59, 0.0  ;;  %v840_v2 = vadd.f32 %v2172_v18, %v839_v62  ;;  %v984_v3 = vadd.f32 %v2172_v18, %v983_v63  ;;  %v841_v4 = vpop.f32.mrb[23].mxu0  ;;  %v985_v5 = vpop.f32.mrb[23].mxu1 }
 0x12a   : > { %v1783_v6 = vpack.c.bf16 %v1093_v0, %v1093_v0  ;;  %v1819_v7 = vpack.c.bf16 %v1129_v1, %v1129_v1  ;;  %v1094_v8 = vmax.f32 %v840_v2, 0.0  ;;  %v1130_v9 = vmax.f32 %v984_v3, 0.0 }
 0x12c   : > { %1454 = vst.msk [vmem:[%s2182_s16 + $0x28] sm:$0xf] %vm1443_vm1, %v1783_v6  ;;  %1490 = vst.msk [vmem:[%s2182_s16 + $0xb8] sm:$0xf] %vm1443_vm1, %v1819_v7  ;;  %v1784_v10 = vpack.c.bf16 %v1094_v8, %v1094_v8  ;;  %v1820_v11 = vpack.c.bf16 %v1130_v9, %v1130_v9 }
 0x12d   : > { %v844_v12 = vpop.f32.mrb[24].mxu0  ;;  %v988_v13 = vpop.f32.mrb[24].mxu1 }
 0x12e   : > { %1455 = vst.msk [vmem:[%s2182_s16 + $0x2c] sm:$0xf] %vm1443_vm1, %v1784_v10  ;;  %1491 = vst.msk [vmem:[%s2182_s16 + $0xbc] sm:$0xf] %vm1443_vm1, %v1820_v11  ;;  %v845_v14 = vadd.f32 %v2172_v18, %v844_v12  ;;  %v989_v15 = vadd.f32 %v2172_v18, %v988_v13  ;;  %v846_v16 = vpop.f32.mrb[25].mxu0  ;;  %v990_v17 = vpop.f32.mrb[25].mxu1 }
 0x12f   : > { %v847_v19 = vpop.f32.mrb[26].mxu0  ;;  %v991_v20 = vpop.f32.mrb[26].mxu1 }
 0x130   : > { %v1095_v21 = vmax.f32 %v845_v14, 0.0  ;;  %v1131_v22 = vmax.f32 %v989_v15, 0.0  ;;  %v848_v23 = vadd.f32 %v2172_v18, %v847_v19  ;;  %v992_v24 = vadd.f32 %v2172_v18, %v991_v20  ;;  %v849_v25 = vpop.f32.mrb[27].mxu0  ;;  %v993_v26 = vpop.f32.mrb[27].mxu1 }
 0x132   : > { %v1785_v27 = vpack.c.bf16 %v1095_v21, %v1095_v21  ;;  %v1821_v28 = vpack.c.bf16 %v1131_v22, %v1131_v22  ;;  %v1096_v29 = vmax.f32 %v848_v23, 0.0  ;;  %v1132_v30 = vmax.f32 %v992_v24, 0.0 }
 0x134   : > { %1456 = vst.msk [vmem:[%s2182_s16 + $0x30] sm:$0xf] %vm1443_vm1, %v1785_v27  ;;  %1492 = vst.msk [vmem:[%s2182_s16 + $0xc0] sm:$0xf] %vm1443_vm1, %v1821_v28  ;;  %v1786_v31 = vpack.c.bf16 %v1096_v29, %v1096_v29  ;;  %v1822_v32 = vpack.c.bf16 %v1132_v30, %v1132_v30 }
 0x135   : > { %v852_v33 = vpop.f32.mrb[28].mxu0  ;;  %v996_v34 = vpop.f32.mrb[28].mxu1 }
 0x136   : > { %1457 = vst.msk [vmem:[%s2182_s16 + $0x34] sm:$0xf] %vm1443_vm1, %v1786_v31  ;;  %1493 = vst.msk [vmem:[%s2182_s16 + $0xc4] sm:$0xf] %vm1443_vm1, %v1822_v32  ;;  %v853_v35 = vadd.f32 %v2172_v18, %v852_v33  ;;  %v997_v36 = vadd.f32 %v2172_v18, %v996_v34  ;;  %v854_v37 = vpop.f32.mrb[29].mxu0  ;;  %v998_v38 = vpop.f32.mrb[29].mxu1 }
 0x137   : > { %v855_v39 = vpop.f32.mrb[30].mxu0  ;;  %v999_v40 = vpop.f32.mrb[30].mxu1 }
 0x138   : > { %v1097_v41 = vmax.f32 %v853_v35, 0.0  ;;  %v1133_v42 = vmax.f32 %v997_v36, 0.0  ;;  %v856_v43 = vadd.f32 %v2172_v18, %v855_v39  ;;  %v1000_v44 = vadd.f32 %v2172_v18, %v999_v40  ;;  %v857_v45 = vpop.f32.mrb[31].mxu0  ;;  %v1001_v46 = vpop.f32.mrb[31].mxu1 }
 0x13a   : > { %v1787_v47 = vpack.c.bf16 %v1097_v41, %v1097_v41  ;;  %v1823_v48 = vpack.c.bf16 %v1133_v42, %v1133_v42  ;;  %v1098_v49 = vmax.f32 %v856_v43, 0.0  ;;  %v1134_v50 = vmax.f32 %v1000_v44, 0.0 }
 0x13c   : > { %1458 = vst.msk [vmem:[%s2182_s16 + $0x38] sm:$0xf] %vm1443_vm1, %v1787_v47  ;;  %1494 = vst.msk [vmem:[%s2182_s16 + $0xc8] sm:$0xf] %vm1443_vm1, %v1823_v48  ;;  %v1788_v51 = vpack.c.bf16 %v1098_v49, %v1098_v49  ;;  %v1824_v52 = vpack.c.bf16 %v1134_v50, %v1134_v50 }
 0x13d   : > { %v860_v53 = vpop.f32.mrb[32].mxu0  ;;  %v1004_v54 = vpop.f32.mrb[32].mxu1 }
 0x13e   : > { %1459 = vst.msk [vmem:[%s2182_s16 + $0x3c] sm:$0xf] %vm1443_vm1, %v1788_v51  ;;  %1495 = vst.msk [vmem:[%s2182_s16 + $0xcc] sm:$0xf] %vm1443_vm1, %v1824_v52  ;;  %v861_v55 = vadd.f32 %v2172_v18, %v860_v53  ;;  %v1005_v56 = vadd.f32 %v2172_v18, %v1004_v54  ;;  %v862_v57 = vpop.f32.mrb[33].mxu0  ;;  %v1006_v58 = vpop.f32.mrb[33].mxu1 }
 0x13f   : > { %v863_v59 = vpop.f32.mrb[34].mxu0  ;;  %v1007_v60 = vpop.f32.mrb[34].mxu1 }
 0x140   : > { %v1099_v61 = vmax.f32 %v861_v55, 0.0  ;;  %v1135_v62 = vmax.f32 %v1005_v56, 0.0  ;;  %v864_v63 = vadd.f32 %v2172_v18, %v863_v59  ;;  %v1008_v0 = vadd.f32 %v2172_v18, %v1007_v60  ;;  %v865_v1 = vpop.f32.mrb[35].mxu0  ;;  %v1009_v2 = vpop.f32.mrb[35].mxu1 }
 0x142   : > { %v1789_v3 = vpack.c.bf16 %v1099_v61, %v1099_v61  ;;  %v1825_v4 = vpack.c.bf16 %v1135_v62, %v1135_v62  ;;  %v1100_v5 = vmax.f32 %v864_v63, 0.0  ;;  %v1136_v6 = vmax.f32 %v1008_v0, 0.0 }
 0x144   : > { %1460 = vst.msk [vmem:[%s2182_s16 + $0x40] sm:$0xf] %vm1443_vm1, %v1789_v3  ;;  %1496 = vst.msk [vmem:[%s2182_s16 + $0xd0] sm:$0xf] %vm1443_vm1, %v1825_v4  ;;  %v1790_v7 = vpack.c.bf16 %v1100_v5, %v1100_v5  ;;  %v1826_v8 = vpack.c.bf16 %v1136_v6, %v1136_v6 }
 0x145   : > { %v868_v9 = vpop.f32.mrb[36].mxu0  ;;  %v1012_v10 = vpop.f32.mrb[36].mxu1 }
 0x146   : > { %1461 = vst.msk [vmem:[%s2182_s16 + $0x44] sm:$0xf] %vm1443_vm1, %v1790_v7  ;;  %1497 = vst.msk [vmem:[%s2182_s16 + $0xd4] sm:$0xf] %vm1443_vm1, %v1826_v8  ;;  %v869_v11 = vadd.f32 %v2172_v18, %v868_v9  ;;  %v1013_v12 = vadd.f32 %v2172_v18, %v1012_v10  ;;  %v870_v13 = vpop.f32.mrb[37].mxu0  ;;  %v1014_v14 = vpop.f32.mrb[37].mxu1 }
 0x147   : > { %v871_v15 = vpop.f32.mrb[38].mxu0  ;;  %v1015_v16 = vpop.f32.mrb[38].mxu1 }
 0x148   : > { %v1101_v17 = vmax.f32 %v869_v11, 0.0  ;;  %v1137_v19 = vmax.f32 %v1013_v12, 0.0  ;;  %v872_v20 = vadd.f32 %v2172_v18, %v871_v15  ;;  %v1016_v21 = vadd.f32 %v2172_v18, %v1015_v16  ;;  %v873_v22 = vpop.f32.mrb[39].mxu0  ;;  %v1017_v23 = vpop.f32.mrb[39].mxu1 }
 0x14a   : > { %v1791_v24 = vpack.c.bf16 %v1101_v17, %v1101_v17  ;;  %v1827_v25 = vpack.c.bf16 %v1137_v19, %v1137_v19  ;;  %v1102_v26 = vmax.f32 %v872_v20, 0.0  ;;  %v1138_v27 = vmax.f32 %v1016_v21, 0.0 }
 0x14c   : > { %1462 = vst.msk [vmem:[%s2182_s16 + $0x48] sm:$0xf] %vm1443_vm1, %v1791_v24  ;;  %1498 = vst.msk [vmem:[%s2182_s16 + $0xd8] sm:$0xf] %vm1443_vm1, %v1827_v25  ;;  %v1792_v28 = vpack.c.bf16 %v1102_v26, %v1102_v26  ;;  %v1828_v29 = vpack.c.bf16 %v1138_v27, %v1138_v27 }
 0x14d   : > { %v876_v30 = vpop.f32.mrb[40].mxu0  ;;  %v1020_v31 = vpop.f32.mrb[40].mxu1 }
 0x14e   : > { %1463 = vst.msk [vmem:[%s2182_s16 + $0x4c] sm:$0xf] %vm1443_vm1, %v1792_v28  ;;  %1499 = vst.msk [vmem:[%s2182_s16 + $0xdc] sm:$0xf] %vm1443_vm1, %v1828_v29  ;;  %v877_v32 = vadd.f32 %v2172_v18, %v876_v30  ;;  %v1021_v33 = vadd.f32 %v2172_v18, %v1020_v31  ;;  %v878_v34 = vpop.f32.mrb[41].mxu0  ;;  %v1022_v35 = vpop.f32.mrb[41].mxu1 }
 0x14f   : > { %v879_v36 = vpop.f32.mrb[42].mxu0  ;;  %v1023_v37 = vpop.f32.mrb[42].mxu1 }
 0x150   : > { %v1103_v38 = vmax.f32 %v877_v32, 0.0  ;;  %v1139_v39 = vmax.f32 %v1021_v33, 0.0  ;;  %v880_v40 = vadd.f32 %v2172_v18, %v879_v36  ;;  %v1024_v41 = vadd.f32 %v2172_v18, %v1023_v37  ;;  %v881_v42 = vpop.f32.mrb[43].mxu0  ;;  %v1025_v43 = vpop.f32.mrb[43].mxu1 }
 0x152   : > { %v1793_v44 = vpack.c.bf16 %v1103_v38, %v1103_v38  ;;  %v1829_v45 = vpack.c.bf16 %v1139_v39, %v1139_v39  ;;  %v1104_v46 = vmax.f32 %v880_v40, 0.0  ;;  %v1140_v47 = vmax.f32 %v1024_v41, 0.0 }
 0x154   : > { %1464 = vst.msk [vmem:[%s2182_s16 + $0x50] sm:$0xf] %vm1443_vm1, %v1793_v44  ;;  %1500 = vst.msk [vmem:[%s2182_s16 + $0xe0] sm:$0xf] %vm1443_vm1, %v1829_v45  ;;  %v1794_v48 = vpack.c.bf16 %v1104_v46, %v1104_v46  ;;  %v1830_v49 = vpack.c.bf16 %v1140_v47, %v1140_v47 }
 0x155   : > { %v884_v50 = vpop.f32.mrb[44].mxu0  ;;  %v1028_v51 = vpop.f32.mrb[44].mxu1 }
 0x156   : > { %1465 = vst.msk [vmem:[%s2182_s16 + $0x54] sm:$0xf] %vm1443_vm1, %v1794_v48  ;;  %1501 = vst.msk [vmem:[%s2182_s16 + $0xe4] sm:$0xf] %vm1443_vm1, %v1830_v49  ;;  %v885_v52 = vadd.f32 %v2172_v18, %v884_v50  ;;  %v1029_v53 = vadd.f32 %v2172_v18, %v1028_v51  ;;  %v886_v54 = vpop.f32.mrb[45].mxu0  ;;  %v1030_v55 = vpop.f32.mrb[45].mxu1 }
 0x157   : > { %v887_v56 = vpop.f32.mrb[46].mxu0  ;;  %v1031_v57 = vpop.f32.mrb[46].mxu1 }
 0x158   : > { %v1105_v58 = vmax.f32 %v885_v52, 0.0  ;;  %v1141_v59 = vmax.f32 %v1029_v53, 0.0  ;;  %v888_v60 = vadd.f32 %v2172_v18, %v887_v56  ;;  %v1032_v61 = vadd.f32 %v2172_v18, %v1031_v57  ;;  %v889_v62 = vpop.f32.mrb[47].mxu0  ;;  %v1033_v63 = vpop.f32.mrb[47].mxu1 }
 0x15a   : > { %v1795_v0 = vpack.c.bf16 %v1105_v58, %v1105_v58  ;;  %v1831_v1 = vpack.c.bf16 %v1141_v59, %v1141_v59  ;;  %v1106_v2 = vmax.f32 %v888_v60, 0.0  ;;  %v1142_v3 = vmax.f32 %v1032_v61, 0.0 }
 0x15c   : > { %1466 = vst.msk [vmem:[%s2182_s16 + $0x58] sm:$0xf] %vm1443_vm1, %v1795_v0  ;;  %1502 = vst.msk [vmem:[%s2182_s16 + $0xe8] sm:$0xf] %vm1443_vm1, %v1831_v1  ;;  %v1796_v4 = vpack.c.bf16 %v1106_v2, %v1106_v2  ;;  %v1832_v5 = vpack.c.bf16 %v1142_v3, %v1142_v3 }
 0x15d   : > { %v892_v6 = vpop.f32.mrb[48].mxu0  ;;  %v1036_v7 = vpop.f32.mrb[48].mxu1 }
 0x15e   : > { %1467 = vst.msk [vmem:[%s2182_s16 + $0x5c] sm:$0xf] %vm1443_vm1, %v1796_v4  ;;  %1503 = vst.msk [vmem:[%s2182_s16 + $0xec] sm:$0xf] %vm1443_vm1, %v1832_v5  ;;  %v893_v8 = vadd.f32 %v2172_v18, %v892_v6  ;;  %v1037_v9 = vadd.f32 %v2172_v18, %v1036_v7  ;;  %v894_v10 = vpop.f32.mrb[49].mxu0  ;;  %v1038_v11 = vpop.f32.mrb[49].mxu1 }
 0x15f   : > { %v895_v12 = vpop.f32.mrb[50].mxu0  ;;  %v1039_v13 = vpop.f32.mrb[50].mxu1 }
 0x160   : > { %v1107_v14 = vmax.f32 %v893_v8, 0.0  ;;  %v1143_v15 = vmax.f32 %v1037_v9, 0.0  ;;  %v896_v16 = vadd.f32 %v2172_v18, %v895_v12  ;;  %v1040_v17 = vadd.f32 %v2172_v18, %v1039_v13  ;;  %v897_v19 = vpop.f32.mrb[51].mxu0  ;;  %v1041_v20 = vpop.f32.mrb[51].mxu1 }
 0x162   : > { %v1797_v21 = vpack.c.bf16 %v1107_v14, %v1107_v14  ;;  %v1833_v22 = vpack.c.bf16 %v1143_v15, %v1143_v15  ;;  %v1108_v23 = vmax.f32 %v896_v16, 0.0  ;;  %v1144_v24 = vmax.f32 %v1040_v17, 0.0 }
 0x164   : > { %1468 = vst.msk [vmem:[%s2182_s16 + $0x60] sm:$0xf] %vm1443_vm1, %v1797_v21  ;;  %1504 = vst.msk [vmem:[%s2182_s16 + $0xf0] sm:$0xf] %vm1443_vm1, %v1833_v22  ;;  %v1798_v25 = vpack.c.bf16 %v1108_v23, %v1108_v23  ;;  %v1834_v26 = vpack.c.bf16 %v1144_v24, %v1144_v24 }
 0x165   : > { %v900_v27 = vpop.f32.mrb[52].mxu0  ;;  %v1044_v28 = vpop.f32.mrb[52].mxu1 }
 0x166   : > { %1469 = vst.msk [vmem:[%s2182_s16 + $0x64] sm:$0xf] %vm1443_vm1, %v1798_v25  ;;  %1505 = vst.msk [vmem:[%s2182_s16 + $0xf4] sm:$0xf] %vm1443_vm1, %v1834_v26  ;;  %v901_v29 = vadd.f32 %v2172_v18, %v900_v27  ;;  %v1045_v30 = vadd.f32 %v2172_v18, %v1044_v28  ;;  %v902_v31 = vpop.f32.mrb[53].mxu0  ;;  %v1046_v32 = vpop.f32.mrb[53].mxu1 }
 0x167   : > { %v903_v33 = vpop.f32.mrb[54].mxu0  ;;  %v1047_v34 = vpop.f32.mrb[54].mxu1 }
 0x168   : > { %v1109_v35 = vmax.f32 %v901_v29, 0.0  ;;  %v1145_v36 = vmax.f32 %v1045_v30, 0.0  ;;  %v904_v37 = vadd.f32 %v2172_v18, %v903_v33  ;;  %v1048_v38 = vadd.f32 %v2172_v18, %v1047_v34  ;;  %v905_v39 = vpop.f32.mrb[55].mxu0  ;;  %v1049_v40 = vpop.f32.mrb[55].mxu1 }
 0x16a   : > { %v1799_v41 = vpack.c.bf16 %v1109_v35, %v1109_v35  ;;  %v1835_v42 = vpack.c.bf16 %v1145_v36, %v1145_v36  ;;  %v1110_v43 = vmax.f32 %v904_v37, 0.0  ;;  %v1146_v44 = vmax.f32 %v1048_v38, 0.0 }
 0x16c   : > { %1470 = vst.msk [vmem:[%s2182_s16 + $0x68] sm:$0xf] %vm1443_vm1, %v1799_v41  ;;  %1506 = vst.msk [vmem:[%s2182_s16 + $0xf8] sm:$0xf] %vm1443_vm1, %v1835_v42  ;;  %v1800_v45 = vpack.c.bf16 %v1110_v43, %v1110_v43  ;;  %v1836_v46 = vpack.c.bf16 %v1146_v44, %v1146_v44 }
 0x16d   : > { %v908_v47 = vpop.f32.mrb[56].mxu0  ;;  %v1052_v48 = vpop.f32.mrb[56].mxu1 }
 0x16e   : > { %1471 = vst.msk [vmem:[%s2182_s16 + $0x6c] sm:$0xf] %vm1443_vm1, %v1800_v45  ;;  %1507 = vst.msk [vmem:[%s2182_s16 + $0xfc] sm:$0xf] %vm1443_vm1, %v1836_v46  ;;  %v909_v49 = vadd.f32 %v2172_v18, %v908_v47  ;;  %v1053_v50 = vadd.f32 %v2172_v18, %v1052_v48  ;;  %v910_v51 = vpop.f32.mrb[57].mxu0  ;;  %v1054_v52 = vpop.f32.mrb[57].mxu1 }
 0x16f   : > { %v911_v53 = vpop.f32.mrb[58].mxu0  ;;  %v1055_v54 = vpop.f32.mrb[58].mxu1 }
 0x170   : > { %v1111_v55 = vmax.f32 %v909_v49, 0.0  ;;  %v1147_v56 = vmax.f32 %v1053_v50, 0.0  ;;  %v912_v57 = vadd.f32 %v2172_v18, %v911_v53  ;;  %v1056_v58 = vadd.f32 %v2172_v18, %v1055_v54  ;;  %v913_v59 = vpop.f32.mrb[59].mxu0  ;;  %v1057_v60 = vpop.f32.mrb[59].mxu1 }
 0x172   : > { %v1801_v61 = vpack.c.bf16 %v1111_v55, %v1111_v55  ;;  %v1837_v62 = vpack.c.bf16 %v1147_v56, %v1147_v56  ;;  %v1112_v63 = vmax.f32 %v912_v57, 0.0  ;;  %v1148_v0 = vmax.f32 %v1056_v58, 0.0 }
 0x174   : > { %1472 = vst.msk [vmem:[%s2182_s16 + $0x70] sm:$0xf] %vm1443_vm1, %v1801_v61  ;;  %1508 = vst.msk [vmem:[%s2182_s16 + $0x100] sm:$0xf] %vm1443_vm1, %v1837_v62  ;;  %v1802_v1 = vpack.c.bf16 %v1112_v63, %v1112_v63  ;;  %v1838_v2 = vpack.c.bf16 %v1148_v0, %v1148_v0 }
 0x175   : > { %v916_v3 = vpop.f32.mrb[60].mxu0  ;;  %v1060_v4 = vpop.f32.mrb[60].mxu1 }
 0x176   : > { %1473 = vst.msk [vmem:[%s2182_s16 + $0x74] sm:$0xf] %vm1443_vm1, %v1802_v1  ;;  %1509 = vst.msk [vmem:[%s2182_s16 + $0x104] sm:$0xf] %vm1443_vm1, %v1838_v2  ;;  %v917_v5 = vadd.f32 %v2172_v18, %v916_v3  ;;  %v1061_v6 = vadd.f32 %v2172_v18, %v1060_v4  ;;  %v918_v7 = vpop.f32.mrb[61].mxu0  ;;  %v1062_v8 = vpop.f32.mrb[61].mxu1 }
 0x177   : > { %v919_v9 = vpop.f32.mrb[62].mxu0  ;;  %v1063_v10 = vpop.f32.mrb[62].mxu1 }
 0x178   : > { %v1113_v11 = vmax.f32 %v917_v5, 0.0  ;;  %v1149_v12 = vmax.f32 %v1061_v6, 0.0  ;;  %v920_v13 = vadd.f32 %v2172_v18, %v919_v9  ;;  %v1064_v14 = vadd.f32 %v2172_v18, %v1063_v10  ;;  %v921_v15 = vpop.f32.mrb[63].mxu0  ;;  %v1065_v16 = vpop.f32.mrb[63].mxu1 }
 0x17a   : > { %v1803_v17 = vpack.c.bf16 %v1113_v11, %v1113_v11  ;;  %v1839_v19 = vpack.c.bf16 %v1149_v12, %v1149_v12  ;;  %v1114_v20 = vmax.f32 %v920_v13, 0.0  ;;  %v1150_v21 = vmax.f32 %v1064_v14, 0.0 }
 0x17c   : > { %1474 = vst.msk [vmem:[%s2182_s16 + $0x78] sm:$0xf] %vm1443_vm1, %v1803_v17  ;;  %1510 = vst.msk [vmem:[%s2182_s16 + $0x108] sm:$0xf] %vm1443_vm1, %v1839_v19  ;;  %v1804_v22 = vpack.c.bf16 %v1114_v20, %v1114_v20  ;;  %v1840_v23 = vpack.c.bf16 %v1150_v21, %v1150_v21 }
 0x17d   : > { %v924_v24 = vpop.f32.mrb[64].mxu0  ;;  %v1068_v25 = vpop.f32.mrb[64].mxu1 }
 0x17e   : > { %1475 = vst.msk [vmem:[%s2182_s16 + $0x7c] sm:$0xf] %vm1443_vm1, %v1804_v22  ;;  %1511 = vst.msk [vmem:[%s2182_s16 + $0x10c] sm:$0xf] %vm1443_vm1, %v1840_v23  ;;  %v925_v26 = vadd.f32 %v2172_v18, %v924_v24  ;;  %v1069_v27 = vadd.f32 %v2172_v18, %v1068_v25  ;;  %v926_v28 = vpop.f32.mrb[65].mxu0  ;;  %v1070_v29 = vpop.f32.mrb[65].mxu1 }
 0x17f   : > { %v927_v30 = vpop.f32.mrb[66].mxu0  ;;  %v1071_v31 = vpop.f32.mrb[66].mxu1 }
 0x180   : > { %v1115_v32 = vmax.f32 %v925_v26, 0.0  ;;  %v1151_v33 = vmax.f32 %v1069_v27, 0.0  ;;  %v928_v34 = vadd.f32 %v2172_v18, %v927_v30  ;;  %v1072_v35 = vadd.f32 %v2172_v18, %v1071_v31  ;;  %v929_v36 = vpop.f32.mrb[67].mxu0  ;;  %v1073_v37 = vpop.f32.mrb[67].mxu1 }
 0x182   : > { %v1805_v38 = vpack.c.bf16 %v1115_v32, %v1115_v32  ;;  %v1841_v39 = vpack.c.bf16 %v1151_v33, %v1151_v33  ;;  %v1116_v40 = vmax.f32 %v928_v34, 0.0  ;;  %v1152_v41 = vmax.f32 %v1072_v35, 0.0 }
 0x184   : > { %1476 = vst.msk [vmem:[%s2182_s16 + $0x80] sm:$0xf] %vm1443_vm1, %v1805_v38  ;;  %1512 = vst.msk [vmem:[%s2182_s16 + $0x110] sm:$0xf] %vm1443_vm1, %v1841_v39  ;;  %v1806_v42 = vpack.c.bf16 %v1116_v40, %v1116_v40  ;;  %v1842_v43 = vpack.c.bf16 %v1152_v41, %v1152_v41 }
 0x185   : > { %v932_v44 = vpop.f32.mrb[68].mxu0  ;;  %v1076_v45 = vpop.f32.mrb[68].mxu1 }
 0x186   : > { %1477 = vst.msk [vmem:[%s2182_s16 + $0x84] sm:$0xf] %vm1443_vm1, %v1806_v42  ;;  %1513 = vst.msk [vmem:[%s2182_s16 + $0x114] sm:$0xf] %vm1443_vm1, %v1842_v43  ;;  %v933_v46 = vadd.f32 %v2172_v18, %v932_v44  ;;  %v1077_v47 = vadd.f32 %v2172_v18, %v1076_v45  ;;  %v934_v48 = vpop.f32.mrb[69].mxu0  ;;  %v1078_v49 = vpop.f32.mrb[69].mxu1 }
 0x187   : > { %v935_v50 = vpop.f32.mrb[70].mxu0  ;;  %v1079_v51 = vpop.f32.mrb[70].mxu1 }
 0x188   : > { %v1117_v52 = vmax.f32 %v933_v46, 0.0  ;;  %v1153_v53 = vmax.f32 %v1077_v47, 0.0  ;;  %v936_v54 = vadd.f32 %v2172_v18, %v935_v50  ;;  %v1080_v55 = vadd.f32 %v2172_v18, %v1079_v51  ;;  %v937_v56 = vpop.f32.mrb[71].mxu0  ;;  %v1081_v57 = vpop.f32.mrb[71].mxu1 }
 0x18a   : > { %v1807_v58 = vpack.c.bf16 %v1117_v52, %v1117_v52  ;;  %v1843_v59 = vpack.c.bf16 %v1153_v53, %v1153_v53  ;;  %v1118_v60 = vmax.f32 %v936_v54, 0.0  ;;  %v1154_v61 = vmax.f32 %v1080_v55, 0.0 }
 0x18c   : > { %1478 = vst.msk [vmem:[%s2182_s16 + $0x88] sm:$0xf] %vm1443_vm1, %v1807_v58  ;;  %1514 = vst.msk [vmem:[%s2182_s16 + $0x118] sm:$0xf] %vm1443_vm1, %v1843_v59  ;;  %v1808_v62 = vpack.c.bf16 %v1118_v60, %v1118_v60  ;;  %v1844_v63 = vpack.c.bf16 %v1154_v61, %v1154_v61 }
 0x18e   : > { %1479 = vst.msk [vmem:[%s2182_s16 + $0x8c] sm:$0xf] %vm1443_vm1, %v1808_v62  ;;  %1515 = vst.msk [vmem:[%s2182_s16 + $0x11c] sm:$0xf] %vm1443_vm1, %v1844_v63 }
 0x18f PF: > { %s13_s12 = sadd.s32 1, %s1995_s12  }
 0x190   : > { %p10_p4 = scmp.ge.s32.totalorder %s13_s12, 4  }
 0x192   :  { %12 = sbr.rel (!%p10_p4) target bundleno = 1 (0x1), region = 62 }

// kernel: critic_forward.5
= control target key start
LH: loop header
LB: loop body
LE: loop exit
PB: predicated region body
PF: predicated region fallthrough
CT: control target
= control target key end

     0   :  { %v1992_v0 = vmov 0   ;;  %vm1060_vm0 = vcmask 523264   ;;  %vm1594_vm1 = vcmask 519168   ;;  %s3026_s1 = inlined_call_operand.vmem [shape: bf16[512,64], index: 1, kind: input, shape index: {}]   ;;  %s3027_s0 = inlined_call_operand.vmem [shape: bf16[288,512], index: 0, kind: input, shape index: {}]   ;;  %s3028_s2 = inlined_call_operand.vmem [shape: f32[1,64], index: 2, kind: input, shape index: {}]   ;;  %s3029_s3 = inlined_call_operand.vmem [shape: f32[1,64], index: 3, kind: input, shape index: {}]   ;;  %s3030_s4 = inlined_call_operand.vmem [shape: bf16[288,64], index: 4, kind: output, shape index: {}]  }
   0x1   :  { %706 = vmatprep.subr.bf16.mxu1 %v1992_v0  ;;  %883 = vmatprep.subr.bf16.mxu0 %v1992_v0  ;;  %v1850_v1 = vld [vmem:[%s3026_s1] sm:$0xff]   ;;  %v1852_v3 = vld [vmem:[%s3026_s1 + $0x8] sm:$0xff]   ;;  %v1854_v5 = vld [vmem:[%s3026_s1 + $0x10] sm:$0xff]  }
   0x2   :  { %v1851_v2 = vld [vmem:[%s3026_s1 + $0x80] sm:$0xff]   ;;  %707 = vmatpush1.bf16.msra.mxu1 %v1850_v1  ;;  %v1853_v4 = vld [vmem:[%s3026_s1 + $0x88] sm:$0xff]   ;;  %v1855_v6 = vld [vmem:[%s3026_s1 + $0x90] sm:$0xff]  }
   0x3   :  { %884 = vmatpush1.bf16.msra.mxu0 %v1851_v2  ;;  %708 = vmatprep.subr.bf16.mxu1 %v1992_v0  ;;  %v1856_v7 = vld [vmem:[%s3026_s1 + $0x18] sm:$0xff]   ;;  %v1858_v9 = vld [vmem:[%s3026_s1 + $0x20] sm:$0xff]   ;;  %v1860_v11 = vld [vmem:[%s3026_s1 + $0x28] sm:$0xff]  }
   0x4   :  { %885 = vmatprep.subr.bf16.mxu0 %v1992_v0  ;;  %v1857_v8 = vld [vmem:[%s3026_s1 + $0x98] sm:$0xff]   ;;  %v1859_v10 = vld [vmem:[%s3026_s1 + $0xa0] sm:$0xff]   ;;  %v1861_v12 = vld [vmem:[%s3026_s1 + $0xa8] sm:$0xff]  }
   0x5   :  { %v1862_v13 = vld [vmem:[%s3026_s1 + $0x30] sm:$0xff]   ;;  %v1864_v15 = vld [vmem:[%s3026_s1 + $0x38] sm:$0xff]   ;;  %v1866_v17 = vld [vmem:[%s3026_s1 + $0x40] sm:$0xff]  }
   0x6   :  { %709 = vmatpush1.bf16.msra.mxu1 %v1852_v3  ;;  %v1863_v14 = vld [vmem:[%s3026_s1 + $0xb0] sm:$0xff]   ;;  %v1865_v16 = vld [vmem:[%s3026_s1 + $0xb8] sm:$0xff]   ;;  %v1867_v18 = vld [vmem:[%s3026_s1 + $0xc0] sm:$0xff]  }
   0x7   :  { %886 = vmatpush1.bf16.msra.mxu0 %v1853_v4  ;;  %710 = vmatprep.subr.bf16.mxu1 %v1992_v0  ;;  %v1884_v19 = vld [vmem:[%s3027_s0 + $0x4] ss:$16 sps:$4 sm:$0xff]   ;;  %v1868_v20 = vld [vmem:[%s3026_s1 + $0x48] sm:$0xff]   ;;  %v1872_v25 = vld [vmem:[%s3026_s1 + $0x58] sm:$0xff]  }
   0x8   :  { %887 = vmatprep.subr.bf16.mxu0 %v1992_v0  ;;  %v1887_v21 = vld [vmem:[%s3027_s0 + $0xc] ss:$16 sps:$4 sm:$0xff]   ;;  %738 = vmatprep.mubr.bf16.mxu1 %v1884_v19  ;;  %v1870_v23 = vld [vmem:[%s3026_s1 + $0x50] sm:$0xff]   ;;  %v1874_v27 = vld [vmem:[%s3026_s1 + $0x60] sm:$0xff]  }
   0x9   :  { %v1869_v22 = vld [vmem:[%s3026_s1 + $0xc8] sm:$0xff]   ;;  %915 = vmatprep.mubr.bf16.mxu0 %v1887_v21  ;;  %v1871_v24 = vld [vmem:[%s3026_s1 + $0xd0] sm:$0xff]   ;;  %v1873_v26 = vld [vmem:[%s3026_s1 + $0xd8] sm:$0xff]  }
   0xa   :  { %711 = vmatpush1.bf16.msra.mxu1 %v1854_v5  ;;  %v1875_v28 = vld [vmem:[%s3026_s1 + $0xe0] sm:$0xff]   ;;  %v1876_v29 = vld [vmem:[%s3026_s1 + $0x68] sm:$0xff]   ;;  %v1878_v31 = vld [vmem:[%s3026_s1 + $0x70] sm:$0xff]  }
   0xb   :  { %888 = vmatpush1.bf16.msra.mxu0 %v1855_v6  ;;  %712 = vmatprep.subr.bf16.mxu1 %v1992_v0  ;;  %v1877_v30 = vld [vmem:[%s3026_s1 + $0xe8] sm:$0xff]   ;;  %v1879_v32 = vld [vmem:[%s3026_s1 + $0xf0] sm:$0xff]   ;;  %v1880_v33 = vld [vmem:[%s3026_s1 + $0x78] sm:$0xff]  }
   0xc   :  { %889 = vmatprep.subr.bf16.mxu0 %v1992_v0  ;;  %v1881_v34 = vld [vmem:[%s3026_s1 + $0xf8] sm:$0xff]   ;;  %v1882_v35 = vld [vmem:[%s3027_s0] ss:$16 sps:$4 sm:$0xff]   ;;  %v1888_v37 = vld [vmem:[%s3027_s0 + $0x24] ss:$16 sps:$4 sm:$0xff]  }
   0xd   :  { %v1885_v36 = vld [vmem:[%s3027_s0 + $0x8] ss:$16 sps:$4 sm:$0xff]   ;;  %v1890_v38 = vld [vmem:[%s3027_s0 + $0x2c] ss:$16 sps:$4 sm:$0xff]   ;;  %v1892_v39 = vld [vmem:[%s3027_s0 + $0x20] ss:$16 sps:$4 sm:$0xff]  }
   0xe   :  { %713 = vmatpush1.bf16.msra.mxu1 %v1856_v7  ;;  %v1893_v40 = vld [vmem:[%s3027_s0 + $0x28] ss:$16 sps:$4 sm:$0xff]   ;;  %v1894_v41 = vld [vmem:[%s3027_s0 + $0x44] ss:$16 sps:$4 sm:$0xff]   ;;  %v1896_v42 = vld [vmem:[%s3027_s0 + $0x4c] ss:$16 sps:$4 sm:$0xff]  }
   0xf   :  { %890 = vmatpush1.bf16.msra.mxu0 %v1857_v8  ;;  %714 = vmatprep.subr.bf16.mxu1 %v1992_v0  ;;  %v1898_v43 = vld [vmem:[%s3027_s0 + $0x40] ss:$16 sps:$4 sm:$0xff]   ;;  %v1899_v44 = vld [vmem:[%s3027_s0 + $0x48] ss:$16 sps:$4 sm:$0xff]   ;;  %v1900_v45 = vld [vmem:[%s3027_s0 + $0x64] ss:$16 sps:$4 sm:$0xff]  }
  0x10   :  { %891 = vmatprep.subr.bf16.mxu0 %v1992_v0  ;;  %v1902_v46 = vld [vmem:[%s3027_s0 + $0x6c] ss:$16 sps:$4 sm:$0xff]   ;;  %v1904_v47 = vld [vmem:[%s3027_s0 + $0x60] ss:$16 sps:$4 sm:$0xff]   ;;  %v1905_v48 = vld [vmem:[%s3027_s0 + $0x68] ss:$16 sps:$4 sm:$0xff]  }
  0x11   :  { %v1906_v49 = vld [vmem:[%s3027_s0 + $0x84] ss:$16 sps:$4 sm:$0xff]   ;;  %v1908_v50 = vld [vmem:[%s3027_s0 + $0x8c] ss:$16 sps:$4 sm:$0xff]   ;;  %v1910_v51 = vld [vmem:[%s3027_s0 + $0x80] ss:$16 sps:$4 sm:$0xff]  }
  0x12   :  { %715 = vmatpush1.bf16.msra.mxu1 %v1858_v9  ;;  %v1911_v52 = vld [vmem:[%s3027_s0 + $0x88] ss:$16 sps:$4 sm:$0xff]   ;;  %v1912_v53 = vld [vmem:[%s3027_s0 + $0xa4] ss:$16 sps:$4 sm:$0xff]   ;;  %v1914_v54 = vld [vmem:[%s3027_s0 + $0xac] ss:$16 sps:$4 sm:$0xff]  }
  0x13   :  { %892 = vmatpush1.bf16.msra.mxu0 %v1859_v10  ;;  %716 = vmatprep.subr.bf16.mxu1 %v1992_v0  ;;  %v1916_v55 = vld [vmem:[%s3027_s0 + $0xa0] ss:$16 sps:$4 sm:$0xff]   ;;  %v1917_v56 = vld [vmem:[%s3027_s0 + $0xa8] ss:$16 sps:$4 sm:$0xff]   ;;  %v1918_v57 = vld [vmem:[%s3027_s0 + $0xc4] ss:$16 sps:$4 sm:$0xff]  }
  0x14   :  { %893 = vmatprep.subr.bf16.mxu0 %v1992_v0  ;;  %v1920_v58 = vld [vmem:[%s3027_s0 + $0xcc] ss:$16 sps:$4 sm:$0xff]   ;;  %v1922_v59 = vld [vmem:[%s3027_s0 + $0xc0] ss:$16 sps:$4 sm:$0xff]   ;;  %v1923_v60 = vld [vmem:[%s3027_s0 + $0xc8] ss:$16 sps:$4 sm:$0xff]  }
  0x15   :  { %v1924_v61 = vld [vmem:[%s3027_s0 + $0xe4] ss:$16 sps:$4 sm:$0xff]   ;;  %v1926_v62 = vld [vmem:[%s3027_s0 + $0xec] ss:$16 sps:$4 sm:$0xff]   ;;  %v1928_v63 = vld [vmem:[%s3027_s0 + $0xe0] ss:$16 sps:$4 sm:$0xff]  }
  0x16   :  { %717 = vmatpush1.bf16.msra.mxu1 %v1860_v11  ;;  %v1930_v1 = vld [vmem:[%s3027_s0 + $0x104] ss:$16 sps:$4 sm:$0xff]   ;;  %v1932_v2 = vld [vmem:[%s3027_s0 + $0x10c] ss:$16 sps:$4 sm:$0xff]   ;;  %v1934_v3 = vld [vmem:[%s3027_s0 + $0x100] ss:$16 sps:$4 sm:$0xff]  }
  0x17   :  { %894 = vmatpush1.bf16.msra.mxu0 %v1861_v12  ;;  %718 = vmatprep.subr.bf16.mxu1 %v1992_v0  ;;  %v1935_v4 = vld [vmem:[%s3027_s0 + $0x108] ss:$16 sps:$4 sm:$0xff]   ;;  %v1936_v5 = vld [vmem:[%s3027_s0 + $0x124] ss:$16 sps:$4 sm:$0xff]   ;;  %v1938_v6 = vld [vmem:[%s3027_s0 + $0x12c] ss:$16 sps:$4 sm:$0xff]  }
  0x18   :  { %895 = vmatprep.subr.bf16.mxu0 %v1992_v0  ;;  %v1940_v7 = vld [vmem:[%s3027_s0 + $0x120] ss:$16 sps:$4 sm:$0xff]   ;;  %v1941_v8 = vld [vmem:[%s3027_s0 + $0x128] ss:$16 sps:$4 sm:$0xff]   ;;  %v1942_v9 = vld [vmem:[%s3027_s0 + $0x144] ss:$16 sps:$4 sm:$0xff]  }
  0x19   :  { %v1944_v10 = vld [vmem:[%s3027_s0 + $0x14c] ss:$16 sps:$4 sm:$0xff]   ;;  %v1946_v11 = vld [vmem:[%s3027_s0 + $0x140] ss:$16 sps:$4 sm:$0xff]   ;;  %v1947_v12 = vld [vmem:[%s3027_s0 + $0x148] ss:$16 sps:$4 sm:$0xff]  }
  0x1a   :  { %719 = vmatpush1.bf16.msra.mxu1 %v1862_v13  ;;  %v1948_v13 = vld [vmem:[%s3027_s0 + $0x164] ss:$16 sps:$4 sm:$0xff]   ;;  %v1958_v19 = vld [vmem:[%s3027_s0 + $0x180] ss:$16 sps:$4 sm:$0xff]  }
  0x1b   :  { %896 = vmatpush1.bf16.msra.mxu0 %v1863_v14  ;;  %720 = vmatprep.subr.bf16.mxu1 %v1992_v0  ;;  %v1950_v14 = vld [vmem:[%s3027_s0 + $0x16c] ss:$16 sps:$4 sm:$0xff]   ;;  %v1960_v21 = vld [vmem:[%s3027_s0 + $0x1a4] ss:$16 sps:$4 sm:$0xff]  }
  0x1c   :  { %897 = vmatprep.subr.bf16.mxu0 %v1992_v0 }
  0x1e   :  { %721 = vmatpush1.bf16.msra.mxu1 %v1864_v15  ;;  %v1952_v15 = vld [vmem:[%s3027_s0 + $0x160] ss:$16 sps:$4 sm:$0xff]  }
  0x1f   :  { %898 = vmatpush1.bf16.msra.mxu0 %v1865_v16  ;;  %722 = vmatprep.subr.bf16.mxu1 %v1992_v0  ;;  %v1953_v16 = vld [vmem:[%s3027_s0 + $0x168] ss:$16 sps:$4 sm:$0xff]  }
  0x20   :  { %899 = vmatprep.subr.bf16.mxu0 %v1992_v0 }
  0x22   :  { %723 = vmatpush1.bf16.msra.mxu1 %v1866_v17  ;;  %v1954_v17 = vld [vmem:[%s3027_s0 + $0x184] ss:$16 sps:$4 sm:$0xff]  }
  0x23   :  { %900 = vmatpush1.bf16.msra.mxu0 %v1867_v18  ;;  %724 = vmatprep.subr.bf16.mxu1 %v1992_v0  ;;  %v1956_v18 = vld [vmem:[%s3027_s0 + $0x18c] ss:$16 sps:$4 sm:$0xff]  }
  0x24   :  { %901 = vmatprep.subr.bf16.mxu0 %v1992_v0 }
  0x26   :  { %725 = vmatpush1.bf16.msra.mxu1 %v1868_v20  ;;  %v1959_v20 = vld [vmem:[%s3027_s0 + $0x188] ss:$16 sps:$4 sm:$0xff]  }
  0x27   :  { %902 = vmatpush1.bf16.msra.mxu0 %v1869_v22  ;;  %726 = vmatprep.subr.bf16.mxu1 %v1992_v0  ;;  %v1962_v22 = vld [vmem:[%s3027_s0 + $0x1ac] ss:$16 sps:$4 sm:$0xff]  }
  0x28   :  { %903 = vmatprep.subr.bf16.mxu0 %v1992_v0 }
  0x2a   :  { %727 = vmatpush1.bf16.msra.mxu1 %v1870_v23  ;;  %v1964_v23 = vld [vmem:[%s3027_s0 + $0x1a0] ss:$16 sps:$4 sm:$0xff]  }
  0x2b   :  { %904 = vmatpush1.bf16.msra.mxu0 %v1871_v24  ;;  %728 = vmatprep.subr.bf16.mxu1 %v1992_v0  ;;  %v1965_v24 = vld [vmem:[%s3027_s0 + $0x1a8] ss:$16 sps:$4 sm:$0xff]  }
  0x2c   :  { %905 = vmatprep.subr.bf16.mxu0 %v1992_v0 }
  0x2e   :  { %729 = vmatpush1.bf16.msra.mxu1 %v1872_v25  ;;  %v1966_v25 = vld [vmem:[%s3027_s0 + $0x1c4] ss:$16 sps:$4 sm:$0xff]  }
  0x2f   :  { %906 = vmatpush1.bf16.msra.mxu0 %v1873_v26  ;;  %730 = vmatprep.subr.bf16.mxu1 %v1992_v0  ;;  %v1968_v26 = vld [vmem:[%s3027_s0 + $0x1cc] ss:$16 sps:$4 sm:$0xff]  }
  0x30   :  { %907 = vmatprep.subr.bf16.mxu0 %v1992_v0 }
  0x32   :  { %731 = vmatpush1.bf16.msra.mxu1 %v1874_v27  ;;  %v1970_v27 = vld [vmem:[%s3027_s0 + $0x1c0] ss:$16 sps:$4 sm:$0xff]  }
  0x33   :  { %908 = vmatpush1.bf16.msra.mxu0 %v1875_v28  ;;  %732 = vmatprep.subr.bf16.mxu1 %v1992_v0  ;;  %v1971_v28 = vld [vmem:[%s3027_s0 + $0x1c8] ss:$16 sps:$4 sm:$0xff]  }
  0x34   :  { %909 = vmatprep.subr.bf16.mxu0 %v1992_v0 }
  0x36   :  { %733 = vmatpush1.bf16.msra.mxu1 %v1876_v29  ;;  %v1972_v29 = vld [vmem:[%s3027_s0 + $0x1e4] ss:$16 sps:$4 sm:$0xff]  }
  0x37   :  { %910 = vmatpush1.bf16.msra.mxu0 %v1877_v30  ;;  %734 = vmatprep.subr.bf16.mxu1 %v1992_v0  ;;  %v1974_v30 = vld [vmem:[%s3027_s0 + $0x1ec] ss:$16 sps:$4 sm:$0xff]  }
  0x38   :  { %911 = vmatprep.subr.bf16.mxu0 %v1992_v0 }
  0x3a   :  { %735 = vmatpush1.bf16.msra.mxu1 %v1878_v31  ;;  %v1976_v31 = vld [vmem:[%s3027_s0 + $0x1e0] ss:$16 sps:$4 sm:$0xff]  }
  0x3b   :  { %912 = vmatpush1.bf16.msra.mxu0 %v1879_v32  ;;  %736 = vmatprep.subr.bf16.mxu1 %v1992_v0  ;;  %v1977_v32 = vld [vmem:[%s3027_s0 + $0x1e8] ss:$16 sps:$4 sm:$0xff]  }
  0x3c   :  { %913 = vmatprep.subr.bf16.mxu0 %v1992_v0  ;;  %v1929_v0 = vld [vmem:[%s3027_s0 + $0xe8] ss:$16 sps:$4 sm:$0xff]  }
  0x3e   :  { %737 = vmatpush1.bf16.msra.mxu1 %v1880_v33  ;;  %v1978_v33 = vld [vmem:[%s3027_s0 + $0x204] ss:$16 sps:$4 sm:$0xff]  }
  0x3f   :  { %914 = vmatpush1.bf16.msra.mxu0 %v1881_v34  ;;  %v1980_v34 = vld [vmem:[%s3027_s0 + $0x20c] ss:$16 sps:$4 sm:$0xff]  }
  0x41   :  { %739 = vmatmul.mubr.bf16.vlgmr.msra.gmra.mrb[0].mxu1 %v1882_v35  ;;  %v1982_v35 = vld [vmem:[%s3027_s0 + $0x200] ss:$16 sps:$4 sm:$0xff]  }
  0x42   :  { %916 = vmatmul.mubr.bf16.vlgmr.msra.gmra.mrb[0].mxu0 %v1885_v36  ;;  %746 = vmatprep.mubr.bf16.mxu1 %v1888_v37  ;;  %v1983_v36 = vld [vmem:[%s3027_s0 + $0x208] ss:$16 sps:$4 sm:$0xff]   ;;  %v1984_v37 = vld [vmem:[%s3027_s0 + $0x224] ss:$16 sps:$4 sm:$0xff]  }
  0x43   :  { %923 = vmatprep.mubr.bf16.mxu0 %v1890_v38  ;;  %v1986_v38 = vld [vmem:[%s3027_s0 + $0x22c] ss:$16 sps:$4 sm:$0xff]  }
  0x49   :  { %747 = vmatmul.mubr.bf16.gmra.mrb[4].mxu1 %v1892_v39  ;;  %v1988_v39 = vld [vmem:[%s3027_s0 + $0x220] ss:$16 sps:$4 sm:$0xff]  }
  0x4a   :  { %924 = vmatmul.mubr.bf16.gmra.mrb[4].mxu0 %v1893_v40  ;;  %754 = vmatprep.mubr.bf16.mxu1 %v1894_v41  ;;  %v1989_v40 = vld [vmem:[%s3027_s0 + $0x228] ss:$16 sps:$4 sm:$0xff]  }
  0x4b   :  { %931 = vmatprep.mubr.bf16.mxu0 %v1896_v42 }
  0x51   :  { %755 = vmatmul.mubr.bf16.gmra.mrb[8].mxu1 %v1898_v43 }
  0x52   :  { %932 = vmatmul.mubr.bf16.gmra.mrb[8].mxu0 %v1899_v44  ;;  %762 = vmatprep.mubr.bf16.mxu1 %v1900_v45 }
  0x53   :  { %939 = vmatprep.mubr.bf16.mxu0 %v1902_v46 }
  0x59   :  { %763 = vmatmul.mubr.bf16.gmra.mrb[12].mxu1 %v1904_v47 }
  0x5a   :  { %940 = vmatmul.mubr.bf16.gmra.mrb[12].mxu0 %v1905_v48  ;;  %770 = vmatprep.mubr.bf16.mxu1 %v1906_v49 }
  0x5b   :  { %947 = vmatprep.mubr.bf16.mxu0 %v1908_v50 }
  0x61   :  { %771 = vmatmul.mubr.bf16.gmra.mrb[16].mxu1 %v1910_v51 }
  0x62   :  { %948 = vmatmul.mubr.bf16.gmra.mrb[16].mxu0 %v1911_v52  ;;  %778 = vmatprep.mubr.bf16.mxu1 %v1912_v53 }
  0x63   :  { %955 = vmatprep.mubr.bf16.mxu0 %v1914_v54 }
  0x69   :  { %779 = vmatmul.mubr.bf16.gmra.mrb[20].mxu1 %v1916_v55 }
  0x6a   :  { %956 = vmatmul.mubr.bf16.gmra.mrb[20].mxu0 %v1917_v56  ;;  %786 = vmatprep.mubr.bf16.mxu1 %v1918_v57 }
  0x6b   :  { %963 = vmatprep.mubr.bf16.mxu0 %v1920_v58 }
  0x71   :  { %787 = vmatmul.mubr.bf16.gmra.mrb[24].mxu1 %v1922_v59 }
  0x72   :  { %964 = vmatmul.mubr.bf16.gmra.mrb[24].mxu0 %v1923_v60  ;;  %794 = vmatprep.mubr.bf16.mxu1 %v1924_v61 }
  0x73   :  { %971 = vmatprep.mubr.bf16.mxu0 %v1926_v62 }
  0x79   :  { %795 = vmatmul.mubr.bf16.gmra.mrb[28].mxu1 %v1928_v63 }
  0x7a   :  { %972 = vmatmul.mubr.bf16.gmra.mrb[28].mxu0 %v1929_v0  ;;  %802 = vmatprep.mubr.bf16.mxu1 %v1930_v1 }
  0x7b   :  { %979 = vmatprep.mubr.bf16.mxu0 %v1932_v2 }
  0x81   :  { %803 = vmatmul.mubr.bf16.gmra.mrb[32].mxu1 %v1934_v3 }
  0x82   :  { %980 = vmatmul.mubr.bf16.gmra.mrb[32].mxu0 %v1935_v4  ;;  %810 = vmatprep.mubr.bf16.mxu1 %v1936_v5 }
  0x83   :  { %987 = vmatprep.mubr.bf16.mxu0 %v1938_v6 }
  0x89   :  { %811 = vmatmul.mubr.bf16.gmra.mrb[36].mxu1 %v1940_v7 }
  0x8a   :  { %988 = vmatmul.mubr.bf16.gmra.mrb[36].mxu0 %v1941_v8  ;;  %818 = vmatprep.mubr.bf16.mxu1 %v1942_v9 }
  0x8b   :  { %995 = vmatprep.mubr.bf16.mxu0 %v1944_v10 }
  0x91   :  { %819 = vmatmul.mubr.bf16.gmra.mrb[40].mxu1 %v1946_v11 }
  0x92   :  { %996 = vmatmul.mubr.bf16.gmra.mrb[40].mxu0 %v1947_v12  ;;  %826 = vmatprep.mubr.bf16.mxu1 %v1948_v13 }
  0x93   :  { %1003 = vmatprep.mubr.bf16.mxu0 %v1950_v14 }
  0x99   :  { %827 = vmatmul.mubr.bf16.gmra.mrb[44].mxu1 %v1952_v15 }
  0x9a   :  { %1004 = vmatmul.mubr.bf16.gmra.mrb[44].mxu0 %v1953_v16  ;;  %834 = vmatprep.mubr.bf16.mxu1 %v1954_v17 }
  0x9b   :  { %1011 = vmatprep.mubr.bf16.mxu0 %v1956_v18 }
  0xa1   :  { %835 = vmatmul.mubr.bf16.gmra.mrb[48].mxu1 %v1958_v19 }
  0xa2   :  { %1012 = vmatmul.mubr.bf16.gmra.mrb[48].mxu0 %v1959_v20  ;;  %842 = vmatprep.mubr.bf16.mxu1 %v1960_v21 }
  0xa3   :  { %1019 = vmatprep.mubr.bf16.mxu0 %v1962_v22 }
  0xa9   :  { %843 = vmatmul.mubr.bf16.gmra.mrb[52].mxu1 %v1964_v23 }
  0xaa   :  { %1020 = vmatmul.mubr.bf16.gmra.mrb[52].mxu0 %v1965_v24  ;;  %850 = vmatprep.mubr.bf16.mxu1 %v1966_v25 }
  0xab   :  { %1027 = vmatprep.mubr.bf16.mxu0 %v1968_v26 }
  0xb1   :  { %851 = vmatmul.mubr.bf16.gmra.mrb[56].mxu1 %v1970_v27 }
  0xb2   :  { %1028 = vmatmul.mubr.bf16.gmra.mrb[56].mxu0 %v1971_v28  ;;  %858 = vmatprep.mubr.bf16.mxu1 %v1972_v29 }
  0xb3   :  { %1035 = vmatprep.mubr.bf16.mxu0 %v1974_v30 }
  0xb9   :  { %859 = vmatmul.mubr.bf16.gmra.mrb[60].mxu1 %v1976_v31 }
  0xba   :  { %1036 = vmatmul.mubr.bf16.gmra.mrb[60].mxu0 %v1977_v32  ;;  %866 = vmatprep.mubr.bf16.mxu1 %v1978_v33 }
  0xbb   :  { %1043 = vmatprep.mubr.bf16.mxu0 %v1980_v34 }
  0xc1   :  { %867 = vmatmul.mubr.bf16.gmra.mrb[64].mxu1 %v1982_v35 }
  0xc2   :  { %1044 = vmatmul.mubr.bf16.gmra.mrb[64].mxu0 %v1983_v36  ;;  %874 = vmatprep.mubr.bf16.mxu1 %v1984_v37 }
  0xc3   :  { %1051 = vmatprep.mubr.bf16.mxu0 %v1986_v38 }
  0xc9   :  { %875 = vmatmul.mubr.bf16.gmra.mrb[68].mxu1 %v1988_v39 }
  0xca   :  { %1052 = vmatmul.mubr.bf16.gmra.mrb[68].mxu0 %v1989_v40 }
 0x114   :  { %v740_v41 = vpop.f32.mrb[0].mxu1 }
 0x115   :  { %v917_v42 = vpop.f32.mrb[0].mxu0  ;;  %v742_v43 = vpop.f32.mrb[1].mxu1 }
 0x116   :  { %v2362_v44 = vadd.f32 %v917_v42, %v740_v41  ;;  %v919_v45 = vpop.f32.mrb[1].mxu0  ;;  %v743_v46 = vpop.f32.mrb[2].mxu1 }
 0x117   :  { %v920_v47 = vpop.f32.mrb[2].mxu0  ;;  %v745_v48 = vpop.f32.mrb[3].mxu1 }
 0x118   :  { %v2364_v49 = vadd.f32 %v920_v47, %v743_v46  ;;  %v922_v50 = vpop.f32.mrb[3].mxu0  ;;  %v1061_v21 = vsel %vm1060_vm0, %v2362_v44, 0.0 }
 0x11a   :  { %v1062_v17 = vsel %vm1060_vm0, %v2364_v49, 0.0 }
 0x11b   :  { %v1063_v26 = vadd.f32 %v1062_v17, %v1061_v21 }
 0x11c   :  { %v748_v51 = vpop.f32.mrb[4].mxu1 }
 0x11d   :  { %v925_v52 = vpop.f32.mrb[4].mxu0  ;;  %v750_v53 = vpop.f32.mrb[5].mxu1 }
 0x11e   :  { %v2366_v54 = vadd.f32 %v925_v52, %v748_v51  ;;  %v927_v55 = vpop.f32.mrb[5].mxu0  ;;  %v751_v56 = vpop.f32.mrb[6].mxu1 }
 0x11f   :  { %v928_v57 = vpop.f32.mrb[6].mxu0  ;;  %v753_v58 = vpop.f32.mrb[7].mxu1 }
 0x120   :  { %v2368_v59 = vadd.f32 %v928_v57, %v751_v56  ;;  %v930_v60 = vpop.f32.mrb[7].mxu0  ;;  %v1064_v22 = vsel %vm1060_vm0, %v2366_v54, 0.0 }
 0x121   :  { %v1065_v31 = vadd.f32 %v1064_v22, %v1063_v26 }
 0x122   :  { %v1066_v32 = vsel %vm1060_vm0, %v2368_v59, 0.0 }
 0x123   :  { %v1067_v35 = vadd.f32 %v1066_v32, %v1065_v31 }
 0x124   :  { %v756_v61 = vpop.f32.mrb[8].mxu1 }
 0x125   :  { %v933_v62 = vpop.f32.mrb[8].mxu0  ;;  %v758_v63 = vpop.f32.mrb[9].mxu1 }
 0x126   :  { %v2370_v0 = vadd.f32 %v933_v62, %v756_v61  ;;  %v935_v1 = vpop.f32.mrb[9].mxu0  ;;  %v759_v2 = vpop.f32.mrb[10].mxu1 }
 0x127   :  { %v936_v3 = vpop.f32.mrb[10].mxu0  ;;  %v761_v4 = vpop.f32.mrb[11].mxu1 }
 0x128   :  { %v2372_v5 = vadd.f32 %v936_v3, %v759_v2  ;;  %v938_v6 = vpop.f32.mrb[11].mxu0  ;;  %v1068_v33 = vsel %vm1060_vm0, %v2370_v0, 0.0 }
 0x129   :  { %v1069_v41 = vadd.f32 %v1068_v33, %v1067_v35 }
 0x12a   :  { %v1070_v45 = vsel %vm1060_vm0, %v2372_v5, 0.0 }
 0x12b   :  { %v1071_v50 = vadd.f32 %v1070_v45, %v1069_v41 }
 0x12c   :  { %v764_v7 = vpop.f32.mrb[12].mxu1 }
 0x12d   :  { %v941_v8 = vpop.f32.mrb[12].mxu0  ;;  %v766_v9 = vpop.f32.mrb[13].mxu1 }
 0x12e   :  { %v2374_v10 = vadd.f32 %v941_v8, %v764_v7  ;;  %v943_v11 = vpop.f32.mrb[13].mxu0  ;;  %v767_v12 = vpop.f32.mrb[14].mxu1 }
 0x12f   :  { %v944_v13 = vpop.f32.mrb[14].mxu0  ;;  %v769_v14 = vpop.f32.mrb[15].mxu1 }
 0x130   :  { %v2376_v15 = vadd.f32 %v944_v13, %v767_v12  ;;  %v946_v16 = vpop.f32.mrb[15].mxu0  ;;  %v1072_v48 = vsel %vm1060_vm0, %v2374_v10, 0.0 }
 0x131   :  { %v1073_v52 = vadd.f32 %v1072_v48, %v1071_v50 }
 0x132   :  { %v1074_v56 = vsel %vm1060_vm0, %v2376_v15, 0.0 }
 0x133   :  { %v1075_v3 = vadd.f32 %v1074_v56, %v1073_v52 }
 0x134   :  { %v772_v18 = vpop.f32.mrb[16].mxu1 }
 0x135   :  { %v949_v19 = vpop.f32.mrb[16].mxu0  ;;  %v774_v20 = vpop.f32.mrb[17].mxu1 }
 0x136   :  { %v2384_v23 = vadd.f32 %v949_v19, %v772_v18  ;;  %v951_v24 = vpop.f32.mrb[17].mxu0  ;;  %v775_v25 = vpop.f32.mrb[18].mxu1 }
 0x137   :  { %v952_v27 = vpop.f32.mrb[18].mxu0  ;;  %v777_v28 = vpop.f32.mrb[19].mxu1 }
 0x138   :  { %v2386_v29 = vadd.f32 %v952_v27, %v775_v25  ;;  %v954_v30 = vpop.f32.mrb[19].mxu0  ;;  %v1076_v63 = vsel %vm1060_vm0, %v2384_v23, 0.0 }
 0x139   :  { %v1077_v4 = vadd.f32 %v1076_v63, %v1075_v3 }
 0x13a   :  { %v1078_v6 = vsel %vm1060_vm0, %v2386_v29, 0.0 }
 0x13b   :  { %v1079_v16 = vadd.f32 %v1078_v6, %v1077_v4 }
 0x13c   :  { %v780_v34 = vpop.f32.mrb[20].mxu1 }
 0x13d   :  { %v957_v36 = vpop.f32.mrb[20].mxu0  ;;  %v782_v37 = vpop.f32.mrb[21].mxu1 }
 0x13e   :  { %v2392_v38 = vadd.f32 %v957_v36, %v780_v34  ;;  %v959_v39 = vpop.f32.mrb[21].mxu0  ;;  %v783_v40 = vpop.f32.mrb[22].mxu1 }
 0x13f   :  { %v960_v42 = vpop.f32.mrb[22].mxu0  ;;  %v785_v43 = vpop.f32.mrb[23].mxu1 }
 0x140   :  { %v2396_v46 = vadd.f32 %v960_v42, %v783_v40  ;;  %v962_v47 = vpop.f32.mrb[23].mxu0  ;;  %v1080_v11 = vsel %vm1060_vm0, %v2392_v38, 0.0 }
 0x141   :  { %v1081_v21 = vadd.f32 %v1080_v11, %v1079_v16 }
 0x142   :  { %v1082_v22 = vsel %vm1060_vm0, %v2396_v46, 0.0 }
 0x143   :  { %v1083_v26 = vadd.f32 %v1082_v22, %v1081_v21 }
 0x144   :  { %v788_v51 = vpop.f32.mrb[24].mxu1 }
 0x145   :  { %v965_v53 = vpop.f32.mrb[24].mxu0  ;;  %v790_v55 = vpop.f32.mrb[25].mxu1 }
 0x146   :  { %v2402_v57 = vadd.f32 %v965_v53, %v788_v51  ;;  %v967_v58 = vpop.f32.mrb[25].mxu0  ;;  %v791_v60 = vpop.f32.mrb[26].mxu1 }
 0x147   :  { %v968_v61 = vpop.f32.mrb[26].mxu0  ;;  %v793_v62 = vpop.f32.mrb[27].mxu1 }
 0x148   :  { %v2406_v1 = vadd.f32 %v968_v61, %v791_v60  ;;  %v970_v2 = vpop.f32.mrb[27].mxu0  ;;  %v1084_v24 = vsel %vm1060_vm0, %v2402_v57, 0.0 }
 0x149   :  { %v1085_v33 = vadd.f32 %v1084_v24, %v1083_v26 }
 0x14a   :  { %v1086_v36 = vsel %vm1060_vm0, %v2406_v1, 0.0 }
 0x14b   :  { %v1087_v41 = vadd.f32 %v1086_v36, %v1085_v33 }
 0x14c   :  { %v796_v7 = vpop.f32.mrb[28].mxu1 }
 0x14d   :  { %v973_v8 = vpop.f32.mrb[28].mxu0  ;;  %v798_v9 = vpop.f32.mrb[29].mxu1 }
 0x14e   :  { %v2412_v12 = vadd.f32 %v973_v8, %v796_v7  ;;  %v975_v13 = vpop.f32.mrb[29].mxu0  ;;  %v799_v14 = vpop.f32.mrb[30].mxu1 }
 0x14f   :  { %v976_v17 = vpop.f32.mrb[30].mxu0  ;;  %v801_v18 = vpop.f32.mrb[31].mxu1 }
 0x150   :  { %v2414_v19 = vadd.f32 %v976_v17, %v799_v14  ;;  %v978_v20 = vpop.f32.mrb[31].mxu0  ;;  %v1088_v40 = vsel %vm1060_vm0, %v2412_v12, 0.0 }
 0x151   :  { %v1089_v43 = vadd.f32 %v1088_v40, %v1087_v41 }
 0x152   :  { %v1090_v48 = vsel %vm1060_vm0, %v2414_v19, 0.0 }
 0x153   :  { %v1091_v61 = vadd.f32 %v1090_v48, %v1089_v43 }
 0x154   :  { %v804_v25 = vpop.f32.mrb[32].mxu1 }
 0x155   :  { %v981_v27 = vpop.f32.mrb[32].mxu0  ;;  %v806_v28 = vpop.f32.mrb[33].mxu1 }
 0x156   :  { %v2420_v30 = vadd.f32 %v981_v27, %v804_v25  ;;  %v983_v31 = vpop.f32.mrb[33].mxu0  ;;  %v807_v32 = vpop.f32.mrb[34].mxu1 }
 0x157   :  { %v984_v34 = vpop.f32.mrb[34].mxu0  ;;  %v809_v35 = vpop.f32.mrb[35].mxu1 }
 0x158   :  { %v2424_v37 = vadd.f32 %v984_v34, %v807_v32  ;;  %v986_v39 = vpop.f32.mrb[35].mxu0  ;;  %v1092_v56 = vsel %vm1060_vm0, %v2420_v30, 0.0 }
 0x159   :  { %v1093_v62 = vadd.f32 %v1092_v56, %v1091_v61 }
 0x15a   :  { %v1094_v63 = vsel %vm1060_vm0, %v2424_v37, 0.0 }
 0x15b   :  { %v1095_v11 = vadd.f32 %v1094_v63, %v1093_v62 }
 0x15c   :  { %v812_v42 = vpop.f32.mrb[36].mxu1 }
 0x15d   :  { %v989_v45 = vpop.f32.mrb[36].mxu0  ;;  %v814_v47 = vpop.f32.mrb[37].mxu1 }
 0x15e   :  { %v2430_v50 = vadd.f32 %v989_v45, %v812_v42  ;;  %v991_v51 = vpop.f32.mrb[37].mxu0  ;;  %v815_v52 = vpop.f32.mrb[38].mxu1 }
 0x15f   :  { %v992_v53 = vpop.f32.mrb[38].mxu0  ;;  %v817_v55 = vpop.f32.mrb[39].mxu1 }
 0x160   :  { %v2434_v58 = vadd.f32 %v992_v53, %v815_v52  ;;  %v994_v60 = vpop.f32.mrb[39].mxu0  ;;  %v1096_v6 = vsel %vm1060_vm0, %v2430_v50, 0.0 }
 0x161   :  { %v1097_v18 = vadd.f32 %v1096_v6, %v1095_v11 }
 0x162   :  { %v1098_v20 = vsel %vm1060_vm0, %v2434_v58, 0.0 }
 0x163   :  { %v1099_v24 = vadd.f32 %v1098_v20, %v1097_v18 }
 0x164   :  { %v820_v2 = vpop.f32.mrb[40].mxu1 }
 0x165   :  { %v997_v3 = vpop.f32.mrb[40].mxu0  ;;  %v822_v4 = vpop.f32.mrb[41].mxu1 }
 0x166   :  { %v2440_v7 = vadd.f32 %v997_v3, %v820_v2  ;;  %v999_v8 = vpop.f32.mrb[41].mxu0  ;;  %v823_v9 = vpop.f32.mrb[42].mxu1 }
 0x167   :  { %v1000_v13 = vpop.f32.mrb[42].mxu0  ;;  %v825_v14 = vpop.f32.mrb[43].mxu1 }
 0x168   :  { %v2442_v16 = vadd.f32 %v1000_v13, %v823_v9  ;;  %v1002_v17 = vpop.f32.mrb[43].mxu0  ;;  %v1100_v21 = vsel %vm1060_vm0, %v2440_v7, 0.0 }
 0x169   :  { %v1101_v32 = vadd.f32 %v1100_v21, %v1099_v24 }
 0x16a   :  { %v1102_v35 = vsel %vm1060_vm0, %v2442_v16, 0.0 }
 0x16b   :  { %v1103_v41 = vadd.f32 %v1102_v35, %v1101_v32 }
 0x16c   :  { %v828_v22 = vpop.f32.mrb[44].mxu1 }
 0x16d   :  { %v1005_v25 = vpop.f32.mrb[44].mxu0  ;;  %v830_v26 = vpop.f32.mrb[45].mxu1 }
 0x16e   :  { %v2448_v27 = vadd.f32 %v1005_v25, %v828_v22  ;;  %v1007_v28 = vpop.f32.mrb[45].mxu0  ;;  %v831_v31 = vpop.f32.mrb[46].mxu1 }
 0x16f   :  { %v1008_v33 = vpop.f32.mrb[46].mxu0  ;;  %v833_v34 = vpop.f32.mrb[47].mxu1 }
 0x170   :  { %v2452_v36 = vadd.f32 %v1008_v33, %v831_v31  ;;  %v1010_v39 = vpop.f32.mrb[47].mxu0  ;;  %v1104_v40 = vsel %vm1060_vm0, %v2448_v27, 0.0 }
 0x171   :  { %v1105_v43 = vadd.f32 %v1104_v40, %v1103_v41 }
 0x172   :  { %v1106_v48 = vsel %vm1060_vm0, %v2452_v36, 0.0 }
 0x173   :  { %v1107_v63 = vadd.f32 %v1106_v48, %v1105_v43 }
 0x174   :  { %v836_v42 = vpop.f32.mrb[48].mxu1 }
 0x175   :  { %v1013_v45 = vpop.f32.mrb[48].mxu0  ;;  %v838_v47 = vpop.f32.mrb[49].mxu1 }
 0x176   :  { %v2458_v51 = vadd.f32 %v1013_v45, %v836_v42  ;;  %v1015_v52 = vpop.f32.mrb[49].mxu0  ;;  %v839_v53 = vpop.f32.mrb[50].mxu1 }
 0x177   :  { %v1016_v55 = vpop.f32.mrb[50].mxu0  ;;  %v841_v56 = vpop.f32.mrb[51].mxu1 }
 0x178   :  { %v1108_v60 = vsel %vm1060_vm0, %v2458_v51, 0.0  ;;  %v2462_v61 = vadd.f32 %v1016_v55, %v839_v53  ;;  %v1018_v62 = vpop.f32.mrb[51].mxu0 }
 0x179   :  { %v1109_v2 = vadd.f32 %v1108_v60, %v1107_v63 }
 0x17a   :  { %v1110_v3 = vsel %vm1060_vm0, %v2462_v61, 0.0 }
 0x17b   :  { %v1111_v14 = vadd.f32 %v1110_v3, %v1109_v2 }
 0x17c   :  { %v844_v4 = vpop.f32.mrb[52].mxu1 }
 0x17d   :  { %v1021_v6 = vpop.f32.mrb[52].mxu0  ;;  %v846_v8 = vpop.f32.mrb[53].mxu1 }
 0x17e   :  { %v2466_v9 = vadd.f32 %v1021_v6, %v844_v4  ;;  %v1023_v11 = vpop.f32.mrb[53].mxu0  ;;  %v847_v13 = vpop.f32.mrb[54].mxu1 }
 0x17f   :  { %v1024_v17 = vpop.f32.mrb[54].mxu0  ;;  %v849_v18 = vpop.f32.mrb[55].mxu1 }
 0x180   :  { %v1112_v20 = vsel %vm1060_vm0, %v2466_v9, 0.0  ;;  %v2470_v21 = vadd.f32 %v1024_v17, %v847_v13  ;;  %v1026_v22 = vpop.f32.mrb[55].mxu0 }
 0x181   :  { %v1113_v24 = vadd.f32 %v1112_v20, %v1111_v14 }
 0x182   :  { %v1114_v25 = vsel %vm1060_vm0, %v2470_v21, 0.0 }
 0x183   :  { %v1115_v26 = vadd.f32 %v1114_v25, %v1113_v24 }
 0x184   :  { %v852_v28 = vpop.f32.mrb[56].mxu1 }
 0x185   :  { %v1029_v31 = vpop.f32.mrb[56].mxu0  ;;  %v854_v32 = vpop.f32.mrb[57].mxu1 }
 0x186   :  { %v2474_v33 = vadd.f32 %v1029_v31, %v852_v28  ;;  %v1031_v34 = vpop.f32.mrb[57].mxu0  ;;  %v855_v35 = vpop.f32.mrb[58].mxu1 }
 0x187   :  { %v1032_v39 = vpop.f32.mrb[58].mxu0  ;;  %v857_v40 = vpop.f32.mrb[59].mxu1 }
 0x188   :  { %v1116_v41 = vsel %vm1060_vm0, %v2474_v33, 0.0  ;;  %v1033_v42 = vadd.f32 %v1032_v39, %v855_v35  ;;  %v1034_v43 = vpop.f32.mrb[59].mxu0 }
 0x189   :  { %v1117_v45 = vadd.f32 %v1116_v41, %v1115_v26 }
 0x18a   :  { %v1118_v47 = vsel %vm1060_vm0, %v1033_v42, 0.0 }
 0x18b   :  { %v1119_v48 = vadd.f32 %v1118_v47, %v1117_v45 }
 0x18c   :  { %v860_v52 = vpop.f32.mrb[60].mxu1 }
 0x18d   :  { %v1037_v53 = vpop.f32.mrb[60].mxu0  ;;  %v862_v55 = vpop.f32.mrb[61].mxu1 }
 0x18e   :  { %v1038_v56 = vadd.f32 %v1037_v53, %v860_v52  ;;  %v1039_v60 = vpop.f32.mrb[61].mxu0  ;;  %v863_v62 = vpop.f32.mrb[62].mxu1 }
 0x18f   :  { %v1040_v63 = vpop.f32.mrb[62].mxu0  ;;  %v865_v2 = vpop.f32.mrb[63].mxu1 }
 0x190   :  { %v1120_v3 = vsel %vm1060_vm0, %v1038_v56, 0.0  ;;  %v1041_v4 = vadd.f32 %v1040_v63, %v863_v62  ;;  %v1042_v6 = vpop.f32.mrb[63].mxu0 }
 0x191   :  { %v1121_v8 = vadd.f32 %v1120_v3, %v1119_v48 }
 0x192   :  { %v1122_v11 = vsel %vm1060_vm0, %v1041_v4, 0.0 }
 0x193   :  { %v1123_v13 = vadd.f32 %v1122_v11, %v1121_v8 }
 0x194   :  { %v868_v14 = vpop.f32.mrb[64].mxu1 }
 0x195   :  { %v1045_v17 = vpop.f32.mrb[64].mxu0  ;;  %v870_v18 = vpop.f32.mrb[65].mxu1 }
 0x196   :  { %v1046_v20 = vadd.f32 %v1045_v17, %v868_v14  ;;  %v1047_v22 = vpop.f32.mrb[65].mxu0  ;;  %v871_v24 = vpop.f32.mrb[66].mxu1 }
 0x197   :  { %v1048_v25 = vpop.f32.mrb[66].mxu0  ;;  %v873_v26 = vpop.f32.mrb[67].mxu1 }
 0x198   :  { %v1124_v28 = vsel %vm1060_vm0, %v1046_v20, 0.0  ;;  %v1049_v31 = vadd.f32 %v1048_v25, %v871_v24  ;;  %v1050_v32 = vpop.f32.mrb[67].mxu0 }
 0x199   :  { %v1125_v34 = vadd.f32 %v1124_v28, %v1123_v13 }
 0x19a   :  { %v1126_v35 = vsel %vm1060_vm0, %v1049_v31, 0.0 }
 0x19b   :  { %v1127_v39 = vadd.f32 %v1126_v35, %v1125_v34 }
 0x19c   :  { %v876_v40 = vpop.f32.mrb[68].mxu1 }
 0x19d   :  { %v1053_v41 = vpop.f32.mrb[68].mxu0  ;;  %v878_v43 = vpop.f32.mrb[69].mxu1 }
 0x19e   :  { %v1054_v45 = vadd.f32 %v1053_v41, %v876_v40  ;;  %v1055_v47 = vpop.f32.mrb[69].mxu0  ;;  %v879_v48 = vpop.f32.mrb[70].mxu1 }
 0x19f   :  { %v1056_v52 = vpop.f32.mrb[70].mxu0  ;;  %v881_v53 = vpop.f32.mrb[71].mxu1 }
 0x1a0   :  { %v1128_v55 = vsel %vm1060_vm0, %v1054_v45, 0.0  ;;  %v1057_v60 = vadd.f32 %v1056_v52, %v879_v48  ;;  %v1058_v62 = vpop.f32.mrb[71].mxu0 }
 0x1a1   :  { %v1129_v63 = vadd.f32 %v1128_v55, %v1127_v39 }
 0x1a2   :  { %v1130_v2 = vsel %vm1060_vm0, %v1057_v60, 0.0 }
 0x1a3   :  { %v1131_v3 = vadd.f32 %v1130_v2, %v1129_v63 }
 0x1a5   :  { %v1132_v6 = vrot.slane %v1131_v3, 4 }
 0x1a7   :  { %v1133_v8 = vadd.f32 %v1132_v6, %v1131_v3 }
 0x1a9   :  { %v1134_v11 = vrot.slane %v1133_v8, 2 }
 0x1ab   :  { %v1135_v13 = vadd.f32 %v1134_v11, %v1133_v8 }
 0x1ad   :  { %v1136_v14 = vrot.slane %v1135_v13, 1 }
 0x1af   :  { %v1137_v17 = vadd.f32 %v1136_v14, %v1135_v13 }
 0x1b1   :  { %v2485_v18 = vmul.f32 0.0034722222, %v1137_v17 }
 0x1b3   :  { %v2489_v22 = vsub.f32 %v2462_v61, %v2485_v18  ;;  %v2493_v24 = vsub.f32 %v2466_v9, %v2485_v18  ;;  %v2497_v25 = vsub.f32 %v2470_v21, %v2485_v18  ;;  %v2501_v26 = vsub.f32 %v2474_v33, %v2485_v18 }
 0x1b4   :  { %v2504_v28 = vsub.f32 %v1033_v42, %v2485_v18  ;;  %v2507_v32 = vsub.f32 %v1038_v56, %v2485_v18  ;;  %v2510_v61 = vsub.f32 %v1041_v4, %v2485_v18  ;;  %v2513_v9 = vsub.f32 %v1046_v20, %v2485_v18 }
 0x1b5   :  { %v2516_v34 = vsub.f32 %v1049_v31, %v2485_v18  ;;  %v2519_v21 = vsub.f32 %v1054_v45, %v2485_v18  ;;  %v2522_v33 = vsub.f32 %v1057_v60, %v2485_v18  ;;  %v2526_v42 = vsub.f32 %v2362_v44, %v2485_v18 }
 0x1b6   :  { %v2530_v56 = vsub.f32 %v2364_v49, %v2485_v18  ;;  %v2534_v4 = vsub.f32 %v2366_v54, %v2485_v18  ;;  %v2538_v20 = vsub.f32 %v2368_v59, %v2485_v18  ;;  %v2546_v44 = vsub.f32 %v2370_v0, %v2485_v18 }
 0x1b7   :  { %v1176_v31 = vmul.f32 %v2526_v42, %v2526_v42  ;;  %v2552_v54 = vsub.f32 %v2372_v5, %v2485_v18  ;;  %v2560_v43 = vsub.f32 %v2374_v10, %v2485_v18  ;;  %v2567_v5 = vsub.f32 %v2376_v15, %v2485_v18 }
 0x1b8   :  { %v1177_v35 = vmul.f32 %v2530_v56, %v2530_v56  ;;  %v1178_v49 = vmul.f32 %v2534_v4, %v2534_v4  ;;  %v1179_v59 = vmul.f32 %v2538_v20, %v2538_v20  ;;  %v1180_v0 = vmul.f32 %v2546_v44, %v2546_v44 }
 0x1b9   :  { %v1212_v39 = vsel %vm1060_vm0, %v1176_v31, 0.0  ;;  %v1181_v48 = vmul.f32 %v2552_v54, %v2552_v54  ;;  %v2574_v10 = vsub.f32 %v2384_v23, %v2485_v18  ;;  %v1182_v55 = vmul.f32 %v2560_v43, %v2560_v43 }
 0x1ba   :  { %v1213_v40 = vsel %vm1060_vm0, %v1177_v35, 0.0  ;;  %v1215_v45 = vsel %vm1060_vm0, %v1178_v49, 0.0  ;;  %v1217_v52 = vsel %vm1060_vm0, %v1179_v59, 0.0  ;;  %v1219_v60 = vsel %vm1060_vm0, %v1180_v0, 0.0 }
 0x1bb   :  { %v1214_v41 = vadd.f32 %v1213_v40, %v1212_v39  ;;  %v2581_v15 = vsub.f32 %v2386_v29, %v2485_v18  ;;  %v1183_v63 = vmul.f32 %v2567_v5, %v2567_v5  ;;  %v1221_v2 = vsel %vm1060_vm0, %v1181_v48, 0.0 }
 0x1bc   :  { %v2588_v23 = vsub.f32 %v2392_v38, %v2485_v18  ;;  %v1184_v6 = vmul.f32 %v2574_v10, %v2574_v10  ;;  %v1223_v8 = vsel %vm1060_vm0, %v1182_v55, 0.0  ;;  %v2595_v29 = vsub.f32 %v2396_v46, %v2485_v18 }
 0x1bd   :  { %v1216_v47 = vadd.f32 %v1215_v45, %v1214_v41  ;;  %v1185_v13 = vmul.f32 %v2581_v15, %v2581_v15  ;;  %v1225_v14 = vsel %vm1060_vm0, %v1183_v63, 0.0  ;;  %v2602_v38 = vsub.f32 %v2402_v57, %v2485_v18 }
 0x1be   :  { %v1186_v31 = vmul.f32 %v2588_v23, %v2588_v23  ;;  %v1227_v35 = vsel %vm1060_vm0, %v1184_v6, 0.0  ;;  %v2609_v46 = vsub.f32 %v2406_v1, %v2485_v18  ;;  %v1187_v59 = vmul.f32 %v2595_v29, %v2595_v29 }
 0x1bf   :  { %v1218_v53 = vadd.f32 %v1217_v52, %v1216_v47  ;;  %v1229_v39 = vsel %vm1060_vm0, %v1185_v13, 0.0  ;;  %v2616_v57 = vsub.f32 %v2412_v12, %v2485_v18  ;;  %v1188_v41 = vmul.f32 %v2602_v38, %v2602_v38 }
 0x1c0   :  { %v1231_v0 = vsel %vm1060_vm0, %v1186_v31, 0.0  ;;  %v2623_v1 = vsub.f32 %v2414_v19, %v2485_v18  ;;  %v1189_v47 = vmul.f32 %v2609_v46, %v2609_v46  ;;  %v1233_v48 = vsel %vm1060_vm0, %v1187_v59, 0.0 }
 0x1c1   :  { %v1220_v62 = vadd.f32 %v1219_v60, %v1218_v53  ;;  %v2630_v12 = vsub.f32 %v2420_v30, %v2485_v18  ;;  %v1190_v53 = vmul.f32 %v2616_v57, %v2616_v57  ;;  %v1235_v55 = vsel %vm1060_vm0, %v1188_v41, 0.0 }
 0x1c2   :  { %v2637_v19 = vsub.f32 %v2424_v37, %v2485_v18  ;;  %v1237_v63 = vsel %vm1060_vm0, %v1189_v47, 0.0  ;;  %v2644_v30 = vsub.f32 %v2430_v50, %v2485_v18  ;;  %v2651_v37 = vsub.f32 %v2434_v58, %v2485_v18 }
 0x1c3   :  { %v1222_v3 = vadd.f32 %v1221_v2, %v1220_v62  ;;  %v1191_v62 = vmul.f32 %v2623_v1, %v2623_v1  ;;  %v1239_v6 = vsel %vm1060_vm0, %v1190_v53, 0.0  ;;  %v2658_v50 = vsub.f32 %v2440_v7, %v2485_v18 }
 0x1c4   :  { %v2665_v58 = vsub.f32 %v2442_v16, %v2485_v18  ;;  %v2672_v7 = vsub.f32 %v2448_v27, %v2485_v18  ;;  %v2679_v16 = vsub.f32 %v2452_v36, %v2485_v18  ;;  %v2686_v27 = vsub.f32 %v2458_v51, %v2485_v18 }
 0x1c5   :  { %v1224_v11 = vadd.f32 %v1223_v8, %v1222_v3  ;;  %v1192_v3 = vmul.f32 %v2630_v12, %v2630_v12  ;;  %v1241_v13 = vsel %vm1060_vm0, %v1191_v62, 0.0  ;;  %v1201_v51 = vmul.f32 %v2489_v22, %v2489_v22 }
 0x1c6   :  { %v1199_v36 = vmul.f32 %v2679_v16, %v2679_v16 }
 0x1c7   :  { %v1226_v17 = vadd.f32 %v1225_v14, %v1224_v11  ;;  %v1193_v11 = vmul.f32 %v2637_v19, %v2637_v19  ;;  %v1243_v31 = vsel %vm1060_vm0, %v1192_v3, 0.0 }
 0x1c8   :  { %v1257_v18 = vsel %vm1060_vm0, %v1199_v36, 0.0 }
 0x1c9   :  { %v1228_v49 = vadd.f32 %v1227_v35, %v1226_v17  ;;  %v1194_v17 = vmul.f32 %v2644_v30, %v2644_v30  ;;  %v1245_v59 = vsel %vm1060_vm0, %v1193_v11, 0.0 }
 0x1cb   :  { %v1230_v40 = vadd.f32 %v1229_v39, %v1228_v49  ;;  %v1195_v49 = vmul.f32 %v2651_v37, %v2651_v37  ;;  %v1247_v41 = vsel %vm1060_vm0, %v1194_v17, 0.0  ;;  %v1261_v17 = vsel %vm1060_vm0, %v1201_v51, 0.0 }
 0x1cd   :  { %v1232_v45 = vadd.f32 %v1231_v0, %v1230_v40  ;;  %v1196_v40 = vmul.f32 %v2658_v50, %v2658_v50  ;;  %v1249_v47 = vsel %vm1060_vm0, %v1195_v49, 0.0 }
 0x1cf   :  { %v1234_v52 = vadd.f32 %v1233_v48, %v1232_v45  ;;  %v1197_v45 = vmul.f32 %v2665_v58, %v2665_v58  ;;  %v1251_v53 = vsel %vm1060_vm0, %v1196_v40, 0.0 }
 0x1d1   :  { %v1236_v60 = vadd.f32 %v1235_v55, %v1234_v52  ;;  %v1198_v52 = vmul.f32 %v2672_v7, %v2672_v7 }
 0x1d3   :  { %v1238_v2 = vadd.f32 %v1237_v63, %v1236_v60  ;;  %v1253_v60 = vsel %vm1060_vm0, %v1197_v45, 0.0  ;;  %v1200_v63 = vmul.f32 %v2686_v27, %v2686_v27 }
 0x1d5   :  { %v1240_v8 = vadd.f32 %v1239_v6, %v1238_v2  ;;  %v1255_v2 = vsel %vm1060_vm0, %v1198_v52, 0.0  ;;  %v1259_v11 = vsel %vm1060_vm0, %v1200_v63, 0.0 }
 0x1d7   :  { %v1242_v14 = vadd.f32 %v1241_v13, %v1240_v8  ;;  %v1202_v8 = vmul.f32 %v2493_v24, %v2493_v24 }
 0x1d9   :  { %v1244_v35 = vadd.f32 %v1243_v31, %v1242_v14  ;;  %v1203_v14 = vmul.f32 %v2497_v25, %v2497_v25  ;;  %v1263_v49 = vsel %vm1060_vm0, %v1202_v8, 0.0 }
 0x1db   :  { %v1246_v39 = vadd.f32 %v1245_v59, %v1244_v35  ;;  %v1204_v35 = vmul.f32 %v2501_v26, %v2501_v26  ;;  %v1265_v40 = vsel %vm1060_vm0, %v1203_v14, 0.0 }
 0x1dd   :  { %v1248_v0 = vadd.f32 %v1247_v41, %v1246_v39  ;;  %v1205_v39 = vmul.f32 %v2504_v28, %v2504_v28  ;;  %v1267_v45 = vsel %vm1060_vm0, %v1204_v35, 0.0 }
 0x1df   :  { %v1250_v48 = vadd.f32 %v1249_v47, %v1248_v0  ;;  %v1206_v0 = vmul.f32 %v2507_v32, %v2507_v32  ;;  %v1269_v52 = vsel %vm1060_vm0, %v1205_v39, 0.0 }
 0x1e1   :  { %v1252_v55 = vadd.f32 %v1251_v53, %v1250_v48  ;;  %v1207_v48 = vmul.f32 %v2510_v61, %v2510_v61  ;;  %v1271_v36 = vsel %vm1060_vm0, %v1206_v0, 0.0 }
 0x1e3   :  { %v1254_v62 = vadd.f32 %v1253_v60, %v1252_v55  ;;  %v1208_v55 = vmul.f32 %v2513_v9, %v2513_v9  ;;  %v1273_v63 = vsel %vm1060_vm0, %v1207_v48, 0.0 }
 0x1e5   :  { %v1256_v3 = vadd.f32 %v1255_v2, %v1254_v62  ;;  %v1209_v62 = vmul.f32 %v2516_v34, %v2516_v34  ;;  %v1275_v51 = vsel %vm1060_vm0, %v1208_v55, 0.0 }
 0x1e7   :  { %v1258_v6 = vadd.f32 %v1257_v18, %v1256_v3  ;;  %v1210_v3 = vmul.f32 %v2519_v21, %v2519_v21  ;;  %v1277_v8 = vsel %vm1060_vm0, %v1209_v62, 0.0 }
 0x1e9   :  { %v1260_v13 = vadd.f32 %v1259_v11, %v1258_v6  ;;  %v1211_v6 = vmul.f32 %v2522_v33, %v2522_v33 }
 0x1eb   :  { %v1262_v31 = vadd.f32 %v1261_v17, %v1260_v13  ;;  %v1279_v13 = vsel %vm1060_vm0, %v1210_v3, 0.0  ;;  %v1281_v17 = vsel %vm1060_vm0, %v1211_v6, 0.0 }
 0x1ed   :  { %v1264_v59 = vadd.f32 %v1263_v49, %v1262_v31 }
 0x1ef   :  { %v1266_v41 = vadd.f32 %v1265_v40, %v1264_v59 }
 0x1f1   :  { %v1268_v47 = vadd.f32 %v1267_v45, %v1266_v41 }
 0x1f3   :  { %v1270_v53 = vadd.f32 %v1269_v52, %v1268_v47 }
 0x1f5   :  { %v1272_v60 = vadd.f32 %v1271_v36, %v1270_v53 }
 0x1f7   :  { %v1274_v2 = vadd.f32 %v1273_v63, %v1272_v60 }
 0x1f9   :  { %v1276_v18 = vadd.f32 %v1275_v51, %v1274_v2 }
 0x1fb   :  { %v1278_v11 = vadd.f32 %v1277_v8, %v1276_v18 }
 0x1fd   :  { %v1280_v14 = vadd.f32 %v1279_v13, %v1278_v11 }
 0x1ff   :  { %v1282_v31 = vadd.f32 %v1281_v17, %v1280_v14 }
 0x201   :  { %v1283_v35 = vrot.slane %v1282_v31, 4 }
 0x203   :  { %v1284_v49 = vadd.f32 %v1283_v35, %v1282_v31 }
 0x205   :  { %v1285_v59 = vrot.slane %v1284_v49, 2 }
 0x207   :  { %v1286_v39 = vadd.f32 %v1285_v59, %v1284_v49 }
 0x209   :  { %v1287_v40 = vrot.slane %v1286_v39, 1 }
 0x20b   :  { %v1288_v41 = vadd.f32 %v1287_v40, %v1286_v39 }
 0x20d   :  { %v1289_v0 = vmul.f32 0.0034722222, %v1288_v41 }
 0x20f   :  { %v1290_v45 = vadd.f32 1e-05, %v1289_v0 }
 0x211   :  { %1990 = vrsqrt.f32 %v1290_v45 }
 0x21b   :  { %v1991_v47 = vpop.eup %1990 }
 0x21c   :  { %v1292_v48 = vmul.f32 %v1991_v47, %v2526_v42  ;;  %v1293_v52 = vmul.f32 %v1991_v47, %v2530_v56  ;;  %v1294_v53 = vmul.f32 %v1991_v47, %v2534_v4  ;;  %v1295_v55 = vmul.f32 %v1991_v47, %v2538_v20 }
 0x21d   :  { %v1296_v36 = vmul.f32 %v1991_v47, %v2546_v44  ;;  %v1297_v60 = vmul.f32 %v1991_v47, %v2552_v54  ;;  %v1298_v62 = vmul.f32 %v1991_v47, %v2560_v43  ;;  %v1299_v63 = vmul.f32 %v1991_v47, %v2567_v5 }
 0x21e   :  { %v1300_v2 = vmul.f32 %v1991_v47, %v2574_v10  ;;  %v1301_v3 = vmul.f32 %v1991_v47, %v2581_v15  ;;  %v1302_v42 = vmul.f32 %v1991_v47, %v2588_v23  ;;  %v1303_v56 = vmul.f32 %v1991_v47, %v2595_v29 }
 0x21f   :  { %v1304_v4 = vmul.f32 %v1991_v47, %v2602_v38  ;;  %v1305_v20 = vmul.f32 %v1991_v47, %v2609_v46  ;;  %v1306_v44 = vmul.f32 %v1991_v47, %v2616_v57  ;;  %v1307_v54 = vmul.f32 %v1991_v47, %v2623_v1 }
 0x220   :  { %v1308_v43 = vmul.f32 %v1991_v47, %v2630_v12  ;;  %v1309_v5 = vmul.f32 %v1991_v47, %v2637_v19  ;;  %v1310_v10 = vmul.f32 %v1991_v47, %v2644_v30  ;;  %v1311_v15 = vmul.f32 %v1991_v47, %v2651_v37  ;;  %v1739_v30 = vld [vmem:[%s3028_s2] ss:$0 sm:$0xff] }
 0x221   :  { %v1312_v23 = vmul.f32 %v1991_v47, %v2658_v50  ;;  %v1313_v29 = vmul.f32 %v1991_v47, %v2665_v58  ;;  %v1314_v38 = vmul.f32 %v1991_v47, %v2672_v7  ;;  %v1315_v46 = vmul.f32 %v1991_v47, %v2679_v16 }
 0x222   :  { %v1316_v57 = vmul.f32 %v1991_v47, %v2686_v27  ;;  %v1317_v1 = vmul.f32 %v1991_v47, %v2489_v22  ;;  %v1318_v12 = vmul.f32 %v1991_v47, %v2493_v24  ;;  %v1319_v19 = vmul.f32 %v1991_v47, %v2497_v25 }
 0x223   :  { %v1320_v37 = vmul.f32 %v1991_v47, %v2501_v26  ;;  %v1321_v50 = vmul.f32 %v1991_v47, %v2504_v28  ;;  %v1322_v58 = vmul.f32 %v1991_v47, %v2507_v32  ;;  %v1323_v7 = vmul.f32 %v1991_v47, %v2510_v61 }
 0x224   :  { %v1324_v16 = vmul.f32 %v1991_v47, %v2513_v9  ;;  %v1325_v22 = vmul.f32 %v1991_v47, %v2516_v34  ;;  %v1326_v24 = vmul.f32 %v1991_v47, %v2519_v21  ;;  %v1327_v25 = vmul.f32 %v1991_v47, %v2522_v33 }
 0x225   :  { %v1335_v27 = vmul.f32 %v1739_v30, %v1292_v48  ;;  %v1336_v51 = vmul.f32 %v1739_v30, %v1293_v52  ;;  %v1337_v18 = vmul.f32 %v1739_v30, %v1294_v53  ;;  %v1338_v6 = vmul.f32 %v1739_v30, %v1295_v55  ;;  %v1740_v52 = vld [vmem:[%s3029_s3] ss:$0 sm:$0xff] }
 0x226   :  { %v1339_v8 = vmul.f32 %v1739_v30, %v1296_v36  ;;  %v1340_v26 = vmul.f32 %v1739_v30, %v1297_v60  ;;  %v1341_v11 = vmul.f32 %v1739_v30, %v1298_v62  ;;  %v1342_v28 = vmul.f32 %v1739_v30, %v1299_v63 }
 0x227   :  { %v1343_v13 = vmul.f32 %v1739_v30, %v1300_v2  ;;  %v1344_v32 = vmul.f32 %v1739_v30, %v1301_v3  ;;  %v1345_v14 = vmul.f32 %v1739_v30, %v1302_v42  ;;  %v1346_v61 = vmul.f32 %v1739_v30, %v1303_v56 }
 0x228   :  { %v1347_v17 = vmul.f32 %v1739_v30, %v1304_v4  ;;  %v1348_v9 = vmul.f32 %v1739_v30, %v1305_v20  ;;  %v1349_v31 = vmul.f32 %v1739_v30, %v1306_v44  ;;  %v1350_v34 = vmul.f32 %v1739_v30, %v1307_v54 }
 0x229   :  { %v1351_v35 = vmul.f32 %v1739_v30, %v1308_v43  ;;  %v1352_v21 = vmul.f32 %v1739_v30, %v1309_v5  ;;  %v1353_v49 = vmul.f32 %v1739_v30, %v1310_v10  ;;  %v1354_v33 = vmul.f32 %v1739_v30, %v1311_v15 }
 0x22a   :  { %v1355_v59 = vmul.f32 %v1739_v30, %v1312_v23  ;;  %v1356_v39 = vmul.f32 %v1739_v30, %v1313_v29  ;;  %v1357_v40 = vmul.f32 %v1739_v30, %v1314_v38  ;;  %v1358_v41 = vmul.f32 %v1739_v30, %v1315_v46 }
 0x22b   :  { %v1359_v0 = vmul.f32 %v1739_v30, %v1316_v57  ;;  %v1360_v45 = vmul.f32 %v1739_v30, %v1317_v1  ;;  %v1361_v47 = vmul.f32 %v1739_v30, %v1318_v12  ;;  %v1362_v48 = vmul.f32 %v1739_v30, %v1319_v19 }
 0x22c   :  { %v1363_v53 = vmul.f32 %v1739_v30, %v1320_v37  ;;  %v1364_v55 = vmul.f32 %v1739_v30, %v1321_v50  ;;  %v1365_v36 = vmul.f32 %v1739_v30, %v1322_v58  ;;  %v1366_v60 = vmul.f32 %v1739_v30, %v1323_v7 }
 0x22d   :  { %v1367_v62 = vmul.f32 %v1739_v30, %v1324_v16  ;;  %v1368_v63 = vmul.f32 %v1739_v30, %v1325_v22  ;;  %v1369_v2 = vmul.f32 %v1739_v30, %v1326_v24  ;;  %v1370_v3 = vmul.f32 %v1739_v30, %v1327_v25 }
 0x22e   :  { %v2774_v42 = vadd.f32 %v1740_v52, %v1335_v27  ;;  %v2776_v56 = vadd.f32 %v1740_v52, %v1336_v51  ;;  %v2778_v4 = vadd.f32 %v1740_v52, %v1337_v18  ;;  %v2780_v20 = vadd.f32 %v1740_v52, %v1338_v6 }
 0x22f   :  { %v2782_v44 = vadd.f32 %v1740_v52, %v1339_v8  ;;  %v2784_v54 = vadd.f32 %v1740_v52, %v1340_v26  ;;  %v2786_v43 = vadd.f32 %v1740_v52, %v1341_v11  ;;  %v2788_v5 = vadd.f32 %v1740_v52, %v1342_v28 }
 0x230   :  { %v2790_v10 = vadd.f32 %v1740_v52, %v1343_v13  ;;  %v2792_v15 = vadd.f32 %v1740_v52, %v1344_v32  ;;  %v2794_v23 = vadd.f32 %v1740_v52, %v1345_v14  ;;  %v2796_v29 = vadd.f32 %v1740_v52, %v1346_v61 }
 0x231   :  { %v2798_v38 = vadd.f32 %v1740_v52, %v1347_v17  ;;  %v2800_v46 = vadd.f32 %v1740_v52, %v1348_v9  ;;  %v2802_v57 = vadd.f32 %v1740_v52, %v1349_v31  ;;  %v2804_v1 = vadd.f32 %v1740_v52, %v1350_v34 }
 0x232   :  { %v2806_v12 = vadd.f32 %v1740_v52, %v1351_v35  ;;  %v2808_v19 = vadd.f32 %v1740_v52, %v1352_v21  ;;  %v2810_v30 = vadd.f32 %v1740_v52, %v1353_v49  ;;  %v2812_v37 = vadd.f32 %v1740_v52, %v1354_v33 }
 0x233   :  { %v2814_v50 = vadd.f32 %v1740_v52, %v1355_v59  ;;  %v2816_v58 = vadd.f32 %v1740_v52, %v1356_v39  ;;  %v2818_v7 = vadd.f32 %v1740_v52, %v1357_v40  ;;  %v2820_v16 = vadd.f32 %v1740_v52, %v1358_v41 }
 0x234   :  { %v2822_v22 = vadd.f32 %v1740_v52, %v1359_v0  ;;  %v2824_v24 = vadd.f32 %v1740_v52, %v1360_v45  ;;  %v2826_v25 = vadd.f32 %v1740_v52, %v1361_v47  ;;  %v2828_v27 = vadd.f32 %v1740_v52, %v1362_v48 }
 0x235   :  { %v2830_v51 = vadd.f32 %v1740_v52, %v1363_v53  ;;  %v2832_v18 = vadd.f32 %v1740_v52, %v1364_v55  ;;  %v2834_v6 = vadd.f32 %v1740_v52, %v1365_v36  ;;  %v2836_v8 = vadd.f32 %v1740_v52, %v1366_v60 }
 0x236   :  { %v2838_v26 = vadd.f32 %v1740_v52, %v1367_v62  ;;  %v2840_v11 = vadd.f32 %v1740_v52, %v1368_v63  ;;  %v2842_v28 = vadd.f32 %v1740_v52, %v1369_v2  ;;  %v2844_v13 = vadd.f32 %v1740_v52, %v1370_v3 }
 0x237   :  { %v1414_v32 = vmax.f32 %v2774_v42, 0.0  ;;  %v1415_v14 = vmax.f32 %v2776_v56, 0.0  ;;  %v1416_v61 = vmax.f32 %v2778_v4, 0.0  ;;  %v1417_v17 = vmax.f32 %v2780_v20, 0.0 }
 0x238   :  { %v1418_v9 = vmax.f32 %v2782_v44, 0.0  ;;  %v1419_v31 = vmax.f32 %v2784_v54, 0.0  ;;  %v1420_v34 = vmax.f32 %v2786_v43, 0.0  ;;  %v1421_v35 = vmax.f32 %v2788_v5, 0.0 }
 0x239   :  { %v1422_v21 = vmax.f32 %v2790_v10, 0.0  ;;  %v1423_v49 = vmax.f32 %v2792_v15, 0.0  ;;  %v1424_v33 = vmax.f32 %v2794_v23, 0.0  ;;  %v1425_v59 = vmax.f32 %v2796_v29, 0.0 }
 0x23a   :  { %v1426_v39 = vmax.f32 %v2798_v38, 0.0  ;;  %v1427_v40 = vmax.f32 %v2800_v46, 0.0  ;;  %v1428_v41 = vmax.f32 %v2802_v57, 0.0  ;;  %v1429_v0 = vmax.f32 %v2804_v1, 0.0 }
 0x23b   :  { %v1430_v45 = vmax.f32 %v2806_v12, 0.0  ;;  %v1431_v47 = vmax.f32 %v2808_v19, 0.0  ;;  %v1432_v48 = vmax.f32 %v2810_v30, 0.0  ;;  %v1433_v52 = vmax.f32 %v2812_v37, 0.0 }
 0x23c   :  { %v1434_v53 = vmax.f32 %v2814_v50, 0.0  ;;  %v1435_v55 = vmax.f32 %v2816_v58, 0.0  ;;  %v1436_v36 = vmax.f32 %v2818_v7, 0.0  ;;  %v1437_v60 = vmax.f32 %v2820_v16, 0.0 }
 0x23d   :  { %v1438_v62 = vmax.f32 %v2822_v22, 0.0  ;;  %v1439_v63 = vmax.f32 %v2824_v24, 0.0  ;;  %v1440_v2 = vmax.f32 %v2826_v25, 0.0  ;;  %v1441_v3 = vmax.f32 %v2828_v27, 0.0 }
 0x23e   :  { %v1442_v42 = vmax.f32 %v2830_v51, 0.0  ;;  %v1443_v56 = vmax.f32 %v2832_v18, 0.0  ;;  %v1444_v4 = vmax.f32 %v2834_v6, 0.0  ;;  %v1445_v20 = vmax.f32 %v2836_v8, 0.0 }
 0x23f   :  { %v1446_v44 = vmax.f32 %v2838_v26, 0.0  ;;  %v1447_v54 = vmax.f32 %v2840_v11, 0.0  ;;  %v1448_v43 = vmax.f32 %v2842_v28, 0.0  ;;  %v1449_v5 = vmax.f32 %v2844_v13, 0.0 }
 0x240   :  { %v1777_v10 = vpack.c.bf16 %v1414_v32, %v1414_v32  ;;  %v1778_v15 = vpack.c.bf16 %v1415_v14, %v1415_v14  ;;  %v1779_v23 = vpack.c.bf16 %v1416_v61, %v1416_v61  ;;  %v1780_v29 = vpack.c.bf16 %v1417_v17, %v1417_v17 }
 0x241   :  { %v1781_v38 = vpack.c.bf16 %v1418_v9, %v1418_v9  ;;  %v1782_v46 = vpack.c.bf16 %v1419_v31, %v1419_v31  ;;  %v1783_v57 = vpack.c.bf16 %v1420_v34, %v1420_v34  ;;  %v1784_v1 = vpack.c.bf16 %v1421_v35, %v1421_v35 }
 0x242   :  { %v1785_v12 = vpack.c.bf16 %v1422_v21, %v1422_v21  ;;  %v1786_v19 = vpack.c.bf16 %v1423_v49, %v1423_v49  ;;  %v1787_v30 = vpack.c.bf16 %v1424_v33, %v1424_v33  ;;  %v1788_v37 = vpack.c.bf16 %v1425_v59, %v1425_v59  ;;  %1595 = vst.msk [vmem:[%s3030_s4] sm:$0xf] %vm1594_vm1, %v1777_v10 }
 0x243   :  { %1596 = vst.msk [vmem:[%s3030_s4 + $0x4] sm:$0xf] %vm1594_vm1, %v1778_v15  ;;  %1597 = vst.msk [vmem:[%s3030_s4 + $0x8] sm:$0xf] %vm1594_vm1, %v1779_v23  ;;  %v1789_v50 = vpack.c.bf16 %v1426_v39, %v1426_v39  ;;  %v1790_v58 = vpack.c.bf16 %v1427_v40, %v1427_v40  ;;  %v1791_v7 = vpack.c.bf16 %v1428_v41, %v1428_v41 }
 0x244   :  { %1598 = vst.msk [vmem:[%s3030_s4 + $0xc] sm:$0xf] %vm1594_vm1, %v1780_v29  ;;  %v1792_v16 = vpack.c.bf16 %v1429_v0, %v1429_v0  ;;  %1599 = vst.msk [vmem:[%s3030_s4 + $0x10] sm:$0xf] %vm1594_vm1, %v1781_v38  ;;  %v1793_v22 = vpack.c.bf16 %v1430_v45, %v1430_v45  ;;  %v1794_v24 = vpack.c.bf16 %v1431_v47, %v1431_v47 }
 0x245   :  { %1600 = vst.msk [vmem:[%s3030_s4 + $0x14] sm:$0xf] %vm1594_vm1, %v1782_v46  ;;  %1601 = vst.msk [vmem:[%s3030_s4 + $0x18] sm:$0xf] %vm1594_vm1, %v1783_v57  ;;  %v1795_v25 = vpack.c.bf16 %v1432_v48, %v1432_v48  ;;  %v1796_v27 = vpack.c.bf16 %v1433_v52, %v1433_v52  ;;  %v1797_v51 = vpack.c.bf16 %v1434_v53, %v1434_v53 }
 0x246   :  { %1602 = vst.msk [vmem:[%s3030_s4 + $0x1c] sm:$0xf] %vm1594_vm1, %v1784_v1  ;;  %1603 = vst.msk [vmem:[%s3030_s4 + $0x20] sm:$0xf] %vm1594_vm1, %v1785_v12  ;;  %v1798_v18 = vpack.c.bf16 %v1435_v55, %v1435_v55  ;;  %v1799_v6 = vpack.c.bf16 %v1436_v36, %v1436_v36  ;;  %v1800_v8 = vpack.c.bf16 %v1437_v60, %v1437_v60 }
 0x247   :  { %1604 = vst.msk [vmem:[%s3030_s4 + $0x24] sm:$0xf] %vm1594_vm1, %v1786_v19  ;;  %1605 = vst.msk [vmem:[%s3030_s4 + $0x28] sm:$0xf] %vm1594_vm1, %v1787_v30  ;;  %v1801_v26 = vpack.c.bf16 %v1438_v62, %v1438_v62  ;;  %v1802_v11 = vpack.c.bf16 %v1439_v63, %v1439_v63  ;;  %v1803_v28 = vpack.c.bf16 %v1440_v2, %v1440_v2 }
 0x248   :  { %1606 = vst.msk [vmem:[%s3030_s4 + $0x2c] sm:$0xf] %vm1594_vm1, %v1788_v37  ;;  %1607 = vst.msk [vmem:[%s3030_s4 + $0x30] sm:$0xf] %vm1594_vm1, %v1789_v50  ;;  %v1804_v13 = vpack.c.bf16 %v1441_v3, %v1441_v3  ;;  %v1805_v32 = vpack.c.bf16 %v1442_v42, %v1442_v42  ;;  %v1806_v14 = vpack.c.bf16 %v1443_v56, %v1443_v56 }
 0x249   :  { %1608 = vst.msk [vmem:[%s3030_s4 + $0x34] sm:$0xf] %vm1594_vm1, %v1790_v58  ;;  %1609 = vst.msk [vmem:[%s3030_s4 + $0x38] sm:$0xf] %vm1594_vm1, %v1791_v7  ;;  %v1807_v61 = vpack.c.bf16 %v1444_v4, %v1444_v4  ;;  %v1808_v17 = vpack.c.bf16 %v1445_v20, %v1445_v20  ;;  %v1809_v9 = vpack.c.bf16 %v1446_v44, %v1446_v44 }
 0x24a   :  { %1610 = vst.msk [vmem:[%s3030_s4 + $0x3c] sm:$0xf] %vm1594_vm1, %v1792_v16  ;;  %1611 = vst.msk [vmem:[%s3030_s4 + $0x40] sm:$0xf] %vm1594_vm1, %v1793_v22  ;;  %v1810_v31 = vpack.c.bf16 %v1447_v54, %v1447_v54  ;;  %v1811_v34 = vpack.c.bf16 %v1448_v43, %v1448_v43  ;;  %v1812_v35 = vpack.c.bf16 %v1449_v5, %v1449_v5 }
 0x24b   :  { %1612 = vst.msk [vmem:[%s3030_s4 + $0x44] sm:$0xf] %vm1594_vm1, %v1794_v24  ;;  %1613 = vst.msk [vmem:[%s3030_s4 + $0x48] sm:$0xf] %vm1594_vm1, %v1795_v25 }
 0x24c   :  { %1614 = vst.msk [vmem:[%s3030_s4 + $0x4c] sm:$0xf] %vm1594_vm1, %v1796_v27  ;;  %1615 = vst.msk [vmem:[%s3030_s4 + $0x50] sm:$0xf] %vm1594_vm1, %v1797_v51 }
 0x24d   :  { %1616 = vst.msk [vmem:[%s3030_s4 + $0x54] sm:$0xf] %vm1594_vm1, %v1798_v18  ;;  %1617 = vst.msk [vmem:[%s3030_s4 + $0x58] sm:$0xf] %vm1594_vm1, %v1799_v6 }
 0x24e   :  { %1618 = vst.msk [vmem:[%s3030_s4 + $0x5c] sm:$0xf] %vm1594_vm1, %v1800_v8  ;;  %1619 = vst.msk [vmem:[%s3030_s4 + $0x60] sm:$0xf] %vm1594_vm1, %v1801_v26 }
 0x24f   :  { %1620 = vst.msk [vmem:[%s3030_s4 + $0x64] sm:$0xf] %vm1594_vm1, %v1802_v11  ;;  %1621 = vst.msk [vmem:[%s3030_s4 + $0x68] sm:$0xf] %vm1594_vm1, %v1803_v28 }
 0x250   :  { %1622 = vst.msk [vmem:[%s3030_s4 + $0x6c] sm:$0xf] %vm1594_vm1, %v1804_v13  ;;  %1623 = vst.msk [vmem:[%s3030_s4 + $0x70] sm:$0xf] %vm1594_vm1, %v1805_v32 }
 0x251   :  { %1624 = vst.msk [vmem:[%s3030_s4 + $0x74] sm:$0xf] %vm1594_vm1, %v1806_v14  ;;  %1625 = vst.msk [vmem:[%s3030_s4 + $0x78] sm:$0xf] %vm1594_vm1, %v1807_v61 }
 0x252   :  { %1626 = vst.msk [vmem:[%s3030_s4 + $0x7c] sm:$0xf] %vm1594_vm1, %v1808_v17  ;;  %1627 = vst.msk [vmem:[%s3030_s4 + $0x80] sm:$0xf] %vm1594_vm1, %v1809_v9 }
 0x253   :  { %1628 = vst.msk [vmem:[%s3030_s4 + $0x84] sm:$0xf] %vm1594_vm1, %v1810_v31  ;;  %1629 = vst.msk [vmem:[%s3030_s4 + $0x88] sm:$0xf] %vm1594_vm1, %v1811_v34 }
 0x254   :  { %1630 = vst.msk [vmem:[%s3030_s4 + $0x8c] sm:$0xf] %vm1594_vm1, %v1812_v35 }

// kernel: critic_forward.6
= control target key start
LH: loop header
LB: loop body
LE: loop exit
PB: predicated region body
PF: predicated region fallthrough
CT: control target
= control target key end

     0   :  { %s1983_s1 = inlined_call_operand.vmem [shape: bf16[1024,128], index: 1, kind: input, shape index: {}]   ;;  %s1984_s0 = inlined_call_operand.vmem [shape: bf16[72,1024], index: 0, kind: input, shape index: {}]   ;;  %s1985_s2 = inlined_call_operand.vmem [shape: f32[1,128], index: 2, kind: input, shape index: {}]   ;;  %s1986_s3 = inlined_call_operand.vmem [shape: f32[1,128], index: 3, kind: input, shape index: {}]   ;;  %s1987_s4 = inlined_call_operand.vmem [shape: bf16[72,128], index: 4, kind: output, shape index: {}]  }
   0x1   :  { %v1524_v0 = vld [vmem:[%s1983_s1 + $0x40] sm:$0xff]   ;;  %v1528_v4 = vld [vmem:[%s1983_s1 + $0x48] sm:$0xff]   ;;  %v1532_v8 = vld [vmem:[%s1983_s1 + $0x50] sm:$0xff]  }
   0x2   :  { %v1525_v1 = vld [vmem:[%s1983_s1 + $0xc0] sm:$0xff]   ;;  %1340 = vmatprep.subr.bf16.mxu0 %v1524_v0  ;;  %v1529_v5 = vld [vmem:[%s1983_s1 + $0xc8] sm:$0xff]   ;;  %v1533_v9 = vld [vmem:[%s1983_s1 + $0xd0] sm:$0xff]  }
   0x3   :  { %v1526_v2 = vld [vmem:[%s1983_s1] sm:$0xff]   ;;  %1386 = vmatprep.subr.bf16.mxu1 %v1525_v1  ;;  %v1530_v6 = vld [vmem:[%s1983_s1 + $0x8] sm:$0xff]   ;;  %v1534_v10 = vld [vmem:[%s1983_s1 + $0x10] sm:$0xff]  }
   0x4   :  { %v1527_v3 = vld [vmem:[%s1983_s1 + $0x80] sm:$0xff]   ;;  %1341 = vmatpush3.bf16.msra.mxu0 %v1526_v2  ;;  %v1531_v7 = vld [vmem:[%s1983_s1 + $0x88] sm:$0xff]   ;;  %v1535_v11 = vld [vmem:[%s1983_s1 + $0x90] sm:$0xff]  }
   0x5   :  { %1387 = vmatpush3.bf16.msra.mxu1 %v1527_v3  ;;  %1342 = vmatprep.subr.bf16.mxu0 %v1528_v4  ;;  %v1536_v12 = vld [vmem:[%s1983_s1 + $0x58] sm:$0xff]   ;;  %v1540_v16 = vld [vmem:[%s1983_s1 + $0x60] sm:$0xff]   ;;  %v1544_v20 = vld [vmem:[%s1983_s1 + $0x68] sm:$0xff]  }
   0x6   :  { %1388 = vmatprep.subr.bf16.mxu1 %v1529_v5  ;;  %v1537_v13 = vld [vmem:[%s1983_s1 + $0xd8] sm:$0xff]   ;;  %v1541_v17 = vld [vmem:[%s1983_s1 + $0xe0] sm:$0xff]   ;;  %v1545_v21 = vld [vmem:[%s1983_s1 + $0xe8] sm:$0xff]  }
   0x7   :  { %v1538_v14 = vld [vmem:[%s1983_s1 + $0x18] sm:$0xff]   ;;  %v1542_v18 = vld [vmem:[%s1983_s1 + $0x20] sm:$0xff]   ;;  %v1546_v22 = vld [vmem:[%s1983_s1 + $0x28] sm:$0xff]  }
   0x8   :  { %1343 = vmatpush3.bf16.msra.mxu0 %v1530_v6  ;;  %v1539_v15 = vld [vmem:[%s1983_s1 + $0x98] sm:$0xff]   ;;  %v1543_v19 = vld [vmem:[%s1983_s1 + $0xa0] sm:$0xff]   ;;  %v1547_v23 = vld [vmem:[%s1983_s1 + $0xa8] sm:$0xff]  }
   0x9   :  { %1389 = vmatpush3.bf16.msra.mxu1 %v1531_v7  ;;  %1344 = vmatprep.subr.bf16.mxu0 %v1532_v8  ;;  %v1548_v24 = vld [vmem:[%s1983_s1 + $0x70] sm:$0xff]   ;;  %v1552_v28 = vld [vmem:[%s1983_s1 + $0x78] sm:$0xff]   ;;  %v18_v32 = vld [vmem:[%s1984_s0] sm:$0xff] }
   0xa   :  { %1390 = vmatprep.subr.bf16.mxu1 %v1533_v9  ;;  %v1549_v25 = vld [vmem:[%s1983_s1 + $0xf0] sm:$0xff]   ;;  %v1553_v29 = vld [vmem:[%s1983_s1 + $0xf8] sm:$0xff]   ;;  %v22_v33 = vld [vmem:[%s1984_s0 + $0x20] sm:$0xff] }
   0xb   :  { %v1550_v26 = vld [vmem:[%s1983_s1 + $0x30] sm:$0xff]   ;;  %v1554_v30 = vld [vmem:[%s1983_s1 + $0x38] sm:$0xff]   ;;  %v19_v34 = vld [vmem:[%s1984_s0 + $0x8] sm:$0xff]  ;;  %v1193_v35 = vcombine.low %v18_v32, %v22_v33  ;;  %v1194_v36 = vcombine.high %v18_v32, %v22_v33 }
   0xc   :  { %1345 = vmatpush3.bf16.msra.mxu0 %v1534_v10  ;;  %v1551_v27 = vld [vmem:[%s1983_s1 + $0xb0] sm:$0xff]   ;;  %v1555_v31 = vld [vmem:[%s1983_s1 + $0xb8] sm:$0xff]   ;;  %v23_v37 = vld [vmem:[%s1984_s0 + $0x28] sm:$0xff] }
   0xd   :  { %1391 = vmatpush3.bf16.msra.mxu1 %v1535_v11  ;;  %1346 = vmatprep.subr.bf16.mxu0 %v1536_v12  ;;  %v1195_v38 = vcombine.low %v19_v34, %v23_v37  ;;  %v1196_v39 = vcombine.high %v19_v34, %v23_v37  ;;  %v1556_v40 = vld [vmem:[%s1983_s1 + $0x140] sm:$0xff]   ;;  %v1560_v44 = vld [vmem:[%s1983_s1 + $0x148] sm:$0xff]   ;;  %v1564_v56 = vld [vmem:[%s1983_s1 + $0x150] sm:$0xff]  }
   0xe   :  { %1392 = vmatprep.subr.bf16.mxu1 %v1537_v13  ;;  %786 = vmatprep.mubr.bf16.mxu0 %v1194_v36  ;;  %v1557_v41 = vld [vmem:[%s1983_s1 + $0x100] sm:$0xff]   ;;  %v1561_v45 = vld [vmem:[%s1983_s1 + $0x108] sm:$0xff]   ;;  %v1565_v57 = vld [vmem:[%s1983_s1 + $0x110] sm:$0xff]  }
   0xf   :  { %858 = vmatprep.mubr.bf16.mxu1 %v1196_v39  ;;  %v1558_v42 = vld [vmem:[%s1983_s1 + $0x1c0] sm:$0xff]   ;;  %v27_v49 = vld [vmem:[%s1984_s0 + $0x48] sm:$0xff]  ;;  %v1566_v58 = vld [vmem:[%s1983_s1 + $0x1d0] sm:$0xff]  }
  0x10   :  { %1347 = vmatpush3.bf16.msra.mxu0 %v1538_v14  ;;  %v1559_v43 = vld [vmem:[%s1983_s1 + $0x180] sm:$0xff]   ;;  %v31_v50 = vld [vmem:[%s1984_s0 + $0x68] sm:$0xff]  ;;  %v1567_v59 = vld [vmem:[%s1983_s1 + $0x190] sm:$0xff]  }
  0x11   :  { %1393 = vmatpush3.bf16.msra.mxu1 %v1539_v15  ;;  %1348 = vmatprep.subr.bf16.mxu0 %v1540_v16  ;;  %v26_v46 = vld [vmem:[%s1984_s0 + $0x40] sm:$0xff]  ;;  %v1204_v52 = vcombine.high %v27_v49, %v31_v50  ;;  %v1562_v53 = vld [vmem:[%s1983_s1 + $0x1c8] sm:$0xff]   ;;  %v1203_v54 = vcombine.low %v27_v49, %v31_v50  ;;  %v1568_v2 = vld [vmem:[%s1983_s1 + $0x158] sm:$0xff]  }
  0x12   :  { %1394 = vmatprep.subr.bf16.mxu1 %v1541_v17  ;;  %v30_v47 = vld [vmem:[%s1984_s0 + $0x60] sm:$0xff]  ;;  %v1563_v55 = vld [vmem:[%s1983_s1 + $0x188] sm:$0xff]   ;;  %v1569_v5 = vld [vmem:[%s1983_s1 + $0x118] sm:$0xff]  }
  0x13   :  { %v1202_v48 = vcombine.high %v26_v46, %v30_v47  ;;  %v1201_v51 = vcombine.low %v26_v46, %v30_v47  ;;  %v34_v60 = vld [vmem:[%s1984_s0 + $0x80] sm:$0xff]  ;;  %v35_v62 = vld [vmem:[%s1984_s0 + $0x88] sm:$0xff]  ;;  %v1570_v6 = vld [vmem:[%s1983_s1 + $0x1d8] sm:$0xff]  }
  0x14   :  { %1349 = vmatpush3.bf16.msra.mxu0 %v1542_v18  ;;  %v38_v61 = vld [vmem:[%s1984_s0 + $0xa0] sm:$0xff]  ;;  %v39_v63 = vld [vmem:[%s1984_s0 + $0xa8] sm:$0xff]  ;;  %v1571_v7 = vld [vmem:[%s1983_s1 + $0x198] sm:$0xff]  }
  0x15   :  { %1395 = vmatpush3.bf16.msra.mxu1 %v1543_v19  ;;  %1350 = vmatprep.subr.bf16.mxu0 %v1544_v20  ;;  %v1210_v0 = vcombine.high %v34_v60, %v38_v61  ;;  %v1212_v1 = vcombine.high %v35_v62, %v39_v63  ;;  %v1209_v3 = vcombine.low %v34_v60, %v38_v61  ;;  %v1572_v8 = vld [vmem:[%s1983_s1 + $0x160] sm:$0xff]   ;;  %v43_v13 = vld [vmem:[%s1984_s0 + $0xc8] sm:$0xff]  ;;  %v1587_v33 = vld [vmem:[%s1983_s1 + $0x1b0] sm:$0xff]  }
  0x16   :  { %1396 = vmatprep.subr.bf16.mxu1 %v1545_v21  ;;  %v1211_v4 = vcombine.low %v35_v62, %v39_v63  ;;  %v1573_v9 = vld [vmem:[%s1983_s1 + $0x120] sm:$0xff]   ;;  %v47_v15 = vld [vmem:[%s1984_s0 + $0xe8] sm:$0xff]  ;;  %v1588_v34 = vld [vmem:[%s1983_s1 + $0x178] sm:$0xff]  }
  0x17   :  { %v1574_v10 = vld [vmem:[%s1983_s1 + $0x1e0] sm:$0xff]   ;;  %v1220_v17 = vcombine.high %v43_v13, %v47_v15  ;;  %v1219_v19 = vcombine.low %v43_v13, %v47_v15  ;;  %v1576_v20 = vld [vmem:[%s1983_s1 + $0x168] sm:$0xff]   ;;  %v1590_v36 = vld [vmem:[%s1983_s1 + $0x1f8] sm:$0xff]  }
  0x18   :  { %1351 = vmatpush3.bf16.msra.mxu0 %v1546_v22  ;;  %v42_v11 = vld [vmem:[%s1984_s0 + $0xc0] sm:$0xff]  ;;  %v1577_v21 = vld [vmem:[%s1983_s1 + $0x128] sm:$0xff]   ;;  %v1591_v37 = vld [vmem:[%s1983_s1 + $0x1b8] sm:$0xff]  }
  0x19   :  { %1397 = vmatpush3.bf16.msra.mxu1 %v1547_v23  ;;  %1352 = vmatprep.subr.bf16.mxu0 %v1548_v24  ;;  %v46_v12 = vld [vmem:[%s1984_s0 + $0xe0] sm:$0xff]  ;;  %v1578_v22 = vld [vmem:[%s1983_s1 + $0x1e8] sm:$0xff]   ;;  %v1580_v24 = vld [vmem:[%s1983_s1 + $0x170] sm:$0xff]  }
  0x1a   :  { %1398 = vmatprep.subr.bf16.mxu1 %v1549_v25  ;;  %v1218_v14 = vcombine.high %v42_v11, %v46_v12  ;;  %v1217_v16 = vcombine.low %v42_v11, %v46_v12  ;;  %v1575_v18 = vld [vmem:[%s1983_s1 + $0x1a0] sm:$0xff]   ;;  %v1579_v23 = vld [vmem:[%s1983_s1 + $0x1a8] sm:$0xff]   ;;  %v24_v39 = vld [vmem:[%s1984_s0 + $0x30] sm:$0xff] }
  0x1b   :  { %v50_v25 = vld [vmem:[%s1984_s0 + $0x100] sm:$0xff]  ;;  %v29_v47 = vld [vmem:[%s1984_s0 + $0x58] sm:$0xff]  ;;  %v44_v60 = vld [vmem:[%s1984_s0 + $0xd0] sm:$0xff] }
  0x1c   :  { %1353 = vmatpush3.bf16.msra.mxu0 %v1550_v26  ;;  %v51_v26 = vld [vmem:[%s1984_s0 + $0x108] sm:$0xff]  ;;  %v48_v61 = vld [vmem:[%s1984_s0 + $0xf0] sm:$0xff]  ;;  %v45_v62 = vld [vmem:[%s1984_s0 + $0xd8] sm:$0xff] }
  0x1d   :  { %1399 = vmatpush3.bf16.msra.mxu1 %v1551_v27  ;;  %1354 = vmatprep.subr.bf16.mxu0 %v1552_v28  ;;  %v1226_v27 = vcombine.high %v50_v25, %v50_v25  ;;  %v1228_v28 = vcombine.high %v51_v26, %v51_v26  ;;  %v1227_v32 = vcombine.low %v51_v26, %v51_v26  ;;  %v49_v63 = vld [vmem:[%s1984_s0 + $0xf8] sm:$0xff] }
  0x1e   :  { %1400 = vmatprep.subr.bf16.mxu1 %v1553_v29  ;;  %v1583_v29 = vld [vmem:[%s1983_s1 + $0x130] sm:$0xff]  }
  0x20   :  { %1355 = vmatpush3.bf16.msra.mxu0 %v1554_v30  ;;  %v1225_v30 = vcombine.low %v50_v25, %v50_v25 }
  0x21   :  { %1401 = vmatpush3.bf16.msra.mxu1 %v1555_v31  ;;  %1432 = vmatprep.subr.bf16.mxu0 %v1556_v40  ;;  %v1586_v31 = vld [vmem:[%s1983_s1 + $0x1f0] sm:$0xff]   ;;  %v21_v40 = vld [vmem:[%s1984_s0 + $0x18] sm:$0xff] }
  0x22   :  { %1478 = vmatprep.subr.bf16.mxu1 %v1558_v42  ;;  %v25_v42 = vld [vmem:[%s1984_s0 + $0x38] sm:$0xff] }
  0x23   :  { %787 = vmatmul.mubr.bf16.vlgmr.msra.gmra.mrb[0].mxu0 %v1193_v35  ;;  %v1589_v35 = vld [vmem:[%s1983_s1 + $0x138] sm:$0xff]   ;;  %v1200_v46 = vcombine.high %v21_v40, %v25_v42  ;;  %v1199_v49 = vcombine.low %v21_v40, %v25_v42 }
  0x24   :  { %859 = vmatmul.mubr.bf16.vlgmr.msra.gmra.mrb[0].mxu1 %v1195_v38  ;;  %1433 = vmatpush3.bf16.msra.mxu0 %v1557_v41  ;;  %v20_v38 = vld [vmem:[%s1984_s0 + $0x10] sm:$0xff] }
  0x25   :  { %1479 = vmatpush3.bf16.msra.mxu1 %v1559_v43  ;;  %1434 = vmatprep.subr.bf16.mxu0 %v1560_v44  ;;  %v1198_v41 = vcombine.high %v20_v38, %v24_v39  ;;  %v28_v43 = vld [vmem:[%s1984_s0 + $0x50] sm:$0xff] }
  0x26   :  { %794 = vmatprep.mubr.bf16.mxu0 %v1202_v48  ;;  %866 = vmatprep.mubr.bf16.mxu1 %v1204_v52  ;;  %v32_v44 = vld [vmem:[%s1984_s0 + $0x70] sm:$0xff]  ;;  %v33_v48 = vld [vmem:[%s1984_s0 + $0x78] sm:$0xff] }
  0x27   :  { %1480 = vmatprep.subr.bf16.mxu1 %v1562_v53  ;;  %v1206_v50 = vcombine.high %v28_v43, %v32_v44  ;;  %v36_v52 = vld [vmem:[%s1984_s0 + $0x90] sm:$0xff] }
  0x28   :  { %1435 = vmatpush3.bf16.msra.mxu0 %v1561_v45  ;;  %v1197_v45 = vcombine.low %v20_v38, %v24_v39  ;;  %v40_v53 = vld [vmem:[%s1984_s0 + $0xb0] sm:$0xff] }
  0x29   :  { %1481 = vmatpush3.bf16.msra.mxu1 %v1563_v55  ;;  %1436 = vmatprep.subr.bf16.mxu0 %v1564_v56  ;;  %v41_v55 = vld [vmem:[%s1984_s0 + $0xb8] sm:$0xff]  ;;  %v1205_v56 = vcombine.low %v28_v43, %v32_v44 }
  0x2a   :  { %1482 = vmatprep.subr.bf16.mxu1 %v1566_v58  ;;  %v1214_v58 = vcombine.high %v36_v52, %v40_v53 }
  0x2b   :  { %795 = vmatmul.mubr.bf16.gmra.mrb[4].mxu0 %v1201_v51  ;;  %v1208_v51 = vcombine.high %v29_v47, %v33_v48 }
  0x2c   :  { %867 = vmatmul.mubr.bf16.gmra.mrb[4].mxu1 %v1203_v54  ;;  %1437 = vmatpush3.bf16.msra.mxu0 %v1565_v57  ;;  %v37_v54 = vld [vmem:[%s1984_s0 + $0x98] sm:$0xff]  ;;  %v1207_v57 = vcombine.low %v29_v47, %v33_v48 }
  0x2d   :  { %1483 = vmatpush3.bf16.msra.mxu1 %v1567_v59  ;;  %802 = vmatprep.mubr.bf16.mxu0 %v1210_v0  ;;  %v1216_v59 = vcombine.high %v37_v54, %v41_v55  ;;  %v1213_v0 = vcombine.low %v36_v52, %v40_v53 }
  0x2e   :  { %874 = vmatprep.mubr.bf16.mxu1 %v1212_v1  ;;  %1438 = vmatprep.subr.bf16.mxu0 %v1568_v2  ;;  %v1215_v1 = vcombine.low %v37_v54, %v41_v55  ;;  %v1222_v2 = vcombine.high %v44_v60, %v48_v61 }
  0x2f   :  { %1484 = vmatprep.subr.bf16.mxu1 %v1570_v6  ;;  %v1221_v6 = vcombine.low %v44_v60, %v48_v61 }
  0x30   :  { %1439 = vmatpush3.bf16.msra.mxu0 %v1569_v5  ;;  %v53_v5 = vld [vmem:[%s1984_s0 + $0x118] sm:$0xff] }
  0x31   :  { %1485 = vmatpush3.bf16.msra.mxu1 %v1571_v7  ;;  %1440 = vmatprep.subr.bf16.mxu0 %v1572_v8  ;;  %v1223_v7 = vcombine.low %v45_v62, %v49_v63  ;;  %v1231_v11 = vcombine.low %v53_v5, %v53_v5 }
  0x32   :  { %1486 = vmatprep.subr.bf16.mxu1 %v1574_v10 }
  0x33   :  { %803 = vmatmul.mubr.bf16.gmra.mrb[8].mxu0 %v1209_v3  ;;  %v1224_v3 = vcombine.high %v45_v62, %v49_v63 }
  0x34   :  { %875 = vmatmul.mubr.bf16.gmra.mrb[8].mxu1 %v1211_v4  ;;  %1441 = vmatpush3.bf16.msra.mxu0 %v1573_v9  ;;  %v52_v4 = vld [vmem:[%s1984_s0 + $0x110] sm:$0xff]  ;;  %v1232_v9 = vcombine.high %v53_v5, %v53_v5 }
  0x35   :  { %810 = vmatprep.mubr.bf16.mxu0 %v1218_v14  ;;  %882 = vmatprep.mubr.bf16.mxu1 %v1220_v17  ;;  %v1230_v8 = vcombine.high %v52_v4, %v52_v4  ;;  %v1229_v10 = vcombine.low %v52_v4, %v52_v4 }
  0x36   :  { %1487 = vmatpush3.bf16.msra.mxu1 %v1575_v18  ;;  %1442 = vmatprep.subr.bf16.mxu0 %v1576_v20 }
  0x37   :  { %1488 = vmatprep.subr.bf16.mxu1 %v1578_v22 }
  0x38   :  { %1443 = vmatpush3.bf16.msra.mxu0 %v1577_v21 }
  0x39   :  { %1444 = vmatprep.subr.bf16.mxu0 %v1580_v24 }
  0x3a   :  { %1489 = vmatpush3.bf16.msra.mxu1 %v1579_v23 }
  0x3b   :  { %811 = vmatmul.mubr.bf16.gmra.mrb[12].mxu0 %v1217_v16  ;;  %1490 = vmatprep.subr.bf16.mxu1 %v1586_v31 }
  0x3c   :  { %883 = vmatmul.mubr.bf16.gmra.mrb[12].mxu1 %v1219_v19  ;;  %818 = vmatprep.mubr.bf16.mxu0 %v1226_v27 }
  0x3d   :  { %890 = vmatprep.mubr.bf16.mxu1 %v1228_v28  ;;  %1445 = vmatpush3.bf16.msra.mxu0 %v1583_v29 }
  0x3e   :  { %1491 = vmatpush3.bf16.msra.mxu1 %v1587_v33  ;;  %1446 = vmatprep.subr.bf16.mxu0 %v1588_v34 }
  0x3f   :  { %1492 = vmatprep.subr.bf16.mxu1 %v1590_v36 }
  0x41   :  { %1447 = vmatpush3.bf16.msra.mxu0 %v1589_v35 }
  0x42   :  { %1493 = vmatpush3.bf16.msra.mxu1 %v1591_v37 }
  0x43   :  { %819 = vmatmul.mubr.bf16.gmra.mrb[16].mxu0 %v1225_v30 }
  0x44   :  { %891 = vmatmul.mubr.bf16.gmra.mrb[16].mxu1 %v1227_v32  ;;  %930 = vmatprep.mubr.bf16.mxu0 %v1198_v41 }
  0x45   :  { %1002 = vmatprep.mubr.bf16.mxu1 %v1200_v46 }
  0x4b   :  { %931 = vmatmul.mubr.bf16.vlgmr.msra.gmra.mrb[20].mxu0 %v1197_v45 }
  0x4c   :  { %1003 = vmatmul.mubr.bf16.vlgmr.msra.gmra.mrb[20].mxu1 %v1199_v49  ;;  %938 = vmatprep.mubr.bf16.mxu0 %v1206_v50 }
  0x4d   :  { %1010 = vmatprep.mubr.bf16.mxu1 %v1208_v51 }
  0x53   :  { %939 = vmatmul.mubr.bf16.gmra.mrb[24].mxu0 %v1205_v56 }
  0x54   :  { %1011 = vmatmul.mubr.bf16.gmra.mrb[24].mxu1 %v1207_v57  ;;  %946 = vmatprep.mubr.bf16.mxu0 %v1214_v58 }
  0x55   :  { %1018 = vmatprep.mubr.bf16.mxu1 %v1216_v59 }
  0x5b   :  { %947 = vmatmul.mubr.bf16.gmra.mrb[28].mxu0 %v1213_v0 }
  0x5c   :  { %1019 = vmatmul.mubr.bf16.gmra.mrb[28].mxu1 %v1215_v1  ;;  %954 = vmatprep.mubr.bf16.mxu0 %v1222_v2 }
  0x5d   :  { %1026 = vmatprep.mubr.bf16.mxu1 %v1224_v3 }
  0x63   :  { %955 = vmatmul.mubr.bf16.gmra.mrb[32].mxu0 %v1221_v6 }
  0x64   :  { %1027 = vmatmul.mubr.bf16.gmra.mrb[32].mxu1 %v1223_v7  ;;  %962 = vmatprep.mubr.bf16.mxu0 %v1230_v8 }
  0x65   :  { %1034 = vmatprep.mubr.bf16.mxu1 %v1232_v9 }
  0x6b   :  { %963 = vmatmul.mubr.bf16.gmra.mrb[36].mxu0 %v1229_v10 }
  0x6c   :  { %1035 = vmatmul.mubr.bf16.gmra.mrb[36].mxu1 %v1231_v11 }
  0xf6   :  { %v1356_v12 = vpop.f32.mrb[0].mxu0 }
  0xf7   :  { %v1402_v13 = vpop.f32.mrb[0].mxu1  ;;  %v1357_v14 = vpop.f32.mrb[1].mxu0 }
  0xf8   :  { %v1358_v15 = vadd.f32 %v1357_v14, %v1356_v12  ;;  %v1403_v16 = vpop.f32.mrb[1].mxu1  ;;  %v1359_v17 = vpop.f32.mrb[2].mxu0 }
  0xf9   :  { %v1404_v18 = vadd.f32 %v1403_v16, %v1402_v13  ;;  %v1405_v19 = vpop.f32.mrb[2].mxu1  ;;  %v1360_v20 = vpop.f32.mrb[3].mxu0 }
  0xfa   :  { %v1361_v21 = vadd.f32 %v1360_v20, %v1359_v17  ;;  %v1406_v22 = vpop.f32.mrb[3].mxu1 }
  0xfb   :  { %v1923_v23 = vadd.f32 %v1404_v18, %v1358_v15  ;;  %v1407_v24 = vadd.f32 %v1406_v22, %v1405_v19 }
  0xfd   :  { %v1925_v25 = vadd.f32 %v1407_v24, %v1361_v21 }
  0xfe   :  { %v1362_v26 = vpop.f32.mrb[4].mxu0 }
  0xff   :  { %v1408_v27 = vpop.f32.mrb[4].mxu1  ;;  %v1363_v28 = vpop.f32.mrb[5].mxu0 }
 0x100   :  { %v1364_v29 = vadd.f32 %v1363_v28, %v1362_v26  ;;  %v1409_v30 = vpop.f32.mrb[5].mxu1  ;;  %v1365_v31 = vpop.f32.mrb[6].mxu0 }
 0x101   :  { %v1410_v32 = vadd.f32 %v1409_v30, %v1408_v27  ;;  %v1411_v33 = vpop.f32.mrb[6].mxu1  ;;  %v1366_v34 = vpop.f32.mrb[7].mxu0 }
 0x102   :  { %v1367_v35 = vadd.f32 %v1366_v34, %v1365_v31  ;;  %v1412_v36 = vpop.f32.mrb[7].mxu1 }
 0x103   :  { %v1927_v37 = vadd.f32 %v1410_v32, %v1364_v29  ;;  %v1413_v38 = vadd.f32 %v1412_v36, %v1411_v33 }
 0x105   :  { %v1929_v39 = vadd.f32 %v1413_v38, %v1367_v35 }
 0x106   :  { %v1368_v40 = vpop.f32.mrb[8].mxu0 }
 0x107   :  { %v1414_v41 = vpop.f32.mrb[8].mxu1  ;;  %v1369_v42 = vpop.f32.mrb[9].mxu0 }
 0x108   :  { %v1370_v43 = vadd.f32 %v1369_v42, %v1368_v40  ;;  %v1415_v44 = vpop.f32.mrb[9].mxu1  ;;  %v1371_v45 = vpop.f32.mrb[10].mxu0 }
 0x109   :  { %v1416_v46 = vadd.f32 %v1415_v44, %v1414_v41  ;;  %v1417_v47 = vpop.f32.mrb[10].mxu1  ;;  %v1372_v48 = vpop.f32.mrb[11].mxu0 }
 0x10a   :  { %v1373_v49 = vadd.f32 %v1372_v48, %v1371_v45  ;;  %v1418_v50 = vpop.f32.mrb[11].mxu1 }
 0x10b   :  { %v1931_v51 = vadd.f32 %v1416_v46, %v1370_v43  ;;  %v1419_v52 = vadd.f32 %v1418_v50, %v1417_v47 }
 0x10d   :  { %v1933_v53 = vadd.f32 %v1419_v52, %v1373_v49 }
 0x10e   :  { %v1374_v54 = vpop.f32.mrb[12].mxu0 }
 0x10f   :  { %v1420_v55 = vpop.f32.mrb[12].mxu1  ;;  %v1375_v56 = vpop.f32.mrb[13].mxu0 }
 0x110   :  { %v1376_v57 = vadd.f32 %v1375_v56, %v1374_v54  ;;  %v1421_v58 = vpop.f32.mrb[13].mxu1  ;;  %v1377_v59 = vpop.f32.mrb[14].mxu0 }
 0x111   :  { %v1422_v60 = vadd.f32 %v1421_v58, %v1420_v55  ;;  %v1423_v61 = vpop.f32.mrb[14].mxu1  ;;  %v1378_v62 = vpop.f32.mrb[15].mxu0 }
 0x112   :  { %v1379_v63 = vadd.f32 %v1378_v62, %v1377_v59  ;;  %v1424_v0 = vpop.f32.mrb[15].mxu1 }
 0x113   :  { %v1935_v1 = vadd.f32 %v1422_v60, %v1376_v57  ;;  %v1425_v2 = vadd.f32 %v1424_v0, %v1423_v61 }
 0x115   :  { %v1937_v3 = vadd.f32 %v1425_v2, %v1379_v63 }
 0x116   :  { %v1380_v4 = vpop.f32.mrb[16].mxu0 }
 0x117   :  { %v1426_v5 = vpop.f32.mrb[16].mxu1  ;;  %v1381_v6 = vpop.f32.mrb[17].mxu0 }
 0x118   :  { %v1382_v7 = vadd.f32 %v1381_v6, %v1380_v4  ;;  %v1427_v8 = vpop.f32.mrb[17].mxu1  ;;  %v1383_v9 = vpop.f32.mrb[18].mxu0 }
 0x119   :  { %v1428_v10 = vadd.f32 %v1427_v8, %v1426_v5  ;;  %v1429_v11 = vpop.f32.mrb[18].mxu1  ;;  %v1384_v12 = vpop.f32.mrb[19].mxu0 }
 0x11a   :  { %v1430_v13 = vpop.f32.mrb[19].mxu1 }
 0x11b   :  { %v1939_v14 = vadd.f32 %v1428_v10, %v1382_v7 }
 0x11e   :  { %v1448_v15 = vpop.f32.mrb[20].mxu0 }
 0x11f   :  { %v1494_v16 = vpop.f32.mrb[20].mxu1  ;;  %v1449_v17 = vpop.f32.mrb[21].mxu0 }
 0x120   :  { %v1450_v18 = vadd.f32 %v1449_v17, %v1448_v15  ;;  %v1495_v19 = vpop.f32.mrb[21].mxu1  ;;  %v1451_v20 = vpop.f32.mrb[22].mxu0 }
 0x121   :  { %v1496_v21 = vadd.f32 %v1495_v19, %v1494_v16  ;;  %v1497_v22 = vpop.f32.mrb[22].mxu1  ;;  %v1452_v24 = vpop.f32.mrb[23].mxu0 }
 0x122   :  { %v933_v26 = vadd.f32 %v1450_v18, %v1923_v23  ;;  %v1453_v27 = vadd.f32 %v1452_v24, %v1451_v20  ;;  %v1498_v28 = vpop.f32.mrb[23].mxu1 }
 0x123   :  { %v1499_v29 = vadd.f32 %v1498_v28, %v1497_v22 }
 0x124   :  { %v1942_v30 = vadd.f32 %v1496_v21, %v933_v26  ;;  %v936_v31 = vadd.f32 %v1453_v27, %v1925_v25 }
 0x126   :  { %v1945_v32 = vadd.f32 %v1499_v29, %v936_v31  ;;  %v1454_v33 = vpop.f32.mrb[24].mxu0 }
 0x127   :  { %v1500_v34 = vpop.f32.mrb[24].mxu1  ;;  %v1455_v35 = vpop.f32.mrb[25].mxu0 }
 0x128   :  { %v1042_v36 = vadd.f32 %v1945_v32, %v1942_v30  ;;  %v1456_v38 = vadd.f32 %v1455_v35, %v1454_v33  ;;  %v1501_v40 = vpop.f32.mrb[25].mxu1  ;;  %v1457_v41 = vpop.f32.mrb[26].mxu0 }
 0x129   :  { %v1502_v42 = vadd.f32 %v1501_v40, %v1500_v34  ;;  %v1503_v23 = vpop.f32.mrb[26].mxu1  ;;  %v1458_v43 = vpop.f32.mrb[27].mxu0 }
 0x12a   :  { %v941_v44 = vadd.f32 %v1456_v38, %v1927_v37  ;;  %v1459_v45 = vadd.f32 %v1458_v43, %v1457_v41  ;;  %v1504_v46 = vpop.f32.mrb[27].mxu1 }
 0x12b   :  { %v1505_v47 = vadd.f32 %v1504_v46, %v1503_v23 }
 0x12c   :  { %v1950_v25 = vadd.f32 %v1502_v42, %v941_v44  ;;  %v944_v48 = vadd.f32 %v1459_v45, %v1929_v39 }
 0x12e   :  { %v1043_v49 = vadd.f32 %v1042_v36, %v1950_v25  ;;  %v1016_v50 = vadd.f32 %v1505_v47, %v944_v48  ;;  %v1460_v52 = vpop.f32.mrb[28].mxu0 }
 0x12f   :  { %v1506_v54 = vpop.f32.mrb[28].mxu1  ;;  %v1461_v55 = vpop.f32.mrb[29].mxu0 }
 0x130   :  { %v1044_v56 = vadd.f32 %v1043_v49, %v1016_v50  ;;  %v1462_v57 = vadd.f32 %v1461_v55, %v1460_v52  ;;  %v1507_v58 = vpop.f32.mrb[29].mxu1  ;;  %v1463_v59 = vpop.f32.mrb[30].mxu0 }
 0x131   :  { %v1508_v60 = vadd.f32 %v1507_v58, %v1506_v54  ;;  %v1509_v61 = vpop.f32.mrb[30].mxu1  ;;  %v1464_v37 = vpop.f32.mrb[31].mxu0 }
 0x132   :  { %v949_v62 = vadd.f32 %v1462_v57, %v1931_v51  ;;  %v1465_v63 = vadd.f32 %v1464_v37, %v1463_v59  ;;  %v1510_v0 = vpop.f32.mrb[31].mxu1 }
 0x133   :  { %v1511_v2 = vadd.f32 %v1510_v0, %v1509_v61 }
 0x134   :  { %v1021_v4 = vadd.f32 %v1508_v60, %v949_v62  ;;  %v952_v39 = vadd.f32 %v1465_v63, %v1933_v53 }
 0x136   :  { %v1045_v5 = vadd.f32 %v1044_v56, %v1021_v4  ;;  %v1024_v6 = vadd.f32 %v1511_v2, %v952_v39  ;;  %v1466_v7 = vpop.f32.mrb[32].mxu0 }
 0x137   :  { %v1512_v8 = vpop.f32.mrb[32].mxu1  ;;  %v1467_v9 = vpop.f32.mrb[33].mxu0 }
 0x138   :  { %v1046_v10 = vadd.f32 %v1045_v5, %v1024_v6  ;;  %v1468_v11 = vadd.f32 %v1467_v9, %v1466_v7  ;;  %v1513_v12 = vpop.f32.mrb[33].mxu1  ;;  %v1469_v13 = vpop.f32.mrb[34].mxu0 }
 0x139   :  { %v1514_v15 = vadd.f32 %v1513_v12, %v1512_v8  ;;  %v1515_v16 = vpop.f32.mrb[34].mxu1  ;;  %v1470_v17 = vpop.f32.mrb[35].mxu0 }
 0x13a   :  { %v957_v51 = vadd.f32 %v1468_v11, %v1935_v1  ;;  %v1471_v18 = vadd.f32 %v1470_v17, %v1469_v13  ;;  %v1516_v19 = vpop.f32.mrb[35].mxu1 }
 0x13b   :  { %v1517_v20 = vadd.f32 %v1516_v19, %v1515_v16 }
 0x13c   :  { %v1029_v21 = vadd.f32 %v1514_v15, %v957_v51  ;;  %v960_v53 = vadd.f32 %v1471_v18, %v1937_v3  ;;  %v1297_v51 = vld [vmem:[%s1985_s2] ss:$0 sm:$0xff] }
 0x13e   :  { %v1047_v22 = vadd.f32 %v1046_v10, %v1029_v21  ;;  %v1032_v24 = vadd.f32 %v1517_v20, %v960_v53  ;;  %v1472_v26 = vpop.f32.mrb[36].mxu0 }
 0x13f   :  { %v1518_v27 = vpop.f32.mrb[36].mxu1  ;;  %v1473_v28 = vpop.f32.mrb[37].mxu0 }
 0x140   :  { %v1048_v29 = vadd.f32 %v1047_v22, %v1032_v24  ;;  %v1474_v31 = vadd.f32 %v1473_v28, %v1472_v26  ;;  %v1519_v33 = vpop.f32.mrb[37].mxu1  ;;  %v1475_v34 = vpop.f32.mrb[38].mxu0 }
 0x141   :  { %v1520_v35 = vadd.f32 %v1519_v33, %v1518_v27  ;;  %v1521_v36 = vpop.f32.mrb[38].mxu1  ;;  %v1476_v38 = vpop.f32.mrb[39].mxu0  ;;  %v1298_v27 = vld [vmem:[%s1986_s3] ss:$0 sm:$0xff] }
 0x142   :  { %v965_v1 = vadd.f32 %v1474_v31, %v1939_v14  ;;  %v1522_v40 = vpop.f32.mrb[39].mxu1 }
 0x144   :  { %v1037_v41 = vadd.f32 %v1520_v35, %v965_v1 }
 0x146   :  { %v1049_v42 = vadd.f32 %v1048_v29, %v1037_v41 }
 0x148   :  { %v1050_v23 = vrot.slane %v1049_v42, 4 }
 0x14a   :  { %v1051_v43 = vadd.f32 %v1050_v23, %v1049_v42 }
 0x14c   :  { %v1052_v3 = vrot.slane %v1051_v43, 2 }
 0x14e   :  { %v1053_v44 = vadd.f32 %v1052_v3, %v1051_v43 }
 0x150   :  { %v1054_v45 = vrot.slane %v1053_v44, 1 }
 0x152   :  { %v1055_v46 = vadd.f32 %v1054_v45, %v1053_v44 }
 0x154   :  { %v1057_v47 = vmul.f32 0.013888889, %v1055_v46 }
 0x156   :  { %v1058_v48 = vsub.f32 %v1942_v30, %v1057_v47  ;;  %v1059_v49 = vsub.f32 %v1945_v32, %v1057_v47  ;;  %v1060_v52 = vsub.f32 %v1950_v25, %v1057_v47  ;;  %v1061_v54 = vsub.f32 %v1016_v50, %v1057_v47 }
 0x157   :  { %v1062_v55 = vsub.f32 %v1021_v4, %v1057_v47  ;;  %v1063_v56 = vsub.f32 %v1024_v6, %v1057_v47  ;;  %v1064_v14 = vsub.f32 %v1029_v21, %v1057_v47  ;;  %v1065_v57 = vsub.f32 %v1032_v24, %v1057_v47 }
 0x158   :  { %v1066_v58 = vsub.f32 %v1037_v41, %v1057_v47  ;;  %v1067_v59 = vmul.f32 %v1058_v48, %v1058_v48  ;;  %v1068_v60 = vmul.f32 %v1059_v49, %v1059_v49  ;;  %v1069_v61 = vmul.f32 %v1060_v52, %v1060_v52 }
 0x159   :  { %v1070_v62 = vmul.f32 %v1061_v54, %v1061_v54  ;;  %v1071_v0 = vmul.f32 %v1062_v55, %v1062_v55  ;;  %v1072_v39 = vmul.f32 %v1063_v56, %v1063_v56  ;;  %v1073_v5 = vmul.f32 %v1064_v14, %v1064_v14 }
 0x15a   :  { %v1076_v37 = vadd.f32 %v1068_v60, %v1067_v59  ;;  %v1074_v7 = vmul.f32 %v1065_v57, %v1065_v57  ;;  %v1075_v50 = vmul.f32 %v1066_v58, %v1066_v58 }
 0x15c   :  { %v1077_v63 = vadd.f32 %v1076_v37, %v1069_v61 }
 0x15e   :  { %v1078_v2 = vadd.f32 %v1077_v63, %v1070_v62 }
 0x160   :  { %v1079_v30 = vadd.f32 %v1078_v2, %v1071_v0 }
 0x162   :  { %v1080_v32 = vadd.f32 %v1079_v30, %v1072_v39 }
 0x164   :  { %v1081_v25 = vadd.f32 %v1080_v32, %v1073_v5 }
 0x166   :  { %v1082_v4 = vadd.f32 %v1081_v25, %v1074_v7 }
 0x168   :  { %v1083_v6 = vadd.f32 %v1082_v4, %v1075_v50 }
 0x16a   :  { %v1084_v8 = vrot.slane %v1083_v6, 4 }
 0x16c   :  { %v1085_v9 = vadd.f32 %v1084_v8, %v1083_v6 }
 0x16e   :  { %v1086_v10 = vrot.slane %v1085_v9, 2 }
 0x170   :  { %v1087_v11 = vadd.f32 %v1086_v10, %v1085_v9 }
 0x172   :  { %v1088_v12 = vrot.slane %v1087_v11, 1 }
 0x174   :  { %v1089_v13 = vadd.f32 %v1088_v12, %v1087_v11 }
 0x176   :  { %v1090_v15 = vmul.f32 0.013888889, %v1089_v13 }
 0x178   :  { %v1091_v16 = vadd.f32 1e-05, %v1090_v15 }
 0x17a   :  { %1596 = vrsqrt.f32 %v1091_v16 }
 0x184   :  { %v1597_v17 = vpop.eup %1596 }
 0x185   :  { %v1093_v18 = vmul.f32 %v1597_v17, %v1058_v48  ;;  %v1094_v19 = vmul.f32 %v1597_v17, %v1059_v49  ;;  %v1095_v20 = vmul.f32 %v1597_v17, %v1060_v52  ;;  %v1096_v21 = vmul.f32 %v1597_v17, %v1061_v54 }
 0x186   :  { %v1097_v53 = vmul.f32 %v1597_v17, %v1062_v55  ;;  %v1098_v22 = vmul.f32 %v1597_v17, %v1063_v56  ;;  %v1099_v24 = vmul.f32 %v1597_v17, %v1064_v14  ;;  %v1100_v26 = vmul.f32 %v1597_v17, %v1065_v57 }
 0x187   :  { %v1101_v28 = vmul.f32 %v1597_v17, %v1066_v58  ;;  %v1109_v29 = vmul.f32 %v1297_v51, %v1093_v18  ;;  %v1110_v31 = vmul.f32 %v1297_v51, %v1094_v19  ;;  %v1111_v33 = vmul.f32 %v1297_v51, %v1095_v20 }
 0x188   :  { %v1112_v34 = vmul.f32 %v1297_v51, %v1096_v21  ;;  %v1113_v35 = vmul.f32 %v1297_v51, %v1097_v53  ;;  %v1114_v36 = vmul.f32 %v1297_v51, %v1098_v22  ;;  %v1115_v38 = vmul.f32 %v1297_v51, %v1099_v24 }
 0x189   :  { %v1116_v1 = vmul.f32 %v1297_v51, %v1100_v26  ;;  %v1117_v40 = vmul.f32 %v1297_v51, %v1101_v28  ;;  %v1125_v41 = vadd.f32 %v1298_v27, %v1109_v29  ;;  %v1126_v42 = vadd.f32 %v1298_v27, %v1110_v31 }
 0x18a   :  { %v1127_v23 = vadd.f32 %v1298_v27, %v1111_v33  ;;  %v1128_v43 = vadd.f32 %v1298_v27, %v1112_v34  ;;  %v1129_v3 = vadd.f32 %v1298_v27, %v1113_v35  ;;  %v1130_v44 = vadd.f32 %v1298_v27, %v1114_v36 }
 0x18b   :  { %v1131_v45 = vadd.f32 %v1298_v27, %v1115_v38  ;;  %v1132_v46 = vadd.f32 %v1298_v27, %v1116_v1  ;;  %v1133_v47 = vadd.f32 %v1298_v27, %v1117_v40  ;;  %v1134_v48 = vmax.f32 %v1125_v41, 0.0 }
 0x18c   :  { %v1135_v49 = vmax.f32 %v1126_v42, 0.0  ;;  %v1136_v52 = vmax.f32 %v1127_v23, 0.0  ;;  %v1137_v54 = vmax.f32 %v1128_v43, 0.0  ;;  %v1138_v55 = vmax.f32 %v1129_v3, 0.0 }
 0x18d   :  { %v1139_v56 = vmax.f32 %v1130_v44, 0.0  ;;  %v1140_v14 = vmax.f32 %v1131_v45, 0.0  ;;  %v1141_v57 = vmax.f32 %v1132_v46, 0.0  ;;  %v1142_v58 = vmax.f32 %v1133_v47, 0.0 }
 0x18e   :  { %v1320_v59 = vpack.c.bf16 %v1135_v49, %v1134_v48  ;;  %v1325_v60 = vpack.c.bf16 %v1137_v54, %v1136_v52 }
 0x18f   :  { %v1316_v61 = vpack.c.bf16 %v1142_v58, %v1142_v58  ;;  %v1330_v37 = vpack.c.bf16 %v1139_v56, %v1138_v55  ;;  %v1335_v62 = vpack.c.bf16 %v1141_v57, %v1140_v14 }
 0x190   :  { %1321 = vst [vmem:[%s1987_s4] sm:$0xff] %v1320_v59   ;;  %1337 = vst [vmem:[%s1987_s4 + $0x8] sm:$0xff] %v1325_v60  }
 0x191   :  { %1338 = vst [vmem:[%s1987_s4 + $0x10] sm:$0xff] %v1330_v37   ;;  %1339 = vst [vmem:[%s1987_s4 + $0x18] sm:$0xff] %v1335_v62  }
 0x192   :  { %1188 = vst [vmem:[%s1987_s4 + $0x20] sm:$0xf] %v1316_v61 }

// kernel: critic_forward.7
= control target key start
LH: loop header
LB: loop body
LE: loop exit
PB: predicated region body
PF: predicated region fallthrough
CT: control target
= control target key end

     0   :  { %s8778_s0 = inlined_call_operand.vmem [shape: bf16[18,2048], index: 0, kind: input, shape index: {}]   ;;  %s8779_s1 = inlined_call_operand.vmem [shape: bf16[2,4], index: 1, kind: input, shape index: {}]   ;;  %s8780_s2 = inlined_call_operand.vmem [shape: bf16[2048,256], index: 2, kind: input, shape index: {}]   ;;  %s8781_s3 = inlined_call_operand.vmem [shape: f32[1,256], index: 3, kind: input, shape index: {}]   ;;  %s8782_s4 = inlined_call_operand.vmem [shape: bf16[9,256,256], index: 4, kind: input, shape index: {}]   ;;  %s8783_s5 = inlined_call_operand.vmem [shape: bf16[4,256], index: 5, kind: input, shape index: {}]   ;;  %s8784_s6 = inlined_call_operand.vmem [shape: f32[1,256], index: 6, kind: input, shape index: {}]   ;;  %s8785_s7 = inlined_call_operand.vmem [shape: bf16[256,256], index: 7, kind: input, shape index: {}]   ;;  %s8786_s8 = inlined_call_operand.vmem [shape: f32[1,256], index: 8, kind: input, shape index: {}]   ;;  %s8787_s9 = inlined_call_operand.vmem [shape: bf16[256,4], index: 9, kind: input, shape index: {}]   ;;  %s8788_s10 = inlined_call_operand.vmem [shape: f32[1,4], index: 10, kind: input, shape index: {}]   ;;  %s8789_s11 = inlined_call_operand.hbm [shape: f32[2,4], index: 11, kind: output, shape index: {}]  }
   0x1   :  { %v5808_v0 = vld [vmem:[%s8780_s2 + $0x4] ss:$8 sps:$4 sm:$0xff]   ;;  %v5810_v1 = vld [vmem:[%s8780_s2] ss:$8 sps:$4 sm:$0xff]   ;;  %v5811_v2 = vld [vmem:[%s8780_s2 + $0x14] ss:$8 sps:$4 sm:$0xff]  }
   0x2   :  { %1748 = vmatprep.subr.bf16.mxu0 %v5808_v0  ;;  %v5813_v3 = vld [vmem:[%s8780_s2 + $0x10] ss:$8 sps:$4 sm:$0xff]   ;;  %v5814_v4 = vld [vmem:[%s8780_s2 + $0x24] ss:$8 sps:$4 sm:$0xff]   ;;  %v5816_v5 = vld [vmem:[%s8780_s2 + $0x20] ss:$8 sps:$4 sm:$0xff]  }
   0x3   :  { %1749 = vmatpush1.bf16.msra.mxu0 %v5810_v1  ;;  %v5817_v6 = vld [vmem:[%s8780_s2 + $0x34] ss:$8 sps:$4 sm:$0xff]   ;;  %v5819_v7 = vld [vmem:[%s8780_s2 + $0x30] ss:$8 sps:$4 sm:$0xff]   ;;  %v5820_v8 = vld [vmem:[%s8780_s2 + $0x44] ss:$8 sps:$4 sm:$0xff]  }
   0x4   :  { %1750 = vmatprep.subr.bf16.mxu0 %v5811_v2  ;;  %v5822_v9 = vld [vmem:[%s8780_s2 + $0x40] ss:$8 sps:$4 sm:$0xff]   ;;  %v5823_v10 = vld [vmem:[%s8780_s2 + $0x54] ss:$8 sps:$4 sm:$0xff]   ;;  %v5825_v11 = vld [vmem:[%s8780_s2 + $0x50] ss:$8 sps:$4 sm:$0xff]  }
   0x5   :  { %v5826_v12 = vld [vmem:[%s8780_s2 + $0x64] ss:$8 sps:$4 sm:$0xff]   ;;  %v5828_v16 = vld [vmem:[%s8780_s2 + $0x60] ss:$8 sps:$4 sm:$0xff]   ;;  %v5829_v17 = vld [vmem:[%s8780_s2 + $0x74] ss:$8 sps:$4 sm:$0xff]  }
   0x6   :  { %v40_v13 = vld [vmem:[%s8778_s0] sm:$0xff]  ;;  %v5831_v18 = vld [vmem:[%s8780_s2 + $0x70] ss:$8 sps:$4 sm:$0xff]   ;;  %v5835_v21 = vld [vmem:[%s8780_s2 + $0x94] ss:$8 sps:$4 sm:$0xff]  }
   0x7   :  { %1751 = vmatpush1.bf16.msra.mxu0 %v5813_v3  ;;  %v48_v14 = vld [vmem:[%s8778_s0 + $0x40] sm:$0xff]  ;;  %v5837_v22 = vld [vmem:[%s8780_s2 + $0x90] ss:$8 sps:$4 sm:$0xff]   ;;  %v5841_v25 = vld [vmem:[%s8780_s2 + $0xb4] ss:$8 sps:$4 sm:$0xff]  }
   0x8   :  { %1752 = vmatprep.subr.bf16.mxu0 %v5814_v4  ;;  %v4839_v15 = vcombine.high %v40_v13, %v48_v14  ;;  %v5832_v19 = vld [vmem:[%s8780_s2 + $0x84] ss:$8 sps:$4 sm:$0xff]   ;;  %v5834_v20 = vld [vmem:[%s8780_s2 + $0x80] ss:$8 sps:$4 sm:$0xff]   ;;  %v5843_v26 = vld [vmem:[%s8780_s2 + $0xb0] ss:$8 sps:$4 sm:$0xff]   ;;  %v4838_v37 = vcombine.low %v40_v13, %v48_v14 }
   0x9   :  { %v5838_v23 = vld [vmem:[%s8780_s2 + $0xa4] ss:$8 sps:$4 sm:$0xff]   ;;  %v5840_v24 = vld [vmem:[%s8780_s2 + $0xa0] ss:$8 sps:$4 sm:$0xff]   ;;  %v5847_v29 = vld [vmem:[%s8780_s2 + $0xd4] ss:$8 sps:$4 sm:$0xff]  }
   0xa   :  { %1780 = vmatprep.mubr.bf16.mxu0 %v4839_v15  ;;  %v5844_v27 = vld [vmem:[%s8780_s2 + $0xc4] ss:$8 sps:$4 sm:$0xff]   ;;  %v5846_v28 = vld [vmem:[%s8780_s2 + $0xc0] ss:$8 sps:$4 sm:$0xff]   ;;  %v5849_v30 = vld [vmem:[%s8780_s2 + $0xd0] ss:$8 sps:$4 sm:$0xff]  }
   0xb   :  { %1753 = vmatpush1.bf16.msra.mxu0 %v5816_v5  ;;  %v5850_v31 = vld [vmem:[%s8780_s2 + $0xe4] ss:$8 sps:$4 sm:$0xff]   ;;  %v5852_v32 = vld [vmem:[%s8780_s2 + $0xe0] ss:$8 sps:$4 sm:$0xff]   ;;  %v5853_v33 = vld [vmem:[%s8780_s2 + $0xf4] ss:$8 sps:$4 sm:$0xff]  }
   0xc   :  { %1754 = vmatprep.subr.bf16.mxu0 %v5817_v6  ;;  %v5855_v34 = vld [vmem:[%s8780_s2 + $0xf0] ss:$8 sps:$4 sm:$0xff]   ;;  %v5858_v35 = vld [vmem:[%s8780_s2 + $0x104] ss:$8 sps:$4 sm:$0xff]   ;;  %v5856_v38 = vld [vmem:[%s8780_s2 + $0x100] ss:$8 sps:$4 sm:$0xff]  }
   0xd   :  { %v56_v36 = vld [vmem:[%s8778_s0 + $0x80] sm:$0x11]  ;;  %v5861_v40 = vld [vmem:[%s8780_s2 + $0x114] ss:$8 sps:$4 sm:$0xff]   ;;  %v5859_v41 = vld [vmem:[%s8780_s2 + $0x110] ss:$8 sps:$4 sm:$0xff]  }
   0xe   :  { %v4855_v39 = vcombine.high %v56_v36, %v56_v36  ;;  %v5864_v42 = vld [vmem:[%s8780_s2 + $0x124] ss:$8 sps:$4 sm:$0xff]   ;;  %v4854_v45 = vcombine.low %v56_v36, %v56_v36  ;;  %v5862_v46 = vld [vmem:[%s8780_s2 + $0x120] ss:$8 sps:$4 sm:$0xff]   ;;  %v5867_v47 = vld [vmem:[%s8780_s2 + $0x134] ss:$8 sps:$4 sm:$0xff]  }
   0xf   :  { %1755 = vmatpush1.bf16.msra.mxu0 %v5819_v7  ;;  %v6913_v43 = vld [vmem:[%s8778_s0 + $0x8] sm:$0xff]  ;;  %v5865_v49 = vld [vmem:[%s8780_s2 + $0x130] ss:$8 sps:$4 sm:$0xff]   ;;  %v5873_v52 = vld [vmem:[%s8780_s2 + $0x154] ss:$8 sps:$4 sm:$0xff]  }
  0x10   :  { %1756 = vmatprep.subr.bf16.mxu0 %v5820_v8  ;;  %v6918_v44 = vld [vmem:[%s8778_s0 + $0x48] sm:$0xff]  ;;  %v5871_v53 = vld [vmem:[%s8780_s2 + $0x150] ss:$8 sps:$4 sm:$0xff]   ;;  %v5879_v56 = vld [vmem:[%s8780_s2 + $0x174] ss:$8 sps:$4 sm:$0xff]  }
  0x11   :  { %v4841_v48 = vcombine.high %v6913_v43, %v6918_v44  ;;  %v5870_v50 = vld [vmem:[%s8780_s2 + $0x144] ss:$8 sps:$4 sm:$0xff]   ;;  %v5868_v51 = vld [vmem:[%s8780_s2 + $0x140] ss:$8 sps:$4 sm:$0xff]   ;;  %v5877_v57 = vld [vmem:[%s8780_s2 + $0x170] ss:$8 sps:$4 sm:$0xff]  }
  0x12   :  { %v5876_v54 = vld [vmem:[%s8780_s2 + $0x164] ss:$8 sps:$4 sm:$0xff]   ;;  %v5874_v55 = vld [vmem:[%s8780_s2 + $0x160] ss:$8 sps:$4 sm:$0xff]   ;;  %v5885_v60 = vld [vmem:[%s8780_s2 + $0x194] ss:$8 sps:$4 sm:$0xff]  }
  0x13   :  { %1757 = vmatpush1.bf16.msra.mxu0 %v5822_v9  ;;  %v5882_v58 = vld [vmem:[%s8780_s2 + $0x184] ss:$8 sps:$4 sm:$0xff]   ;;  %v5880_v59 = vld [vmem:[%s8780_s2 + $0x180] ss:$8 sps:$4 sm:$0xff]   ;;  %v5883_v61 = vld [vmem:[%s8780_s2 + $0x190] ss:$8 sps:$4 sm:$0xff]  }
  0x14   :  { %1758 = vmatprep.subr.bf16.mxu0 %v5823_v10  ;;  %v5888_v62 = vld [vmem:[%s8780_s2 + $0x1a4] ss:$8 sps:$4 sm:$0xff]   ;;  %v5886_v63 = vld [vmem:[%s8780_s2 + $0x1a0] ss:$8 sps:$4 sm:$0xff]   ;;  %v5891_v0 = vld [vmem:[%s8780_s2 + $0x1b4] ss:$8 sps:$4 sm:$0xff]  }
  0x15   :  { %v5889_v1 = vld [vmem:[%s8780_s2 + $0x1b0] ss:$8 sps:$4 sm:$0xff]   ;;  %v5894_v2 = vld [vmem:[%s8780_s2 + $0x1c4] ss:$8 sps:$4 sm:$0xff]   ;;  %v5892_v3 = vld [vmem:[%s8780_s2 + $0x1c0] ss:$8 sps:$4 sm:$0xff]  }
  0x16   :  { %v5897_v4 = vld [vmem:[%s8780_s2 + $0x1d4] ss:$8 sps:$4 sm:$0xff]   ;;  %v5895_v5 = vld [vmem:[%s8780_s2 + $0x1d0] ss:$8 sps:$4 sm:$0xff]   ;;  %v5901_v6 = vld [vmem:[%s8780_s2 + $0x1e4] ss:$8 sps:$4 sm:$0xff]  }
  0x17   :  { %1759 = vmatpush1.bf16.msra.mxu0 %v5825_v11  ;;  %v5899_v7 = vld [vmem:[%s8780_s2 + $0x1e0] ss:$8 sps:$4 sm:$0xff]   ;;  %v5905_v8 = vld [vmem:[%s8780_s2 + $0x1f4] ss:$8 sps:$4 sm:$0xff]   ;;  %v5903_v9 = vld [vmem:[%s8780_s2 + $0x1f0] ss:$8 sps:$4 sm:$0xff]  }
  0x18   :  { %1760 = vmatprep.subr.bf16.mxu0 %v5826_v12  ;;  %v5908_v10 = vld [vmem:[%s8780_s2 + $0x204] ss:$8 sps:$4 sm:$0xff]   ;;  %v4840_v12 = vcombine.low %v6913_v43, %v6918_v44  ;;  %v5906_v13 = vld [vmem:[%s8780_s2 + $0x200] ss:$8 sps:$4 sm:$0xff]   ;;  %v5911_v15 = vld [vmem:[%s8780_s2 + $0x214] ss:$8 sps:$4 sm:$0xff]  }
  0x19   :  { %v57_v11 = vld [vmem:[%s8778_s0 + $0x88] sm:$0x11]  ;;  %v5933_v36 = vld [vmem:[%s8780_s2 + $0x290] ss:$8 sps:$4 sm:$0xff]   ;;  %v5947_v43 = vld [vmem:[%s8780_s2 + $0x2d4] ss:$8 sps:$4 sm:$0xff]  }
  0x1a   :  { %v4857_v14 = vcombine.high %v57_v11, %v57_v11  ;;  %v5945_v44 = vld [vmem:[%s8780_s2 + $0x2d0] ss:$8 sps:$4 sm:$0xff]  }
  0x1b   :  { %1761 = vmatpush1.bf16.msra.mxu0 %v5828_v16  ;;  %v5909_v16 = vld [vmem:[%s8780_s2 + $0x210] ss:$8 sps:$4 sm:$0xff]  }
  0x1c   :  { %1762 = vmatprep.subr.bf16.mxu0 %v5829_v17  ;;  %v5914_v17 = vld [vmem:[%s8780_s2 + $0x224] ss:$8 sps:$4 sm:$0xff]  }
  0x1f   :  { %1763 = vmatpush1.bf16.msra.mxu0 %v5831_v18  ;;  %v7026_v18 = vld [vmem:[%s8778_s0 + $0x10] sm:$0xff] }
  0x20   :  { %1764 = vmatprep.subr.bf16.mxu0 %v5832_v19  ;;  %v7031_v19 = vld [vmem:[%s8778_s0 + $0x50] sm:$0xff] }
  0x23   :  { %1765 = vmatpush1.bf16.msra.mxu0 %v5834_v20  ;;  %v4856_v20 = vcombine.low %v57_v11, %v57_v11  ;;  %v5983_v11 = vld [vmem:[%s8780_s2 + $0x390] ss:$8 sps:$4 sm:$0xff]  }
  0x24   :  { %1766 = vmatprep.subr.bf16.mxu0 %v5835_v21  ;;  %v5912_v21 = vld [vmem:[%s8780_s2 + $0x220] ss:$8 sps:$4 sm:$0xff]  }
  0x27   :  { %1767 = vmatpush1.bf16.msra.mxu0 %v5837_v22  ;;  %v5917_v22 = vld [vmem:[%s8780_s2 + $0x234] ss:$8 sps:$4 sm:$0xff]  }
  0x28   :  { %1768 = vmatprep.subr.bf16.mxu0 %v5838_v23  ;;  %v4843_v23 = vcombine.high %v7026_v18, %v7031_v19 }
  0x2b   :  { %1769 = vmatpush1.bf16.msra.mxu0 %v5840_v24  ;;  %v5915_v24 = vld [vmem:[%s8780_s2 + $0x230] ss:$8 sps:$4 sm:$0xff]  }
  0x2c   :  { %1770 = vmatprep.subr.bf16.mxu0 %v5841_v25  ;;  %v5920_v25 = vld [vmem:[%s8780_s2 + $0x244] ss:$8 sps:$4 sm:$0xff]  }
  0x2f   :  { %1771 = vmatpush1.bf16.msra.mxu0 %v5843_v26  ;;  %v5918_v26 = vld [vmem:[%s8780_s2 + $0x240] ss:$8 sps:$4 sm:$0xff]  }
  0x30   :  { %1772 = vmatprep.subr.bf16.mxu0 %v5844_v27  ;;  %v5923_v27 = vld [vmem:[%s8780_s2 + $0x254] ss:$8 sps:$4 sm:$0xff]  }
  0x33   :  { %1773 = vmatpush1.bf16.msra.mxu0 %v5846_v28  ;;  %v5921_v28 = vld [vmem:[%s8780_s2 + $0x250] ss:$8 sps:$4 sm:$0xff]  }
  0x34   :  { %1774 = vmatprep.subr.bf16.mxu0 %v5847_v29  ;;  %v5926_v29 = vld [vmem:[%s8780_s2 + $0x264] ss:$8 sps:$4 sm:$0xff]  }
  0x37   :  { %1775 = vmatpush1.bf16.msra.mxu0 %v5849_v30  ;;  %v5924_v30 = vld [vmem:[%s8780_s2 + $0x260] ss:$8 sps:$4 sm:$0xff]  }
  0x38   :  { %1776 = vmatprep.subr.bf16.mxu0 %v5850_v31  ;;  %v5929_v31 = vld [vmem:[%s8780_s2 + $0x274] ss:$8 sps:$4 sm:$0xff]  }
  0x3b   :  { %1777 = vmatpush1.bf16.msra.mxu0 %v5852_v32  ;;  %v5927_v32 = vld [vmem:[%s8780_s2 + $0x270] ss:$8 sps:$4 sm:$0xff]  }
  0x3c   :  { %1778 = vmatprep.subr.bf16.mxu0 %v5853_v33  ;;  %v5932_v33 = vld [vmem:[%s8780_s2 + $0x284] ss:$8 sps:$4 sm:$0xff]  }
  0x3f   :  { %1779 = vmatpush1.bf16.msra.mxu0 %v5855_v34  ;;  %v5930_v34 = vld [vmem:[%s8780_s2 + $0x280] ss:$8 sps:$4 sm:$0xff]  }
  0x40   :  { %1799 = vmatprep.subr.bf16.mxu0 %v5858_v35  ;;  %v5935_v35 = vld [vmem:[%s8780_s2 + $0x294] ss:$8 sps:$4 sm:$0xff]  }
  0x42   :  { %1781 = vmatmul.mubr.bf16.vlgmr.msra.gmra.mrb[0].mxu0 %v4838_v37  ;;  %v5938_v37 = vld [vmem:[%s8780_s2 + $0x2a4] ss:$8 sps:$4 sm:$0xff]  }
  0x43   :  { %1800 = vmatpush1.bf16.msra.mxu0 %v5856_v38  ;;  %1790 = vmatprep.mubr.bf16.mxu0 %v4855_v39  ;;  %v5936_v38 = vld [vmem:[%s8780_s2 + $0x2a0] ss:$8 sps:$4 sm:$0xff]   ;;  %v5941_v39 = vld [vmem:[%s8780_s2 + $0x2b4] ss:$8 sps:$4 sm:$0xff]  }
  0x44   :  { %1801 = vmatprep.subr.bf16.mxu0 %v5861_v40  ;;  %v5939_v40 = vld [vmem:[%s8780_s2 + $0x2b0] ss:$8 sps:$4 sm:$0xff]  }
  0x47   :  { %1802 = vmatpush1.bf16.msra.mxu0 %v5859_v41  ;;  %v5944_v41 = vld [vmem:[%s8780_s2 + $0x2c4] ss:$8 sps:$4 sm:$0xff]  }
  0x48   :  { %1803 = vmatprep.subr.bf16.mxu0 %v5864_v42  ;;  %v5942_v42 = vld [vmem:[%s8780_s2 + $0x2c0] ss:$8 sps:$4 sm:$0xff]  }
  0x4a   :  { %1791 = vmatmul.mubr.bf16.gmra.mrb[4].mxu0 %v4854_v45  ;;  %v5951_v45 = vld [vmem:[%s8780_s2 + $0x2e4] ss:$8 sps:$4 sm:$0xff]  }
  0x4b   :  { %1804 = vmatpush1.bf16.msra.mxu0 %v5862_v46  ;;  %1831 = vmatprep.mubr.bf16.mxu0 %v4841_v48  ;;  %v5949_v46 = vld [vmem:[%s8780_s2 + $0x2e0] ss:$8 sps:$4 sm:$0xff]   ;;  %v5953_v48 = vld [vmem:[%s8780_s2 + $0x2f0] ss:$8 sps:$4 sm:$0xff]  }
  0x4c   :  { %1805 = vmatprep.subr.bf16.mxu0 %v5867_v47  ;;  %v5955_v47 = vld [vmem:[%s8780_s2 + $0x2f4] ss:$8 sps:$4 sm:$0xff]  }
  0x4f   :  { %1806 = vmatpush1.bf16.msra.mxu0 %v5865_v49  ;;  %v5958_v49 = vld [vmem:[%s8780_s2 + $0x304] ss:$8 sps:$4 sm:$0xff]  }
  0x50   :  { %1807 = vmatprep.subr.bf16.mxu0 %v5870_v50  ;;  %v58_v50 = vld [vmem:[%s8778_s0 + $0x90] sm:$0x11] }
  0x53   :  { %1808 = vmatpush1.bf16.msra.mxu0 %v5868_v51  ;;  %v4842_v51 = vcombine.low %v7026_v18, %v7031_v19  ;;  %v5997_v18 = vld [vmem:[%s8780_s2 + $0x3d4] ss:$8 sps:$4 sm:$0xff]   ;;  %v5995_v19 = vld [vmem:[%s8780_s2 + $0x3d0] ss:$8 sps:$4 sm:$0xff]  }
  0x54   :  { %1809 = vmatprep.subr.bf16.mxu0 %v5873_v52  ;;  %v5956_v52 = vld [vmem:[%s8780_s2 + $0x300] ss:$8 sps:$4 sm:$0xff]  }
  0x57   :  { %1810 = vmatpush1.bf16.msra.mxu0 %v5871_v53  ;;  %v4859_v53 = vcombine.high %v58_v50, %v58_v50 }
  0x58   :  { %1811 = vmatprep.subr.bf16.mxu0 %v5876_v54  ;;  %v5961_v54 = vld [vmem:[%s8780_s2 + $0x314] ss:$8 sps:$4 sm:$0xff]  }
  0x5b   :  { %1812 = vmatpush1.bf16.msra.mxu0 %v5874_v55  ;;  %v5959_v55 = vld [vmem:[%s8780_s2 + $0x310] ss:$8 sps:$4 sm:$0xff]  }
  0x5c   :  { %1813 = vmatprep.subr.bf16.mxu0 %v5879_v56  ;;  %v5964_v56 = vld [vmem:[%s8780_s2 + $0x324] ss:$8 sps:$4 sm:$0xff]  }
  0x5f   :  { %1814 = vmatpush1.bf16.msra.mxu0 %v5877_v57  ;;  %v7139_v57 = vld [vmem:[%s8778_s0 + $0x18] sm:$0xff] }
  0x60   :  { %1815 = vmatprep.subr.bf16.mxu0 %v5882_v58  ;;  %v7144_v58 = vld [vmem:[%s8778_s0 + $0x58] sm:$0xff] }
  0x63   :  { %1816 = vmatpush1.bf16.msra.mxu0 %v5880_v59  ;;  %v4858_v59 = vcombine.low %v58_v50, %v58_v50 }
  0x64   :  { %1817 = vmatprep.subr.bf16.mxu0 %v5885_v60  ;;  %v5962_v60 = vld [vmem:[%s8780_s2 + $0x320] ss:$8 sps:$4 sm:$0xff]  }
  0x67   :  { %1818 = vmatpush1.bf16.msra.mxu0 %v5883_v61  ;;  %v5967_v61 = vld [vmem:[%s8780_s2 + $0x334] ss:$8 sps:$4 sm:$0xff]  }
  0x68   :  { %1819 = vmatprep.subr.bf16.mxu0 %v5888_v62  ;;  %v4845_v62 = vcombine.high %v7139_v57, %v7144_v58 }
  0x6b   :  { %1820 = vmatpush1.bf16.msra.mxu0 %v5886_v63  ;;  %v5965_v63 = vld [vmem:[%s8780_s2 + $0x330] ss:$8 sps:$4 sm:$0xff]  }
  0x6c   :  { %1821 = vmatprep.subr.bf16.mxu0 %v5891_v0  ;;  %v5970_v0 = vld [vmem:[%s8780_s2 + $0x344] ss:$8 sps:$4 sm:$0xff]  }
  0x6f   :  { %1822 = vmatpush1.bf16.msra.mxu0 %v5889_v1  ;;  %v5968_v1 = vld [vmem:[%s8780_s2 + $0x340] ss:$8 sps:$4 sm:$0xff]  }
  0x70   :  { %1823 = vmatprep.subr.bf16.mxu0 %v5894_v2  ;;  %v5973_v2 = vld [vmem:[%s8780_s2 + $0x354] ss:$8 sps:$4 sm:$0xff]  }
  0x73   :  { %1824 = vmatpush1.bf16.msra.mxu0 %v5892_v3  ;;  %v5971_v3 = vld [vmem:[%s8780_s2 + $0x350] ss:$8 sps:$4 sm:$0xff]  }
  0x74   :  { %1825 = vmatprep.subr.bf16.mxu0 %v5897_v4  ;;  %v5976_v4 = vld [vmem:[%s8780_s2 + $0x364] ss:$8 sps:$4 sm:$0xff]  }
  0x77   :  { %1826 = vmatpush1.bf16.msra.mxu0 %v5895_v5  ;;  %v5974_v5 = vld [vmem:[%s8780_s2 + $0x360] ss:$8 sps:$4 sm:$0xff]  }
  0x78   :  { %1827 = vmatprep.subr.bf16.mxu0 %v5901_v6  ;;  %v5979_v6 = vld [vmem:[%s8780_s2 + $0x374] ss:$8 sps:$4 sm:$0xff]  }
  0x7b   :  { %1828 = vmatpush1.bf16.msra.mxu0 %v5899_v7  ;;  %v5977_v7 = vld [vmem:[%s8780_s2 + $0x370] ss:$8 sps:$4 sm:$0xff]  }
  0x7c   :  { %1829 = vmatprep.subr.bf16.mxu0 %v5905_v8  ;;  %v5982_v8 = vld [vmem:[%s8780_s2 + $0x384] ss:$8 sps:$4 sm:$0xff]  }
  0x7f   :  { %1830 = vmatpush1.bf16.msra.mxu0 %v5903_v9  ;;  %v5980_v9 = vld [vmem:[%s8780_s2 + $0x380] ss:$8 sps:$4 sm:$0xff]  }
  0x80   :  { %1850 = vmatprep.subr.bf16.mxu0 %v5908_v10  ;;  %v5985_v10 = vld [vmem:[%s8780_s2 + $0x394] ss:$8 sps:$4 sm:$0xff]  }
  0x82   :  { %1832 = vmatmul.mubr.bf16.vlgmr.msra.gmra.mrb[0].mxu0 %v4840_v12  ;;  %v5988_v12 = vld [vmem:[%s8780_s2 + $0x3a4] ss:$8 sps:$4 sm:$0xff]  }
  0x83   :  { %1851 = vmatpush1.bf16.msra.mxu0 %v5906_v13  ;;  %1841 = vmatprep.mubr.bf16.mxu0 %v4857_v14  ;;  %v5986_v13 = vld [vmem:[%s8780_s2 + $0x3a0] ss:$8 sps:$4 sm:$0xff]   ;;  %v5991_v14 = vld [vmem:[%s8780_s2 + $0x3b4] ss:$8 sps:$4 sm:$0xff]  }
  0x84   :  { %1852 = vmatprep.subr.bf16.mxu0 %v5911_v15  ;;  %v5989_v15 = vld [vmem:[%s8780_s2 + $0x3b0] ss:$8 sps:$4 sm:$0xff]  }
  0x87   :  { %1853 = vmatpush1.bf16.msra.mxu0 %v5909_v16  ;;  %v5994_v16 = vld [vmem:[%s8780_s2 + $0x3c4] ss:$8 sps:$4 sm:$0xff]  }
  0x88   :  { %1854 = vmatprep.subr.bf16.mxu0 %v5914_v17  ;;  %v5992_v17 = vld [vmem:[%s8780_s2 + $0x3c0] ss:$8 sps:$4 sm:$0xff]  }
  0x8a   :  { %1842 = vmatmul.mubr.bf16.gmra.mrb[4].mxu0 %v4856_v20  ;;  %v6001_v20 = vld [vmem:[%s8780_s2 + $0x3e4] ss:$8 sps:$4 sm:$0xff]  }
  0x8b   :  { %1855 = vmatpush1.bf16.msra.mxu0 %v5912_v21  ;;  %1882 = vmatprep.mubr.bf16.mxu0 %v4843_v23  ;;  %v5999_v21 = vld [vmem:[%s8780_s2 + $0x3e0] ss:$8 sps:$4 sm:$0xff]   ;;  %v6003_v23 = vld [vmem:[%s8780_s2 + $0x3f0] ss:$8 sps:$4 sm:$0xff]  }
  0x8c   :  { %1856 = vmatprep.subr.bf16.mxu0 %v5917_v22  ;;  %v6005_v22 = vld [vmem:[%s8780_s2 + $0x3f4] ss:$8 sps:$4 sm:$0xff]  }
  0x8f   :  { %1857 = vmatpush1.bf16.msra.mxu0 %v5915_v24  ;;  %v6008_v24 = vld [vmem:[%s8780_s2 + $0x404] ss:$8 sps:$4 sm:$0xff]  }
  0x90   :  { %1858 = vmatprep.subr.bf16.mxu0 %v5920_v25  ;;  %v59_v25 = vld [vmem:[%s8778_s0 + $0x98] sm:$0x11] }
  0x93   :  { %1859 = vmatpush1.bf16.msra.mxu0 %v5918_v26  ;;  %v4844_v26 = vcombine.low %v7139_v57, %v7144_v58 }
  0x94   :  { %1860 = vmatprep.subr.bf16.mxu0 %v5923_v27  ;;  %v6006_v27 = vld [vmem:[%s8780_s2 + $0x400] ss:$8 sps:$4 sm:$0xff]  }
  0x97   :  { %1861 = vmatpush1.bf16.msra.mxu0 %v5921_v28  ;;  %v4861_v28 = vcombine.high %v59_v25, %v59_v25 }
  0x98   :  { %1862 = vmatprep.subr.bf16.mxu0 %v5926_v29  ;;  %v6011_v29 = vld [vmem:[%s8780_s2 + $0x414] ss:$8 sps:$4 sm:$0xff]  }
  0x9b   :  { %1863 = vmatpush1.bf16.msra.mxu0 %v5924_v30  ;;  %v6009_v30 = vld [vmem:[%s8780_s2 + $0x410] ss:$8 sps:$4 sm:$0xff]  }
  0x9c   :  { %1864 = vmatprep.subr.bf16.mxu0 %v5929_v31  ;;  %v6014_v31 = vld [vmem:[%s8780_s2 + $0x424] ss:$8 sps:$4 sm:$0xff]  }
  0x9f   :  { %1865 = vmatpush1.bf16.msra.mxu0 %v5927_v32  ;;  %v7252_v32 = vld [vmem:[%s8778_s0 + $0x20] sm:$0xff] }
  0xa0   :  { %1866 = vmatprep.subr.bf16.mxu0 %v5932_v33  ;;  %v7257_v33 = vld [vmem:[%s8778_s0 + $0x60] sm:$0xff] }
  0xa3   :  { %1867 = vmatpush1.bf16.msra.mxu0 %v5930_v34  ;;  %v4860_v34 = vcombine.low %v59_v25, %v59_v25 }
  0xa4   :  { %1868 = vmatprep.subr.bf16.mxu0 %v5935_v35  ;;  %v6012_v35 = vld [vmem:[%s8780_s2 + $0x420] ss:$8 sps:$4 sm:$0xff]  }
  0xa7   :  { %1869 = vmatpush1.bf16.msra.mxu0 %v5933_v36  ;;  %v6017_v36 = vld [vmem:[%s8780_s2 + $0x434] ss:$8 sps:$4 sm:$0xff]  }
  0xa8   :  { %1870 = vmatprep.subr.bf16.mxu0 %v5938_v37  ;;  %v4847_v37 = vcombine.high %v7252_v32, %v7257_v33 }
  0xab   :  { %1871 = vmatpush1.bf16.msra.mxu0 %v5936_v38  ;;  %v6015_v38 = vld [vmem:[%s8780_s2 + $0x430] ss:$8 sps:$4 sm:$0xff]  }
  0xac   :  { %1872 = vmatprep.subr.bf16.mxu0 %v5941_v39  ;;  %v6020_v39 = vld [vmem:[%s8780_s2 + $0x444] ss:$8 sps:$4 sm:$0xff]  }
  0xaf   :  { %1873 = vmatpush1.bf16.msra.mxu0 %v5939_v40  ;;  %v6018_v40 = vld [vmem:[%s8780_s2 + $0x440] ss:$8 sps:$4 sm:$0xff]  }
  0xb0   :  { %1874 = vmatprep.subr.bf16.mxu0 %v5944_v41  ;;  %v6023_v41 = vld [vmem:[%s8780_s2 + $0x454] ss:$8 sps:$4 sm:$0xff]  }
  0xb3   :  { %1875 = vmatpush1.bf16.msra.mxu0 %v5942_v42  ;;  %v6021_v42 = vld [vmem:[%s8780_s2 + $0x450] ss:$8 sps:$4 sm:$0xff]  }
  0xb4   :  { %1876 = vmatprep.subr.bf16.mxu0 %v5947_v43  ;;  %v6026_v43 = vld [vmem:[%s8780_s2 + $0x464] ss:$8 sps:$4 sm:$0xff]  }
  0xb7   :  { %1877 = vmatpush1.bf16.msra.mxu0 %v5945_v44 }
  0xb8   :  { %1878 = vmatprep.subr.bf16.mxu0 %v5951_v45 }
  0xbb   :  { %1879 = vmatpush1.bf16.msra.mxu0 %v5949_v46 }
  0xbc   :  { %1880 = vmatprep.subr.bf16.mxu0 %v5955_v47 }
  0xbf   :  { %1881 = vmatpush1.bf16.msra.mxu0 %v5953_v48 }
  0xc0   :  { %1901 = vmatprep.subr.bf16.mxu0 %v5958_v49 }
  0xc2   :  { %1883 = vmatmul.mubr.bf16.vlgmr.msra.gmra.mrb[0].mxu0 %v4842_v51 }
  0xc3   :  { %1902 = vmatpush1.bf16.msra.mxu0 %v5956_v52  ;;  %1892 = vmatprep.mubr.bf16.mxu0 %v4859_v53 }
  0xc4   :  { %1903 = vmatprep.subr.bf16.mxu0 %v5961_v54 }
  0xc7   :  { %1904 = vmatpush1.bf16.msra.mxu0 %v5959_v55 }
  0xc8   :  { %1905 = vmatprep.subr.bf16.mxu0 %v5964_v56 }
  0xca   :  { %1893 = vmatmul.mubr.bf16.gmra.mrb[4].mxu0 %v4858_v59 }
  0xcb   :  { %1906 = vmatpush1.bf16.msra.mxu0 %v5962_v60  ;;  %1933 = vmatprep.mubr.bf16.mxu0 %v4845_v62 }
  0xcc   :  { %1907 = vmatprep.subr.bf16.mxu0 %v5967_v61 }
  0xcf   :  { %1908 = vmatpush1.bf16.msra.mxu0 %v5965_v63 }
  0xd0   :  { %1909 = vmatprep.subr.bf16.mxu0 %v5970_v0 }
  0xd3   :  { %1910 = vmatpush1.bf16.msra.mxu0 %v5968_v1 }
  0xd4   :  { %1911 = vmatprep.subr.bf16.mxu0 %v5973_v2 }
  0xd7   :  { %1912 = vmatpush1.bf16.msra.mxu0 %v5971_v3 }
  0xd8   :  { %1913 = vmatprep.subr.bf16.mxu0 %v5976_v4 }
  0xdb   :  { %1914 = vmatpush1.bf16.msra.mxu0 %v5974_v5 }
  0xdc   :  { %1915 = vmatprep.subr.bf16.mxu0 %v5979_v6 }
  0xdf   :  { %1916 = vmatpush1.bf16.msra.mxu0 %v5977_v7 }
  0xe0   :  { %1917 = vmatprep.subr.bf16.mxu0 %v5982_v8 }
  0xe3   :  { %1918 = vmatpush1.bf16.msra.mxu0 %v5980_v9 }
  0xe4   :  { %1919 = vmatprep.subr.bf16.mxu0 %v5985_v10 }
  0xe7   :  { %1920 = vmatpush1.bf16.msra.mxu0 %v5983_v11 }
  0xe8   :  { %1921 = vmatprep.subr.bf16.mxu0 %v5988_v12 }
  0xeb   :  { %1922 = vmatpush1.bf16.msra.mxu0 %v5986_v13 }
  0xec   :  { %1923 = vmatprep.subr.bf16.mxu0 %v5991_v14 }
  0xef   :  { %1924 = vmatpush1.bf16.msra.mxu0 %v5989_v15 }
  0xf0   :  { %1925 = vmatprep.subr.bf16.mxu0 %v5994_v16 }
  0xf3   :  { %1926 = vmatpush1.bf16.msra.mxu0 %v5992_v17 }
  0xf4   :  { %1927 = vmatprep.subr.bf16.mxu0 %v5997_v18 }
  0xf7   :  { %1928 = vmatpush1.bf16.msra.mxu0 %v5995_v19 }
  0xf8   :  { %1929 = vmatprep.subr.bf16.mxu0 %v6001_v20 }
  0xfb   :  { %1930 = vmatpush1.bf16.msra.mxu0 %v5999_v21 }
  0xfc   :  { %1931 = vmatprep.subr.bf16.mxu0 %v6005_v22 }
  0xff   :  { %1932 = vmatpush1.bf16.msra.mxu0 %v6003_v23 }
 0x100   :  { %1952 = vmatprep.subr.bf16.mxu0 %v6008_v24 }
 0x102   :  { %1934 = vmatmul.mubr.bf16.vlgmr.msra.gmra.mrb[0].mxu0 %v4844_v26 }
 0x103   :  { %1953 = vmatpush1.bf16.msra.mxu0 %v6006_v27  ;;  %1943 = vmatprep.mubr.bf16.mxu0 %v4861_v28 }
 0x104   :  { %1954 = vmatprep.subr.bf16.mxu0 %v6011_v29 }
 0x107   :  { %1955 = vmatpush1.bf16.msra.mxu0 %v6009_v30 }
 0x108   :  { %1956 = vmatprep.subr.bf16.mxu0 %v6014_v31 }
 0x10a   :  { %1944 = vmatmul.mubr.bf16.gmra.mrb[4].mxu0 %v4860_v34 }
 0x10b   :  { %1957 = vmatpush1.bf16.msra.mxu0 %v6012_v35  ;;  %1984 = vmatprep.mubr.bf16.mxu0 %v4847_v37 }
 0x10c   :  { %1958 = vmatprep.subr.bf16.mxu0 %v6017_v36 }
 0x10f   :  { %1959 = vmatpush1.bf16.msra.mxu0 %v6015_v38 }
 0x110   :  { %1960 = vmatprep.subr.bf16.mxu0 %v6020_v39 }
 0x113   :  { %1961 = vmatpush1.bf16.msra.mxu0 %v6018_v40 }
 0x114   :  { %1962 = vmatprep.subr.bf16.mxu0 %v6023_v41 }
 0x115   :  { %16 = vsyncpa [#allocation3], 0  ;;  %v6024_v44 = vld [vmem:[%s8780_s2 + $0x460] ss:$8 sps:$4 sm:$0xff]   ;;  %v6029_v45 = vld [vmem:[%s8780_s2 + $0x474] ss:$8 sps:$4 sm:$0xff]   ;;  %v4846_v1 = vcombine.low %v7252_v32, %v7257_v33 }
 0x116   :  { %v6027_v46 = vld [vmem:[%s8780_s2 + $0x470] ss:$8 sps:$4 sm:$0xff]   ;;  %v6032_v47 = vld [vmem:[%s8780_s2 + $0x484] ss:$8 sps:$4 sm:$0xff]   ;;  %v6030_v48 = vld [vmem:[%s8780_s2 + $0x480] ss:$8 sps:$4 sm:$0xff]  }
 0x117   :  { %1963 = vmatpush1.bf16.msra.mxu0 %v6021_v42  ;;  %v6035_v49 = vld [vmem:[%s8780_s2 + $0x494] ss:$8 sps:$4 sm:$0xff]   ;;  %v6033_v50 = vld [vmem:[%s8780_s2 + $0x490] ss:$8 sps:$4 sm:$0xff]   ;;  %v6038_v51 = vld [vmem:[%s8780_s2 + $0x4a4] ss:$8 sps:$4 sm:$0xff]  }
 0x118   :  { %1964 = vmatprep.subr.bf16.mxu0 %v6026_v43  ;;  %v6036_v52 = vld [vmem:[%s8780_s2 + $0x4a0] ss:$8 sps:$4 sm:$0xff]   ;;  %v6041_v53 = vld [vmem:[%s8780_s2 + $0x4b4] ss:$8 sps:$4 sm:$0xff]   ;;  %v6039_v54 = vld [vmem:[%s8780_s2 + $0x4b0] ss:$8 sps:$4 sm:$0xff]  }
 0x119   :  { %v6044_v55 = vld [vmem:[%s8780_s2 + $0x4c4] ss:$8 sps:$4 sm:$0xff]   ;;  %v6042_v56 = vld [vmem:[%s8780_s2 + $0x4c0] ss:$8 sps:$4 sm:$0xff]   ;;  %v6047_v57 = vld [vmem:[%s8780_s2 + $0x4d4] ss:$8 sps:$4 sm:$0xff]  }
 0x11a   :  { %v6045_v58 = vld [vmem:[%s8780_s2 + $0x4d0] ss:$8 sps:$4 sm:$0xff]   ;;  %v6051_v59 = vld [vmem:[%s8780_s2 + $0x4e4] ss:$8 sps:$4 sm:$0xff]   ;;  %v6049_v60 = vld [vmem:[%s8780_s2 + $0x4e0] ss:$8 sps:$4 sm:$0xff]  }
 0x11b   :  { %1965 = vmatpush1.bf16.msra.mxu0 %v6024_v44  ;;  %v6055_v61 = vld [vmem:[%s8780_s2 + $0x4f4] ss:$8 sps:$4 sm:$0xff]   ;;  %v6053_v62 = vld [vmem:[%s8780_s2 + $0x4f0] ss:$8 sps:$4 sm:$0xff]   ;;  %v6058_v63 = vld [vmem:[%s8780_s2 + $0x504] ss:$8 sps:$4 sm:$0xff]  }
 0x11c   :  { %1966 = vmatprep.subr.bf16.mxu0 %v6029_v45  ;;  %v60_v0 = vld [vmem:[%s8778_s0 + $0xa0] sm:$0x11]  ;;  %v6061_v4 = vld [vmem:[%s8780_s2 + $0x514] ss:$8 sps:$4 sm:$0xff]   ;;  %v6059_v5 = vld [vmem:[%s8780_s2 + $0x510] ss:$8 sps:$4 sm:$0xff]  }
 0x11d   :  { %v6056_v2 = vld [vmem:[%s8780_s2 + $0x500] ss:$8 sps:$4 sm:$0xff]   ;;  %v4863_v3 = vcombine.high %v60_v0, %v60_v0  ;;  %v6064_v6 = vld [vmem:[%s8780_s2 + $0x524] ss:$8 sps:$4 sm:$0xff]   ;;  %v4862_v9 = vcombine.low %v60_v0, %v60_v0  ;;  %v6067_v12 = vld [vmem:[%s8780_s2 + $0x534] ss:$8 sps:$4 sm:$0xff]  }
 0x11e   :  { %v7365_v7 = vld [vmem:[%s8778_s0 + $0x28] sm:$0xff]  ;;  %v6065_v13 = vld [vmem:[%s8780_s2 + $0x530] ss:$8 sps:$4 sm:$0xff]   ;;  %v6073_v16 = vld [vmem:[%s8780_s2 + $0x554] ss:$8 sps:$4 sm:$0xff]   ;;  %vm2414_vm0 = vcmask 1041408  }
 0x11f   :  { %1967 = vmatpush1.bf16.msra.mxu0 %v6027_v46  ;;  %v7370_v8 = vld [vmem:[%s8778_s0 + $0x68] sm:$0xff]  ;;  %v6071_v17 = vld [vmem:[%s8780_s2 + $0x550] ss:$8 sps:$4 sm:$0xff]   ;;  %v6079_v20 = vld [vmem:[%s8780_s2 + $0x574] ss:$8 sps:$4 sm:$0xff]   ;;  %vm2410_vm1 = vcmask 31744  }
 0x120   :  { %1968 = vmatprep.subr.bf16.mxu0 %v6032_v47  ;;  %v6062_v10 = vld [vmem:[%s8780_s2 + $0x520] ss:$8 sps:$4 sm:$0xff]   ;;  %v4849_v11 = vcombine.high %v7365_v7, %v7370_v8  ;;  %v6070_v14 = vld [vmem:[%s8780_s2 + $0x544] ss:$8 sps:$4 sm:$0xff]   ;;  %v6077_v21 = vld [vmem:[%s8780_s2 + $0x570] ss:$8 sps:$4 sm:$0xff]   ;;  %v4848_v40 = vcombine.low %v7365_v7, %v7370_v8 }
 0x121   :  { %v6068_v15 = vld [vmem:[%s8780_s2 + $0x540] ss:$8 sps:$4 sm:$0xff]   ;;  %v6076_v18 = vld [vmem:[%s8780_s2 + $0x564] ss:$8 sps:$4 sm:$0xff]   ;;  %v6085_v24 = vld [vmem:[%s8780_s2 + $0x594] ss:$8 sps:$4 sm:$0xff]  }
 0x122   :  { %v6074_v19 = vld [vmem:[%s8780_s2 + $0x560] ss:$8 sps:$4 sm:$0xff]   ;;  %v6082_v22 = vld [vmem:[%s8780_s2 + $0x584] ss:$8 sps:$4 sm:$0xff]   ;;  %v6083_v25 = vld [vmem:[%s8780_s2 + $0x590] ss:$8 sps:$4 sm:$0xff]  }
 0x123   :  { %1969 = vmatpush1.bf16.msra.mxu0 %v6030_v48  ;;  %v6080_v23 = vld [vmem:[%s8780_s2 + $0x580] ss:$8 sps:$4 sm:$0xff]   ;;  %v6088_v26 = vld [vmem:[%s8780_s2 + $0x5a4] ss:$8 sps:$4 sm:$0xff]   ;;  %v6091_v28 = vld [vmem:[%s8780_s2 + $0x5b4] ss:$8 sps:$4 sm:$0xff]  }
 0x124   :  { %1970 = vmatprep.subr.bf16.mxu0 %v6035_v49  ;;  %v6086_v27 = vld [vmem:[%s8780_s2 + $0x5a0] ss:$8 sps:$4 sm:$0xff]   ;;  %v6089_v29 = vld [vmem:[%s8780_s2 + $0x5b0] ss:$8 sps:$4 sm:$0xff]   ;;  %v6094_v30 = vld [vmem:[%s8780_s2 + $0x5c4] ss:$8 sps:$4 sm:$0xff]  }
 0x125   :  { %v6092_v31 = vld [vmem:[%s8780_s2 + $0x5c0] ss:$8 sps:$4 sm:$0xff]   ;;  %v6097_v32 = vld [vmem:[%s8780_s2 + $0x5d4] ss:$8 sps:$4 sm:$0xff]   ;;  %v6095_v33 = vld [vmem:[%s8780_s2 + $0x5d0] ss:$8 sps:$4 sm:$0xff]  }
 0x126   :  { %v6101_v34 = vld [vmem:[%s8780_s2 + $0x5e4] ss:$8 sps:$4 sm:$0xff]   ;;  %v6099_v35 = vld [vmem:[%s8780_s2 + $0x5e0] ss:$8 sps:$4 sm:$0xff]   ;;  %v6105_v36 = vld [vmem:[%s8780_s2 + $0x5f4] ss:$8 sps:$4 sm:$0xff]  }
 0x127   :  { %1971 = vmatpush1.bf16.msra.mxu0 %v6033_v50  ;;  %v6103_v37 = vld [vmem:[%s8780_s2 + $0x5f0] ss:$8 sps:$4 sm:$0xff]   ;;  %v6108_v38 = vld [vmem:[%s8780_s2 + $0x604] ss:$8 sps:$4 sm:$0xff]   ;;  %v6106_v41 = vld [vmem:[%s8780_s2 + $0x600] ss:$8 sps:$4 sm:$0xff]  }
 0x128   :  { %1972 = vmatprep.subr.bf16.mxu0 %v6038_v51  ;;  %v61_v39 = vld [vmem:[%s8778_s0 + $0xa8] sm:$0x11]  ;;  %v6111_v43 = vld [vmem:[%s8780_s2 + $0x614] ss:$8 sps:$4 sm:$0xff]   ;;  %v6109_v44 = vld [vmem:[%s8780_s2 + $0x610] ss:$8 sps:$4 sm:$0xff]  }
 0x129   :  { %v4865_v42 = vcombine.high %v61_v39, %v61_v39  ;;  %v6114_v45 = vld [vmem:[%s8780_s2 + $0x624] ss:$8 sps:$4 sm:$0xff]   ;;  %v7478_v46 = vld [vmem:[%s8778_s0 + $0x30] sm:$0xff]  ;;  %v4864_v48 = vcombine.low %v61_v39, %v61_v39  ;;  %v6112_v49 = vld [vmem:[%s8780_s2 + $0x620] ss:$8 sps:$4 sm:$0xff]   ;;  %vm4822_vm2 = vcmask 25600  }
 0x12a   :  { %v7483_v47 = vld [vmem:[%s8778_s0 + $0x70] sm:$0xff]  ;;  %v6126_v0 = vld [vmem:[%s8780_s2 + $0x664] ss:$8 sps:$4 sm:$0xff]  }
 0x12b   :  { %1973 = vmatpush1.bf16.msra.mxu0 %v6036_v52  ;;  %v4851_v50 = vcombine.high %v7478_v46, %v7483_v47  ;;  %v6117_v51 = vld [vmem:[%s8780_s2 + $0x634] ss:$8 sps:$4 sm:$0xff]   ;;  %v6208_v52 = vld [vmem:[%s8782_s4 + $0x4] ss:$8 sps:$4 sm:$0xff]   ;;  %v6127_v7 = vld [vmem:[%s8780_s2 + $0x670] ss:$8 sps:$4 sm:$0xff]  }
 0x12c   :  { %1974 = vmatprep.subr.bf16.mxu0 %v6041_v53  ;;  %v6210_v53 = vld [vmem:[%s8782_s4] ss:$8 sps:$4 sm:$0xff]   ;;  %2360 = vmatprep.subr.bf16.mxu1 %v6208_v52  ;;  %v6132_v8 = vld [vmem:[%s8780_s2 + $0x684] ss:$8 sps:$4 sm:$0xff]   ;;  %v6153_v39 = vld [vmem:[%s8780_s2 + $0x6f0] ss:$8 sps:$4 sm:$0xff]  }
 0x12d   :  { %2361 = vmatpush1.bf16.msra.mxu1 %v6210_v53  ;;  %v6162_v52 = vld [vmem:[%s8780_s2 + $0x720] ss:$8 sps:$4 sm:$0xff]  }
 0x12f   :  { %1975 = vmatpush1.bf16.msra.mxu0 %v6039_v54  ;;  %v6211_v54 = vld [vmem:[%s8782_s4 + $0x14] ss:$8 sps:$4 sm:$0xff]  }
 0x130   :  { %1976 = vmatprep.subr.bf16.mxu0 %v6044_v55  ;;  %v6115_v55 = vld [vmem:[%s8780_s2 + $0x630] ss:$8 sps:$4 sm:$0xff]   ;;  %2362 = vmatprep.subr.bf16.mxu1 %v6211_v54  ;;  %v6167_v54 = vld [vmem:[%s8780_s2 + $0x734] ss:$8 sps:$4 sm:$0xff]  }
 0x133   :  { %1977 = vmatpush1.bf16.msra.mxu0 %v6042_v56  ;;  %v6120_v56 = vld [vmem:[%s8780_s2 + $0x644] ss:$8 sps:$4 sm:$0xff]  }
 0x134   :  { %1978 = vmatprep.subr.bf16.mxu0 %v6047_v57  ;;  %v6213_v57 = vld [vmem:[%s8782_s4 + $0x10] ss:$8 sps:$4 sm:$0xff]  }
 0x135   :  { %2363 = vmatpush1.bf16.msra.mxu1 %v6213_v57  ;;  %v6168_v57 = vld [vmem:[%s8780_s2 + $0x740] ss:$8 sps:$4 sm:$0xff]  }
 0x137   :  { %1979 = vmatpush1.bf16.msra.mxu0 %v6045_v58  ;;  %v6217_v58 = vld [vmem:[%s8782_s4 + $0x24] ss:$8 sps:$4 sm:$0xff]  }
 0x138   :  { %1980 = vmatprep.subr.bf16.mxu0 %v6051_v59  ;;  %v6118_v59 = vld [vmem:[%s8780_s2 + $0x640] ss:$8 sps:$4 sm:$0xff]   ;;  %2364 = vmatprep.subr.bf16.mxu1 %v6217_v58  ;;  %v6173_v58 = vld [vmem:[%s8780_s2 + $0x754] ss:$8 sps:$4 sm:$0xff]  }
 0x13b   :  { %1981 = vmatpush1.bf16.msra.mxu0 %v6049_v60  ;;  %v6123_v60 = vld [vmem:[%s8780_s2 + $0x654] ss:$8 sps:$4 sm:$0xff]  }
 0x13c   :  { %1982 = vmatprep.subr.bf16.mxu0 %v6055_v61  ;;  %v6219_v61 = vld [vmem:[%s8782_s4 + $0x20] ss:$8 sps:$4 sm:$0xff]  }
 0x13d   :  { %2365 = vmatpush1.bf16.msra.mxu1 %v6219_v61  ;;  %v6174_v61 = vld [vmem:[%s8780_s2 + $0x760] ss:$8 sps:$4 sm:$0xff]  }
 0x13f   :  { %1983 = vmatpush1.bf16.msra.mxu0 %v6053_v62  ;;  %v6223_v62 = vld [vmem:[%s8782_s4 + $0x34] ss:$8 sps:$4 sm:$0xff]  }
 0x140   :  { %2003 = vmatprep.subr.bf16.mxu0 %v6058_v63  ;;  %v6121_v63 = vld [vmem:[%s8780_s2 + $0x650] ss:$8 sps:$4 sm:$0xff]   ;;  %2366 = vmatprep.subr.bf16.mxu1 %v6223_v62  ;;  %v6179_v62 = vld [vmem:[%s8780_s2 + $0x774] ss:$8 sps:$4 sm:$0xff]  }
 0x142   :  { %1985 = vmatmul.mubr.bf16.vlgmr.msra.gmra.mrb[0].mxu0 %v4846_v1  ;;  %v6225_v1 = vld [vmem:[%s8782_s4 + $0x30] ss:$8 sps:$4 sm:$0xff]  }
 0x143   :  { %2004 = vmatpush1.bf16.msra.mxu0 %v6056_v2  ;;  %1994 = vmatprep.mubr.bf16.mxu0 %v4863_v3  ;;  %v6229_v2 = vld [vmem:[%s8782_s4 + $0x44] ss:$8 sps:$4 sm:$0xff]   ;;  %v6124_v3 = vld [vmem:[%s8780_s2 + $0x660] ss:$8 sps:$4 sm:$0xff]  }
 0x144   :  { %2005 = vmatprep.subr.bf16.mxu0 %v6061_v4  ;;  %v6129_v4 = vld [vmem:[%s8780_s2 + $0x674] ss:$8 sps:$4 sm:$0xff]   ;;  %2367 = vmatpush1.bf16.msra.mxu1 %v6225_v1  ;;  %v6180_v1 = vld [vmem:[%s8780_s2 + $0x780] ss:$8 sps:$4 sm:$0xff]  }
 0x145   :  { %2368 = vmatprep.subr.bf16.mxu1 %v6229_v2  ;;  %v6185_v2 = vld [vmem:[%s8780_s2 + $0x794] ss:$8 sps:$4 sm:$0xff]  }
 0x147   :  { %2006 = vmatpush1.bf16.msra.mxu0 %v6059_v5  ;;  %v6231_v5 = vld [vmem:[%s8782_s4 + $0x40] ss:$8 sps:$4 sm:$0xff]  }
 0x148   :  { %2007 = vmatprep.subr.bf16.mxu0 %v6064_v6  ;;  %v6235_v6 = vld [vmem:[%s8782_s4 + $0x54] ss:$8 sps:$4 sm:$0xff]   ;;  %2369 = vmatpush1.bf16.msra.mxu1 %v6231_v5  ;;  %v6186_v5 = vld [vmem:[%s8780_s2 + $0x7a0] ss:$8 sps:$4 sm:$0xff]  }
 0x149   :  { %2370 = vmatprep.subr.bf16.mxu1 %v6235_v6  ;;  %v6191_v6 = vld [vmem:[%s8780_s2 + $0x7b4] ss:$8 sps:$4 sm:$0xff]  }
 0x14a   :  { %1995 = vmatmul.mubr.bf16.gmra.mrb[4].mxu0 %v4862_v9  ;;  %v6237_v9 = vld [vmem:[%s8782_s4 + $0x50] ss:$8 sps:$4 sm:$0xff]  }
 0x14b   :  { %2008 = vmatpush1.bf16.msra.mxu0 %v6062_v10  ;;  %2035 = vmatprep.mubr.bf16.mxu0 %v4849_v11  ;;  %v6241_v10 = vld [vmem:[%s8782_s4 + $0x64] ss:$8 sps:$4 sm:$0xff]   ;;  %v6130_v11 = vld [vmem:[%s8780_s2 + $0x680] ss:$8 sps:$4 sm:$0xff]  }
 0x14c   :  { %2009 = vmatprep.subr.bf16.mxu0 %v6067_v12  ;;  %v6135_v12 = vld [vmem:[%s8780_s2 + $0x694] ss:$8 sps:$4 sm:$0xff]   ;;  %2371 = vmatpush1.bf16.msra.mxu1 %v6237_v9  ;;  %v6192_v9 = vld [vmem:[%s8780_s2 + $0x7c0] ss:$8 sps:$4 sm:$0xff]  }
 0x14d   :  { %2372 = vmatprep.subr.bf16.mxu1 %v6241_v10  ;;  %v6197_v10 = vld [vmem:[%s8780_s2 + $0x7d4] ss:$8 sps:$4 sm:$0xff]  }
 0x14f   :  { %2010 = vmatpush1.bf16.msra.mxu0 %v6065_v13  ;;  %v6243_v13 = vld [vmem:[%s8782_s4 + $0x60] ss:$8 sps:$4 sm:$0xff]  }
 0x150   :  { %2011 = vmatprep.subr.bf16.mxu0 %v6070_v14  ;;  %v6247_v14 = vld [vmem:[%s8782_s4 + $0x74] ss:$8 sps:$4 sm:$0xff]   ;;  %2373 = vmatpush1.bf16.msra.mxu1 %v6243_v13  ;;  %v6200_v13 = vld [vmem:[%s8780_s2 + $0x7e0] ss:$8 sps:$4 sm:$0xff]  }
 0x151   :  { %2374 = vmatprep.subr.bf16.mxu1 %v6247_v14  ;;  %v6205_v14 = vld [vmem:[%s8780_s2 + $0x7f4] ss:$8 sps:$4 sm:$0xff]  }
 0x153   :  { %2012 = vmatpush1.bf16.msra.mxu0 %v6068_v15  ;;  %v6133_v15 = vld [vmem:[%s8780_s2 + $0x690] ss:$8 sps:$4 sm:$0xff]  }
 0x154   :  { %2013 = vmatprep.subr.bf16.mxu0 %v6073_v16  ;;  %v6138_v16 = vld [vmem:[%s8780_s2 + $0x6a4] ss:$8 sps:$4 sm:$0xff]  }
 0x157   :  { %2014 = vmatpush1.bf16.msra.mxu0 %v6071_v17  ;;  %v6249_v17 = vld [vmem:[%s8782_s4 + $0x70] ss:$8 sps:$4 sm:$0xff]  }
 0x158   :  { %2015 = vmatprep.subr.bf16.mxu0 %v6076_v18  ;;  %v6253_v18 = vld [vmem:[%s8782_s4 + $0x84] ss:$8 sps:$4 sm:$0xff]   ;;  %2375 = vmatpush1.bf16.msra.mxu1 %v6249_v17 }
 0x159   :  { %2376 = vmatprep.subr.bf16.mxu1 %v6253_v18  ;;  %v6216_v17 = vld [vmem:[%s8782_s4 + $0x804] ss:$8 sps:$4 sm:$0xff]  }
 0x15b   :  { %2016 = vmatpush1.bf16.msra.mxu0 %v6074_v19  ;;  %v6136_v19 = vld [vmem:[%s8780_s2 + $0x6a0] ss:$8 sps:$4 sm:$0xff]  }
 0x15c   :  { %2017 = vmatprep.subr.bf16.mxu0 %v6079_v20  ;;  %v6141_v20 = vld [vmem:[%s8780_s2 + $0x6b4] ss:$8 sps:$4 sm:$0xff]  }
 0x15f   :  { %2018 = vmatpush1.bf16.msra.mxu0 %v6077_v21  ;;  %v6255_v21 = vld [vmem:[%s8782_s4 + $0x80] ss:$8 sps:$4 sm:$0xff]  }
 0x160   :  { %2019 = vmatprep.subr.bf16.mxu0 %v6082_v22  ;;  %v6259_v22 = vld [vmem:[%s8782_s4 + $0x94] ss:$8 sps:$4 sm:$0xff]   ;;  %2377 = vmatpush1.bf16.msra.mxu1 %v6255_v21 }
 0x161   :  { %2378 = vmatprep.subr.bf16.mxu1 %v6259_v22  ;;  %v6222_v21 = vld [vmem:[%s8782_s4 + $0x814] ss:$8 sps:$4 sm:$0xff]   ;;  %v6220_v22 = vld [vmem:[%s8782_s4 + $0x810] ss:$8 sps:$4 sm:$0xff]  }
 0x163   :  { %2020 = vmatpush1.bf16.msra.mxu0 %v6080_v23  ;;  %v6139_v23 = vld [vmem:[%s8780_s2 + $0x6b0] ss:$8 sps:$4 sm:$0xff]  }
 0x164   :  { %2021 = vmatprep.subr.bf16.mxu0 %v6085_v24  ;;  %v6144_v24 = vld [vmem:[%s8780_s2 + $0x6c4] ss:$8 sps:$4 sm:$0xff]  }
 0x167   :  { %2022 = vmatpush1.bf16.msra.mxu0 %v6083_v25  ;;  %v6261_v25 = vld [vmem:[%s8782_s4 + $0x90] ss:$8 sps:$4 sm:$0xff]  }
 0x168   :  { %2023 = vmatprep.subr.bf16.mxu0 %v6088_v26  ;;  %v6265_v26 = vld [vmem:[%s8782_s4 + $0xa4] ss:$8 sps:$4 sm:$0xff]   ;;  %2379 = vmatpush1.bf16.msra.mxu1 %v6261_v25  ;;  %v6226_v25 = vld [vmem:[%s8782_s4 + $0x820] ss:$8 sps:$4 sm:$0xff]  }
 0x169   :  { %2380 = vmatprep.subr.bf16.mxu1 %v6265_v26  ;;  %v6234_v26 = vld [vmem:[%s8782_s4 + $0x834] ss:$8 sps:$4 sm:$0xff]  }
 0x16b   :  { %2024 = vmatpush1.bf16.msra.mxu0 %v6086_v27  ;;  %v6142_v27 = vld [vmem:[%s8780_s2 + $0x6c0] ss:$8 sps:$4 sm:$0xff]  }
 0x16c   :  { %2025 = vmatprep.subr.bf16.mxu0 %v6091_v28  ;;  %v6147_v28 = vld [vmem:[%s8780_s2 + $0x6d4] ss:$8 sps:$4 sm:$0xff]  }
 0x16f   :  { %2026 = vmatpush1.bf16.msra.mxu0 %v6089_v29  ;;  %v6267_v29 = vld [vmem:[%s8782_s4 + $0xa0] ss:$8 sps:$4 sm:$0xff]  }
 0x170   :  { %2027 = vmatprep.subr.bf16.mxu0 %v6094_v30  ;;  %v6271_v30 = vld [vmem:[%s8782_s4 + $0xb4] ss:$8 sps:$4 sm:$0xff]   ;;  %2381 = vmatpush1.bf16.msra.mxu1 %v6267_v29  ;;  %v6238_v29 = vld [vmem:[%s8782_s4 + $0x840] ss:$8 sps:$4 sm:$0xff]  }
 0x171   :  { %2382 = vmatprep.subr.bf16.mxu1 %v6271_v30  ;;  %v6246_v30 = vld [vmem:[%s8782_s4 + $0x854] ss:$8 sps:$4 sm:$0xff]  }
 0x173   :  { %2028 = vmatpush1.bf16.msra.mxu0 %v6092_v31  ;;  %v6145_v31 = vld [vmem:[%s8780_s2 + $0x6d0] ss:$8 sps:$4 sm:$0xff]  }
 0x174   :  { %2029 = vmatprep.subr.bf16.mxu0 %v6097_v32  ;;  %v6151_v32 = vld [vmem:[%s8780_s2 + $0x6e4] ss:$8 sps:$4 sm:$0xff]  }
 0x177   :  { %2030 = vmatpush1.bf16.msra.mxu0 %v6095_v33  ;;  %v6273_v33 = vld [vmem:[%s8782_s4 + $0xb0] ss:$8 sps:$4 sm:$0xff]  }
 0x178   :  { %2031 = vmatprep.subr.bf16.mxu0 %v6101_v34  ;;  %v6277_v34 = vld [vmem:[%s8782_s4 + $0xc4] ss:$8 sps:$4 sm:$0xff]   ;;  %2383 = vmatpush1.bf16.msra.mxu1 %v6273_v33  ;;  %v6250_v33 = vld [vmem:[%s8782_s4 + $0x860] ss:$8 sps:$4 sm:$0xff]  }
 0x179   :  { %2384 = vmatprep.subr.bf16.mxu1 %v6277_v34  ;;  %v6258_v34 = vld [vmem:[%s8782_s4 + $0x874] ss:$8 sps:$4 sm:$0xff]  }
 0x17b   :  { %2032 = vmatpush1.bf16.msra.mxu0 %v6099_v35  ;;  %v6149_v35 = vld [vmem:[%s8780_s2 + $0x6e0] ss:$8 sps:$4 sm:$0xff]  }
 0x17c   :  { %2033 = vmatprep.subr.bf16.mxu0 %v6105_v36  ;;  %v6155_v36 = vld [vmem:[%s8780_s2 + $0x6f4] ss:$8 sps:$4 sm:$0xff]  }
 0x17f   :  { %2034 = vmatpush1.bf16.msra.mxu0 %v6103_v37  ;;  %v6279_v37 = vld [vmem:[%s8782_s4 + $0xc0] ss:$8 sps:$4 sm:$0xff]  }
 0x180   :  { %2054 = vmatprep.subr.bf16.mxu0 %v6108_v38  ;;  %v6283_v38 = vld [vmem:[%s8782_s4 + $0xd4] ss:$8 sps:$4 sm:$0xff]   ;;  %2385 = vmatpush1.bf16.msra.mxu1 %v6279_v37  ;;  %v6262_v37 = vld [vmem:[%s8782_s4 + $0x880] ss:$8 sps:$4 sm:$0xff]  }
 0x181   :  { %2386 = vmatprep.subr.bf16.mxu1 %v6283_v38  ;;  %v6270_v38 = vld [vmem:[%s8782_s4 + $0x894] ss:$8 sps:$4 sm:$0xff]  }
 0x182   :  { %2036 = vmatmul.mubr.bf16.vlgmr.msra.gmra.mrb[0].mxu0 %v4848_v40  ;;  %v6158_v40 = vld [vmem:[%s8780_s2 + $0x704] ss:$8 sps:$4 sm:$0xff]  }
 0x183   :  { %2055 = vmatpush1.bf16.msra.mxu0 %v6106_v41  ;;  %2045 = vmatprep.mubr.bf16.mxu0 %v4865_v42  ;;  %v62_v41 = vld [vmem:[%s8778_s0 + $0xb0] sm:$0x11] }
 0x184   :  { %2056 = vmatprep.subr.bf16.mxu0 %v6111_v43  ;;  %v6285_v42 = vld [vmem:[%s8782_s4 + $0xd0] ss:$8 sps:$4 sm:$0xff]   ;;  %v4850_v43 = vcombine.low %v7478_v46, %v7483_v47  ;;  %v6164_v46 = vld [vmem:[%s8780_s2 + $0x724] ss:$8 sps:$4 sm:$0xff]  }
 0x185   :  { %2387 = vmatpush1.bf16.msra.mxu1 %v6285_v42  ;;  %v7675_v47 = vld [vmem:[%s8778_s0 + $0x38] sm:$0xff] }
 0x186   :  { %v6282_v42 = vld [vmem:[%s8782_s4 + $0x8b4] ss:$8 sps:$4 sm:$0xff]  }
 0x187   :  { %2057 = vmatpush1.bf16.msra.mxu0 %v6109_v44  ;;  %v6156_v44 = vld [vmem:[%s8780_s2 + $0x700] ss:$8 sps:$4 sm:$0xff]  }
 0x188   :  { %2058 = vmatprep.subr.bf16.mxu0 %v6114_v45  ;;  %v4867_v45 = vcombine.high %v62_v41, %v62_v41 }
 0x18a   :  { %2046 = vmatmul.mubr.bf16.gmra.mrb[4].mxu0 %v4864_v48  ;;  %v6161_v48 = vld [vmem:[%s8780_s2 + $0x714] ss:$8 sps:$4 sm:$0xff]  }
 0x18b   :  { %2059 = vmatpush1.bf16.msra.mxu0 %v6112_v49  ;;  %2086 = vmatprep.mubr.bf16.mxu0 %v4851_v50  ;;  %v6159_v49 = vld [vmem:[%s8780_s2 + $0x710] ss:$8 sps:$4 sm:$0xff]  }
 0x18c   :  { %2060 = vmatprep.subr.bf16.mxu0 %v6117_v51  ;;  %v7680_v50 = vld [vmem:[%s8778_s0 + $0x78] sm:$0xff]  ;;  %v4866_v51 = vcombine.low %v62_v41, %v62_v41  ;;  %v6274_v41 = vld [vmem:[%s8782_s4 + $0x8a0] ss:$8 sps:$4 sm:$0xff]  }
 0x18d   :  { %v4853_v53 = vcombine.high %v7675_v47, %v7680_v50  ;;  %v4852_v18 = vcombine.low %v7675_v47, %v7680_v50  ;;  %v6292_v47 = vld [vmem:[%s8782_s4 + $0x8d0] ss:$8 sps:$4 sm:$0xff]   ;;  %v6295_v50 = vld [vmem:[%s8782_s4 + $0xf4] ss:$8 sps:$4 sm:$0xff]  }
 0x18f   :  { %2061 = vmatpush1.bf16.msra.mxu0 %v6115_v55  ;;  %v6165_v55 = vld [vmem:[%s8780_s2 + $0x730] ss:$8 sps:$4 sm:$0xff]  }
 0x190   :  { %2062 = vmatprep.subr.bf16.mxu0 %v6120_v56  ;;  %v6170_v56 = vld [vmem:[%s8780_s2 + $0x744] ss:$8 sps:$4 sm:$0xff]  }
 0x193   :  { %2063 = vmatpush1.bf16.msra.mxu0 %v6118_v59  ;;  %v6171_v59 = vld [vmem:[%s8780_s2 + $0x750] ss:$8 sps:$4 sm:$0xff]  }
 0x194   :  { %2064 = vmatprep.subr.bf16.mxu0 %v6123_v60  ;;  %v6176_v60 = vld [vmem:[%s8780_s2 + $0x764] ss:$8 sps:$4 sm:$0xff]  }
 0x197   :  { %2065 = vmatpush1.bf16.msra.mxu0 %v6121_v63  ;;  %v6177_v63 = vld [vmem:[%s8780_s2 + $0x770] ss:$8 sps:$4 sm:$0xff]  }
 0x198   :  { %2066 = vmatprep.subr.bf16.mxu0 %v6126_v0  ;;  %v6182_v0 = vld [vmem:[%s8780_s2 + $0x784] ss:$8 sps:$4 sm:$0xff]  }
 0x19b   :  { %2067 = vmatpush1.bf16.msra.mxu0 %v6124_v3  ;;  %v6183_v3 = vld [vmem:[%s8780_s2 + $0x790] ss:$8 sps:$4 sm:$0xff]  }
 0x19c   :  { %2068 = vmatprep.subr.bf16.mxu0 %v6129_v4  ;;  %v6188_v4 = vld [vmem:[%s8780_s2 + $0x7a4] ss:$8 sps:$4 sm:$0xff]  }
 0x19f   :  { %2069 = vmatpush1.bf16.msra.mxu0 %v6127_v7  ;;  %v6189_v7 = vld [vmem:[%s8780_s2 + $0x7b0] ss:$8 sps:$4 sm:$0xff]  }
 0x1a0   :  { %2070 = vmatprep.subr.bf16.mxu0 %v6132_v8  ;;  %v6194_v8 = vld [vmem:[%s8780_s2 + $0x7c4] ss:$8 sps:$4 sm:$0xff]  }
 0x1a3   :  { %2071 = vmatpush1.bf16.msra.mxu0 %v6130_v11  ;;  %v6195_v11 = vld [vmem:[%s8780_s2 + $0x7d0] ss:$8 sps:$4 sm:$0xff]  }
 0x1a4   :  { %2072 = vmatprep.subr.bf16.mxu0 %v6135_v12  ;;  %v6202_v12 = vld [vmem:[%s8780_s2 + $0x7e4] ss:$8 sps:$4 sm:$0xff]  }
 0x1a7   :  { %2073 = vmatpush1.bf16.msra.mxu0 %v6133_v15  ;;  %v6203_v15 = vld [vmem:[%s8780_s2 + $0x7f0] ss:$8 sps:$4 sm:$0xff]  }
 0x1a8   :  { %2074 = vmatprep.subr.bf16.mxu0 %v6138_v16  ;;  %v63_v16 = vld [vmem:[%s8778_s0 + $0xb8] sm:$0x11] }
 0x1ab   :  { %2075 = vmatpush1.bf16.msra.mxu0 %v6136_v19  ;;  %v4869_v19 = vcombine.high %v63_v16, %v63_v16 }
 0x1ac   :  { %2076 = vmatprep.subr.bf16.mxu0 %v6141_v20  ;;  %v6214_v20 = vld [vmem:[%s8782_s4 + $0x800] ss:$8 sps:$4 sm:$0xff]  }
 0x1af   :  { %2077 = vmatpush1.bf16.msra.mxu0 %v6139_v23  ;;  %v6228_v23 = vld [vmem:[%s8782_s4 + $0x824] ss:$8 sps:$4 sm:$0xff]  }
 0x1b0   :  { %2078 = vmatprep.subr.bf16.mxu0 %v6144_v24  ;;  %v4868_v24 = vcombine.low %v63_v16, %v63_v16 }
 0x1b3   :  { %2079 = vmatpush1.bf16.msra.mxu0 %v6142_v27  ;;  %v6232_v27 = vld [vmem:[%s8782_s4 + $0x830] ss:$8 sps:$4 sm:$0xff]  }
 0x1b4   :  { %2080 = vmatprep.subr.bf16.mxu0 %v6147_v28  ;;  %v6240_v28 = vld [vmem:[%s8782_s4 + $0x844] ss:$8 sps:$4 sm:$0xff]  }
 0x1b7   :  { %2081 = vmatpush1.bf16.msra.mxu0 %v6145_v31  ;;  %v6244_v31 = vld [vmem:[%s8782_s4 + $0x850] ss:$8 sps:$4 sm:$0xff]  }
 0x1b8   :  { %2082 = vmatprep.subr.bf16.mxu0 %v6151_v32  ;;  %v6252_v32 = vld [vmem:[%s8782_s4 + $0x864] ss:$8 sps:$4 sm:$0xff]  }
 0x1bb   :  { %2083 = vmatpush1.bf16.msra.mxu0 %v6149_v35  ;;  %v6256_v35 = vld [vmem:[%s8782_s4 + $0x870] ss:$8 sps:$4 sm:$0xff]  }
 0x1bc   :  { %2084 = vmatprep.subr.bf16.mxu0 %v6155_v36  ;;  %v6264_v36 = vld [vmem:[%s8782_s4 + $0x884] ss:$8 sps:$4 sm:$0xff]  }
 0x1bf   :  { %2085 = vmatpush1.bf16.msra.mxu0 %v6153_v39  ;;  %v6268_v39 = vld [vmem:[%s8782_s4 + $0x890] ss:$8 sps:$4 sm:$0xff]  }
 0x1c0   :  { %2105 = vmatprep.subr.bf16.mxu0 %v6158_v40  ;;  %v6276_v40 = vld [vmem:[%s8782_s4 + $0x8a4] ss:$8 sps:$4 sm:$0xff]  }
 0x1c2   :  { %2087 = vmatmul.mubr.bf16.vlgmr.msra.gmra.mrb[0].mxu0 %v4850_v43  ;;  %v6280_v43 = vld [vmem:[%s8782_s4 + $0x8b0] ss:$8 sps:$4 sm:$0xff]  }
 0x1c3   :  { %2106 = vmatpush1.bf16.msra.mxu0 %v6156_v44  ;;  %2096 = vmatprep.mubr.bf16.mxu0 %v4867_v45  ;;  %v6288_v44 = vld [vmem:[%s8782_s4 + $0x8c4] ss:$8 sps:$4 sm:$0xff]   ;;  %v6286_v45 = vld [vmem:[%s8782_s4 + $0x8c0] ss:$8 sps:$4 sm:$0xff]  }
 0x1c4   :  { %2107 = vmatprep.subr.bf16.mxu0 %v6161_v48  ;;  %v6289_v48 = vld [vmem:[%s8782_s4 + $0xe4] ss:$8 sps:$4 sm:$0xff]  }
 0x1c5   :  { %2388 = vmatprep.subr.bf16.mxu1 %v6289_v48  ;;  %v6328_v48 = vld [vmem:[%s8782_s4 + $0x180] ss:$8 sps:$4 sm:$0xff]  }
 0x1c7   :  { %2108 = vmatpush1.bf16.msra.mxu0 %v6159_v49  ;;  %v6291_v49 = vld [vmem:[%s8782_s4 + $0xe0] ss:$8 sps:$4 sm:$0xff]  }
 0x1c8   :  { %2109 = vmatprep.subr.bf16.mxu0 %v6164_v46  ;;  %v6294_v46 = vld [vmem:[%s8782_s4 + $0x8d4] ss:$8 sps:$4 sm:$0xff]   ;;  %2389 = vmatpush1.bf16.msra.mxu1 %v6291_v49 }
 0x1c9   :  { %2390 = vmatprep.subr.bf16.mxu1 %v6295_v50  ;;  %v6333_v49 = vld [vmem:[%s8782_s4 + $0x194] ss:$8 sps:$4 sm:$0xff]   ;;  %v6334_v50 = vld [vmem:[%s8782_s4 + $0x1a0] ss:$8 sps:$4 sm:$0xff]  }
 0x1ca   :  { %2097 = vmatmul.mubr.bf16.gmra.mrb[4].mxu0 %v4866_v51  ;;  %v6297_v51 = vld [vmem:[%s8782_s4 + $0xf0] ss:$8 sps:$4 sm:$0xff]  }
 0x1cb   :  { %2110 = vmatpush1.bf16.msra.mxu0 %v6162_v52  ;;  %2137 = vmatprep.mubr.bf16.mxu0 %v4853_v53  ;;  %v6300_v52 = vld [vmem:[%s8782_s4 + $0x8e4] ss:$8 sps:$4 sm:$0xff]   ;;  %v6298_v53 = vld [vmem:[%s8782_s4 + $0x8e0] ss:$8 sps:$4 sm:$0xff]  }
 0x1cc   :  { %2111 = vmatprep.subr.bf16.mxu0 %v6167_v54  ;;  %2391 = vmatpush1.bf16.msra.mxu1 %v6297_v51  ;;  %v5158_v54 = vld.sshfl [vmem:[%s8783_s5] sm:$0x33 pattern:$0x76325410]  ;;  %v6339_v51 = vld [vmem:[%s8782_s4 + $0x1b4] ss:$8 sps:$4 sm:$0xff]  }
 0x1cf   :  { %2112 = vmatpush1.bf16.msra.mxu0 %v6165_v55  ;;  %v6303_v55 = vld [vmem:[%s8782_s4 + $0x8f4] ss:$8 sps:$4 sm:$0xff]  }
 0x1d0   :  { %2113 = vmatprep.subr.bf16.mxu0 %v6170_v56  ;;  %v2409_v56 = vcombine.high %v5158_v54, %v5158_v54 }
 0x1d2   :  { %5159 = vmatprep.subr.msk.bf16.mxu1 %vm2414_vm0, %v2409_v56  ;;  %v6343_v56 = vld [vmem:[%s8782_s4 + $0x1d0] ss:$8 sps:$4 sm:$0xff]  }
 0x1d3   :  { %2114 = vmatpush1.bf16.msra.mxu0 %v6168_v57  ;;  %v6301_v57 = vld [vmem:[%s8782_s4 + $0x8f0] ss:$8 sps:$4 sm:$0xff]  }
 0x1d4   :  { %2115 = vmatprep.subr.bf16.mxu0 %v6173_v58  ;;  %v2416_v58 = vsel %vm2414_vm0, %v5158_v54, 0  ;;  %v6340_v54 = vld [vmem:[%s8782_s4 + $0x1c0] ss:$8 sps:$4 sm:$0xff]  }
 0x1d7   :  { %2116 = vmatpush1.bf16.msra.mxu0 %v6171_v59  ;;  %v322_v59 = vlaneseq }
 0x1d8   :  { %2117 = vmatprep.subr.bf16.mxu0 %v6176_v60 }
 0x1d9   :  { %v323_v60 = vshrl.u32 %v322_v59, 7  ;;  %v6351_v59 = vld [vmem:[%s8782_s4 + $0x1f4] ss:$8 sps:$4 sm:$0xff]  }
 0x1db   :  { %2118 = vmatpush1.bf16.msra.mxu0 %v6174_v61  ;;  %v7881_v61 = vsub.s32 0, %v323_v60 }
 0x1dc   :  { %2119 = vmatprep.subr.bf16.mxu0 %v6179_v62  ;;  %v320_v62 = vld [vmem:[%s8781_s3] sm:$0x3] }
 0x1df   :  { %2120 = vmatpush1.bf16.msra.mxu0 %v6177_v63  ;;  %v7886_v63 = vsub.s32 1, %v323_v60  ;;  %v6349_v60 = vld [vmem:[%s8782_s4 + $0x1f0] ss:$8 sps:$4 sm:$0xff]  }
 0x1e0   :  { %2121 = vmatprep.subr.bf16.mxu0 %v6182_v0  ;;  %v325_v0 = vrot.slane %v320_v62, %v7881_v61 }
 0x1e3   :  { %2122 = vmatpush1.bf16.msra.mxu0 %v6180_v1  ;;  %v329_v1 = vrot.slane %v320_v62, %v7886_v63  ;;  %v6354_v62 = vld [vmem:[%s8782_s4 + $0x204] ss:$8 sps:$4 sm:$0xff]  }
 0x1e4   :  { %2123 = vmatprep.subr.bf16.mxu0 %v6185_v2 }
 0x1e7   :  { %2124 = vmatpush1.bf16.msra.mxu0 %v6183_v3 }
 0x1e8   :  { %2125 = vmatprep.subr.bf16.mxu0 %v6188_v4 }
 0x1eb   :  { %2126 = vmatpush1.bf16.msra.mxu0 %v6186_v5 }
 0x1ec   :  { %2127 = vmatprep.subr.bf16.mxu0 %v6191_v6 }
 0x1ef   :  { %2128 = vmatpush1.bf16.msra.mxu0 %v6189_v7 }
 0x1f0   :  { %2129 = vmatprep.subr.bf16.mxu0 %v6194_v8 }
 0x1f3   :  { %2130 = vmatpush1.bf16.msra.mxu0 %v6192_v9 }
 0x1f4   :  { %2131 = vmatprep.subr.bf16.mxu0 %v6197_v10 }
 0x1f7   :  { %2132 = vmatpush1.bf16.msra.mxu0 %v6195_v11 }
 0x1f8   :  { %2133 = vmatprep.subr.bf16.mxu0 %v6202_v12 }
 0x1fb   :  { %2134 = vmatpush1.bf16.msra.mxu0 %v6200_v13 }
 0x1fc   :  { %2135 = vmatprep.subr.bf16.mxu0 %v6205_v14 }
 0x1ff   :  { %2136 = vmatpush1.bf16.msra.mxu0 %v6203_v15 }
 0x200   :  { %4337 = vmatprep.subr.bf16.mxu0 %v6216_v17 }
 0x202   :  { %2138 = vmatmul.mubr.bf16.vlgmr.msra.gmra.mrb[0].mxu0 %v4852_v18 }
 0x203   :  { %2147 = vmatprep.mubr.bf16.mxu0 %v4869_v19  ;;  %4338 = vmatpush1.bf16.msra.mxu0 %v6214_v20  ;;  %v6306_v19 = vld [vmem:[%s8782_s4 + $0x104] ss:$8 sps:$4 sm:$0xff]  }
 0x204   :  { %4339 = vmatprep.subr.bf16.mxu0 %v6222_v21 }
 0x207   :  { %4340 = vmatpush1.bf16.msra.mxu0 %v6220_v22 }
 0x208   :  { %4341 = vmatprep.subr.bf16.mxu0 %v6228_v23 }
 0x20a   :  { %2148 = vmatmul.mubr.bf16.gmra.mrb[4].mxu0 %v4868_v24 }
 0x20b   :  { %4342 = vmatpush1.bf16.msra.mxu0 %v6226_v25  ;;  %v6728_v25 = vmov 0  }
 0x20c   :  { %4343 = vmatprep.subr.bf16.mxu0 %v6234_v26 }
 0x20f   :  { %4344 = vmatpush1.bf16.msra.mxu0 %v6232_v27 }
 0x210   :  { %4345 = vmatprep.subr.bf16.mxu0 %v6240_v28  ;;  %v6304_v28 = vld [vmem:[%s8782_s4 + $0x100] ss:$8 sps:$4 sm:$0xff]  }
 0x213   :  { %4346 = vmatpush1.bf16.msra.mxu0 %v6238_v29  ;;  %v2166_v29 = vld [vmem:[%s8779_s1] sm:$0x1] }
 0x214   :  { %4347 = vmatprep.subr.bf16.mxu0 %v6246_v30  ;;  %v6309_v30 = vld [vmem:[%s8782_s4 + $0x114] ss:$8 sps:$4 sm:$0xff]  }
 0x217   :  { %4348 = vmatpush1.bf16.msra.mxu0 %v6244_v31 }
 0x218   :  { %4349 = vmatprep.subr.bf16.mxu0 %v6252_v32  ;;  %v6307_v32 = vld [vmem:[%s8782_s4 + $0x110] ss:$8 sps:$4 sm:$0xff]  }
 0x21b   :  { %4350 = vmatpush1.bf16.msra.mxu0 %v6250_v33  ;;  %v6312_v33 = vld [vmem:[%s8782_s4 + $0x124] ss:$8 sps:$4 sm:$0xff]  }
 0x21c   :  { %4351 = vmatprep.subr.bf16.mxu0 %v6258_v34  ;;  %v6310_v34 = vld [vmem:[%s8782_s4 + $0x120] ss:$8 sps:$4 sm:$0xff]  }
 0x21f   :  { %4352 = vmatpush1.bf16.msra.mxu0 %v6256_v35  ;;  %v6315_v35 = vld [vmem:[%s8782_s4 + $0x134] ss:$8 sps:$4 sm:$0xff]  }
 0x220   :  { %4353 = vmatprep.subr.bf16.mxu0 %v6264_v36  ;;  %v6313_v36 = vld [vmem:[%s8782_s4 + $0x130] ss:$8 sps:$4 sm:$0xff]  }
 0x223   :  { %4354 = vmatpush1.bf16.msra.mxu0 %v6262_v37  ;;  %v6318_v37 = vld [vmem:[%s8782_s4 + $0x144] ss:$8 sps:$4 sm:$0xff]  }
 0x224   :  { %4355 = vmatprep.subr.bf16.mxu0 %v6270_v38  ;;  %v6316_v38 = vld [vmem:[%s8782_s4 + $0x140] ss:$8 sps:$4 sm:$0xff]  }
 0x227   :  { %4356 = vmatpush1.bf16.msra.mxu0 %v6268_v39  ;;  %v6321_v39 = vld [vmem:[%s8782_s4 + $0x154] ss:$8 sps:$4 sm:$0xff]  }
 0x228   :  { %4357 = vmatprep.subr.bf16.mxu0 %v6276_v40  ;;  %v6319_v40 = vld [vmem:[%s8782_s4 + $0x150] ss:$8 sps:$4 sm:$0xff]  }
 0x22b   :  { %4358 = vmatpush1.bf16.msra.mxu0 %v6274_v41  ;;  %v6324_v41 = vld [vmem:[%s8782_s4 + $0x164] ss:$8 sps:$4 sm:$0xff]  }
 0x22c   :  { %4359 = vmatprep.subr.bf16.mxu0 %v6282_v42  ;;  %v6322_v42 = vld [vmem:[%s8782_s4 + $0x160] ss:$8 sps:$4 sm:$0xff]  }
 0x22f   :  { %4360 = vmatpush1.bf16.msra.mxu0 %v6280_v43  ;;  %v6327_v43 = vld [vmem:[%s8782_s4 + $0x174] ss:$8 sps:$4 sm:$0xff]  }
 0x230   :  { %4361 = vmatprep.subr.bf16.mxu0 %v6288_v44  ;;  %v6325_v44 = vld [vmem:[%s8782_s4 + $0x170] ss:$8 sps:$4 sm:$0xff]  }
 0x233   :  { %4362 = vmatpush1.bf16.msra.mxu0 %v6286_v45  ;;  %v6330_v45 = vld [vmem:[%s8782_s4 + $0x184] ss:$8 sps:$4 sm:$0xff]  }
 0x234   :  { %4363 = vmatprep.subr.bf16.mxu0 %v6294_v46  ;;  %v6331_v46 = vld [vmem:[%s8782_s4 + $0x190] ss:$8 sps:$4 sm:$0xff]  }
 0x237   :  { %4364 = vmatpush1.bf16.msra.mxu0 %v6292_v47  ;;  %v6336_v47 = vld [vmem:[%s8782_s4 + $0x1a4] ss:$8 sps:$4 sm:$0xff]  }
 0x238   :  { %4365 = vmatprep.subr.bf16.mxu0 %v6300_v52  ;;  %v6337_v52 = vld [vmem:[%s8782_s4 + $0x1b0] ss:$8 sps:$4 sm:$0xff]  }
 0x23b   :  { %4366 = vmatpush1.bf16.msra.mxu0 %v6298_v53  ;;  %v6342_v53 = vld [vmem:[%s8782_s4 + $0x1c4] ss:$8 sps:$4 sm:$0xff]  }
 0x23c   :  { %4367 = vmatprep.subr.bf16.mxu0 %v6303_v55  ;;  %v6345_v55 = vld [vmem:[%s8782_s4 + $0x1d4] ss:$8 sps:$4 sm:$0xff]  }
 0x23f   :  { %4368 = vmatpush1.bf16.msra.mxu0 %v6301_v57  ;;  %v6348_v57 = vld [vmem:[%s8782_s4 + $0x1e4] ss:$8 sps:$4 sm:$0xff]  }
 0x2d5   :  { %v2139_v2 = vpop.f32.mrb[0].mxu0 }
 0x2d6   :  { %v5744_v3 = vadd.f32 %v2139_v2, %v325_v0  ;;  %v2141_v4 = vpop.f32.mrb[1].mxu0  ;;  %v6357_v2 = vld [vmem:[%s8782_s4 + $0x214] ss:$8 sps:$4 sm:$0xff]  }
 0x2d7   :  { %v5745_v5 = vadd.f32 %v2141_v4, %v329_v1  ;;  %v2143_v6 = vpop.f32.mrb[2].mxu0  ;;  %v6355_v4 = vld [vmem:[%s8782_s4 + $0x210] ss:$8 sps:$4 sm:$0xff]  }
 0x2d8   :  { %v5746_v7 = vadd.f32 %v2143_v6, %v325_v0  ;;  %v2145_v8 = vpop.f32.mrb[3].mxu0  ;;  %v2156_v10 = vmax.f32 %v5744_v3, 0.0  ;;  %v6358_v6 = vld [vmem:[%s8782_s4 + $0x220] ss:$8 sps:$4 sm:$0xff]  }
 0x2d9   :  { %v5747_v9 = vadd.f32 %v2145_v8, %v329_v1  ;;  %v2157_v12 = vmax.f32 %v5745_v5, 0.0  ;;  %v6360_v5 = vld [vmem:[%s8782_s4 + $0x224] ss:$8 sps:$4 sm:$0xff]   ;;  %v6361_v8 = vld [vmem:[%s8782_s4 + $0x230] ss:$8 sps:$4 sm:$0xff]  }
 0x2da   :  { %v2158_v11 = vmax.f32 %v5746_v7, 0.0  ;;  %v6363_v7 = vld [vmem:[%s8782_s4 + $0x234] ss:$8 sps:$4 sm:$0xff]  }
 0x2db   :  { %v2159_v13 = vmax.f32 %v5747_v9, 0.0  ;;  %v6366_v9 = vld [vmem:[%s8782_s4 + $0x244] ss:$8 sps:$4 sm:$0xff]  }
 0x2dc   :  { %v7890_v14 = vpack.c.bf16 %v2158_v11, %v2156_v10  ;;  %v6364_v10 = vld [vmem:[%s8782_s4 + $0x240] ss:$8 sps:$4 sm:$0xff]   ;;  %v6369_v11 = vld [vmem:[%s8782_s4 + $0x254] ss:$8 sps:$4 sm:$0xff]  }
 0x2dd   :  { %v7892_v15 = vpack.c.bf16 %v2159_v13, %v2157_v12  ;;  %v2149_v16 = vpop.f32.mrb[4].mxu0  ;;  %v6367_v12 = vld [vmem:[%s8782_s4 + $0x250] ss:$8 sps:$4 sm:$0xff]   ;;  %v6372_v13 = vld [vmem:[%s8782_s4 + $0x264] ss:$8 sps:$4 sm:$0xff]  }
 0x2de   :  { %v5748_v17 = vadd.f32 %v2149_v16, %v325_v0  ;;  %v2151_v18 = vpop.f32.mrb[5].mxu0  ;;  %v6352_v0 = vld [vmem:[%s8782_s4 + $0x200] ss:$8 sps:$4 sm:$0xff]  }
 0x2df   :  { %v5749_v20 = vadd.f32 %v2151_v18, %v329_v1  ;;  %v2153_v21 = vpop.f32.mrb[6].mxu0  ;;  %2392 = vmatprep.mubr.bf16.mxu1 %v7892_v15  ;;  %v2498_v31 = vrot.slane %v7892_v15, 1  ;;  %v2497_v1 = vrot.slane %v7890_v14, 1  ;;  %v2738_v3 = vrot.slane %v7892_v15, 2  ;;  %v6370_v16 = vld [vmem:[%s8782_s4 + $0x260] ss:$8 sps:$4 sm:$0xff]  }
 0x2e0   :  { %v2160_v22 = vmax.f32 %v5748_v17, 0.0  ;;  %v2154_v23 = vpop.f32.mrb[7].mxu0  ;;  %2393 = vmatmul.mubr.bf16.vlgmr.msra.gmra.mrb[0].mxu1 %v7890_v14  ;;  %v6375_v17 = vld [vmem:[%s8782_s4 + $0x274] ss:$8 sps:$4 sm:$0xff]   ;;  %v6373_v18 = vld [vmem:[%s8782_s4 + $0x270] ss:$8 sps:$4 sm:$0xff]  }
 0x2e1   :  { %v2161_v24 = vmax.f32 %v5749_v20, 0.0  ;;  %2422 = vmatpush1.bf16.msra.mxu1 %v2416_v58  ;;  %2453 = vmatprep.mubr.bf16.mxu1 %v6728_v25  ;;  %v6346_v58 = vld [vmem:[%s8782_s4 + $0x1e0] ss:$8 sps:$4 sm:$0xff]   ;;  %v6381_v21 = vld [vmem:[%s8782_s4 + $0x294] ss:$8 sps:$4 sm:$0xff]  }
 0x2e2   :  { %2661 = vmatprep.subr.bf16.mxu1 %v6306_v19  ;;  %v2164_v27 = vpack.c.bf16 %v2160_v22, %v2160_v22  ;;  %v6378_v19 = vld [vmem:[%s8782_s4 + $0x284] ss:$8 sps:$4 sm:$0xff]   ;;  %v6376_v20 = vld [vmem:[%s8782_s4 + $0x280] ss:$8 sps:$4 sm:$0xff]   ;;  %v6379_v22 = vld [vmem:[%s8782_s4 + $0x290] ss:$8 sps:$4 sm:$0xff]  }
 0x2e3   :  { %v2165_v26 = vpack.c.bf16 %v2161_v24, %v2161_v24  ;;  %v6384_v23 = vld [vmem:[%s8782_s4 + $0x2a4] ss:$8 sps:$4 sm:$0xff]   ;;  %v6382_v24 = vld [vmem:[%s8782_s4 + $0x2a0] ss:$8 sps:$4 sm:$0xff]   ;;  %v6387_v25 = vld [vmem:[%s8782_s4 + $0x2b4] ss:$8 sps:$4 sm:$0xff]  }
 0x2e5   :  { %4369 = vmatprep.mubr.bf16.mxu0 %v2165_v26  ;;  %v6385_v26 = vld [vmem:[%s8782_s4 + $0x2b0] ss:$8 sps:$4 sm:$0xff]  }
 0x2e6   :  { %4370 = vmatmul.mubr.bf16.vlgmr.msra.gmra.mrb[8].mxu0 %v2164_v27  ;;  %v6390_v27 = vld [vmem:[%s8782_s4 + $0x2c4] ss:$8 sps:$4 sm:$0xff]  }
 0x2e8   :  { %5160 = vmatmul.mubr.msk.bf16.vlgmr.msra.gmra.mrb[4].mxu1 %vm2410_vm1, %v2166_v29  ;;  %v6393_v29 = vld [vmem:[%s8782_s4 + $0x2d4] ss:$8 sps:$4 sm:$0xff]  }
 0x2e9   :  { %2662 = vmatpush1.bf16.msra.mxu1 %v6304_v28  ;;  %2693 = vmatprep.mubr.bf16.mxu1 %v2498_v31  ;;  %v6388_v28 = vld [vmem:[%s8782_s4 + $0x2c0] ss:$8 sps:$4 sm:$0xff]   ;;  %v6396_v31 = vld [vmem:[%s8782_s4 + $0x2e4] ss:$8 sps:$4 sm:$0xff]  }
 0x2ea   :  { %2663 = vmatprep.subr.bf16.mxu1 %v6309_v30  ;;  %v6391_v30 = vld [vmem:[%s8782_s4 + $0x2d0] ss:$8 sps:$4 sm:$0xff]  }
 0x2ed   :  { %2664 = vmatpush1.bf16.msra.mxu1 %v6307_v32  ;;  %v6394_v32 = vld [vmem:[%s8782_s4 + $0x2e0] ss:$8 sps:$4 sm:$0xff]  }
 0x2ee   :  { %2665 = vmatprep.subr.bf16.mxu1 %v6312_v33  ;;  %v6399_v33 = vld [vmem:[%s8782_s4 + $0x2f4] ss:$8 sps:$4 sm:$0xff]  }
 0x2f1   :  { %2666 = vmatpush1.bf16.msra.mxu1 %v6310_v34  ;;  %v6397_v34 = vld [vmem:[%s8782_s4 + $0x2f0] ss:$8 sps:$4 sm:$0xff]  }
 0x2f2   :  { %2667 = vmatprep.subr.bf16.mxu1 %v6315_v35  ;;  %v6402_v35 = vld [vmem:[%s8782_s4 + $0x304] ss:$8 sps:$4 sm:$0xff]  }
 0x2f5   :  { %2668 = vmatpush1.bf16.msra.mxu1 %v6313_v36  ;;  %v6400_v36 = vld [vmem:[%s8782_s4 + $0x300] ss:$8 sps:$4 sm:$0xff]  }
 0x2f6   :  { %2669 = vmatprep.subr.bf16.mxu1 %v6318_v37  ;;  %v2737_v37 = vrot.slane %v7890_v14, 2 }
 0x2f9   :  { %2670 = vmatpush1.bf16.msra.mxu1 %v6316_v38  ;;  %v6405_v38 = vld [vmem:[%s8782_s4 + $0x314] ss:$8 sps:$4 sm:$0xff]  }
 0x2fa   :  { %2671 = vmatprep.subr.bf16.mxu1 %v6321_v39  ;;  %v2978_v39 = vrot.slane %v7892_v15, 3 }
 0x2fd   :  { %2672 = vmatpush1.bf16.msra.mxu1 %v6319_v40  ;;  %v6403_v40 = vld [vmem:[%s8782_s4 + $0x310] ss:$8 sps:$4 sm:$0xff]  }
 0x2fe   :  { %2673 = vmatprep.subr.bf16.mxu1 %v6324_v41  ;;  %v6408_v41 = vld [vmem:[%s8782_s4 + $0x324] ss:$8 sps:$4 sm:$0xff]  }
 0x301   :  { %2674 = vmatpush1.bf16.msra.mxu1 %v6322_v42  ;;  %v6406_v42 = vld [vmem:[%s8782_s4 + $0x320] ss:$8 sps:$4 sm:$0xff]  }
 0x302   :  { %2675 = vmatprep.subr.bf16.mxu1 %v6327_v43  ;;  %v6411_v43 = vld [vmem:[%s8782_s4 + $0x334] ss:$8 sps:$4 sm:$0xff]  }
 0x305   :  { %2676 = vmatpush1.bf16.msra.mxu1 %v6325_v44  ;;  %v6409_v44 = vld [vmem:[%s8782_s4 + $0x330] ss:$8 sps:$4 sm:$0xff]  }
 0x306   :  { %2677 = vmatprep.subr.bf16.mxu1 %v6330_v45  ;;  %v6414_v45 = vld [vmem:[%s8782_s4 + $0x344] ss:$8 sps:$4 sm:$0xff]  }
 0x309   :  { %2678 = vmatpush1.bf16.msra.mxu1 %v6328_v48  ;;  %v6412_v48 = vld [vmem:[%s8782_s4 + $0x340] ss:$8 sps:$4 sm:$0xff]  }
 0x30a   :  { %2679 = vmatprep.subr.bf16.mxu1 %v6333_v49  ;;  %v6417_v49 = vld [vmem:[%s8782_s4 + $0x354] ss:$8 sps:$4 sm:$0xff]  }
 0x30d   :  { %2680 = vmatpush1.bf16.msra.mxu1 %v6331_v46  ;;  %v6415_v46 = vld [vmem:[%s8782_s4 + $0x350] ss:$8 sps:$4 sm:$0xff]  }
 0x30e   :  { %2681 = vmatprep.subr.bf16.mxu1 %v6336_v47  ;;  %v6420_v47 = vld [vmem:[%s8782_s4 + $0x364] ss:$8 sps:$4 sm:$0xff]  }
 0x311   :  { %2682 = vmatpush1.bf16.msra.mxu1 %v6334_v50  ;;  %v6418_v50 = vld [vmem:[%s8782_s4 + $0x360] ss:$8 sps:$4 sm:$0xff]  }
 0x312   :  { %2683 = vmatprep.subr.bf16.mxu1 %v6339_v51  ;;  %v6423_v51 = vld [vmem:[%s8782_s4 + $0x374] ss:$8 sps:$4 sm:$0xff]  }
 0x315   :  { %2684 = vmatpush1.bf16.msra.mxu1 %v6337_v52  ;;  %v6421_v52 = vld [vmem:[%s8782_s4 + $0x370] ss:$8 sps:$4 sm:$0xff]  }
 0x316   :  { %2685 = vmatprep.subr.bf16.mxu1 %v6342_v53  ;;  %v6426_v53 = vld [vmem:[%s8782_s4 + $0x384] ss:$8 sps:$4 sm:$0xff]  }
 0x319   :  { %2686 = vmatpush1.bf16.msra.mxu1 %v6340_v54  ;;  %v6424_v54 = vld [vmem:[%s8782_s4 + $0x380] ss:$8 sps:$4 sm:$0xff]  }
 0x31a   :  { %2687 = vmatprep.subr.bf16.mxu1 %v6345_v55  ;;  %v6429_v55 = vld [vmem:[%s8782_s4 + $0x394] ss:$8 sps:$4 sm:$0xff]  }
 0x31d   :  { %2688 = vmatpush1.bf16.msra.mxu1 %v6343_v56  ;;  %v6427_v56 = vld [vmem:[%s8782_s4 + $0x390] ss:$8 sps:$4 sm:$0xff]  }
 0x31e   :  { %2689 = vmatprep.subr.bf16.mxu1 %v6348_v57  ;;  %v6432_v57 = vld [vmem:[%s8782_s4 + $0x3a4] ss:$8 sps:$4 sm:$0xff]  }
 0x321   :  { %2690 = vmatpush1.bf16.msra.mxu1 %v6346_v58  ;;  %v6430_v58 = vld [vmem:[%s8782_s4 + $0x3a0] ss:$8 sps:$4 sm:$0xff]  }
 0x322   :  { %2691 = vmatprep.subr.bf16.mxu1 %v6351_v59  ;;  %v6435_v59 = vld [vmem:[%s8782_s4 + $0x3b4] ss:$8 sps:$4 sm:$0xff]  }
 0x325   :  { %2692 = vmatpush1.bf16.msra.mxu1 %v6349_v60  ;;  %v6433_v60 = vld [vmem:[%s8782_s4 + $0x3b0] ss:$8 sps:$4 sm:$0xff]  }
 0x326   :  { %2901 = vmatprep.subr.bf16.mxu1 %v6354_v62  ;;  %v6438_v62 = vld [vmem:[%s8782_s4 + $0x3c4] ss:$8 sps:$4 sm:$0xff]  }
 0x328   :  { %2694 = vmatmul.mubr.bf16.vlgmr.msra.gmra.mrb[8].mxu1 %v2497_v1  ;;  %v6441_v1 = vld [vmem:[%s8782_s4 + $0x3d4] ss:$8 sps:$4 sm:$0xff]  }
 0x329   :  { %2902 = vmatpush1.bf16.msra.mxu1 %v6352_v0  ;;  %2933 = vmatprep.mubr.bf16.mxu1 %v2738_v3  ;;  %v6436_v0 = vld [vmem:[%s8782_s4 + $0x3c0] ss:$8 sps:$4 sm:$0xff]   ;;  %v6444_v3 = vld [vmem:[%s8782_s4 + $0x3e4] ss:$8 sps:$4 sm:$0xff]  }
 0x32a   :  { %2903 = vmatprep.subr.bf16.mxu1 %v6357_v2  ;;  %v6439_v2 = vld [vmem:[%s8782_s4 + $0x3d0] ss:$8 sps:$4 sm:$0xff]  }
 0x32d   :  { %2904 = vmatpush1.bf16.msra.mxu1 %v6355_v4  ;;  %v6442_v4 = vld [vmem:[%s8782_s4 + $0x3e0] ss:$8 sps:$4 sm:$0xff]  }
 0x32e   :  { %2905 = vmatprep.subr.bf16.mxu1 %v6360_v5  ;;  %v6447_v5 = vld [vmem:[%s8782_s4 + $0x3f4] ss:$8 sps:$4 sm:$0xff]  }
 0x331   :  { %2906 = vmatpush1.bf16.msra.mxu1 %v6358_v6  ;;  %v6445_v6 = vld [vmem:[%s8782_s4 + $0x3f0] ss:$8 sps:$4 sm:$0xff]  }
 0x332   :  { %2907 = vmatprep.subr.bf16.mxu1 %v6363_v7  ;;  %v6450_v7 = vld [vmem:[%s8782_s4 + $0x404] ss:$8 sps:$4 sm:$0xff]  }
 0x335   :  { %2908 = vmatpush1.bf16.msra.mxu1 %v6361_v8  ;;  %v6448_v8 = vld [vmem:[%s8782_s4 + $0x400] ss:$8 sps:$4 sm:$0xff]  }
 0x336   :  { %2909 = vmatprep.subr.bf16.mxu1 %v6366_v9  ;;  %v2977_v9 = vrot.slane %v7890_v14, 3 }
 0x339   :  { %2910 = vmatpush1.bf16.msra.mxu1 %v6364_v10  ;;  %v6453_v10 = vld [vmem:[%s8782_s4 + $0x414] ss:$8 sps:$4 sm:$0xff]  }
 0x33a   :  { %2911 = vmatprep.subr.bf16.mxu1 %v6369_v11  ;;  %v3218_v11 = vrot.slane %v7892_v15, 4 }
 0x33d   :  { %2912 = vmatpush1.bf16.msra.mxu1 %v6367_v12  ;;  %v6451_v12 = vld [vmem:[%s8782_s4 + $0x410] ss:$8 sps:$4 sm:$0xff]  }
 0x33e   :  { %2913 = vmatprep.subr.bf16.mxu1 %v6372_v13  ;;  %v6456_v13 = vld [vmem:[%s8782_s4 + $0x424] ss:$8 sps:$4 sm:$0xff]  }
 0x341   :  { %2914 = vmatpush1.bf16.msra.mxu1 %v6370_v16  ;;  %v6454_v16 = vld [vmem:[%s8782_s4 + $0x420] ss:$8 sps:$4 sm:$0xff]  }
 0x342   :  { %2915 = vmatprep.subr.bf16.mxu1 %v6375_v17  ;;  %v6459_v17 = vld [vmem:[%s8782_s4 + $0x434] ss:$8 sps:$4 sm:$0xff]  }
 0x345   :  { %2916 = vmatpush1.bf16.msra.mxu1 %v6373_v18  ;;  %v6457_v18 = vld [vmem:[%s8782_s4 + $0x430] ss:$8 sps:$4 sm:$0xff]  }
 0x346   :  { %2917 = vmatprep.subr.bf16.mxu1 %v6378_v19  ;;  %v6462_v19 = vld [vmem:[%s8782_s4 + $0x444] ss:$8 sps:$4 sm:$0xff]  }
 0x349   :  { %2918 = vmatpush1.bf16.msra.mxu1 %v6376_v20 }
 0x34a   :  { %2919 = vmatprep.subr.bf16.mxu1 %v6381_v21 }
 0x34d   :  { %2920 = vmatpush1.bf16.msra.mxu1 %v6379_v22 }
 0x34e   :  { %2921 = vmatprep.subr.bf16.mxu1 %v6384_v23  ;;  %v6460_v23 = vld [vmem:[%s8782_s4 + $0x440] ss:$8 sps:$4 sm:$0xff]  }
 0x351   :  { %2922 = vmatpush1.bf16.msra.mxu1 %v6382_v24 }
 0x352   :  { %2923 = vmatprep.subr.bf16.mxu1 %v6387_v25  ;;  %v6465_v25 = vld [vmem:[%s8782_s4 + $0x454] ss:$8 sps:$4 sm:$0xff]  }
 0x355   :  { %2924 = vmatpush1.bf16.msra.mxu1 %v6385_v26 }
 0x356   :  { %2925 = vmatprep.subr.bf16.mxu1 %v6390_v27  ;;  %v6463_v27 = vld [vmem:[%s8782_s4 + $0x450] ss:$8 sps:$4 sm:$0xff]  }
 0x359   :  { %2926 = vmatpush1.bf16.msra.mxu1 %v6388_v28 }
 0x35a   :  { %2927 = vmatprep.subr.bf16.mxu1 %v6393_v29  ;;  %v6468_v29 = vld [vmem:[%s8782_s4 + $0x464] ss:$8 sps:$4 sm:$0xff]  }
 0x35d   :  { %2928 = vmatpush1.bf16.msra.mxu1 %v6391_v30 }
 0x35e   :  { %2929 = vmatprep.subr.bf16.mxu1 %v6396_v31 }
 0x361   :  { %2930 = vmatpush1.bf16.msra.mxu1 %v6394_v32 }
 0x362   :  { %2931 = vmatprep.subr.bf16.mxu1 %v6399_v33 }
 0x365   :  { %2932 = vmatpush1.bf16.msra.mxu1 %v6397_v34 }
 0x366   :  { %3141 = vmatprep.subr.bf16.mxu1 %v6402_v35 }
 0x368   :  { %2934 = vmatmul.mubr.bf16.vlgmr.msra.gmra.mrb[12].mxu1 %v2737_v37  ;;  %v6466_v37 = vld [vmem:[%s8782_s4 + $0x460] ss:$8 sps:$4 sm:$0xff]  }
 0x369   :  { %3142 = vmatpush1.bf16.msra.mxu1 %v6400_v36  ;;  %3173 = vmatprep.mubr.bf16.mxu1 %v2978_v39  ;;  %v6471_v39 = vld [vmem:[%s8782_s4 + $0x474] ss:$8 sps:$4 sm:$0xff]  }
 0x36a   :  { %3143 = vmatprep.subr.bf16.mxu1 %v6405_v38 }
 0x36d   :  { %3144 = vmatpush1.bf16.msra.mxu1 %v6403_v40  ;;  %v6469_v40 = vld [vmem:[%s8782_s4 + $0x470] ss:$8 sps:$4 sm:$0xff]  }
 0x36e   :  { %3145 = vmatprep.subr.bf16.mxu1 %v6408_v41  ;;  %v6474_v41 = vld [vmem:[%s8782_s4 + $0x484] ss:$8 sps:$4 sm:$0xff]  }
 0x371   :  { %3146 = vmatpush1.bf16.msra.mxu1 %v6406_v42  ;;  %v6472_v42 = vld [vmem:[%s8782_s4 + $0x480] ss:$8 sps:$4 sm:$0xff]  }
 0x372   :  { %3147 = vmatprep.subr.bf16.mxu1 %v6411_v43  ;;  %v6477_v43 = vld [vmem:[%s8782_s4 + $0x494] ss:$8 sps:$4 sm:$0xff]  }
 0x375   :  { %3148 = vmatpush1.bf16.msra.mxu1 %v6409_v44  ;;  %v6475_v44 = vld [vmem:[%s8782_s4 + $0x490] ss:$8 sps:$4 sm:$0xff]  }
 0x376   :  { %3149 = vmatprep.subr.bf16.mxu1 %v6414_v45  ;;  %v6480_v45 = vld [vmem:[%s8782_s4 + $0x4a4] ss:$8 sps:$4 sm:$0xff]  }
 0x379   :  { %3150 = vmatpush1.bf16.msra.mxu1 %v6412_v48  ;;  %v6478_v48 = vld [vmem:[%s8782_s4 + $0x4a0] ss:$8 sps:$4 sm:$0xff]  }
 0x37a   :  { %3151 = vmatprep.subr.bf16.mxu1 %v6417_v49  ;;  %v6483_v49 = vld [vmem:[%s8782_s4 + $0x4b4] ss:$8 sps:$4 sm:$0xff]  }
 0x37d   :  { %3152 = vmatpush1.bf16.msra.mxu1 %v6415_v46  ;;  %v6481_v46 = vld [vmem:[%s8782_s4 + $0x4b0] ss:$8 sps:$4 sm:$0xff]  }
 0x37e   :  { %3153 = vmatprep.subr.bf16.mxu1 %v6420_v47  ;;  %v6486_v47 = vld [vmem:[%s8782_s4 + $0x4c4] ss:$8 sps:$4 sm:$0xff]  }
 0x381   :  { %3154 = vmatpush1.bf16.msra.mxu1 %v6418_v50  ;;  %v6484_v50 = vld [vmem:[%s8782_s4 + $0x4c0] ss:$8 sps:$4 sm:$0xff]  }
 0x382   :  { %3155 = vmatprep.subr.bf16.mxu1 %v6423_v51  ;;  %v6489_v51 = vld [vmem:[%s8782_s4 + $0x4d4] ss:$8 sps:$4 sm:$0xff]  }
 0x385   :  { %3156 = vmatpush1.bf16.msra.mxu1 %v6421_v52  ;;  %v6487_v52 = vld [vmem:[%s8782_s4 + $0x4d0] ss:$8 sps:$4 sm:$0xff]  }
 0x386   :  { %3157 = vmatprep.subr.bf16.mxu1 %v6426_v53  ;;  %v6492_v53 = vld [vmem:[%s8782_s4 + $0x4e4] ss:$8 sps:$4 sm:$0xff]  }
 0x389   :  { %3158 = vmatpush1.bf16.msra.mxu1 %v6424_v54  ;;  %v6490_v54 = vld [vmem:[%s8782_s4 + $0x4e0] ss:$8 sps:$4 sm:$0xff]  }
 0x38a   :  { %3159 = vmatprep.subr.bf16.mxu1 %v6429_v55  ;;  %v6495_v55 = vld [vmem:[%s8782_s4 + $0x4f4] ss:$8 sps:$4 sm:$0xff]  }
 0x38d   :  { %3160 = vmatpush1.bf16.msra.mxu1 %v6427_v56  ;;  %v6493_v56 = vld [vmem:[%s8782_s4 + $0x4f0] ss:$8 sps:$4 sm:$0xff]  }
 0x38e   :  { %3161 = vmatprep.subr.bf16.mxu1 %v6432_v57  ;;  %v6498_v57 = vld [vmem:[%s8782_s4 + $0x504] ss:$8 sps:$4 sm:$0xff]  }
 0x391   :  { %3162 = vmatpush1.bf16.msra.mxu1 %v6430_v58  ;;  %v6496_v58 = vld [vmem:[%s8782_s4 + $0x500] ss:$8 sps:$4 sm:$0xff]  }
 0x392   :  { %3163 = vmatprep.subr.bf16.mxu1 %v6435_v59  ;;  %v3217_v59 = vrot.slane %v7890_v14, 4 }
 0x395   :  { %3164 = vmatpush1.bf16.msra.mxu1 %v6433_v60  ;;  %v6501_v60 = vld [vmem:[%s8782_s4 + $0x514] ss:$8 sps:$4 sm:$0xff]  }
 0x396   :  { %3165 = vmatprep.subr.bf16.mxu1 %v6438_v62  ;;  %v3458_v62 = vrot.slane %v7892_v15, 5 }
 0x399   :  { %3166 = vmatpush1.bf16.msra.mxu1 %v6436_v0  ;;  %v6499_v0 = vld [vmem:[%s8782_s4 + $0x510] ss:$8 sps:$4 sm:$0xff]  }
 0x39a   :  { %3167 = vmatprep.subr.bf16.mxu1 %v6441_v1  ;;  %v6504_v1 = vld [vmem:[%s8782_s4 + $0x524] ss:$8 sps:$4 sm:$0xff]  }
 0x39d   :  { %3168 = vmatpush1.bf16.msra.mxu1 %v6439_v2  ;;  %v6502_v2 = vld [vmem:[%s8782_s4 + $0x520] ss:$8 sps:$4 sm:$0xff]  }
 0x39e   :  { %3169 = vmatprep.subr.bf16.mxu1 %v6444_v3  ;;  %v6507_v3 = vld [vmem:[%s8782_s4 + $0x534] ss:$8 sps:$4 sm:$0xff]  }
 0x3a1   :  { %3170 = vmatpush1.bf16.msra.mxu1 %v6442_v4  ;;  %v6505_v4 = vld [vmem:[%s8782_s4 + $0x530] ss:$8 sps:$4 sm:$0xff]  }
 0x3a2   :  { %3171 = vmatprep.subr.bf16.mxu1 %v6447_v5  ;;  %v6510_v5 = vld [vmem:[%s8782_s4 + $0x544] ss:$8 sps:$4 sm:$0xff]  }
 0x3a5   :  { %3172 = vmatpush1.bf16.msra.mxu1 %v6445_v6  ;;  %v6508_v6 = vld [vmem:[%s8782_s4 + $0x540] ss:$8 sps:$4 sm:$0xff]  }
 0x3a6   :  { %3381 = vmatprep.subr.bf16.mxu1 %v6450_v7  ;;  %v6513_v7 = vld [vmem:[%s8782_s4 + $0x554] ss:$8 sps:$4 sm:$0xff]  }
 0x3a8   :  { %3174 = vmatmul.mubr.bf16.vlgmr.msra.gmra.mrb[16].mxu1 %v2977_v9  ;;  %v6516_v9 = vld [vmem:[%s8782_s4 + $0x564] ss:$8 sps:$4 sm:$0xff]  }
 0x3a9   :  { %3382 = vmatpush1.bf16.msra.mxu1 %v6448_v8  ;;  %3413 = vmatprep.mubr.bf16.mxu1 %v3218_v11  ;;  %v6511_v8 = vld [vmem:[%s8782_s4 + $0x550] ss:$8 sps:$4 sm:$0xff]  }
 0x3aa   :  { %3383 = vmatprep.subr.bf16.mxu1 %v6453_v10 }
 0x3ad   :  { %3384 = vmatpush1.bf16.msra.mxu1 %v6451_v12 }
 0x3ae   :  { %3385 = vmatprep.subr.bf16.mxu1 %v6456_v13 }
 0x3b1   :  { %3386 = vmatpush1.bf16.msra.mxu1 %v6454_v16 }
 0x3b2   :  { %3387 = vmatprep.subr.bf16.mxu1 %v6459_v17  ;;  %v6514_v17 = vld [vmem:[%s8782_s4 + $0x560] ss:$8 sps:$4 sm:$0xff]  }
 0x3b3   :  { %v2394_v20 = vpop.f32.mrb[0].mxu1 }
 0x3b4   :  { %v2396_v21 = vpop.f32.mrb[1].mxu1 }
 0x3b5   :  { %3388 = vmatpush1.bf16.msra.mxu1 %v6457_v18  ;;  %v2398_v22 = vpop.f32.mrb[2].mxu1 }
 0x3b6   :  { %v2399_v24 = vpop.f32.mrb[3].mxu1  ;;  %3389 = vmatprep.subr.bf16.mxu1 %v6462_v19  ;;  %v6519_v19 = vld [vmem:[%s8782_s4 + $0x574] ss:$8 sps:$4 sm:$0xff]   ;;  %v6520_v22 = vld [vmem:[%s8782_s4 + $0x580] ss:$8 sps:$4 sm:$0xff]  }
 0x3b7   :  { %v6523_v24 = vld [vmem:[%s8782_s4 + $0x590] ss:$8 sps:$4 sm:$0xff]  }
 0x3b9   :  { %3390 = vmatpush1.bf16.msra.mxu1 %v6460_v23  ;;  %v8227_v26 = vpop.f32.mrb[8].mxu0  ;;  %v6525_v23 = vld [vmem:[%s8782_s4 + $0x594] ss:$8 sps:$4 sm:$0xff]  }
 0x3ba   :  { %v8232_v28 = vpop.f32.mrb[9].mxu0  ;;  %3391 = vmatprep.subr.bf16.mxu1 %v6465_v25  ;;  %v6528_v25 = vld [vmem:[%s8782_s4 + $0x5a4] ss:$8 sps:$4 sm:$0xff]  }
 0x3bb   :  { %v2455_v30 = vpop.f32.mrb[4].mxu1  ;;  %v4375_v31 = vpop.f32.mrb[10].mxu0 }
 0x3bc   :  { %v8237_v32 = vadd.f32 %v2455_v30, %v2394_v20  ;;  %v2457_v33 = vpop.f32.mrb[5].mxu1  ;;  %v4376_v34 = vpop.f32.mrb[11].mxu0  ;;  %v6517_v20 = vld [vmem:[%s8782_s4 + $0x570] ss:$8 sps:$4 sm:$0xff]   ;;  %v6534_v31 = vld [vmem:[%s8782_s4 + $0x5c4] ss:$8 sps:$4 sm:$0xff]  }
 0x3bd   :  { %v8239_v35 = vadd.f32 %v2457_v33, %v2396_v21  ;;  %3392 = vmatpush1.bf16.msra.mxu1 %v6463_v27  ;;  %v2459_v36 = vpop.f32.mrb[6].mxu1  ;;  %v6522_v21 = vld [vmem:[%s8782_s4 + $0x584] ss:$8 sps:$4 sm:$0xff]   ;;  %v6526_v27 = vld [vmem:[%s8782_s4 + $0x5a0] ss:$8 sps:$4 sm:$0xff]  }
 0x3be   :  { %v2460_v38 = vpop.f32.mrb[7].mxu1  ;;  %3393 = vmatprep.subr.bf16.mxu1 %v6468_v29  ;;  %v6531_v29 = vld [vmem:[%s8782_s4 + $0x5b4] ss:$8 sps:$4 sm:$0xff]   ;;  %v6529_v30 = vld [vmem:[%s8782_s4 + $0x5b0] ss:$8 sps:$4 sm:$0xff]  }
 0x3bf   :  { %v6537_v33 = vld [vmem:[%s8782_s4 + $0x5d4] ss:$8 sps:$4 sm:$0xff]   ;;  %v6535_v34 = vld [vmem:[%s8782_s4 + $0x5d0] ss:$8 sps:$4 sm:$0xff]   ;;  %v6538_v36 = vld [vmem:[%s8782_s4 + $0x5e0] ss:$8 sps:$4 sm:$0xff]  }
 0x3c0   :  { %v6541_v38 = vld [vmem:[%s8782_s4 + $0x5f0] ss:$8 sps:$4 sm:$0xff]  }
 0x3c1   :  { %3394 = vmatpush1.bf16.msra.mxu1 %v6466_v37  ;;  %v6543_v37 = vld [vmem:[%s8782_s4 + $0x5f4] ss:$8 sps:$4 sm:$0xff]  }
 0x3c2   :  { %3395 = vmatprep.subr.bf16.mxu1 %v6471_v39  ;;  %v6546_v39 = vld [vmem:[%s8782_s4 + $0x604] ss:$8 sps:$4 sm:$0xff]  }
 0x3c5   :  { %3396 = vmatpush1.bf16.msra.mxu1 %v6469_v40  ;;  %v6544_v40 = vld [vmem:[%s8782_s4 + $0x600] ss:$8 sps:$4 sm:$0xff]  }
 0x3c6   :  { %3397 = vmatprep.subr.bf16.mxu1 %v6474_v41  ;;  %v3457_v41 = vrot.slane %v7890_v14, 5 }
 0x3c9   :  { %3398 = vmatpush1.bf16.msra.mxu1 %v6472_v42  ;;  %v6549_v42 = vld [vmem:[%s8782_s4 + $0x614] ss:$8 sps:$4 sm:$0xff]  }
 0x3ca   :  { %3399 = vmatprep.subr.bf16.mxu1 %v6477_v43  ;;  %v3698_v43 = vrot.slane %v7892_v15, 6 }
 0x3cd   :  { %3400 = vmatpush1.bf16.msra.mxu1 %v6475_v44  ;;  %v6547_v44 = vld [vmem:[%s8782_s4 + $0x610] ss:$8 sps:$4 sm:$0xff]  }
 0x3ce   :  { %3401 = vmatprep.subr.bf16.mxu1 %v6480_v45  ;;  %v6552_v45 = vld [vmem:[%s8782_s4 + $0x624] ss:$8 sps:$4 sm:$0xff]  }
 0x3d1   :  { %3402 = vmatpush1.bf16.msra.mxu1 %v6478_v48  ;;  %v6550_v48 = vld [vmem:[%s8782_s4 + $0x620] ss:$8 sps:$4 sm:$0xff]  }
 0x3d2   :  { %3403 = vmatprep.subr.bf16.mxu1 %v6483_v49  ;;  %v6555_v49 = vld [vmem:[%s8782_s4 + $0x634] ss:$8 sps:$4 sm:$0xff]  }
 0x3d5   :  { %3404 = vmatpush1.bf16.msra.mxu1 %v6481_v46  ;;  %v6553_v46 = vld [vmem:[%s8782_s4 + $0x630] ss:$8 sps:$4 sm:$0xff]  }
 0x3d6   :  { %3405 = vmatprep.subr.bf16.mxu1 %v6486_v47  ;;  %v6558_v47 = vld [vmem:[%s8782_s4 + $0x644] ss:$8 sps:$4 sm:$0xff]  }
 0x3d9   :  { %3406 = vmatpush1.bf16.msra.mxu1 %v6484_v50  ;;  %v6556_v50 = vld [vmem:[%s8782_s4 + $0x640] ss:$8 sps:$4 sm:$0xff]  }
 0x3da   :  { %3407 = vmatprep.subr.bf16.mxu1 %v6489_v51  ;;  %v6561_v51 = vld [vmem:[%s8782_s4 + $0x654] ss:$8 sps:$4 sm:$0xff]  }
 0x3dd   :  { %3408 = vmatpush1.bf16.msra.mxu1 %v6487_v52  ;;  %v6559_v52 = vld [vmem:[%s8782_s4 + $0x650] ss:$8 sps:$4 sm:$0xff]  }
 0x3de   :  { %3409 = vmatprep.subr.bf16.mxu1 %v6492_v53  ;;  %v6564_v53 = vld [vmem:[%s8782_s4 + $0x664] ss:$8 sps:$4 sm:$0xff]  }
 0x3e1   :  { %3410 = vmatpush1.bf16.msra.mxu1 %v6490_v54 }
 0x3e2   :  { %3411 = vmatprep.subr.bf16.mxu1 %v6495_v55 }
 0x3e5   :  { %3412 = vmatpush1.bf16.msra.mxu1 %v6493_v56 }
 0x3e6   :  { %3621 = vmatprep.subr.bf16.mxu1 %v6498_v57 }
 0x3e8   :  { %3414 = vmatmul.mubr.bf16.vlgmr.msra.gmra.mrb[20].mxu1 %v3217_v59  ;;  %v6562_v59 = vld [vmem:[%s8782_s4 + $0x660] ss:$8 sps:$4 sm:$0xff]  }
 0x3e9   :  { %3622 = vmatpush1.bf16.msra.mxu1 %v6496_v58  ;;  %3653 = vmatprep.mubr.bf16.mxu1 %v3458_v62  ;;  %v6567_v62 = vld [vmem:[%s8782_s4 + $0x674] ss:$8 sps:$4 sm:$0xff]  }
 0x3ea   :  { %3623 = vmatprep.subr.bf16.mxu1 %v6501_v60 }
 0x3ed   :  { %3624 = vmatpush1.bf16.msra.mxu1 %v6499_v0  ;;  %v6565_v0 = vld [vmem:[%s8782_s4 + $0x670] ss:$8 sps:$4 sm:$0xff]  }
 0x3ee   :  { %3625 = vmatprep.subr.bf16.mxu1 %v6504_v1  ;;  %v6570_v1 = vld [vmem:[%s8782_s4 + $0x684] ss:$8 sps:$4 sm:$0xff]  }
 0x3f1   :  { %3626 = vmatpush1.bf16.msra.mxu1 %v6502_v2  ;;  %v6568_v2 = vld [vmem:[%s8782_s4 + $0x680] ss:$8 sps:$4 sm:$0xff]  }
 0x3f2   :  { %3627 = vmatprep.subr.bf16.mxu1 %v6507_v3  ;;  %v6573_v3 = vld [vmem:[%s8782_s4 + $0x694] ss:$8 sps:$4 sm:$0xff]  }
 0x3f5   :  { %3628 = vmatpush1.bf16.msra.mxu1 %v6505_v4  ;;  %v6571_v4 = vld [vmem:[%s8782_s4 + $0x690] ss:$8 sps:$4 sm:$0xff]  }
 0x3f6   :  { %3629 = vmatprep.subr.bf16.mxu1 %v6510_v5  ;;  %v6576_v5 = vld [vmem:[%s8782_s4 + $0x6a4] ss:$8 sps:$4 sm:$0xff]  }
 0x3f9   :  { %3630 = vmatpush1.bf16.msra.mxu1 %v6508_v6  ;;  %v6574_v6 = vld [vmem:[%s8782_s4 + $0x6a0] ss:$8 sps:$4 sm:$0xff]  }
 0x3fa   :  { %3631 = vmatprep.subr.bf16.mxu1 %v6513_v7  ;;  %v6579_v7 = vld [vmem:[%s8782_s4 + $0x6b4] ss:$8 sps:$4 sm:$0xff]  }
 0x3fb   :  { %v2695_v10 = vpop.f32.mrb[8].mxu1 }
 0x3fc   :  { %v8340_v11 = vadd.f32 %v2695_v10, %v8237_v32  ;;  %v2697_v12 = vpop.f32.mrb[9].mxu1  ;;  %v6532_v32 = vld [vmem:[%s8782_s4 + $0x5c0] ss:$8 sps:$4 sm:$0xff]  }
 0x3fd   :  { %v8343_v13 = vadd.f32 %v2697_v12, %v8239_v35  ;;  %v2699_v16 = vpop.f32.mrb[10].mxu1  ;;  %3632 = vmatpush1.bf16.msra.mxu1 %v6511_v8  ;;  %v6540_v35 = vld [vmem:[%s8782_s4 + $0x5e4] ss:$8 sps:$4 sm:$0xff]   ;;  %v6577_v8 = vld [vmem:[%s8782_s4 + $0x6b0] ss:$8 sps:$4 sm:$0xff]  }
 0x3fe   :  { %v2700_v18 = vpop.f32.mrb[11].mxu1  ;;  %3633 = vmatprep.subr.bf16.mxu1 %v6516_v9  ;;  %v6582_v9 = vld [vmem:[%s8782_s4 + $0x6c4] ss:$8 sps:$4 sm:$0xff]   ;;  %v6580_v10 = vld [vmem:[%s8782_s4 + $0x6c0] ss:$8 sps:$4 sm:$0xff]  }
 0x3ff   :  { %v6583_v12 = vld [vmem:[%s8782_s4 + $0x6d0] ss:$8 sps:$4 sm:$0xff]   ;;  %v6586_v16 = vld [vmem:[%s8782_s4 + $0x6e0] ss:$8 sps:$4 sm:$0xff]  }
 0x400   :  { %v6589_v18 = vld [vmem:[%s8782_s4 + $0x6f0] ss:$8 sps:$4 sm:$0xff]  }
 0x401   :  { %3634 = vmatpush1.bf16.msra.mxu1 %v6514_v17  ;;  %v6591_v17 = vld [vmem:[%s8782_s4 + $0x6f4] ss:$8 sps:$4 sm:$0xff]  }
 0x402   :  { %3635 = vmatprep.subr.bf16.mxu1 %v6519_v19  ;;  %v6594_v19 = vld [vmem:[%s8782_s4 + $0x704] ss:$8 sps:$4 sm:$0xff]  }
 0x405   :  { %3636 = vmatpush1.bf16.msra.mxu1 %v6517_v20  ;;  %v6592_v20 = vld [vmem:[%s8782_s4 + $0x700] ss:$8 sps:$4 sm:$0xff]  }
 0x406   :  { %3637 = vmatprep.subr.bf16.mxu1 %v6522_v21  ;;  %v3697_v21 = vrot.slane %v7890_v14, 6 }
 0x409   :  { %3638 = vmatpush1.bf16.msra.mxu1 %v6520_v22  ;;  %v6597_v22 = vld [vmem:[%s8782_s4 + $0x714] ss:$8 sps:$4 sm:$0xff]  }
 0x40a   :  { %3639 = vmatprep.subr.bf16.mxu1 %v6525_v23  ;;  %v3938_v23 = vrot.slane %v7892_v15, 7  ;;  %v6603_v15 = vld [vmem:[%s8782_s4 + $0x734] ss:$8 sps:$4 sm:$0xff]  }
 0x40d   :  { %3640 = vmatpush1.bf16.msra.mxu1 %v6523_v24  ;;  %v6595_v24 = vld [vmem:[%s8782_s4 + $0x710] ss:$8 sps:$4 sm:$0xff]  }
 0x40e   :  { %3641 = vmatprep.subr.bf16.mxu1 %v6528_v25  ;;  %v6600_v25 = vld [vmem:[%s8782_s4 + $0x724] ss:$8 sps:$4 sm:$0xff]  }
 0x411   :  { %3642 = vmatpush1.bf16.msra.mxu1 %v6526_v27  ;;  %v6598_v27 = vld [vmem:[%s8782_s4 + $0x720] ss:$8 sps:$4 sm:$0xff]  }
 0x412   :  { %3643 = vmatprep.subr.bf16.mxu1 %v6531_v29  ;;  %v6601_v29 = vld [vmem:[%s8782_s4 + $0x730] ss:$8 sps:$4 sm:$0xff]  }
 0x415   :  { %3644 = vmatpush1.bf16.msra.mxu1 %v6529_v30  ;;  %v6606_v30 = vld [vmem:[%s8782_s4 + $0x744] ss:$8 sps:$4 sm:$0xff]  }
 0x416   :  { %3645 = vmatprep.subr.bf16.mxu1 %v6534_v31  ;;  %v6604_v31 = vld [vmem:[%s8782_s4 + $0x740] ss:$8 sps:$4 sm:$0xff]  }
 0x419   :  { %3646 = vmatpush1.bf16.msra.mxu1 %v6532_v32  ;;  %v6609_v32 = vld [vmem:[%s8782_s4 + $0x754] ss:$8 sps:$4 sm:$0xff]  }
 0x41a   :  { %3647 = vmatprep.subr.bf16.mxu1 %v6537_v33  ;;  %v6607_v33 = vld [vmem:[%s8782_s4 + $0x750] ss:$8 sps:$4 sm:$0xff]  }
 0x41d   :  { %3648 = vmatpush1.bf16.msra.mxu1 %v6535_v34  ;;  %v6612_v34 = vld [vmem:[%s8782_s4 + $0x764] ss:$8 sps:$4 sm:$0xff]  }
 0x41e   :  { %3649 = vmatprep.subr.bf16.mxu1 %v6540_v35 }
 0x421   :  { %3650 = vmatpush1.bf16.msra.mxu1 %v6538_v36 }
 0x422   :  { %3651 = vmatprep.subr.bf16.mxu1 %v6543_v37 }
 0x425   :  { %3652 = vmatpush1.bf16.msra.mxu1 %v6541_v38 }
 0x426   :  { %3861 = vmatprep.subr.bf16.mxu1 %v6546_v39 }
 0x428   :  { %3654 = vmatmul.mubr.bf16.vlgmr.msra.gmra.mrb[24].mxu1 %v3457_v41 }
 0x429   :  { %3862 = vmatpush1.bf16.msra.mxu1 %v6544_v40  ;;  %3893 = vmatprep.mubr.bf16.mxu1 %v3698_v43  ;;  %v6610_v40 = vld [vmem:[%s8782_s4 + $0x760] ss:$8 sps:$4 sm:$0xff]   ;;  %v6613_v43 = vld [vmem:[%s8782_s4 + $0x770] ss:$8 sps:$4 sm:$0xff]  }
 0x42a   :  { %3863 = vmatprep.subr.bf16.mxu1 %v6549_v42  ;;  %v6615_v42 = vld [vmem:[%s8782_s4 + $0x774] ss:$8 sps:$4 sm:$0xff]  }
 0x42d   :  { %3864 = vmatpush1.bf16.msra.mxu1 %v6547_v44  ;;  %v6618_v44 = vld [vmem:[%s8782_s4 + $0x784] ss:$8 sps:$4 sm:$0xff]  }
 0x42e   :  { %3865 = vmatprep.subr.bf16.mxu1 %v6552_v45  ;;  %v6616_v45 = vld [vmem:[%s8782_s4 + $0x780] ss:$8 sps:$4 sm:$0xff]  }
 0x431   :  { %3866 = vmatpush1.bf16.msra.mxu1 %v6550_v48  ;;  %v6621_v48 = vld [vmem:[%s8782_s4 + $0x794] ss:$8 sps:$4 sm:$0xff]  }
 0x432   :  { %3867 = vmatprep.subr.bf16.mxu1 %v6555_v49  ;;  %v6619_v49 = vld [vmem:[%s8782_s4 + $0x790] ss:$8 sps:$4 sm:$0xff]  }
 0x435   :  { %3868 = vmatpush1.bf16.msra.mxu1 %v6553_v46  ;;  %v6624_v46 = vld [vmem:[%s8782_s4 + $0x7a4] ss:$8 sps:$4 sm:$0xff]  }
 0x436   :  { %3869 = vmatprep.subr.bf16.mxu1 %v6558_v47  ;;  %v6622_v47 = vld [vmem:[%s8782_s4 + $0x7a0] ss:$8 sps:$4 sm:$0xff]  }
 0x439   :  { %3870 = vmatpush1.bf16.msra.mxu1 %v6556_v50  ;;  %v6627_v50 = vld [vmem:[%s8782_s4 + $0x7b4] ss:$8 sps:$4 sm:$0xff]  }
 0x43a   :  { %3871 = vmatprep.subr.bf16.mxu1 %v6561_v51  ;;  %v6625_v51 = vld [vmem:[%s8782_s4 + $0x7b0] ss:$8 sps:$4 sm:$0xff]  }
 0x43b   :  { %v2935_v54 = vpop.f32.mrb[12].mxu1 }
 0x43c   :  { %v8444_v55 = vadd.f32 %v2935_v54, %v8340_v11  ;;  %v2937_v56 = vpop.f32.mrb[13].mxu1  ;;  %v6585_v11 = vld [vmem:[%s8782_s4 + $0x6d4] ss:$8 sps:$4 sm:$0xff]  }
 0x43d   :  { %v8447_v57 = vadd.f32 %v2937_v56, %v8343_v13  ;;  %v2939_v58 = vpop.f32.mrb[14].mxu1  ;;  %3872 = vmatpush1.bf16.msra.mxu1 %v6559_v52  ;;  %v6588_v13 = vld [vmem:[%s8782_s4 + $0x6e4] ss:$8 sps:$4 sm:$0xff]   ;;  %v6633_v54 = vld [vmem:[%s8782_s4 + $0x7d4] ss:$8 sps:$4 sm:$0xff]  }
 0x43e   :  { %v2940_v60 = vpop.f32.mrb[15].mxu1  ;;  %3873 = vmatprep.subr.bf16.mxu1 %v6564_v53  ;;  %v6630_v52 = vld [vmem:[%s8782_s4 + $0x7c4] ss:$8 sps:$4 sm:$0xff]   ;;  %v6628_v53 = vld [vmem:[%s8782_s4 + $0x7c0] ss:$8 sps:$4 sm:$0xff]  }
 0x43f   :  { %v6636_v56 = vld [vmem:[%s8782_s4 + $0x7e4] ss:$8 sps:$4 sm:$0xff]   ;;  %v6639_v58 = vld [vmem:[%s8782_s4 + $0x7f4] ss:$8 sps:$4 sm:$0xff]   ;;  %v3937_v60 = vrot.slane %v7890_v14, 7 }
 0x440   :  { %v6643_v14 = vld [vmem:[%s8785_s7 + $0x10] ss:$8 sps:$4 sm:$0xff]  }
 0x441   :  { %3874 = vmatpush1.bf16.msra.mxu1 %v6562_v59  ;;  %v6637_v59 = vld [vmem:[%s8782_s4 + $0x7f0] ss:$8 sps:$4 sm:$0xff]  }
 0x442   :  { %3875 = vmatprep.subr.bf16.mxu1 %v6567_v62 }
 0x445   :  { %3876 = vmatpush1.bf16.msra.mxu1 %v6565_v0 }
 0x446   :  { %3877 = vmatprep.subr.bf16.mxu1 %v6570_v1 }
 0x449   :  { %3878 = vmatpush1.bf16.msra.mxu1 %v6568_v2 }
 0x44a   :  { %3879 = vmatprep.subr.bf16.mxu1 %v6573_v3 }
 0x44d   :  { %3880 = vmatpush1.bf16.msra.mxu1 %v6571_v4 }
 0x44e   :  { %3881 = vmatprep.subr.bf16.mxu1 %v6576_v5  ;;  %v6640_v5 = vld [vmem:[%s8785_s7] ss:$8 sps:$4 sm:$0xff]  }
 0x451   :  { %3882 = vmatpush1.bf16.msra.mxu1 %v6574_v6  ;;  %v6642_v6 = vld [vmem:[%s8785_s7 + $0x4] ss:$8 sps:$4 sm:$0xff]  }
 0x452   :  { %3883 = vmatprep.subr.bf16.mxu1 %v6579_v7  ;;  %v6645_v7 = vld [vmem:[%s8785_s7 + $0x14] ss:$8 sps:$4 sm:$0xff]  }
 0x455   :  { %3884 = vmatpush1.bf16.msra.mxu1 %v6577_v8  ;;  %v6648_v8 = vld [vmem:[%s8785_s7 + $0x24] ss:$8 sps:$4 sm:$0xff]  }
 0x456   :  { %3885 = vmatprep.subr.bf16.mxu1 %v6582_v9  ;;  %v6646_v9 = vld [vmem:[%s8785_s7 + $0x20] ss:$8 sps:$4 sm:$0xff]  }
 0x459   :  { %3886 = vmatpush1.bf16.msra.mxu1 %v6580_v10  ;;  %v6651_v10 = vld [vmem:[%s8785_s7 + $0x34] ss:$8 sps:$4 sm:$0xff]  }
 0x45a   :  { %3887 = vmatprep.subr.bf16.mxu1 %v6585_v11  ;;  %v6649_v11 = vld [vmem:[%s8785_s7 + $0x30] ss:$8 sps:$4 sm:$0xff]  }
 0x45d   :  { %3888 = vmatpush1.bf16.msra.mxu1 %v6583_v12  ;;  %v6654_v12 = vld [vmem:[%s8785_s7 + $0x44] ss:$8 sps:$4 sm:$0xff]  }
 0x45e   :  { %3889 = vmatprep.subr.bf16.mxu1 %v6588_v13  ;;  %v6652_v13 = vld [vmem:[%s8785_s7 + $0x40] ss:$8 sps:$4 sm:$0xff]  }
 0x461   :  { %3890 = vmatpush1.bf16.msra.mxu1 %v6586_v16  ;;  %v6657_v16 = vld [vmem:[%s8785_s7 + $0x54] ss:$8 sps:$4 sm:$0xff]  }
 0x462   :  { %3891 = vmatprep.subr.bf16.mxu1 %v6591_v17  ;;  %v6655_v17 = vld [vmem:[%s8785_s7 + $0x50] ss:$8 sps:$4 sm:$0xff]  }
 0x465   :  { %3892 = vmatpush1.bf16.msra.mxu1 %v6589_v18  ;;  %v6660_v18 = vld [vmem:[%s8785_s7 + $0x64] ss:$8 sps:$4 sm:$0xff]  }
 0x466   :  { %4101 = vmatprep.subr.bf16.mxu1 %v6594_v19  ;;  %v6658_v19 = vld [vmem:[%s8785_s7 + $0x60] ss:$8 sps:$4 sm:$0xff]  }
 0x468   :  { %3894 = vmatmul.mubr.bf16.vlgmr.msra.gmra.mrb[28].mxu1 %v3697_v21  ;;  %v6661_v21 = vld [vmem:[%s8785_s7 + $0x70] ss:$8 sps:$4 sm:$0xff]  }
 0x469   :  { %4102 = vmatpush1.bf16.msra.mxu1 %v6592_v20  ;;  %4133 = vmatprep.mubr.bf16.mxu1 %v3938_v23  ;;  %v6663_v20 = vld [vmem:[%s8785_s7 + $0x74] ss:$8 sps:$4 sm:$0xff]   ;;  %v6664_v23 = vld [vmem:[%s8785_s7 + $0x80] ss:$8 sps:$4 sm:$0xff]  }
 0x46a   :  { %4103 = vmatprep.subr.bf16.mxu1 %v6597_v22  ;;  %v6666_v22 = vld [vmem:[%s8785_s7 + $0x84] ss:$8 sps:$4 sm:$0xff]  }
 0x46d   :  { %4104 = vmatpush1.bf16.msra.mxu1 %v6595_v24  ;;  %v6669_v24 = vld [vmem:[%s8785_s7 + $0x94] ss:$8 sps:$4 sm:$0xff]  }
 0x46e   :  { %4105 = vmatprep.subr.bf16.mxu1 %v6600_v25  ;;  %v6667_v25 = vld [vmem:[%s8785_s7 + $0x90] ss:$8 sps:$4 sm:$0xff]  }
 0x471   :  { %4106 = vmatpush1.bf16.msra.mxu1 %v6598_v27  ;;  %v6672_v27 = vld [vmem:[%s8785_s7 + $0xa4] ss:$8 sps:$4 sm:$0xff]  }
 0x472   :  { %4107 = vmatprep.subr.bf16.mxu1 %v6603_v15  ;;  %v6670_v15 = vld [vmem:[%s8785_s7 + $0xa0] ss:$8 sps:$4 sm:$0xff]  }
 0x475   :  { %4108 = vmatpush1.bf16.msra.mxu1 %v6601_v29  ;;  %v6675_v29 = vld [vmem:[%s8785_s7 + $0xb4] ss:$8 sps:$4 sm:$0xff]  }
 0x476   :  { %4109 = vmatprep.subr.bf16.mxu1 %v6606_v30  ;;  %v6673_v30 = vld [vmem:[%s8785_s7 + $0xb0] ss:$8 sps:$4 sm:$0xff]  }
 0x479   :  { %4110 = vmatpush1.bf16.msra.mxu1 %v6604_v31  ;;  %v6678_v31 = vld [vmem:[%s8785_s7 + $0xc4] ss:$8 sps:$4 sm:$0xff]  }
 0x47a   :  { %4111 = vmatprep.subr.bf16.mxu1 %v6609_v32  ;;  %v6676_v32 = vld [vmem:[%s8785_s7 + $0xc0] ss:$8 sps:$4 sm:$0xff]  }
 0x47b   :  { %v3175_v35 = vpop.f32.mrb[16].mxu1 }
 0x47c   :  { %v3182_v36 = vadd.f32 %v3175_v35, %v8444_v55  ;;  %v3177_v37 = vpop.f32.mrb[17].mxu1  ;;  %v6631_v55 = vld [vmem:[%s8782_s4 + $0x7d0] ss:$8 sps:$4 sm:$0xff]  }
 0x47d   :  { %v3183_v38 = vadd.f32 %v3177_v37, %v8447_v57  ;;  %v3179_v39 = vpop.f32.mrb[18].mxu1  ;;  %4112 = vmatpush1.bf16.msra.mxu1 %v6607_v33  ;;  %v6634_v57 = vld [vmem:[%s8782_s4 + $0x7e0] ss:$8 sps:$4 sm:$0xff]  }
 0x47e   :  { %v3180_v41 = vpop.f32.mrb[19].mxu1  ;;  %4113 = vmatprep.subr.bf16.mxu1 %v6612_v34  ;;  %v6681_v39 = vld [vmem:[%s8785_s7 + $0xd4] ss:$8 sps:$4 sm:$0xff]  }
 0x47f   :  { %v6684_v41 = vld [vmem:[%s8785_s7 + $0xe4] ss:$8 sps:$4 sm:$0xff]  }
 0x481   :  { %4114 = vmatpush1.bf16.msra.mxu1 %v6610_v40  ;;  %v6679_v40 = vld [vmem:[%s8785_s7 + $0xd0] ss:$8 sps:$4 sm:$0xff]  }
 0x482   :  { %4115 = vmatprep.subr.bf16.mxu1 %v6615_v42  ;;  %v6682_v42 = vld [vmem:[%s8785_s7 + $0xe0] ss:$8 sps:$4 sm:$0xff]  }
 0x485   :  { %4116 = vmatpush1.bf16.msra.mxu1 %v6613_v43  ;;  %v6687_v43 = vld [vmem:[%s8785_s7 + $0xf4] ss:$8 sps:$4 sm:$0xff]  }
 0x486   :  { %4117 = vmatprep.subr.bf16.mxu1 %v6618_v44  ;;  %v6685_v44 = vld [vmem:[%s8785_s7 + $0xf0] ss:$8 sps:$4 sm:$0xff]  }
 0x489   :  { %4118 = vmatpush1.bf16.msra.mxu1 %v6616_v45  ;;  %v6688_v45 = vld [vmem:[%s8787_s9 + $0x40] sm:$0xff]  }
 0x48a   :  { %4119 = vmatprep.subr.bf16.mxu1 %v6621_v48  ;;  %v6689_v48 = vld [vmem:[%s8787_s9] sm:$0xff]   ;;  %5722 = vmatprep.subr.bf16.mxu0 %v6688_v45 }
 0x48b   :  { %5723 = vmatpush3.bf16.msra.mxu0 %v6689_v48 }
 0x48d   :  { %4120 = vmatpush1.bf16.msra.mxu1 %v6619_v49  ;;  %v6690_v49 = vld [vmem:[%s8787_s9 + $0x48] sm:$0xff]  }
 0x48e   :  { %4121 = vmatprep.subr.bf16.mxu1 %v6624_v46  ;;  %v6691_v46 = vld [vmem:[%s8787_s9 + $0x8] sm:$0xff]   ;;  %5724 = vmatprep.subr.bf16.mxu0 %v6690_v49 }
 0x48f   :  { %5725 = vmatpush3.bf16.msra.mxu0 %v6691_v46 }
 0x491   :  { %4122 = vmatpush1.bf16.msra.mxu1 %v6622_v47  ;;  %v6692_v47 = vld [vmem:[%s8787_s9 + $0x50] sm:$0xff]  }
 0x492   :  { %4123 = vmatprep.subr.bf16.mxu1 %v6627_v50  ;;  %v6693_v50 = vld [vmem:[%s8787_s9 + $0x10] sm:$0xff]   ;;  %5726 = vmatprep.subr.bf16.mxu0 %v6692_v47 }
 0x493   :  { %5727 = vmatpush3.bf16.msra.mxu0 %v6693_v50 }
 0x495   :  { %4124 = vmatpush1.bf16.msra.mxu1 %v6625_v51  ;;  %v6694_v51 = vld [vmem:[%s8787_s9 + $0x58] sm:$0xff]  }
 0x496   :  { %4125 = vmatprep.subr.bf16.mxu1 %v6630_v52  ;;  %v6695_v52 = vld [vmem:[%s8787_s9 + $0x18] sm:$0xff]   ;;  %5728 = vmatprep.subr.bf16.mxu0 %v6694_v51 }
 0x497   :  { %5729 = vmatpush3.bf16.msra.mxu0 %v6695_v52 }
 0x499   :  { %4126 = vmatpush1.bf16.msra.mxu1 %v6628_v53  ;;  %v6696_v53 = vld [vmem:[%s8787_s9 + $0x60] sm:$0xff]  }
 0x49a   :  { %4127 = vmatprep.subr.bf16.mxu1 %v6633_v54  ;;  %v6697_v54 = vld [vmem:[%s8787_s9 + $0x20] sm:$0xff]   ;;  %5730 = vmatprep.subr.bf16.mxu0 %v6696_v53 }
 0x49b   :  { %5731 = vmatpush3.bf16.msra.mxu0 %v6697_v54 }
 0x49d   :  { %4128 = vmatpush1.bf16.msra.mxu1 %v6631_v55  ;;  %v6698_v55 = vld [vmem:[%s8787_s9 + $0x68] sm:$0xff]  }
 0x49e   :  { %4129 = vmatprep.subr.bf16.mxu1 %v6636_v56  ;;  %v6699_v56 = vld [vmem:[%s8787_s9 + $0x28] sm:$0xff]   ;;  %5732 = vmatprep.subr.bf16.mxu0 %v6698_v55 }
 0x49f   :  { %5733 = vmatpush3.bf16.msra.mxu0 %v6699_v56 }
 0x4a1   :  { %4130 = vmatpush1.bf16.msra.mxu1 %v6634_v57 }
 0x4a2   :  { %4131 = vmatprep.subr.bf16.mxu1 %v6639_v58 }
 0x4a5   :  { %4132 = vmatpush1.bf16.msra.mxu1 %v6637_v59 }
 0x4a6   :  { %4602 = vmatprep.subr.bf16.mxu1 %v6642_v6 }
 0x4a8   :  { %4134 = vmatmul.mubr.bf16.vlgmr.msra.gmra.mrb[32].mxu1 %v3937_v60 }
 0x4a9   :  { %4603 = vmatpush1.bf16.msra.mxu1 %v6640_v5 }
 0x4aa   :  { %4604 = vmatprep.subr.bf16.mxu1 %v6645_v7 }
 0x4ad   :  { %4605 = vmatpush1.bf16.msra.mxu1 %v6643_v14 }
 0x4ae   :  { %4606 = vmatprep.subr.bf16.mxu1 %v6648_v8 }
 0x4b1   :  { %4607 = vmatpush1.bf16.msra.mxu1 %v6646_v9 }
 0x4b2   :  { %4608 = vmatprep.subr.bf16.mxu1 %v6651_v10 }
 0x4b5   :  { %4609 = vmatpush1.bf16.msra.mxu1 %v6649_v11 }
 0x4b6   :  { %4610 = vmatprep.subr.bf16.mxu1 %v6654_v12 }
 0x4b9   :  { %4611 = vmatpush1.bf16.msra.mxu1 %v6652_v13 }
 0x4ba   :  { %4612 = vmatprep.subr.bf16.mxu1 %v6657_v16 }
 0x4bb   :  { %v3415_v62 = vpop.f32.mrb[20].mxu1 }
 0x4bc   :  { %v3422_v0 = vadd.f32 %v3415_v62, %v3182_v36  ;;  %v3417_v1 = vpop.f32.mrb[21].mxu1 }
 0x4bd   :  { %v3423_v2 = vadd.f32 %v3417_v1, %v3183_v38  ;;  %v3419_v3 = vpop.f32.mrb[22].mxu1  ;;  %4613 = vmatpush1.bf16.msra.mxu1 %v6655_v17  ;;  %v4380_v1 = vld [vmem:[%s8784_s6] sm:$0x3] }
 0x4be   :  { %v3420_v4 = vpop.f32.mrb[23].mxu1  ;;  %4614 = vmatprep.subr.bf16.mxu1 %v6660_v18  ;;  %v4389_v7 = vrot.slane %v4380_v1, %v7886_v63 }
 0x4bf   :  { %v4385_v4 = vrot.slane %v4380_v1, %v7881_v61 }
 0x4c1   :  { %4615 = vmatpush1.bf16.msra.mxu1 %v6658_v19  ;;  %v6700_v19 = vld [vmem:[%s8787_s9 + $0x70] sm:$0xff]  }
 0x4c2   :  { %4616 = vmatprep.subr.bf16.mxu1 %v6663_v20  ;;  %v6701_v20 = vld [vmem:[%s8787_s9 + $0x30] sm:$0xff]   ;;  %5734 = vmatprep.subr.bf16.mxu0 %v6700_v19 }
 0x4c3   :  { %5735 = vmatpush3.bf16.msra.mxu0 %v6701_v20 }
 0x4c5   :  { %4617 = vmatpush1.bf16.msra.mxu1 %v6661_v21  ;;  %v4430_v21 = vld [vmem:[%s8786_s8] sm:$0x3]  ;;  %s6729_s8 = smov [#allocation2]  }
 0x4c6   :  { %4618 = vmatprep.subr.bf16.mxu1 %v6666_v22  ;;  %v4435_v22 = vrot.slane %v4430_v21, %v7881_v61  ;;  %s4830_s29 = sshll.u32 %s6729_s8, 4  ;;  %s4831_s29 = int_to_ptr.vmem [resolvable:$true] %s4830_s29 }
 0x4c7   :  { %s6704_s0 = scalar_lea.vmem %s4831_s29, 32  ;;  %p6709_p1 = scmp.lt.s32.totalorder %s4831_s29, %s4831_s29 }
 0x4c8   :  { %p6705_p0 = scmp.ne.s32.totalorder %s4831_s29, %s6704_s0  ;;  %p6710_p2 = scmp.lt.s32.totalorder %s6704_s0, %s6704_s0 }
 0x4c9   :  { %4619 = vmatpush1.bf16.msra.mxu1 %v6664_v23  ;;  %v4439_v23 = vrot.slane %v4430_v21, %v7886_v63 }
 0x4ca   :  { %4620 = vmatprep.subr.bf16.mxu1 %v6669_v24  ;;  %p6711_p3 = por %p6710_p2, %p6709_p1 }
 0x4cc   :  { %p6712_p4 = pnand %p6711_p3, %p6705_p0 }
 0x4cd   :  { %4621 = vmatpush1.bf16.msra.mxu1 %v6667_v25 }
 0x4ce   :  { %4622 = vmatprep.subr.bf16.mxu1 %v6672_v27 }
 0x4d1   :  { %4623 = vmatpush1.bf16.msra.mxu1 %v6670_v15 }
 0x4d2   :  { %4624 = vmatprep.subr.bf16.mxu1 %v6675_v29 }
 0x4d5   :  { %4625 = vmatpush1.bf16.msra.mxu1 %v6673_v30 }
 0x4d6   :  { %4626 = vmatprep.subr.bf16.mxu1 %v6678_v31 }
 0x4d9   :  { %4627 = vmatpush1.bf16.msra.mxu1 %v6676_v32 }
 0x4da   :  { %4628 = vmatprep.subr.bf16.mxu1 %v6681_v39 }
 0x4dd   :  { %4629 = vmatpush1.bf16.msra.mxu1 %v6679_v40 }
 0x4de   :  { %4630 = vmatprep.subr.bf16.mxu1 %v6684_v41 }
 0x4e1   :  { %4631 = vmatpush1.bf16.msra.mxu1 %v6682_v42 }
 0x4e2   :  { %4632 = vmatprep.subr.bf16.mxu1 %v6687_v43 }
 0x4e5   :  { %4633 = vmatpush1.bf16.msra.mxu1 %v6685_v44 }
 0x4fb   :  { %v3655_v33 = vpop.f32.mrb[24].mxu1 }
 0x4fc   :  { %v3662_v34 = vadd.f32 %v3655_v33, %v3422_v0  ;;  %v3657_v35 = vpop.f32.mrb[25].mxu1 }
 0x4fd   :  { %v3663_v36 = vadd.f32 %v3657_v35, %v3423_v2  ;;  %v3659_v37 = vpop.f32.mrb[26].mxu1 }
 0x4fe   :  { %v3660_v38 = vpop.f32.mrb[27].mxu1 }
 0x53b   :  { %v3895_v57 = vpop.f32.mrb[28].mxu1 }
 0x53c   :  { %v3902_v58 = vadd.f32 %v3895_v57, %v3662_v34  ;;  %v3897_v59 = vpop.f32.mrb[29].mxu1 }
 0x53d   :  { %v3903_v60 = vadd.f32 %v3897_v59, %v3663_v36  ;;  %v3899_v62 = vpop.f32.mrb[30].mxu1  ;;  %v5705_v36 = vld [vmem:[%s8788_s10] ss:$0 sm:$0xff] }
 0x53e   :  { %v3900_v0 = vpop.f32.mrb[31].mxu1 }
 0x57b   :  { %v4135_v2 = vpop.f32.mrb[32].mxu1 }
 0x57c   :  { %v4142_v3 = vadd.f32 %v4135_v2, %v3902_v58  ;;  %v4137_v5 = vpop.f32.mrb[33].mxu1 }
 0x57d   :  { %v4143_v6 = vadd.f32 %v4137_v5, %v3903_v60  ;;  %v4139_v14 = vpop.f32.mrb[34].mxu1 }
 0x57e   :  { %v4378_v8 = vadd.f32 %v8227_v26, %v4142_v3  ;;  %v4140_v9 = vpop.f32.mrb[35].mxu1  ;;  %v6702_v26 = vld [vmem:[%s8787_s9 + $0x78] sm:$0xff]  }
 0x57f   :  { %v4379_v10 = vadd.f32 %v8232_v28, %v4143_v6  ;;  %v6703_v28 = vld [vmem:[%s8787_s9 + $0x38] sm:$0xff]   ;;  %5736 = vmatprep.subr.bf16.mxu0 %v6702_v26 }
 0x580   :  { %v4392_v11 = vadd.f32 %v4385_v4, %v4378_v8  ;;  %5737 = vmatpush3.bf16.msra.mxu0 %v6703_v28 }
 0x581   :  { %v4393_v12 = vadd.f32 %v4389_v7, %v4379_v10 }
 0x582   :  { %v4394_v13 = vmax.f32 %v4392_v11, 0.0 }
 0x583   :  { %v4395_v16 = vmax.f32 %v4393_v12, 0.0 }
 0x584   :  { %v4396_v18 = vpack.c.bf16 %v4394_v13, %v4394_v13 }
 0x585   :  { %v4397_v17 = vpack.c.bf16 %v4395_v16, %v4395_v16 }
 0x587   :  { %4634 = vmatprep.mubr.bf16.mxu1 %v4397_v17 }
 0x588   :  { %4635 = vmatmul.mubr.bf16.vlgmr.msra.gmra.mrb[36].mxu1 %v4396_v18 }
 0x65b   :  { %v4636_v24 = vpop.f32.mrb[36].mxu1 }
 0x65c   :  { %v4637_v25 = vadd.f32 %v4636_v24, %v4435_v22  ;;  %v4638_v27 = vpop.f32.mrb[37].mxu1 }
 0x65d   :  { %v4639_v15 = vadd.f32 %v4638_v27, %v4439_v23  ;;  %v4640_v29 = vpop.f32.mrb[38].mxu1 }
 0x65e   :  { %v4643_v30 = vmax.f32 %v4637_v25, 0.0  ;;  %v4641_v31 = vpop.f32.mrb[39].mxu1 }
 0x65f   :  { %v4644_v32 = vmax.f32 %v4639_v15, 0.0 }
 0x660   :  { %v4645_v34 = vpack.c.bf16 %v4643_v30, %v4643_v30 }
 0x661   :  { %v4646_v33 = vpack.c.bf16 %v4644_v32, %v4644_v32 }
 0x663   :  { %4814 = vmatprep.mubr.bf16.mxu0 %v4646_v33 }
 0x664   :  { %4815 = vmatmul.mubr.bf16.vlgmr.msra.gmra.mrb[12].mxu0 %v4645_v34 }
 0x737   :  { %v5738_v35 = vpop.f32.mrb[12].mxu0 }
 0x738   :  { %v5739_v61 = vpop.f32.mrb[13].mxu0 }
 0x739   :  { %v5740_v63 = vadd.f32 %v5739_v61, %v5738_v35  ;;  %v5741_v37 = vpop.f32.mrb[14].mxu0 }
 0x73a   :  { %v5742_v38 = vpop.f32.mrb[15].mxu0 }
 0x73b   :  { %v4817_v39 = vadd.f32 %v5740_v63, %v5705_v36 }
 0x73d   :  { %4823 = vst.msk [vmem:[#allocation2] sm:$0x3] %vm4822_vm2, %v4817_v39 }
 0x73e   :  { %6715 = shalt.err (!%p6712_p4)
}
 0x73f   :  { %s6716_s10 = scalar_lea.hbm %s8789_s11, 32 }
 0x740   :  { %p6717_p5 = scmp.ne.s32.totalorder %s8789_s11, %s6716_s10  ;;  %p6720_p6 = scmp.lt.u32.totalorder %s6716_s10, %s8789_s11 }
 0x742   :  { %p6722_p7 = pnand %p6720_p6, %p6717_p5 }
 0x744   :  { %6725 = shalt.err (!%p6722_p7)
}
 0x745   :  { %4833 = dma.vmem_to_hbm [thread:$0]  %s4831_s29, 32, %s8789_s11, [#allocation3]  }
 0x746   :  { %6726 = dma.done.wait [#allocation3], 32  }
 0x747   :  { %6727 = vsyncadd [#allocation3], 4294967264 }
 0x748   :  { %4837 = vsyncpa [#allocation3], 1 }

</bundles_post_ra>
